<compile_context>
chip_gen: v5e
topology: v5e:2x2
jax: 0.10.0
libtpu: 0.0.40
codegen_flags: <defaults>
</compile_context>

<pallas_src>
import functools
import math

import numpy as np

import jax
import jax.numpy as jnp
from jax import lax
from jax.experimental import pallas as pl
from jax.experimental.pallas import tpu as pltpu


# ----------------------------- configuration --------------------------------
SR = 22050
N_MFCC = 16          # constructor arg n_mfcc (small for the demo)
N_MELS = 32          # constructor arg n_mels
N_FFT = 256          # constructor arg n_ftt
HOP = 64             # constructor arg hop_length
GRU_FEATURES = 128   # constructor arg gru_features
TIMBRE_ENC_SIZE = 16 # constructor arg timbre_enc_size
F_MIN, F_MAX = 20.0, 8000.0

BATCH = 2
N_SAMPLES = 1024
N_FREQS = N_FFT // 2 + 1
N_FRAMES = N_SAMPLES // HOP + 1                 # torch.stft(center=True)
NFP = ((N_FREQS + 127) // 128) * 128            # freq axis padded to 128 lanes (=256)


# ----------------------- host-side constant builders ------------------------
def hann_window(n):
    k = np.arange(n)
    return 0.5 - 0.5 * np.cos(2.0 * np.pi * k / n)   # periodic hann (torch default)


def dft_matrices(n_fft):
    n_freqs = n_fft // 2 + 1
    n = np.arange(n_fft)[:, None].astype(np.float64)
    k = np.arange(n_freqs)[None, :].astype(np.float64)
    ang = 2.0 * np.pi * n * k / n_fft
    w = hann_window(n_fft)[:, None]
    wc = (w * np.cos(ang)).astype(np.float32)   # window baked into the DFT basis
    ws = (w * np.sin(ang)).astype(np.float32)   # sign irrelevant (squared later)
    return wc, ws


def melscale_fbanks(n_freqs, f_min, f_max, n_mels, sr):
    # torchaudio.functional.melscale_fbanks, mel_scale="htk", norm=None
    all_freqs = np.linspace(0.0, sr // 2, n_freqs)

    def hz_to_mel(f):
        return 2595.0 * np.log10(1.0 + f / 700.0)

    def mel_to_hz(m):
        return 700.0 * (10.0 ** (m / 2595.0) - 1.0)

    m_pts = np.linspace(hz_to_mel(f_min), hz_to_mel(f_max), n_mels + 2)
    f_pts = mel_to_hz(m_pts)
    f_diff = f_pts[1:] - f_pts[:-1]
    slopes = f_pts[None, :] - all_freqs[:, None]
    down = -slopes[:, :-2] / f_diff[:-1]
    up = slopes[:, 2:] / f_diff[1:]
    fb = np.maximum(0.0, np.minimum(down, up))
    return fb.astype(np.float32)                             # (n_freqs, n_mels)


def create_dct(n_mfcc, n_mels):
    # torchaudio.functional.create_dct(norm="ortho"), returned transposed: (n_mels, n_mfcc)
    n = np.arange(n_mels)[None, :].astype(np.float64)
    k = np.arange(n_mfcc)[:, None].astype(np.float64)
    dct = np.cos(np.pi / n_mels * (n + 0.5) * k)
    dct[0] *= 1.0 / math.sqrt(2.0)
    dct *= math.sqrt(2.0 / n_mels)
    return dct.T.astype(np.float32)


def frame_signal(x, n_fft, hop):
    # torch.stft(center=True, pad_mode="reflect") framing (glue: gather in plain JAX)
    b, n = x.shape
    pad = n_fft // 2
    xp = jnp.pad(x, ((0, 0), (pad, pad)), mode="reflect")
    t = n // hop + 1
    idx = jnp.arange(t)[:, None] * hop + jnp.arange(n_fft)[None, :]
    return xp[:, idx]                                         # (B, T, n_fft)


def build_constants():
    wc, ws = dft_matrices(N_FFT)
    fb = melscale_fbanks(N_FREQS, F_MIN, F_MAX, N_MELS, SR)
    dct = create_dct(N_MFCC, N_MELS)

    # combined, lane-aligned windowed DFT basis [cos | sin], zero-padded to NFP each
    w_dft = np.zeros((N_FFT, 2 * NFP), np.float32)
    w_dft[:, :N_FREQS] = wc
    w_dft[:, NFP:NFP + N_FREQS] = ws
    fb_pad = np.zeros((NFP, N_MELS), np.float32)
    fb_pad[:N_FREQS, :] = fb

    t, b = N_FRAMES, BATCH
    # batch-id one-hot for batch-major rows (segmented instance-norm statistics)
    seg = np.zeros((b * t, b), np.float32)
    for bi in range(b):
        seg[bi * t:(bi + 1) * t, bi] = 1.0
    # batch-major <-> time-major permutations, applied as matmuls inside the kernel
    perm_tm = np.zeros((t * b, b * t), np.float32)
    for ti in range(t):
        for bi in range(b):
            perm_tm[ti * b + bi, bi * t + ti] = 1.0

    kconsts = dict(
        w_dft=jnp.asarray(w_dft), fb=jnp.asarray(fb_pad), dct=jnp.asarray(dct),
        seg=jnp.asarray(seg), segT=jnp.asarray(seg.T),
        ptm=jnp.asarray(perm_tm), pbm=jnp.asarray(perm_tm.T))
    rconsts = (jnp.asarray(wc), jnp.asarray(ws), jnp.asarray(fb), jnp.asarray(dct))
    return kconsts, rconsts


# --------------------------- fused Pallas kernel ------------------------------
def timbre_kernel(frames_ref, wdft_ref, fb_ref, dct_ref, gamma_ref, beta_ref,
                  segT_ref, seg_ref, ptm_ref, pbm_ref,
                  wih_ref, bin_ref, whhf_ref, whhb_ref, bhhnf_ref, bhhnb_ref,
                  wlin_ref, blin_ref,
                  out_ref,
                  gxf_s, gxb_s, hf_s, hb_s,
                  *, t_len, batch, hidden, nfp):
    f32 = jnp.float32
    T, B, H = t_len, batch, hidden

    # ---- MFCC for all B*T frames at once (batch-major rows b*T + t) ----
    spec = jnp.dot(frames_ref[...], wdft_ref[...], preferred_element_type=f32)  # (BT, 2*nfp)
    re, im = spec[:, :nfp], spec[:, nfp:]
    power = re * re + im * im                                                    # |STFT|^2
    mel = jnp.dot(power, fb_ref[...], preferred_element_type=f32)                # (BT, n_mels)
    logmel = jnp.log(mel + 1e-6)                                                 # log_mels=True
    mfcc = jnp.dot(logmel, dct_ref[...], preferred_element_type=f32)             # (BT, C)

    # ---- InstanceNorm1d over time (per batch/channel, biased var, eps=1e-5) ----
    segT, seg = segT_ref[...], seg_ref[...]
    inv_t = 1.0 / T
    mean = jnp.dot(segT, mfcc, preferred_element_type=f32) * inv_t               # (B, C)
    d = mfcc - jnp.dot(seg, mean, preferred_element_type=f32)
    var = jnp.dot(segT, d * d, preferred_element_type=f32) * inv_t               # (B, C)
    var_bt = jnp.dot(seg, var, preferred_element_type=f32)
    feat = d * lax.rsqrt(var_bt + 1e-5) * gamma_ref[...] + beta_ref[...]         # (BT, C)

    # ---- hoisted GRU input projection: all timesteps, both directions, one matmul
    feat_tm = jnp.dot(ptm_ref[...], feat, preferred_element_type=f32)            # time-major (TB, C)
    gx = jnp.dot(feat_tm, wih_ref[...], preferred_element_type=f32) + bin_ref[...]  # (TB, 6H)
    gxf_s[...] = gx[:, :3 * H]
    gxb_s[...] = gx[:, 3 * H:]

    # hoisted loop-invariant n-gate hidden biases (broadcast once, not per step)
    bhh_nf = jnp.broadcast_to(bhhnf_ref[...], (B, H))
    bhh_nb = jnp.broadcast_to(bhhnb_ref[...], (B, H))

    def cell(gxd, h, whh_ref, bhh_n):
        # PyTorch GRU, gate order [r | z | n]; input-side + r/z hidden biases prefolded.
        gh = jnp.dot(h, whh_ref[...], preferred_element_type=f32)                # (B, 3H)
        r = jax.nn.sigmoid(gxd[:, 0:H] + gh[:, 0:H])
        z = jax.nn.sigmoid(gxd[:, H:2 * H] + gh[:, H:2 * H])
        n = jnp.tanh(gxd[:, 2 * H:] + r * (gh[:, 2 * H:] + bhh_n))
        return (1.0 - z) * n + z * h

    # ---- fully unrolled, interleaved fwd/bwd recurrence --------------------
    # T is small and static, so unroll at trace time: every slice start below is a
    # compile-time constant (static sublane slices, no scalar address chain) and the
    # independent fwd/bwd chains hide each other's MXU/EUP latency. Live state per
    # step is only the two (B, H) carries, so unrolling adds no register pressure.
    h_f = jnp.zeros((B, H), f32)
    h_b = jnp.zeros((B, H), f32)
    for s in range(T):
        tb = T - 1 - s
        h_f = cell(gxf_s[pl.ds(s * B, B), :], h_f, whhf_ref, bhh_nf)
        h_b = cell(gxb_s[pl.ds(tb * B, B), :], h_b, whhb_ref, bhh_nb)
        hf_s[pl.ds(s * B, B), :] = h_f
        hb_s[pl.ds(tb * B, B), :] = h_b

    # ---- hoisted output Linear over all timesteps (split halves: no concat) ----
    wl = wlin_ref[...]                                                            # (2H, E)
    out_tm = (jnp.dot(hf_s[...], wl[:H], preferred_element_type=f32)
              + jnp.dot(hb_s[...], wl[H:], preferred_element_type=f32)
              + blin_ref[...])                                                    # (TB, E)
    # back to batch-major so the wrapper only needs a metadata reshape
    out_ref[...] = jnp.dot(pbm_ref[...], out_tm, preferred_element_type=f32)      # (BT, E)


def timbre_encoder_forward(x, kconsts, params):
    b, _ = x.shape
    frames = frame_signal(x, N_FFT, HOP)                      # (B, T, n_fft)
    t = frames.shape[1]
    frames_bm = frames.reshape(b * t, N_FFT)                  # batch-major rows b*T + t

    h = GRU_FEATURES
    # Fold input bias + r/z hidden biases into one per-direction additive bias;
    # the n-gate hidden bias must stay inside the recurrence (multiplied by r).
    zeros_h = jnp.zeros((1, h), jnp.float32)
    bias_f = params["bih_f"] + jnp.concatenate([params["bhh_f"][:, :2 * h], zeros_h], axis=1)
    bias_b = params["bih_b"] + jnp.concatenate([params["bhh_b"][:, :2 * h], zeros_h], axis=1)
    wih_cat = jnp.concatenate([params["wih_f"], params["wih_b"]], axis=1)   # (C, 6H)
    bias_cat = jnp.concatenate([bias_f, bias_b], axis=1)                    # (1, 6H)
    bhh_nf = params["bhh_f"][:, 2 * h:]
    bhh_nb = params["bhh_b"][:, 2 * h:]

    kernel = functools.partial(timbre_kernel, t_len=t, batch=b, hidden=h, nfp=NFP)
    vmem = pl.BlockSpec(memory_space=pltpu.MemorySpace.VMEM)
    out_bm = pl.pallas_call(
        kernel,
        out_shape=jax.ShapeDtypeStruct((b * t, TIMBRE_ENC_SIZE), jnp.float32),
        in_specs=[vmem] * 18,
        out_specs=vmem,
        scratch_shapes=[
            pltpu.VMEM((t * b, 3 * h), jnp.float32),   # fwd input-gate projections (time-major)
            pltpu.VMEM((t * b, 3 * h), jnp.float32),   # bwd input-gate projections (time-major)
            pltpu.VMEM((t * b, h), jnp.float32),       # fwd hidden states (time-major)
            pltpu.VMEM((t * b, h), jnp.float32),       # bwd hidden states (time-major)
        ],
    )(frames_bm, kconsts["w_dft"], kconsts["fb"], kconsts["dct"],
      params["gamma"], params["beta"],
      kconsts["segT"], kconsts["seg"], kconsts["ptm"], kconsts["pbm"],
      wih_cat, bias_cat, params["whh_f"], params["whh_b"], bhh_nf, bhh_nb,
      params["wlin"], params["blin"])
    return out_bm.reshape(b, t, TIMBRE_ENC_SIZE)               # (B, T, timbre_enc_size)


# ------------------------ pure-JAX reference (checking) ----------------------
def reference_forward(x, consts, params):
    wc, ws, fb, dct = consts
    hi = lax.Precision.HIGHEST
    frames = frame_signal(x, N_FFT, HOP)
    re = jnp.einsum("btn,nf->btf", frames, wc, precision=hi)
    im = jnp.einsum("btn,nf->btf", frames, ws, precision=hi)
    power = re * re + im * im
    mel = jnp.einsum("btf,fm->btm", power, fb, precision=hi)
    logmel = jnp.log(mel + 1e-6)
    mfcc = jnp.einsum("btm,mc->btc", logmel, dct, precision=hi)              # (B, T, C)
    mean = jnp.mean(mfcc, axis=1, keepdims=True)
    var = jnp.mean(jnp.square(mfcc - mean), axis=1, keepdims=True)
    xn = (mfcc - mean) * lax.rsqrt(var + 1e-5)
    xn = xn * params["gamma"] + params["beta"]

    h_dim = GRU_FEATURES

    def run_dir(xs, wih, whh, bih, bhh, reverse):
        seq = xs[:, ::-1, :] if reverse else xs

        def step(h, xt):
            gx = jnp.dot(xt, wih, precision=hi) + bih
            gh = jnp.dot(h, whh, precision=hi) + bhh
            r = jax.nn.sigmoid(gx[:, :h_dim] + gh[:, :h_dim])
            z = jax.nn.sigmoid(gx[:, h_dim:2 * h_dim] + gh[:, h_dim:2 * h_dim])
            n = jnp.tanh(gx[:, 2 * h_dim:] + r * gh[:, 2 * h_dim:])
            h_new = (1.0 - z) * n + z * h
            return h_new, h_new

        h0 = jnp.zeros((xs.shape[0], h_dim), jnp.float32)
        _, hs = lax.scan(step, h0, jnp.swapaxes(seq, 0, 1))
        hs = jnp.swapaxes(hs, 0, 1)
        return hs[:, ::-1, :] if reverse else hs

    hf = run_dir(xn, params["wih_f"], params["whh_f"], params["bih_f"], params["bhh_f"], False)
    hb = run_dir(xn, params["wih_b"], params["whh_b"], params["bih_b"], params["bhh_b"], True)
    h = jnp.concatenate([hf, hb], axis=-1)
    return jnp.dot(h, params["wlin"], precision=hi) + params["blin"]


# ------------------------------ parameter init --------------------------------
def init_params(key):
    h, c, e = GRU_FEATURES, N_MFCC, TIMBRE_ENC_SIZE
    ks = jax.random.split(key, 12)
    s_ih = 1.0 / math.sqrt(h)
    s_lin = 1.0 / math.sqrt(2 * h)

    def u(k, shape, s):
        return jax.random.uniform(k, shape, jnp.float32, -s, s)

    return dict(
        gamma=1.0 + 0.1 * jax.random.normal(ks[0], (1, c), jnp.float32),
        beta=0.1 * jax.random.normal(ks[1], (1, c), jnp.float32),
        # GRU weights stored pre-transposed: (in_features, 3H) / (H, 3H), gate order [r|z|n]
        wih_f=u(ks[2], (c, 3 * h), s_ih),
        whh_f=u(ks[3], (h, 3 * h), s_ih),
        bih_f=u(ks[4], (1, 3 * h), s_ih),
        bhh_f=u(ks[5], (1, 3 * h), s_ih),
        wih_b=u(ks[6], (c, 3 * h), s_ih),
        whh_b=u(ks[7], (h, 3 * h), s_ih),
        bih_b=u(ks[8], (1, 3 * h), s_ih),
        bhh_b=u(ks[9], (1, 3 * h), s_ih),
        # Linear stored pre-transposed: (2H, E)
        wlin=u(ks[10], (2 * h, e), s_lin),
        blin=u(ks[11], (1, e), s_lin),
    )


if __name__ == "__main__":
    key = jax.random.PRNGKey(0)
    k_x, k_p = jax.random.split(key)
    x = jax.random.normal(k_x, (BATCH, N_SAMPLES), jnp.float32)
    params = init_params(k_p)
    kconsts, rconsts = build_constants()

    fwd = jax.jit(functools.partial(timbre_encoder_forward, kconsts=kconsts, params=params))
    out = jax.block_until_ready(fwd(x))
    assert out.shape == (BATCH, N_FRAMES, TIMBRE_ENC_SIZE), out.shape

    ref = jax.block_until_ready(reference_forward(x, rconsts, params))
    np.testing.assert_allclose(np.asarray(out), np.asarray(ref), rtol=5e-3, atol=5e-3)

    print("KERNEL_OK")
</pallas_src>

<mosaic_0001>
module attributes {stable_mosaic.version = 11 : i64} {
  func.func @timbre_kernel(%arg0: memref<34x256xf32, #tpu.memory_space<vmem>>, %arg1: memref<256x512xf32, #tpu.memory_space<vmem>>, %arg2: memref<256x32xf32, #tpu.memory_space<vmem>>, %arg3: memref<32x16xf32, #tpu.memory_space<vmem>>, %arg4: memref<1x16xf32, #tpu.memory_space<vmem>>, %arg5: memref<1x16xf32, #tpu.memory_space<vmem>>, %arg6: memref<2x34xf32, #tpu.memory_space<vmem>>, %arg7: memref<34x2xf32, #tpu.memory_space<vmem>>, %arg8: memref<34x34xf32, #tpu.memory_space<vmem>>, %arg9: memref<34x34xf32, #tpu.memory_space<vmem>>, %arg10: memref<16x768xf32, #tpu.memory_space<vmem>>, %arg11: memref<1x768xf32, #tpu.memory_space<vmem>>, %arg12: memref<128x384xf32, #tpu.memory_space<vmem>>, %arg13: memref<128x384xf32, #tpu.memory_space<vmem>>, %arg14: memref<1x128xf32, #tpu.memory_space<vmem>>, %arg15: memref<1x128xf32, #tpu.memory_space<vmem>>, %arg16: memref<256x16xf32, #tpu.memory_space<vmem>>, %arg17: memref<1x16xf32, #tpu.memory_space<vmem>>, %arg18: memref<34x16xf32, #tpu.memory_space<vmem>>, %arg19: memref<34x384xf32, #tpu.memory_space<vmem>>, %arg20: memref<34x384xf32, #tpu.memory_space<vmem>>, %arg21: memref<34x128xf32, #tpu.memory_space<vmem>>, %arg22: memref<34x128xf32, #tpu.memory_space<vmem>>) attributes {dimension_semantics = [], scalar_prefetch = 0 : i64, scratch_operands = 4 : i64, tpu.core_type = #tpu.core_type<tc>} {
    %c0 = arith.constant 0 : index
    %c0_0 = arith.constant 0 : index
    %0 = vector.load %arg0[%c0, %c0_0] : memref<34x256xf32, #tpu.memory_space<vmem>>, vector<34x256xf32>
    %c0_1 = arith.constant 0 : index
    %c0_2 = arith.constant 0 : index
    %1 = vector.load %arg1[%c0_1, %c0_2] : memref<256x512xf32, #tpu.memory_space<vmem>>, vector<256x512xf32>
    %cst = arith.constant dense<0.000000e+00> : vector<34x512xf32>
    %2 = tpu.matmul %0, %1, %cst {dimension_numbers = #tpu.dot_dimension_numbers<[1], [0], [0], [1], [0, 0, 1, 1], [], []>} : vector<34x256xf32>, vector<256x512xf32>, vector<34x512xf32> -> vector<34x512xf32>
    %3 = vector.extract_strided_slice %2 {offsets = [0, 0], sizes = [34, 256], strides = [1, 1]} : vector<34x512xf32> to vector<34x256xf32>
    %4 = vector.extract_strided_slice %2 {offsets = [0, 256], sizes = [34, 256], strides = [1, 1]} : vector<34x512xf32> to vector<34x256xf32>
    %5 = arith.mulf %3, %3 : vector<34x256xf32>
    %6 = arith.mulf %4, %4 : vector<34x256xf32>
    %7 = arith.addf %5, %6 : vector<34x256xf32>
    %c0_3 = arith.constant 0 : index
    %c0_4 = arith.constant 0 : index
    %8 = vector.load %arg2[%c0_3, %c0_4] : memref<256x32xf32, #tpu.memory_space<vmem>>, vector<256x32xf32>
    %cst_5 = arith.constant dense<0.000000e+00> : vector<34x32xf32>
    %9 = tpu.matmul %7, %8, %cst_5 {dimension_numbers = #tpu.dot_dimension_numbers<[1], [0], [0], [1], [0, 0, 1, 1], [], []>} : vector<34x256xf32>, vector<256x32xf32>, vector<34x32xf32> -> vector<34x32xf32>
    %cst_6 = arith.constant 9.99999997E-7 : f32
    %10 = vector.broadcast %cst_6 : f32 to vector<34x32xf32>
    %11 = arith.addf %9, %10 : vector<34x32xf32>
    %12 = math.log %11 : vector<34x32xf32>
    %c0_7 = arith.constant 0 : index
    %c0_8 = arith.constant 0 : index
    %13 = vector.load %arg3[%c0_7, %c0_8] : memref<32x16xf32, #tpu.memory_space<vmem>>, vector<32x16xf32>
    %cst_9 = arith.constant dense<0.000000e+00> : vector<34x16xf32>
    %14 = tpu.matmul %12, %13, %cst_9 {dimension_numbers = #tpu.dot_dimension_numbers<[1], [0], [0], [1], [0, 0, 1, 1], [], []>} : vector<34x32xf32>, vector<32x16xf32>, vector<34x16xf32> -> vector<34x16xf32>
    %c0_10 = arith.constant 0 : index
    %c0_11 = arith.constant 0 : index
    %15 = vector.load %arg6[%c0_10, %c0_11] : memref<2x34xf32, #tpu.memory_space<vmem>>, vector<2x34xf32>
    %c0_12 = arith.constant 0 : index
    %c0_13 = arith.constant 0 : index
    %16 = vector.load %arg7[%c0_12, %c0_13] : memref<34x2xf32, #tpu.memory_space<vmem>>, vector<34x2xf32>
    %cst_14 = arith.constant dense<0.000000e+00> : vector<2x16xf32>
    %17 = tpu.matmul %15, %14, %cst_14 {dimension_numbers = #tpu.dot_dimension_numbers<[1], [0], [0], [1], [0, 0, 1, 1], [], []>} : vector<2x34xf32>, vector<34x16xf32>, vector<2x16xf32> -> vector<2x16xf32>
    %cst_15 = arith.constant 0.0588235296 : f32
    %18 = vector.broadcast %cst_15 : f32 to vector<2x16xf32>
    %19 = arith.mulf %17, %18 : vector<2x16xf32>
    %cst_16 = arith.constant dense<0.000000e+00> : vector<34x16xf32>
    %20 = tpu.matmul %16, %19, %cst_16 {dimension_numbers = #tpu.dot_dimension_numbers<[1], [0], [0], [1], [0, 0, 1, 1], [], []>} : vector<34x2xf32>, vector<2x16xf32>, vector<34x16xf32> -> vector<34x16xf32>
    %21 = arith.subf %14, %20 : vector<34x16xf32>
    %22 = arith.mulf %21, %21 : vector<34x16xf32>
    %cst_17 = arith.constant dense<0.000000e+00> : vector<2x16xf32>
    %23 = tpu.matmul %15, %22, %cst_17 {dimension_numbers = #tpu.dot_dimension_numbers<[1], [0], [0], [1], [0, 0, 1, 1], [], []>} : vector<2x34xf32>, vector<34x16xf32>, vector<2x16xf32> -> vector<2x16xf32>
    %cst_18 = arith.constant 0.0588235296 : f32
    %24 = vector.broadcast %cst_18 : f32 to vector<2x16xf32>
    %25 = arith.mulf %23, %24 : vector<2x16xf32>
    %cst_19 = arith.constant dense<0.000000e+00> : vector<34x16xf32>
    %26 = tpu.matmul %16, %25, %cst_19 {dimension_numbers = #tpu.dot_dimension_numbers<[1], [0], [0], [1], [0, 0, 1, 1], [], []>} : vector<34x2xf32>, vector<2x16xf32>, vector<34x16xf32> -> vector<34x16xf32>
    %cst_20 = arith.constant 9.99999974E-6 : f32
    %27 = vector.broadcast %cst_20 : f32 to vector<34x16xf32>
    %28 = arith.addf %26, %27 : vector<34x16xf32>
    %29 = math.rsqrt %28 : vector<34x16xf32>
    %30 = arith.mulf %21, %29 : vector<34x16xf32>
    %c0_21 = arith.constant 0 : index
    %c0_22 = arith.constant 0 : index
    %31 = vector.load %arg4[%c0_21, %c0_22] : memref<1x16xf32, #tpu.memory_space<vmem>>, vector<1x16xf32>
    %32 = vector.broadcast %31 : vector<1x16xf32> to vector<34x16xf32>
    %33 = arith.mulf %30, %32 : vector<34x16xf32>
    %c0_23 = arith.constant 0 : index
    %c0_24 = arith.constant 0 : index
    %34 = vector.load %arg5[%c0_23, %c0_24] : memref<1x16xf32, #tpu.memory_space<vmem>>, vector<1x16xf32>
    %35 = vector.broadcast %34 : vector<1x16xf32> to vector<34x16xf32>
    %36 = arith.addf %33, %35 : vector<34x16xf32>
    %c0_25 = arith.constant 0 : index
    %c0_26 = arith.constant 0 : index
    %37 = vector.load %arg8[%c0_25, %c0_26] : memref<34x34xf32, #tpu.memory_space<vmem>>, vector<34x34xf32>
    %cst_27 = arith.constant dense<0.000000e+00> : vector<34x16xf32>
    %38 = tpu.matmul %37, %36, %cst_27 {dimension_numbers = #tpu.dot_dimension_numbers<[1], [0], [0], [1], [0, 0, 1, 1], [], []>} : vector<34x34xf32>, vector<34x16xf32>, vector<34x16xf32> -> vector<34x16xf32>
    %c0_28 = arith.constant 0 : index
    %c0_29 = arith.constant 0 : index
    %39 = vector.load %arg10[%c0_28, %c0_29] : memref<16x768xf32, #tpu.memory_space<vmem>>, vector<16x768xf32>
    %cst_30 = arith.constant dense<0.000000e+00> : vector<34x768xf32>
    %40 = tpu.matmul %38, %39, %cst_30 {dimension_numbers = #tpu.dot_dimension_numbers<[1], [0], [0], [1], [0, 0, 1, 1], [], []>} : vector<34x16xf32>, vector<16x768xf32>, vector<34x768xf32> -> vector<34x768xf32>
    %c0_31 = arith.constant 0 : index
    %c0_32 = arith.constant 0 : index
    %41 = vector.load %arg11[%c0_31, %c0_32] : memref<1x768xf32, #tpu.memory_space<vmem>>, vector<1x768xf32>
    %42 = vector.broadcast %41 : vector<1x768xf32> to vector<34x768xf32>
    %43 = arith.addf %40, %42 : vector<34x768xf32>
    %44 = vector.extract_strided_slice %43 {offsets = [0, 0], sizes = [34, 384], strides = [1, 1]} : vector<34x768xf32> to vector<34x384xf32>
    %c0_33 = arith.constant 0 : index
    %c0_34 = arith.constant 0 : index
    %45 = vector.load %arg19[%c0_33, %c0_34] : memref<34x384xf32, #tpu.memory_space<vmem>>, vector<34x384xf32>
    tpu.vector_store %arg19[%c0_33, %c0_34], %44 {strides = array<i32>} : memref<34x384xf32, #tpu.memory_space<vmem>>, vector<34x384xf32>,
    %46 = vector.extract_strided_slice %43 {offsets = [0, 384], sizes = [34, 384], strides = [1, 1]} : vector<34x768xf32> to vector<34x384xf32>
    %c0_35 = arith.constant 0 : index
    %c0_36 = arith.constant 0 : index
    %47 = vector.load %arg20[%c0_35, %c0_36] : memref<34x384xf32, #tpu.memory_space<vmem>>, vector<34x384xf32>
    tpu.vector_store %arg20[%c0_35, %c0_36], %46 {strides = array<i32>} : memref<34x384xf32, #tpu.memory_space<vmem>>, vector<34x384xf32>,
    %c0_37 = arith.constant 0 : index
    %c0_38 = arith.constant 0 : index
    %48 = vector.load %arg14[%c0_37, %c0_38] : memref<1x128xf32, #tpu.memory_space<vmem>>, vector<1x128xf32>
    %49 = vector.shape_cast %48 : vector<1x128xf32> to vector<1x128xf32>
    %50 = vector.broadcast %49 : vector<1x128xf32> to vector<2x128xf32>
    %c0_39 = arith.constant 0 : index
    %c0_40 = arith.constant 0 : index
    %51 = vector.load %arg15[%c0_39, %c0_40] : memref<1x128xf32, #tpu.memory_space<vmem>>, vector<1x128xf32>
    %52 = vector.shape_cast %51 : vector<1x128xf32> to vector<1x128xf32>
    %53 = vector.broadcast %52 : vector<1x128xf32> to vector<2x128xf32>
    %cst_41 = arith.constant 0.000000e+00 : f32
    %54 = vector.broadcast %cst_41 : f32 to vector<2x128xf32>
    %cst_42 = arith.constant 0.000000e+00 : f32
    %55 = vector.broadcast %cst_42 : f32 to vector<2x128xf32>
    %c0_43 = arith.constant 0 : index
    %c0_44 = arith.constant 0 : index
    %56 = vector.load %arg19[%c0_43, %c0_44] : memref<34x384xf32, #tpu.memory_space<vmem>>, vector<2x384xf32>
    %c0_45 = arith.constant 0 : index
    %c0_46 = arith.constant 0 : index
    %57 = vector.load %arg12[%c0_45, %c0_46] : memref<128x384xf32, #tpu.memory_space<vmem>>, vector<128x384xf32>
    %cst_47 = arith.constant dense<0.000000e+00> : vector<2x384xf32>
    %58 = tpu.matmul %54, %57, %cst_47 {dimension_numbers = #tpu.dot_dimension_numbers<[1], [0], [0], [1], [0, 0, 1, 1], [], []>} : vector<2x128xf32>, vector<128x384xf32>, vector<2x384xf32> -> vector<2x384xf32>
    %59 = vector.extract_strided_slice %56 {offsets = [0, 0], sizes = [2, 128], strides = [1, 1]} : vector<2x384xf32> to vector<2x128xf32>
    %60 = vector.extract_strided_slice %58 {offsets = [0, 0], sizes = [2, 128], strides = [1, 1]} : vector<2x384xf32> to vector<2x128xf32>
    %61 = arith.addf %59, %60 : vector<2x128xf32>
    %62 = arith.negf %61 : vector<2x128xf32>
    %63 = math.exp %62 : vector<2x128xf32>
    %cst_48 = arith.constant 1.000000e+00 : f32
    %64 = vector.broadcast %cst_48 : f32 to vector<2x128xf32>
    %65 = arith.addf %64, %63 : vector<2x128xf32>
    %66 = arith.divf %64, %65 : vector<2x128xf32>
    %67 = vector.extract_strided_slice %56 {offsets = [0, 128], sizes = [2, 128], strides = [1, 1]} : vector<2x384xf32> to vector<2x128xf32>
    %68 = vector.extract_strided_slice %58 {offsets = [0, 128], sizes = [2, 128], strides = [1, 1]} : vector<2x384xf32> to vector<2x128xf32>
    %69 = arith.addf %67, %68 : vector<2x128xf32>
    %70 = arith.negf %69 : vector<2x128xf32>
    %71 = math.exp %70 : vector<2x128xf32>
    %cst_49 = arith.constant 1.000000e+00 : f32
    %72 = vector.broadcast %cst_49 : f32 to vector<2x128xf32>
    %73 = arith.addf %72, %71 : vector<2x128xf32>
    %74 = arith.divf %72, %73 : vector<2x128xf32>
    %75 = vector.extract_strided_slice %56 {offsets = [0, 256], sizes = [2, 128], strides = [1, 1]} : vector<2x384xf32> to vector<2x128xf32>
    %76 = vector.extract_strided_slice %58 {offsets = [0, 256], sizes = [2, 128], strides = [1, 1]} : vector<2x384xf32> to vector<2x128xf32>
    %77 = arith.addf %76, %50 : vector<2x128xf32>
    %78 = arith.mulf %66, %77 : vector<2x128xf32>
    %79 = arith.addf %75, %78 : vector<2x128xf32>
    %80 = math.tanh %79 : vector<2x128xf32>
    %cst_50 = arith.constant 1.000000e+00 : f32
    %81 = vector.broadcast %cst_50 : f32 to vector<2x128xf32>
    %82 = arith.subf %81, %74 : vector<2x128xf32>
    %83 = arith.mulf %82, %80 : vector<2x128xf32>
    %84 = arith.mulf %74, %54 : vector<2x128xf32>
    %85 = arith.addf %83, %84 : vector<2x128xf32>
    %c32 = arith.constant 32 : index
    %c0_51 = arith.constant 0 : index
    %86 = vector.load %arg20[%c32, %c0_51] : memref<34x384xf32, #tpu.memory_space<vmem>>, vector<2x384xf32>
    %c0_52 = arith.constant 0 : index
    %c0_53 = arith.constant 0 : index
    %87 = vector.load %arg13[%c0_52, %c0_53] : memref<128x384xf32, #tpu.memory_space<vmem>>, vector<128x384xf32>
    %cst_54 = arith.constant dense<0.000000e+00> : vector<2x384xf32>
    %88 = tpu.matmul %55, %87, %cst_54 {dimension_numbers = #tpu.dot_dimension_numbers<[1], [0], [0], [1], [0, 0, 1, 1], [], []>} : vector<2x128xf32>, vector<128x384xf32>, vector<2x384xf32> -> vector<2x384xf32>
    %89 = vector.extract_strided_slice %86 {offsets = [0, 0], sizes = [2, 128], strides = [1, 1]} : vector<2x384xf32> to vector<2x128xf32>
    %90 = vector.extract_strided_slice %88 {offsets = [0, 0], sizes = [2, 128], strides = [1, 1]} : vector<2x384xf32> to vector<2x128xf32>
    %91 = arith.addf %89, %90 : vector<2x128xf32>
    %92 = arith.negf %91 : vector<2x128xf32>
    %93 = math.exp %92 : vector<2x128xf32>
    %cst_55 = arith.constant 1.000000e+00 : f32
    %94 = vector.broadcast %cst_55 : f32 to vector<2x128xf32>
    %95 = arith.addf %94, %93 : vector<2x128xf32>
    %96 = arith.divf %94, %95 : vector<2x128xf32>
    %97 = vector.extract_strided_slice %86 {offsets = [0, 128], sizes = [2, 128], strides = [1, 1]} : vector<2x384xf32> to vector<2x128xf32>
    %98 = vector.extract_strided_slice %88 {offsets = [0, 128], sizes = [2, 128], strides = [1, 1]} : vector<2x384xf32> to vector<2x128xf32>
    %99 = arith.addf %97, %98 : vector<2x128xf32>
    %100 = arith.negf %99 : vector<2x128xf32>
    %101 = math.exp %100 : vector<2x128xf32>
    %cst_56 = arith.constant 1.000000e+00 : f32
    %102 = vector.broadcast %cst_56 : f32 to vector<2x128xf32>
    %103 = arith.addf %102, %101 : vector<2x128xf32>
    %104 = arith.divf %102, %103 : vector<2x128xf32>
    %105 = vector.extract_strided_slice %86 {offsets = [0, 256], sizes = [2, 128], strides = [1, 1]} : vector<2x384xf32> to vector<2x128xf32>
    %106 = vector.extract_strided_slice %88 {offsets = [0, 256], sizes = [2, 128], strides = [1, 1]} : vector<2x384xf32> to vector<2x128xf32>
    %107 = arith.addf %106, %53 : vector<2x128xf32>
    %108 = arith.mulf %96, %107 : vector<2x128xf32>
    %109 = arith.addf %105, %108 : vector<2x128xf32>
    %110 = math.tanh %109 : vector<2x128xf32>
    %cst_57 = arith.constant 1.000000e+00 : f32
    %111 = vector.broadcast %cst_57 : f32 to vector<2x128xf32>
    %112 = arith.subf %111, %104 : vector<2x128xf32>
    %113 = arith.mulf %112, %110 : vector<2x128xf32>
    %114 = arith.mulf %104, %55 : vector<2x128xf32>
    %115 = arith.addf %113, %114 : vector<2x128xf32>
    %c0_58 = arith.constant 0 : index
    %c0_59 = arith.constant 0 : index
    %116 = vector.load %arg21[%c0_58, %c0_59] : memref<34x128xf32, #tpu.memory_space<vmem>>, vector<2x128xf32>
    tpu.vector_store %arg21[%c0_58, %c0_59], %85 {strides = array<i32>} : memref<34x128xf32, #tpu.memory_space<vmem>>, vector<2x128xf32>,
    %c32_60 = arith.constant 32 : index
    %c0_61 = arith.constant 0 : index
    %117 = vector.load %arg22[%c32_60, %c0_61] : memref<34x128xf32, #tpu.memory_space<vmem>>, vector<2x128xf32>
    tpu.vector_store %arg22[%c32_60, %c0_61], %115 {strides = array<i32>} : memref<34x128xf32, #tpu.memory_space<vmem>>, vector<2x128xf32>,
    %c2 = arith.constant 2 : index
    %c0_62 = arith.constant 0 : index
    %118 = vector.load %arg19[%c2, %c0_62] : memref<34x384xf32, #tpu.memory_space<vmem>>, vector<2x384xf32>
    %c0_63 = arith.constant 0 : index
    %c0_64 = arith.constant 0 : index
    %119 = vector.load %arg12[%c0_63, %c0_64] : memref<128x384xf32, #tpu.memory_space<vmem>>, vector<128x384xf32>
    %cst_65 = arith.constant dense<0.000000e+00> : vector<2x384xf32>
    %120 = tpu.matmul %85, %119, %cst_65 {dimension_numbers = #tpu.dot_dimension_numbers<[1], [0], [0], [1], [0, 0, 1, 1], [], []>} : vector<2x128xf32>, vector<128x384xf32>, vector<2x384xf32> -> vector<2x384xf32>
    %121 = vector.extract_strided_slice %118 {offsets = [0, 0], sizes = [2, 128], strides = [1, 1]} : vector<2x384xf32> to vector<2x128xf32>
    %122 = vector.extract_strided_slice %120 {offsets = [0, 0], sizes = [2, 128], strides = [1, 1]} : vector<2x384xf32> to vector<2x128xf32>
    %123 = arith.addf %121, %122 : vector<2x128xf32>
    %124 = arith.negf %123 : vector<2x128xf32>
    %125 = math.exp %124 : vector<2x128xf32>
    %cst_66 = arith.constant 1.000000e+00 : f32
    %126 = vector.broadcast %cst_66 : f32 to vector<2x128xf32>
    %127 = arith.addf %126, %125 : vector<2x128xf32>
    %128 = arith.divf %126, %127 : vector<2x128xf32>
    %129 = vector.extract_strided_slice %118 {offsets = [0, 128], sizes = [2, 128], strides = [1, 1]} : vector<2x384xf32> to vector<2x128xf32>
    %130 = vector.extract_strided_slice %120 {offsets = [0, 128], sizes = [2, 128], strides = [1, 1]} : vector<2x384xf32> to vector<2x128xf32>
    %131 = arith.addf %129, %130 : vector<2x128xf32>
    %132 = arith.negf %131 : vector<2x128xf32>
    %133 = math.exp %132 : vector<2x128xf32>
    %cst_67 = arith.constant 1.000000e+00 : f32
    %134 = vector.broadcast %cst_67 : f32 to vector<2x128xf32>
    %135 = arith.addf %134, %133 : vector<2x128xf32>
    %136 = arith.divf %134, %135 : vector<2x128xf32>
    %137 = vector.extract_strided_slice %118 {offsets = [0, 256], sizes = [2, 128], strides = [1, 1]} : vector<2x384xf32> to vector<2x128xf32>
    %138 = vector.extract_strided_slice %120 {offsets = [0, 256], sizes = [2, 128], strides = [1, 1]} : vector<2x384xf32> to vector<2x128xf32>
    %139 = arith.addf %138, %50 : vector<2x128xf32>
    %140 = arith.mulf %128, %139 : vector<2x128xf32>
    %141 = arith.addf %137, %140 : vector<2x128xf32>
    %142 = math.tanh %141 : vector<2x128xf32>
    %cst_68 = arith.constant 1.000000e+00 : f32
    %143 = vector.broadcast %cst_68 : f32 to vector<2x128xf32>
    %144 = arith.subf %143, %136 : vector<2x128xf32>
    %145 = arith.mulf %144, %142 : vector<2x128xf32>
    %146 = arith.mulf %136, %85 : vector<2x128xf32>
    %147 = arith.addf %145, %146 : vector<2x128xf32>
    %c30 = arith.constant 30 : index
    %c0_69 = arith.constant 0 : index
    %148 = vector.load %arg20[%c30, %c0_69] : memref<34x384xf32, #tpu.memory_space<vmem>>, vector<2x384xf32>
    %c0_70 = arith.constant 0 : index
    %c0_71 = arith.constant 0 : index
    %149 = vector.load %arg13[%c0_70, %c0_71] : memref<128x384xf32, #tpu.memory_space<vmem>>, vector<128x384xf32>
    %cst_72 = arith.constant dense<0.000000e+00> : vector<2x384xf32>
    %150 = tpu.matmul %115, %149, %cst_72 {dimension_numbers = #tpu.dot_dimension_numbers<[1], [0], [0], [1], [0, 0, 1, 1], [], []>} : vector<2x128xf32>, vector<128x384xf32>, vector<2x384xf32> -> vector<2x384xf32>
    %151 = vector.extract_strided_slice %148 {offsets = [0, 0], sizes = [2, 128], strides = [1, 1]} : vector<2x384xf32> to vector<2x128xf32>
    %152 = vector.extract_strided_slice %150 {offsets = [0, 0], sizes = [2, 128], strides = [1, 1]} : vector<2x384xf32> to vector<2x128xf32>
    %153 = arith.addf %151, %152 : vector<2x128xf32>
    %154 = arith.negf %153 : vector<2x128xf32>
    %155 = math.exp %154 : vector<2x128xf32>
    %cst_73 = arith.constant 1.000000e+00 : f32
    %156 = vector.broadcast %cst_73 : f32 to vector<2x128xf32>
    %157 = arith.addf %156, %155 : vector<2x128xf32>
    %158 = arith.divf %156, %157 : vector<2x128xf32>
    %159 = vector.extract_strided_slice %148 {offsets = [0, 128], sizes = [2, 128], strides = [1, 1]} : vector<2x384xf32> to vector<2x128xf32>
    %160 = vector.extract_strided_slice %150 {offsets = [0, 128], sizes = [2, 128], strides = [1, 1]} : vector<2x384xf32> to vector<2x128xf32>
    %161 = arith.addf %159, %160 : vector<2x128xf32>
    %162 = arith.negf %161 : vector<2x128xf32>
    %163 = math.exp %162 : vector<2x128xf32>
    %cst_74 = arith.constant 1.000000e+00 : f32
    %164 = vector.broadcast %cst_74 : f32 to vector<2x128xf32>
    %165 = arith.addf %164, %163 : vector<2x128xf32>
    %166 = arith.divf %164, %165 : vector<2x128xf32>
    %167 = vector.extract_strided_slice %148 {offsets = [0, 256], sizes = [2, 128], strides = [1, 1]} : vector<2x384xf32> to vector<2x128xf32>
    %168 = vector.extract_strided_slice %150 {offsets = [0, 256], sizes = [2, 128], strides = [1, 1]} : vector<2x384xf32> to vector<2x128xf32>
    %169 = arith.addf %168, %53 : vector<2x128xf32>
    %170 = arith.mulf %158, %169 : vector<2x128xf32>
    %171 = arith.addf %167, %170 : vector<2x128xf32>
    %172 = math.tanh %171 : vector<2x128xf32>
    %cst_75 = arith.constant 1.000000e+00 : f32
    %173 = vector.broadcast %cst_75 : f32 to vector<2x128xf32>
    %174 = arith.subf %173, %166 : vector<2x128xf32>
    %175 = arith.mulf %174, %172 : vector<2x128xf32>
    %176 = arith.mulf %166, %115 : vector<2x128xf32>
    %177 = arith.addf %175, %176 : vector<2x128xf32>
    %c2_76 = arith.constant 2 : index
    %c0_77 = arith.constant 0 : index
    %178 = vector.load %arg21[%c2_76, %c0_77] : memref<34x128xf32, #tpu.memory_space<vmem>>, vector<2x128xf32>
    tpu.vector_store %arg21[%c2_76, %c0_77], %147 {strides = array<i32>} : memref<34x128xf32, #tpu.memory_space<vmem>>, vector<2x128xf32>,
    %c30_78 = arith.constant 30 : index
    %c0_79 = arith.constant 0 : index
    %179 = vector.load %arg22[%c30_78, %c0_79] : memref<34x128xf32, #tpu.memory_space<vmem>>, vector<2x128xf32>
    tpu.vector_store %arg22[%c30_78, %c0_79], %177 {strides = array<i32>} : memref<34x128xf32, #tpu.memory_space<vmem>>, vector<2x128xf32>,
    %c4 = arith.constant 4 : index
    %c0_80 = arith.constant 0 : index
    %180 = vector.load %arg19[%c4, %c0_80] : memref<34x384xf32, #tpu.memory_space<vmem>>, vector<2x384xf32>
    %c0_81 = arith.constant 0 : index
    %c0_82 = arith.constant 0 : index
    %181 = vector.load %arg12[%c0_81, %c0_82] : memref<128x384xf32, #tpu.memory_space<vmem>>, vector<128x384xf32>
    %cst_83 = arith.constant dense<0.000000e+00> : vector<2x384xf32>
    %182 = tpu.matmul %147, %181, %cst_83 {dimension_numbers = #tpu.dot_dimension_numbers<[1], [0], [0], [1], [0, 0, 1, 1], [], []>} : vector<2x128xf32>, vector<128x384xf32>, vector<2x384xf32> -> vector<2x384xf32>
    %183 = vector.extract_strided_slice %180 {offsets = [0, 0], sizes = [2, 128], strides = [1, 1]} : vector<2x384xf32> to vector<2x128xf32>
    %184 = vector.extract_strided_slice %182 {offsets = [0, 0], sizes = [2, 128], strides = [1, 1]} : vector<2x384xf32> to vector<2x128xf32>
    %185 = arith.addf %183, %184 : vector<2x128xf32>
    %186 = arith.negf %185 : vector<2x128xf32>
    %187 = math.exp %186 : vector<2x128xf32>
    %cst_84 = arith.constant 1.000000e+00 : f32
    %188 = vector.broadcast %cst_84 : f32 to vector<2x128xf32>
    %189 = arith.addf %188, %187 : vector<2x128xf32>
    %190 = arith.divf %188, %189 : vector<2x128xf32>
    %191 = vector.extract_strided_slice %180 {offsets = [0, 128], sizes = [2, 128], strides = [1, 1]} : vector<2x384xf32> to vector<2x128xf32>
    %192 = vector.extract_strided_slice %182 {offsets = [0, 128], sizes = [2, 128], strides = [1, 1]} : vector<2x384xf32> to vector<2x128xf32>
    %193 = arith.addf %191, %192 : vector<2x128xf32>
    %194 = arith.negf %193 : vector<2x128xf32>
    %195 = math.exp %194 : vector<2x128xf32>
    %cst_85 = arith.constant 1.000000e+00 : f32
    %196 = vector.broadcast %cst_85 : f32 to vector<2x128xf32>
    %197 = arith.addf %196, %195 : vector<2x128xf32>
    %198 = arith.divf %196, %197 : vector<2x128xf32>
    %199 = vector.extract_strided_slice %180 {offsets = [0, 256], sizes = [2, 128], strides = [1, 1]} : vector<2x384xf32> to vector<2x128xf32>
    %200 = vector.extract_strided_slice %182 {offsets = [0, 256], sizes = [2, 128], strides = [1, 1]} : vector<2x384xf32> to vector<2x128xf32>
    %201 = arith.addf %200, %50 : vector<2x128xf32>
    %202 = arith.mulf %190, %201 : vector<2x128xf32>
    %203 = arith.addf %199, %202 : vector<2x128xf32>
    %204 = math.tanh %203 : vector<2x128xf32>
    %cst_86 = arith.constant 1.000000e+00 : f32
    %205 = vector.broadcast %cst_86 : f32 to vector<2x128xf32>
    %206 = arith.subf %205, %198 : vector<2x128xf32>
    %207 = arith.mulf %206, %204 : vector<2x128xf32>
    %208 = arith.mulf %198, %147 : vector<2x128xf32>
    %209 = arith.addf %207, %208 : vector<2x128xf32>
    %c28 = arith.constant 28 : index
    %c0_87 = arith.constant 0 : index
    %210 = vector.load %arg20[%c28, %c0_87] : memref<34x384xf32, #tpu.memory_space<vmem>>, vector<2x384xf32>
    %c0_88 = arith.constant 0 : index
    %c0_89 = arith.constant 0 : index
    %211 = vector.load %arg13[%c0_88, %c0_89] : memref<128x384xf32, #tpu.memory_space<vmem>>, vector<128x384xf32>
    %cst_90 = arith.constant dense<0.000000e+00> : vector<2x384xf32>
    %212 = tpu.matmul %177, %211, %cst_90 {dimension_numbers = #tpu.dot_dimension_numbers<[1], [0], [0], [1], [0, 0, 1, 1], [], []>} : vector<2x128xf32>, vector<128x384xf32>, vector<2x384xf32> -> vector<2x384xf32>
    %213 = vector.extract_strided_slice %210 {offsets = [0, 0], sizes = [2, 128], strides = [1, 1]} : vector<2x384xf32> to vector<2x128xf32>
    %214 = vector.extract_strided_slice %212 {offsets = [0, 0], sizes = [2, 128], strides = [1, 1]} : vector<2x384xf32> to vector<2x128xf32>
    %215 = arith.addf %213, %214 : vector<2x128xf32>
    %216 = arith.negf %215 : vector<2x128xf32>
    %217 = math.exp %216 : vector<2x128xf32>
    %cst_91 = arith.constant 1.000000e+00 : f32
    %218 = vector.broadcast %cst_91 : f32 to vector<2x128xf32>
    %219 = arith.addf %218, %217 : vector<2x128xf32>
    %220 = arith.divf %218, %219 : vector<2x128xf32>
    %221 = vector.extract_strided_slice %210 {offsets = [0, 128], sizes = [2, 128], strides = [1, 1]} : vector<2x384xf32> to vector<2x128xf32>
    %222 = vector.extract_strided_slice %212 {offsets = [0, 128], sizes = [2, 128], strides = [1, 1]} : vector<2x384xf32> to vector<2x128xf32>
    %223 = arith.addf %221, %222 : vector<2x128xf32>
    %224 = arith.negf %223 : vector<2x128xf32>
    %225 = math.exp %224 : vector<2x128xf32>
    %cst_92 = arith.constant 1.000000e+00 : f32
    %226 = vector.broadcast %cst_92 : f32 to vector<2x128xf32>
    %227 = arith.addf %226, %225 : vector<2x128xf32>
    %228 = arith.divf %226, %227 : vector<2x128xf32>
    %229 = vector.extract_strided_slice %210 {offsets = [0, 256], sizes = [2, 128], strides = [1, 1]} : vector<2x384xf32> to vector<2x128xf32>
    %230 = vector.extract_strided_slice %212 {offsets = [0, 256], sizes = [2, 128], strides = [1, 1]} : vector<2x384xf32> to vector<2x128xf32>
    %231 = arith.addf %230, %53 : vector<2x128xf32>
    %232 = arith.mulf %220, %231 : vector<2x128xf32>
    %233 = arith.addf %229, %232 : vector<2x128xf32>
    %234 = math.tanh %233 : vector<2x128xf32>
    %cst_93 = arith.constant 1.000000e+00 : f32
    %235 = vector.broadcast %cst_93 : f32 to vector<2x128xf32>
    %236 = arith.subf %235, %228 : vector<2x128xf32>
    %237 = arith.mulf %236, %234 : vector<2x128xf32>
    %238 = arith.mulf %228, %177 : vector<2x128xf32>
    %239 = arith.addf %237, %238 : vector<2x128xf32>
    %c4_94 = arith.constant 4 : index
    %c0_95 = arith.constant 0 : index
    %240 = vector.load %arg21[%c4_94, %c0_95] : memref<34x128xf32, #tpu.memory_space<vmem>>, vector<2x128xf32>
    tpu.vector_store %arg21[%c4_94, %c0_95], %209 {strides = array<i32>} : memref<34x128xf32, #tpu.memory_space<vmem>>, vector<2x128xf32>,
    %c28_96 = arith.constant 28 : index
    %c0_97 = arith.constant 0 : index
    %241 = vector.load %arg22[%c28_96, %c0_97] : memref<34x128xf32, #tpu.memory_space<vmem>>, vector<2x128xf32>
    tpu.vector_store %arg22[%c28_96, %c0_97], %239 {strides = array<i32>} : memref<34x128xf32, #tpu.memory_space<vmem>>, vector<2x128xf32>,
    %c6 = arith.constant 6 : index
    %c0_98 = arith.constant 0 : index
    %242 = vector.load %arg19[%c6, %c0_98] : memref<34x384xf32, #tpu.memory_space<vmem>>, vector<2x384xf32>
    %c0_99 = arith.constant 0 : index
    %c0_100 = arith.constant 0 : index
    %243 = vector.load %arg12[%c0_99, %c0_100] : memref<128x384xf32, #tpu.memory_space<vmem>>, vector<128x384xf32>
    %cst_101 = arith.constant dense<0.000000e+00> : vector<2x384xf32>
    %244 = tpu.matmul %209, %243, %cst_101 {dimension_numbers = #tpu.dot_dimension_numbers<[1], [0], [0], [1], [0, 0, 1, 1], [], []>} : vector<2x128xf32>, vector<128x384xf32>, vector<2x384xf32> -> vector<2x384xf32>
    %245 = vector.extract_strided_slice %242 {offsets = [0, 0], sizes = [2, 128], strides = [1, 1]} : vector<2x384xf32> to vector<2x128xf32>
    %246 = vector.extract_strided_slice %244 {offsets = [0, 0], sizes = [2, 128], strides = [1, 1]} : vector<2x384xf32> to vector<2x128xf32>
    %247 = arith.addf %245, %246 : vector<2x128xf32>
    %248 = arith.negf %247 : vector<2x128xf32>
    %249 = math.exp %248 : vector<2x128xf32>
    %cst_102 = arith.constant 1.000000e+00 : f32
    %250 = vector.broadcast %cst_102 : f32 to vector<2x128xf32>
    %251 = arith.addf %250, %249 : vector<2x128xf32>
    %252 = arith.divf %250, %251 : vector<2x128xf32>
    %253 = vector.extract_strided_slice %242 {offsets = [0, 128], sizes = [2, 128], strides = [1, 1]} : vector<2x384xf32> to vector<2x128xf32>
    %254 = vector.extract_strided_slice %244 {offsets = [0, 128], sizes = [2, 128], strides = [1, 1]} : vector<2x384xf32> to vector<2x128xf32>
    %255 = arith.addf %253, %254 : vector<2x128xf32>
    %256 = arith.negf %255 : vector<2x128xf32>
    %257 = math.exp %256 : vector<2x128xf32>
    %cst_103 = arith.constant 1.000000e+00 : f32
    %258 = vector.broadcast %cst_103 : f32 to vector<2x128xf32>
    %259 = arith.addf %258, %257 : vector<2x128xf32>
    %260 = arith.divf %258, %259 : vector<2x128xf32>
    %261 = vector.extract_strided_slice %242 {offsets = [0, 256], sizes = [2, 128], strides = [1, 1]} : vector<2x384xf32> to vector<2x128xf32>
    %262 = vector.extract_strided_slice %244 {offsets = [0, 256], sizes = [2, 128], strides = [1, 1]} : vector<2x384xf32> to vector<2x128xf32>
    %263 = arith.addf %262, %50 : vector<2x128xf32>
    %264 = arith.mulf %252, %263 : vector<2x128xf32>
    %265 = arith.addf %261, %264 : vector<2x128xf32>
    %266 = math.tanh %265 : vector<2x128xf32>
    %cst_104 = arith.constant 1.000000e+00 : f32
    %267 = vector.broadcast %cst_104 : f32 to vector<2x128xf32>
    %268 = arith.subf %267, %260 : vector<2x128xf32>
    %269 = arith.mulf %268, %266 : vector<2x128xf32>
    %270 = arith.mulf %260, %209 : vector<2x128xf32>
    %271 = arith.addf %269, %270 : vector<2x128xf32>
    %c26 = arith.constant 26 : index
    %c0_105 = arith.constant 0 : index
    %272 = vector.load %arg20[%c26, %c0_105] : memref<34x384xf32, #tpu.memory_space<vmem>>, vector<2x384xf32>
    %c0_106 = arith.constant 0 : index
    %c0_107 = arith.constant 0 : index
    %273 = vector.load %arg13[%c0_106, %c0_107] : memref<128x384xf32, #tpu.memory_space<vmem>>, vector<128x384xf32>
    %cst_108 = arith.constant dense<0.000000e+00> : vector<2x384xf32>
    %274 = tpu.matmul %239, %273, %cst_108 {dimension_numbers = #tpu.dot_dimension_numbers<[1], [0], [0], [1], [0, 0, 1, 1], [], []>} : vector<2x128xf32>, vector<128x384xf32>, vector<2x384xf32> -> vector<2x384xf32>
    %275 = vector.extract_strided_slice %272 {offsets = [0, 0], sizes = [2, 128], strides = [1, 1]} : vector<2x384xf32> to vector<2x128xf32>
    %276 = vector.extract_strided_slice %274 {offsets = [0, 0], sizes = [2, 128], strides = [1, 1]} : vector<2x384xf32> to vector<2x128xf32>
    %277 = arith.addf %275, %276 : vector<2x128xf32>
    %278 = arith.negf %277 : vector<2x128xf32>
    %279 = math.exp %278 : vector<2x128xf32>
    %cst_109 = arith.constant 1.000000e+00 : f32
    %280 = vector.broadcast %cst_109 : f32 to vector<2x128xf32>
    %281 = arith.addf %280, %279 : vector<2x128xf32>
    %282 = arith.divf %280, %281 : vector<2x128xf32>
    %283 = vector.extract_strided_slice %272 {offsets = [0, 128], sizes = [2, 128], strides = [1, 1]} : vector<2x384xf32> to vector<2x128xf32>
    %284 = vector.extract_strided_slice %274 {offsets = [0, 128], sizes = [2, 128], strides = [1, 1]} : vector<2x384xf32> to vector<2x128xf32>
    %285 = arith.addf %283, %284 : vector<2x128xf32>
    %286 = arith.negf %285 : vector<2x128xf32>
    %287 = math.exp %286 : vector<2x128xf32>
    %cst_110 = arith.constant 1.000000e+00 : f32
    %288 = vector.broadcast %cst_110 : f32 to vector<2x128xf32>
    %289 = arith.addf %288, %287 : vector<2x128xf32>
    %290 = arith.divf %288, %289 : vector<2x128xf32>
    %291 = vector.extract_strided_slice %272 {offsets = [0, 256], sizes = [2, 128], strides = [1, 1]} : vector<2x384xf32> to vector<2x128xf32>
    %292 = vector.extract_strided_slice %274 {offsets = [0, 256], sizes = [2, 128], strides = [1, 1]} : vector<2x384xf32> to vector<2x128xf32>
    %293 = arith.addf %292, %53 : vector<2x128xf32>
    %294 = arith.mulf %282, %293 : vector<2x128xf32>
    %295 = arith.addf %291, %294 : vector<2x128xf32>
    %296 = math.tanh %295 : vector<2x128xf32>
    %cst_111 = arith.constant 1.000000e+00 : f32
    %297 = vector.broadcast %cst_111 : f32 to vector<2x128xf32>
    %298 = arith.subf %297, %290 : vector<2x128xf32>
    %299 = arith.mulf %298, %296 : vector<2x128xf32>
    %300 = arith.mulf %290, %239 : vector<2x128xf32>
    %301 = arith.addf %299, %300 : vector<2x128xf32>
    %c6_112 = arith.constant 6 : index
    %c0_113 = arith.constant 0 : index
    %302 = vector.load %arg21[%c6_112, %c0_113] : memref<34x128xf32, #tpu.memory_space<vmem>>, vector<2x128xf32>
    tpu.vector_store %arg21[%c6_112, %c0_113], %271 {strides = array<i32>} : memref<34x128xf32, #tpu.memory_space<vmem>>, vector<2x128xf32>,
    %c26_114 = arith.constant 26 : index
    %c0_115 = arith.constant 0 : index
    %303 = vector.load %arg22[%c26_114, %c0_115] : memref<34x128xf32, #tpu.memory_space<vmem>>, vector<2x128xf32>
    tpu.vector_store %arg22[%c26_114, %c0_115], %301 {strides = array<i32>} : memref<34x128xf32, #tpu.memory_space<vmem>>, vector<2x128xf32>,
    %c8 = arith.constant 8 : index
    %c0_116 = arith.constant 0 : index
    %304 = vector.load %arg19[%c8, %c0_116] : memref<34x384xf32, #tpu.memory_space<vmem>>, vector<2x384xf32>
    %c0_117 = arith.constant 0 : index
    %c0_118 = arith.constant 0 : index
    %305 = vector.load %arg12[%c0_117, %c0_118] : memref<128x384xf32, #tpu.memory_space<vmem>>, vector<128x384xf32>
    %cst_119 = arith.constant dense<0.000000e+00> : vector<2x384xf32>
    %306 = tpu.matmul %271, %305, %cst_119 {dimension_numbers = #tpu.dot_dimension_numbers<[1], [0], [0], [1], [0, 0, 1, 1], [], []>} : vector<2x128xf32>, vector<128x384xf32>, vector<2x384xf32> -> vector<2x384xf32>
    %307 = vector.extract_strided_slice %304 {offsets = [0, 0], sizes = [2, 128], strides = [1, 1]} : vector<2x384xf32> to vector<2x128xf32>
    %308 = vector.extract_strided_slice %306 {offsets = [0, 0], sizes = [2, 128], strides = [1, 1]} : vector<2x384xf32> to vector<2x128xf32>
    %309 = arith.addf %307, %308 : vector<2x128xf32>
    %310 = arith.negf %309 : vector<2x128xf32>
    %311 = math.exp %310 : vector<2x128xf32>
    %cst_120 = arith.constant 1.000000e+00 : f32
    %312 = vector.broadcast %cst_120 : f32 to vector<2x128xf32>
    %313 = arith.addf %312, %311 : vector<2x128xf32>
    %314 = arith.divf %312, %313 : vector<2x128xf32>
    %315 = vector.extract_strided_slice %304 {offsets = [0, 128], sizes = [2, 128], strides = [1, 1]} : vector<2x384xf32> to vector<2x128xf32>
    %316 = vector.extract_strided_slice %306 {offsets = [0, 128], sizes = [2, 128], strides = [1, 1]} : vector<2x384xf32> to vector<2x128xf32>
    %317 = arith.addf %315, %316 : vector<2x128xf32>
    %318 = arith.negf %317 : vector<2x128xf32>
    %319 = math.exp %318 : vector<2x128xf32>
    %cst_121 = arith.constant 1.000000e+00 : f32
    %320 = vector.broadcast %cst_121 : f32 to vector<2x128xf32>
    %321 = arith.addf %320, %319 : vector<2x128xf32>
    %322 = arith.divf %320, %321 : vector<2x128xf32>
    %323 = vector.extract_strided_slice %304 {offsets = [0, 256], sizes = [2, 128], strides = [1, 1]} : vector<2x384xf32> to vector<2x128xf32>
    %324 = vector.extract_strided_slice %306 {offsets = [0, 256], sizes = [2, 128], strides = [1, 1]} : vector<2x384xf32> to vector<2x128xf32>
    %325 = arith.addf %324, %50 : vector<2x128xf32>
    %326 = arith.mulf %314, %325 : vector<2x128xf32>
    %327 = arith.addf %323, %326 : vector<2x128xf32>
    %328 = math.tanh %327 : vector<2x128xf32>
    %cst_122 = arith.constant 1.000000e+00 : f32
    %329 = vector.broadcast %cst_122 : f32 to vector<2x128xf32>
    %330 = arith.subf %329, %322 : vector<2x128xf32>
    %331 = arith.mulf %330, %328 : vector<2x128xf32>
    %332 = arith.mulf %322, %271 : vector<2x128xf32>
    %333 = arith.addf %331, %332 : vector<2x128xf32>
    %c24 = arith.constant 24 : index
    %c0_123 = arith.constant 0 : index
    %334 = vector.load %arg20[%c24, %c0_123] : memref<34x384xf32, #tpu.memory_space<vmem>>, vector<2x384xf32>
    %c0_124 = arith.constant 0 : index
    %c0_125 = arith.constant 0 : index
    %335 = vector.load %arg13[%c0_124, %c0_125] : memref<128x384xf32, #tpu.memory_space<vmem>>, vector<128x384xf32>
    %cst_126 = arith.constant dense<0.000000e+00> : vector<2x384xf32>
    %336 = tpu.matmul %301, %335, %cst_126 {dimension_numbers = #tpu.dot_dimension_numbers<[1], [0], [0], [1], [0, 0, 1, 1], [], []>} : vector<2x128xf32>, vector<128x384xf32>, vector<2x384xf32> -> vector<2x384xf32>
    %337 = vector.extract_strided_slice %334 {offsets = [0, 0], sizes = [2, 128], strides = [1, 1]} : vector<2x384xf32> to vector<2x128xf32>
    %338 = vector.extract_strided_slice %336 {offsets = [0, 0], sizes = [2, 128], strides = [1, 1]} : vector<2x384xf32> to vector<2x128xf32>
    %339 = arith.addf %337, %338 : vector<2x128xf32>
    %340 = arith.negf %339 : vector<2x128xf32>
    %341 = math.exp %340 : vector<2x128xf32>
    %cst_127 = arith.constant 1.000000e+00 : f32
    %342 = vector.broadcast %cst_127 : f32 to vector<2x128xf32>
    %343 = arith.addf %342, %341 : vector<2x128xf32>
    %344 = arith.divf %342, %343 : vector<2x128xf32>
    %345 = vector.extract_strided_slice %334 {offsets = [0, 128], sizes = [2, 128], strides = [1, 1]} : vector<2x384xf32> to vector<2x128xf32>
    %346 = vector.extract_strided_slice %336 {offsets = [0, 128], sizes = [2, 128], strides = [1, 1]} : vector<2x384xf32> to vector<2x128xf32>
    %347 = arith.addf %345, %346 : vector<2x128xf32>
    %348 = arith.negf %347 : vector<2x128xf32>
    %349 = math.exp %348 : vector<2x128xf32>
    %cst_128 = arith.constant 1.000000e+00 : f32
    %350 = vector.broadcast %cst_128 : f32 to vector<2x128xf32>
    %351 = arith.addf %350, %349 : vector<2x128xf32>
    %352 = arith.divf %350, %351 : vector<2x128xf32>
    %353 = vector.extract_strided_slice %334 {offsets = [0, 256], sizes = [2, 128], strides = [1, 1]} : vector<2x384xf32> to vector<2x128xf32>
    %354 = vector.extract_strided_slice %336 {offsets = [0, 256], sizes = [2, 128], strides = [1, 1]} : vector<2x384xf32> to vector<2x128xf32>
    %355 = arith.addf %354, %53 : vector<2x128xf32>
    %356 = arith.mulf %344, %355 : vector<2x128xf32>
    %357 = arith.addf %353, %356 : vector<2x128xf32>
    %358 = math.tanh %357 : vector<2x128xf32>
    %cst_129 = arith.constant 1.000000e+00 : f32
    %359 = vector.broadcast %cst_129 : f32 to vector<2x128xf32>
    %360 = arith.subf %359, %352 : vector<2x128xf32>
    %361 = arith.mulf %360, %358 : vector<2x128xf32>
    %362 = arith.mulf %352, %301 : vector<2x128xf32>
    %363 = arith.addf %361, %362 : vector<2x128xf32>
    %c8_130 = arith.constant 8 : index
    %c0_131 = arith.constant 0 : index
    %364 = vector.load %arg21[%c8_130, %c0_131] : memref<34x128xf32, #tpu.memory_space<vmem>>, vector<2x128xf32>
    tpu.vector_store %arg21[%c8_130, %c0_131], %333 {strides = array<i32>} : memref<34x128xf32, #tpu.memory_space<vmem>>, vector<2x128xf32>,
    %c24_132 = arith.constant 24 : index
    %c0_133 = arith.constant 0 : index
    %365 = vector.load %arg22[%c24_132, %c0_133] : memref<34x128xf32, #tpu.memory_space<vmem>>, vector<2x128xf32>
    tpu.vector_store %arg22[%c24_132, %c0_133], %363 {strides = array<i32>} : memref<34x128xf32, #tpu.memory_space<vmem>>, vector<2x128xf32>,
    %c10 = arith.constant 10 : index
    %c0_134 = arith.constant 0 : index
    %366 = vector.load %arg19[%c10, %c0_134] : memref<34x384xf32, #tpu.memory_space<vmem>>, vector<2x384xf32>
    %c0_135 = arith.constant 0 : index
    %c0_136 = arith.constant 0 : index
    %367 = vector.load %arg12[%c0_135, %c0_136] : memref<128x384xf32, #tpu.memory_space<vmem>>, vector<128x384xf32>
    %cst_137 = arith.constant dense<0.000000e+00> : vector<2x384xf32>
    %368 = tpu.matmul %333, %367, %cst_137 {dimension_numbers = #tpu.dot_dimension_numbers<[1], [0], [0], [1], [0, 0, 1, 1], [], []>} : vector<2x128xf32>, vector<128x384xf32>, vector<2x384xf32> -> vector<2x384xf32>
    %369 = vector.extract_strided_slice %366 {offsets = [0, 0], sizes = [2, 128], strides = [1, 1]} : vector<2x384xf32> to vector<2x128xf32>
    %370 = vector.extract_strided_slice %368 {offsets = [0, 0], sizes = [2, 128], strides = [1, 1]} : vector<2x384xf32> to vector<2x128xf32>
    %371 = arith.addf %369, %370 : vector<2x128xf32>
    %372 = arith.negf %371 : vector<2x128xf32>
    %373 = math.exp %372 : vector<2x128xf32>
    %cst_138 = arith.constant 1.000000e+00 : f32
    %374 = vector.broadcast %cst_138 : f32 to vector<2x128xf32>
    %375 = arith.addf %374, %373 : vector<2x128xf32>
    %376 = arith.divf %374, %375 : vector<2x128xf32>
    %377 = vector.extract_strided_slice %366 {offsets = [0, 128], sizes = [2, 128], strides = [1, 1]} : vector<2x384xf32> to vector<2x128xf32>
    %378 = vector.extract_strided_slice %368 {offsets = [0, 128], sizes = [2, 128], strides = [1, 1]} : vector<2x384xf32> to vector<2x128xf32>
    %379 = arith.addf %377, %378 : vector<2x128xf32>
    %380 = arith.negf %379 : vector<2x128xf32>
    %381 = math.exp %380 : vector<2x128xf32>
    %cst_139 = arith.constant 1.000000e+00 : f32
    %382 = vector.broadcast %cst_139 : f32 to vector<2x128xf32>
    %383 = arith.addf %382, %381 : vector<2x128xf32>
    %384 = arith.divf %382, %383 : vector<2x128xf32>
    %385 = vector.extract_strided_slice %366 {offsets = [0, 256], sizes = [2, 128], strides = [1, 1]} : vector<2x384xf32> to vector<2x128xf32>
    %386 = vector.extract_strided_slice %368 {offsets = [0, 256], sizes = [2, 128], strides = [1, 1]} : vector<2x384xf32> to vector<2x128xf32>
    %387 = arith.addf %386, %50 : vector<2x128xf32>
    %388 = arith.mulf %376, %387 : vector<2x128xf32>
    %389 = arith.addf %385, %388 : vector<2x128xf32>
    %390 = math.tanh %389 : vector<2x128xf32>
    %cst_140 = arith.constant 1.000000e+00 : f32
    %391 = vector.broadcast %cst_140 : f32 to vector<2x128xf32>
    %392 = arith.subf %391, %384 : vector<2x128xf32>
    %393 = arith.mulf %392, %390 : vector<2x128xf32>
    %394 = arith.mulf %384, %333 : vector<2x128xf32>
    %395 = arith.addf %393, %394 : vector<2x128xf32>
    %c22 = arith.constant 22 : index
    %c0_141 = arith.constant 0 : index
    %396 = vector.load %arg20[%c22, %c0_141] : memref<34x384xf32, #tpu.memory_space<vmem>>, vector<2x384xf32>
    %c0_142 = arith.constant 0 : index
    %c0_143 = arith.constant 0 : index
    %397 = vector.load %arg13[%c0_142, %c0_143] : memref<128x384xf32, #tpu.memory_space<vmem>>, vector<128x384xf32>
    %cst_144 = arith.constant dense<0.000000e+00> : vector<2x384xf32>
    %398 = tpu.matmul %363, %397, %cst_144 {dimension_numbers = #tpu.dot_dimension_numbers<[1], [0], [0], [1], [0, 0, 1, 1], [], []>} : vector<2x128xf32>, vector<128x384xf32>, vector<2x384xf32> -> vector<2x384xf32>
    %399 = vector.extract_strided_slice %396 {offsets = [0, 0], sizes = [2, 128], strides = [1, 1]} : vector<2x384xf32> to vector<2x128xf32>
    %400 = vector.extract_strided_slice %398 {offsets = [0, 0], sizes = [2, 128], strides = [1, 1]} : vector<2x384xf32> to vector<2x128xf32>
    %401 = arith.addf %399, %400 : vector<2x128xf32>
    %402 = arith.negf %401 : vector<2x128xf32>
    %403 = math.exp %402 : vector<2x128xf32>
    %cst_145 = arith.constant 1.000000e+00 : f32
    %404 = vector.broadcast %cst_145 : f32 to vector<2x128xf32>
    %405 = arith.addf %404, %403 : vector<2x128xf32>
    %406 = arith.divf %404, %405 : vector<2x128xf32>
    %407 = vector.extract_strided_slice %396 {offsets = [0, 128], sizes = [2, 128], strides = [1, 1]} : vector<2x384xf32> to vector<2x128xf32>
    %408 = vector.extract_strided_slice %398 {offsets = [0, 128], sizes = [2, 128], strides = [1, 1]} : vector<2x384xf32> to vector<2x128xf32>
    %409 = arith.addf %407, %408 : vector<2x128xf32>
    %410 = arith.negf %409 : vector<2x128xf32>
    %411 = math.exp %410 : vector<2x128xf32>
    %cst_146 = arith.constant 1.000000e+00 : f32
    %412 = vector.broadcast %cst_146 : f32 to vector<2x128xf32>
    %413 = arith.addf %412, %411 : vector<2x128xf32>
    %414 = arith.divf %412, %413 : vector<2x128xf32>
    %415 = vector.extract_strided_slice %396 {offsets = [0, 256], sizes = [2, 128], strides = [1, 1]} : vector<2x384xf32> to vector<2x128xf32>
    %416 = vector.extract_strided_slice %398 {offsets = [0, 256], sizes = [2, 128], strides = [1, 1]} : vector<2x384xf32> to vector<2x128xf32>
    %417 = arith.addf %416, %53 : vector<2x128xf32>
    %418 = arith.mulf %406, %417 : vector<2x128xf32>
    %419 = arith.addf %415, %418 : vector<2x128xf32>
    %420 = math.tanh %419 : vector<2x128xf32>
    %cst_147 = arith.constant 1.000000e+00 : f32
    %421 = vector.broadcast %cst_147 : f32 to vector<2x128xf32>
    %422 = arith.subf %421, %414 : vector<2x128xf32>
    %423 = arith.mulf %422, %420 : vector<2x128xf32>
    %424 = arith.mulf %414, %363 : vector<2x128xf32>
    %425 = arith.addf %423, %424 : vector<2x128xf32>
    %c10_148 = arith.constant 10 : index
    %c0_149 = arith.constant 0 : index
    %426 = vector.load %arg21[%c10_148, %c0_149] : memref<34x128xf32, #tpu.memory_space<vmem>>, vector<2x128xf32>
    tpu.vector_store %arg21[%c10_148, %c0_149], %395 {strides = array<i32>} : memref<34x128xf32, #tpu.memory_space<vmem>>, vector<2x128xf32>,
    %c22_150 = arith.constant 22 : index
    %c0_151 = arith.constant 0 : index
    %427 = vector.load %arg22[%c22_150, %c0_151] : memref<34x128xf32, #tpu.memory_space<vmem>>, vector<2x128xf32>
    tpu.vector_store %arg22[%c22_150, %c0_151], %425 {strides = array<i32>} : memref<34x128xf32, #tpu.memory_space<vmem>>, vector<2x128xf32>,
    %c12 = arith.constant 12 : index
    %c0_152 = arith.constant 0 : index
    %428 = vector.load %arg19[%c12, %c0_152] : memref<34x384xf32, #tpu.memory_space<vmem>>, vector<2x384xf32>
    %c0_153 = arith.constant 0 : index
    %c0_154 = arith.constant 0 : index
    %429 = vector.load %arg12[%c0_153, %c0_154] : memref<128x384xf32, #tpu.memory_space<vmem>>, vector<128x384xf32>
    %cst_155 = arith.constant dense<0.000000e+00> : vector<2x384xf32>
    %430 = tpu.matmul %395, %429, %cst_155 {dimension_numbers = #tpu.dot_dimension_numbers<[1], [0], [0], [1], [0, 0, 1, 1], [], []>} : vector<2x128xf32>, vector<128x384xf32>, vector<2x384xf32> -> vector<2x384xf32>
    %431 = vector.extract_strided_slice %428 {offsets = [0, 0], sizes = [2, 128], strides = [1, 1]} : vector<2x384xf32> to vector<2x128xf32>
    %432 = vector.extract_strided_slice %430 {offsets = [0, 0], sizes = [2, 128], strides = [1, 1]} : vector<2x384xf32> to vector<2x128xf32>
    %433 = arith.addf %431, %432 : vector<2x128xf32>
    %434 = arith.negf %433 : vector<2x128xf32>
    %435 = math.exp %434 : vector<2x128xf32>
    %cst_156 = arith.constant 1.000000e+00 : f32
    %436 = vector.broadcast %cst_156 : f32 to vector<2x128xf32>
    %437 = arith.addf %436, %435 : vector<2x128xf32>
    %438 = arith.divf %436, %437 : vector<2x128xf32>
    %439 = vector.extract_strided_slice %428 {offsets = [0, 128], sizes = [2, 128], strides = [1, 1]} : vector<2x384xf32> to vector<2x128xf32>
    %440 = vector.extract_strided_slice %430 {offsets = [0, 128], sizes = [2, 128], strides = [1, 1]} : vector<2x384xf32> to vector<2x128xf32>
    %441 = arith.addf %439, %440 : vector<2x128xf32>
    %442 = arith.negf %441 : vector<2x128xf32>
    %443 = math.exp %442 : vector<2x128xf32>
    %cst_157 = arith.constant 1.000000e+00 : f32
    %444 = vector.broadcast %cst_157 : f32 to vector<2x128xf32>
    %445 = arith.addf %444, %443 : vector<2x128xf32>
    %446 = arith.divf %444, %445 : vector<2x128xf32>
    %447 = vector.extract_strided_slice %428 {offsets = [0, 256], sizes = [2, 128], strides = [1, 1]} : vector<2x384xf32> to vector<2x128xf32>
    %448 = vector.extract_strided_slice %430 {offsets = [0, 256], sizes = [2, 128], strides = [1, 1]} : vector<2x384xf32> to vector<2x128xf32>
    %449 = arith.addf %448, %50 : vector<2x128xf32>
    %450 = arith.mulf %438, %449 : vector<2x128xf32>
    %451 = arith.addf %447, %450 : vector<2x128xf32>
    %452 = math.tanh %451 : vector<2x128xf32>
    %cst_158 = arith.constant 1.000000e+00 : f32
    %453 = vector.broadcast %cst_158 : f32 to vector<2x128xf32>
    %454 = arith.subf %453, %446 : vector<2x128xf32>
    %455 = arith.mulf %454, %452 : vector<2x128xf32>
    %456 = arith.mulf %446, %395 : vector<2x128xf32>
    %457 = arith.addf %455, %456 : vector<2x128xf32>
    %c20 = arith.constant 20 : index
    %c0_159 = arith.constant 0 : index
    %458 = vector.load %arg20[%c20, %c0_159] : memref<34x384xf32, #tpu.memory_space<vmem>>, vector<2x384xf32>
    %c0_160 = arith.constant 0 : index
    %c0_161 = arith.constant 0 : index
    %459 = vector.load %arg13[%c0_160, %c0_161] : memref<128x384xf32, #tpu.memory_space<vmem>>, vector<128x384xf32>
    %cst_162 = arith.constant dense<0.000000e+00> : vector<2x384xf32>
    %460 = tpu.matmul %425, %459, %cst_162 {dimension_numbers = #tpu.dot_dimension_numbers<[1], [0], [0], [1], [0, 0, 1, 1], [], []>} : vector<2x128xf32>, vector<128x384xf32>, vector<2x384xf32> -> vector<2x384xf32>
    %461 = vector.extract_strided_slice %458 {offsets = [0, 0], sizes = [2, 128], strides = [1, 1]} : vector<2x384xf32> to vector<2x128xf32>
    %462 = vector.extract_strided_slice %460 {offsets = [0, 0], sizes = [2, 128], strides = [1, 1]} : vector<2x384xf32> to vector<2x128xf32>
    %463 = arith.addf %461, %462 : vector<2x128xf32>
    %464 = arith.negf %463 : vector<2x128xf32>
    %465 = math.exp %464 : vector<2x128xf32>
    %cst_163 = arith.constant 1.000000e+00 : f32
    %466 = vector.broadcast %cst_163 : f32 to vector<2x128xf32>
    %467 = arith.addf %466, %465 : vector<2x128xf32>
    %468 = arith.divf %466, %467 : vector<2x128xf32>
    %469 = vector.extract_strided_slice %458 {offsets = [0, 128], sizes = [2, 128], strides = [1, 1]} : vector<2x384xf32> to vector<2x128xf32>
    %470 = vector.extract_strided_slice %460 {offsets = [0, 128], sizes = [2, 128], strides = [1, 1]} : vector<2x384xf32> to vector<2x128xf32>
    %471 = arith.addf %469, %470 : vector<2x128xf32>
    %472 = arith.negf %471 : vector<2x128xf32>
    %473 = math.exp %472 : vector<2x128xf32>
    %cst_164 = arith.constant 1.000000e+00 : f32
    %474 = vector.broadcast %cst_164 : f32 to vector<2x128xf32>
    %475 = arith.addf %474, %473 : vector<2x128xf32>
    %476 = arith.divf %474, %475 : vector<2x128xf32>
    %477 = vector.extract_strided_slice %458 {offsets = [0, 256], sizes = [2, 128], strides = [1, 1]} : vector<2x384xf32> to vector<2x128xf32>
    %478 = vector.extract_strided_slice %460 {offsets = [0, 256], sizes = [2, 128], strides = [1, 1]} : vector<2x384xf32> to vector<2x128xf32>
    %479 = arith.addf %478, %53 : vector<2x128xf32>
    %480 = arith.mulf %468, %479 : vector<2x128xf32>
    %481 = arith.addf %477, %480 : vector<2x128xf32>
    %482 = math.tanh %481 : vector<2x128xf32>
    %cst_165 = arith.constant 1.000000e+00 : f32
    %483 = vector.broadcast %cst_165 : f32 to vector<2x128xf32>
    %484 = arith.subf %483, %476 : vector<2x128xf32>
    %485 = arith.mulf %484, %482 : vector<2x128xf32>
    %486 = arith.mulf %476, %425 : vector<2x128xf32>
    %487 = arith.addf %485, %486 : vector<2x128xf32>
    %c12_166 = arith.constant 12 : index
    %c0_167 = arith.constant 0 : index
    %488 = vector.load %arg21[%c12_166, %c0_167] : memref<34x128xf32, #tpu.memory_space<vmem>>, vector<2x128xf32>
    tpu.vector_store %arg21[%c12_166, %c0_167], %457 {strides = array<i32>} : memref<34x128xf32, #tpu.memory_space<vmem>>, vector<2x128xf32>,
    %c20_168 = arith.constant 20 : index
    %c0_169 = arith.constant 0 : index
    %489 = vector.load %arg22[%c20_168, %c0_169] : memref<34x128xf32, #tpu.memory_space<vmem>>, vector<2x128xf32>
    tpu.vector_store %arg22[%c20_168, %c0_169], %487 {strides = array<i32>} : memref<34x128xf32, #tpu.memory_space<vmem>>, vector<2x128xf32>,
    %c14 = arith.constant 14 : index
    %c0_170 = arith.constant 0 : index
    %490 = vector.load %arg19[%c14, %c0_170] : memref<34x384xf32, #tpu.memory_space<vmem>>, vector<2x384xf32>
    %c0_171 = arith.constant 0 : index
    %c0_172 = arith.constant 0 : index
    %491 = vector.load %arg12[%c0_171, %c0_172] : memref<128x384xf32, #tpu.memory_space<vmem>>, vector<128x384xf32>
    %cst_173 = arith.constant dense<0.000000e+00> : vector<2x384xf32>
    %492 = tpu.matmul %457, %491, %cst_173 {dimension_numbers = #tpu.dot_dimension_numbers<[1], [0], [0], [1], [0, 0, 1, 1], [], []>} : vector<2x128xf32>, vector<128x384xf32>, vector<2x384xf32> -> vector<2x384xf32>
    %493 = vector.extract_strided_slice %490 {offsets = [0, 0], sizes = [2, 128], strides = [1, 1]} : vector<2x384xf32> to vector<2x128xf32>
    %494 = vector.extract_strided_slice %492 {offsets = [0, 0], sizes = [2, 128], strides = [1, 1]} : vector<2x384xf32> to vector<2x128xf32>
    %495 = arith.addf %493, %494 : vector<2x128xf32>
    %496 = arith.negf %495 : vector<2x128xf32>
    %497 = math.exp %496 : vector<2x128xf32>
    %cst_174 = arith.constant 1.000000e+00 : f32
    %498 = vector.broadcast %cst_174 : f32 to vector<2x128xf32>
    %499 = arith.addf %498, %497 : vector<2x128xf32>
    %500 = arith.divf %498, %499 : vector<2x128xf32>
    %501 = vector.extract_strided_slice %490 {offsets = [0, 128], sizes = [2, 128], strides = [1, 1]} : vector<2x384xf32> to vector<2x128xf32>
    %502 = vector.extract_strided_slice %492 {offsets = [0, 128], sizes = [2, 128], strides = [1, 1]} : vector<2x384xf32> to vector<2x128xf32>
    %503 = arith.addf %501, %502 : vector<2x128xf32>
    %504 = arith.negf %503 : vector<2x128xf32>
    %505 = math.exp %504 : vector<2x128xf32>
    %cst_175 = arith.constant 1.000000e+00 : f32
    %506 = vector.broadcast %cst_175 : f32 to vector<2x128xf32>
    %507 = arith.addf %506, %505 : vector<2x128xf32>
    %508 = arith.divf %506, %507 : vector<2x128xf32>
    %509 = vector.extract_strided_slice %490 {offsets = [0, 256], sizes = [2, 128], strides = [1, 1]} : vector<2x384xf32> to vector<2x128xf32>
    %510 = vector.extract_strided_slice %492 {offsets = [0, 256], sizes = [2, 128], strides = [1, 1]} : vector<2x384xf32> to vector<2x128xf32>
    %511 = arith.addf %510, %50 : vector<2x128xf32>
    %512 = arith.mulf %500, %511 : vector<2x128xf32>
    %513 = arith.addf %509, %512 : vector<2x128xf32>
    %514 = math.tanh %513 : vector<2x128xf32>
    %cst_176 = arith.constant 1.000000e+00 : f32
    %515 = vector.broadcast %cst_176 : f32 to vector<2x128xf32>
    %516 = arith.subf %515, %508 : vector<2x128xf32>
    %517 = arith.mulf %516, %514 : vector<2x128xf32>
    %518 = arith.mulf %508, %457 : vector<2x128xf32>
    %519 = arith.addf %517, %518 : vector<2x128xf32>
    %c18 = arith.constant 18 : index
    %c0_177 = arith.constant 0 : index
    %520 = vector.load %arg20[%c18, %c0_177] : memref<34x384xf32, #tpu.memory_space<vmem>>, vector<2x384xf32>
    %c0_178 = arith.constant 0 : index
    %c0_179 = arith.constant 0 : index
    %521 = vector.load %arg13[%c0_178, %c0_179] : memref<128x384xf32, #tpu.memory_space<vmem>>, vector<128x384xf32>
    %cst_180 = arith.constant dense<0.000000e+00> : vector<2x384xf32>
    %522 = tpu.matmul %487, %521, %cst_180 {dimension_numbers = #tpu.dot_dimension_numbers<[1], [0], [0], [1], [0, 0, 1, 1], [], []>} : vector<2x128xf32>, vector<128x384xf32>, vector<2x384xf32> -> vector<2x384xf32>
    %523 = vector.extract_strided_slice %520 {offsets = [0, 0], sizes = [2, 128], strides = [1, 1]} : vector<2x384xf32> to vector<2x128xf32>
    %524 = vector.extract_strided_slice %522 {offsets = [0, 0], sizes = [2, 128], strides = [1, 1]} : vector<2x384xf32> to vector<2x128xf32>
    %525 = arith.addf %523, %524 : vector<2x128xf32>
    %526 = arith.negf %525 : vector<2x128xf32>
    %527 = math.exp %526 : vector<2x128xf32>
    %cst_181 = arith.constant 1.000000e+00 : f32
    %528 = vector.broadcast %cst_181 : f32 to vector<2x128xf32>
    %529 = arith.addf %528, %527 : vector<2x128xf32>
    %530 = arith.divf %528, %529 : vector<2x128xf32>
    %531 = vector.extract_strided_slice %520 {offsets = [0, 128], sizes = [2, 128], strides = [1, 1]} : vector<2x384xf32> to vector<2x128xf32>
    %532 = vector.extract_strided_slice %522 {offsets = [0, 128], sizes = [2, 128], strides = [1, 1]} : vector<2x384xf32> to vector<2x128xf32>
    %533 = arith.addf %531, %532 : vector<2x128xf32>
    %534 = arith.negf %533 : vector<2x128xf32>
    %535 = math.exp %534 : vector<2x128xf32>
    %cst_182 = arith.constant 1.000000e+00 : f32
    %536 = vector.broadcast %cst_182 : f32 to vector<2x128xf32>
    %537 = arith.addf %536, %535 : vector<2x128xf32>
    %538 = arith.divf %536, %537 : vector<2x128xf32>
    %539 = vector.extract_strided_slice %520 {offsets = [0, 256], sizes = [2, 128], strides = [1, 1]} : vector<2x384xf32> to vector<2x128xf32>
    %540 = vector.extract_strided_slice %522 {offsets = [0, 256], sizes = [2, 128], strides = [1, 1]} : vector<2x384xf32> to vector<2x128xf32>
    %541 = arith.addf %540, %53 : vector<2x128xf32>
    %542 = arith.mulf %530, %541 : vector<2x128xf32>
    %543 = arith.addf %539, %542 : vector<2x128xf32>
    %544 = math.tanh %543 : vector<2x128xf32>
    %cst_183 = arith.constant 1.000000e+00 : f32
    %545 = vector.broadcast %cst_183 : f32 to vector<2x128xf32>
    %546 = arith.subf %545, %538 : vector<2x128xf32>
    %547 = arith.mulf %546, %544 : vector<2x128xf32>
    %548 = arith.mulf %538, %487 : vector<2x128xf32>
    %549 = arith.addf %547, %548 : vector<2x128xf32>
    %c14_184 = arith.constant 14 : index
    %c0_185 = arith.constant 0 : index
    %550 = vector.load %arg21[%c14_184, %c0_185] : memref<34x128xf32, #tpu.memory_space<vmem>>, vector<2x128xf32>
    tpu.vector_store %arg21[%c14_184, %c0_185], %519 {strides = array<i32>} : memref<34x128xf32, #tpu.memory_space<vmem>>, vector<2x128xf32>,
    %c18_186 = arith.constant 18 : index
    %c0_187 = arith.constant 0 : index
    %551 = vector.load %arg22[%c18_186, %c0_187] : memref<34x128xf32, #tpu.memory_space<vmem>>, vector<2x128xf32>
    tpu.vector_store %arg22[%c18_186, %c0_187], %549 {strides = array<i32>} : memref<34x128xf32, #tpu.memory_space<vmem>>, vector<2x128xf32>,
    %c16 = arith.constant 16 : index
    %c0_188 = arith.constant 0 : index
    %552 = vector.load %arg19[%c16, %c0_188] : memref<34x384xf32, #tpu.memory_space<vmem>>, vector<2x384xf32>
    %c0_189 = arith.constant 0 : index
    %c0_190 = arith.constant 0 : index
    %553 = vector.load %arg12[%c0_189, %c0_190] : memref<128x384xf32, #tpu.memory_space<vmem>>, vector<128x384xf32>
    %cst_191 = arith.constant dense<0.000000e+00> : vector<2x384xf32>
    %554 = tpu.matmul %519, %553, %cst_191 {dimension_numbers = #tpu.dot_dimension_numbers<[1], [0], [0], [1], [0, 0, 1, 1], [], []>} : vector<2x128xf32>, vector<128x384xf32>, vector<2x384xf32> -> vector<2x384xf32>
    %555 = vector.extract_strided_slice %552 {offsets = [0, 0], sizes = [2, 128], strides = [1, 1]} : vector<2x384xf32> to vector<2x128xf32>
    %556 = vector.extract_strided_slice %554 {offsets = [0, 0], sizes = [2, 128], strides = [1, 1]} : vector<2x384xf32> to vector<2x128xf32>
    %557 = arith.addf %555, %556 : vector<2x128xf32>
    %558 = arith.negf %557 : vector<2x128xf32>
    %559 = math.exp %558 : vector<2x128xf32>
    %cst_192 = arith.constant 1.000000e+00 : f32
    %560 = vector.broadcast %cst_192 : f32 to vector<2x128xf32>
    %561 = arith.addf %560, %559 : vector<2x128xf32>
    %562 = arith.divf %560, %561 : vector<2x128xf32>
    %563 = vector.extract_strided_slice %552 {offsets = [0, 128], sizes = [2, 128], strides = [1, 1]} : vector<2x384xf32> to vector<2x128xf32>
    %564 = vector.extract_strided_slice %554 {offsets = [0, 128], sizes = [2, 128], strides = [1, 1]} : vector<2x384xf32> to vector<2x128xf32>
    %565 = arith.addf %563, %564 : vector<2x128xf32>
    %566 = arith.negf %565 : vector<2x128xf32>
    %567 = math.exp %566 : vector<2x128xf32>
    %cst_193 = arith.constant 1.000000e+00 : f32
    %568 = vector.broadcast %cst_193 : f32 to vector<2x128xf32>
    %569 = arith.addf %568, %567 : vector<2x128xf32>
    %570 = arith.divf %568, %569 : vector<2x128xf32>
    %571 = vector.extract_strided_slice %552 {offsets = [0, 256], sizes = [2, 128], strides = [1, 1]} : vector<2x384xf32> to vector<2x128xf32>
    %572 = vector.extract_strided_slice %554 {offsets = [0, 256], sizes = [2, 128], strides = [1, 1]} : vector<2x384xf32> to vector<2x128xf32>
    %573 = arith.addf %572, %50 : vector<2x128xf32>
    %574 = arith.mulf %562, %573 : vector<2x128xf32>
    %575 = arith.addf %571, %574 : vector<2x128xf32>
    %576 = math.tanh %575 : vector<2x128xf32>
    %cst_194 = arith.constant 1.000000e+00 : f32
    %577 = vector.broadcast %cst_194 : f32 to vector<2x128xf32>
    %578 = arith.subf %577, %570 : vector<2x128xf32>
    %579 = arith.mulf %578, %576 : vector<2x128xf32>
    %580 = arith.mulf %570, %519 : vector<2x128xf32>
    %581 = arith.addf %579, %580 : vector<2x128xf32>
    %c16_195 = arith.constant 16 : index
    %c0_196 = arith.constant 0 : index
    %582 = vector.load %arg20[%c16_195, %c0_196] : memref<34x384xf32, #tpu.memory_space<vmem>>, vector<2x384xf32>
    %c0_197 = arith.constant 0 : index
    %c0_198 = arith.constant 0 : index
    %583 = vector.load %arg13[%c0_197, %c0_198] : memref<128x384xf32, #tpu.memory_space<vmem>>, vector<128x384xf32>
    %cst_199 = arith.constant dense<0.000000e+00> : vector<2x384xf32>
    %584 = tpu.matmul %549, %583, %cst_199 {dimension_numbers = #tpu.dot_dimension_numbers<[1], [0], [0], [1], [0, 0, 1, 1], [], []>} : vector<2x128xf32>, vector<128x384xf32>, vector<2x384xf32> -> vector<2x384xf32>
    %585 = vector.extract_strided_slice %582 {offsets = [0, 0], sizes = [2, 128], strides = [1, 1]} : vector<2x384xf32> to vector<2x128xf32>
    %586 = vector.extract_strided_slice %584 {offsets = [0, 0], sizes = [2, 128], strides = [1, 1]} : vector<2x384xf32> to vector<2x128xf32>
    %587 = arith.addf %585, %586 : vector<2x128xf32>
    %588 = arith.negf %587 : vector<2x128xf32>
    %589 = math.exp %588 : vector<2x128xf32>
    %cst_200 = arith.constant 1.000000e+00 : f32
    %590 = vector.broadcast %cst_200 : f32 to vector<2x128xf32>
    %591 = arith.addf %590, %589 : vector<2x128xf32>
    %592 = arith.divf %590, %591 : vector<2x128xf32>
    %593 = vector.extract_strided_slice %582 {offsets = [0, 128], sizes = [2, 128], strides = [1, 1]} : vector<2x384xf32> to vector<2x128xf32>
    %594 = vector.extract_strided_slice %584 {offsets = [0, 128], sizes = [2, 128], strides = [1, 1]} : vector<2x384xf32> to vector<2x128xf32>
    %595 = arith.addf %593, %594 : vector<2x128xf32>
    %596 = arith.negf %595 : vector<2x128xf32>
    %597 = math.exp %596 : vector<2x128xf32>
    %cst_201 = arith.constant 1.000000e+00 : f32
    %598 = vector.broadcast %cst_201 : f32 to vector<2x128xf32>
    %599 = arith.addf %598, %597 : vector<2x128xf32>
    %600 = arith.divf %598, %599 : vector<2x128xf32>
    %601 = vector.extract_strided_slice %582 {offsets = [0, 256], sizes = [2, 128], strides = [1, 1]} : vector<2x384xf32> to vector<2x128xf32>
    %602 = vector.extract_strided_slice %584 {offsets = [0, 256], sizes = [2, 128], strides = [1, 1]} : vector<2x384xf32> to vector<2x128xf32>
    %603 = arith.addf %602, %53 : vector<2x128xf32>
    %604 = arith.mulf %592, %603 : vector<2x128xf32>
    %605 = arith.addf %601, %604 : vector<2x128xf32>
    %606 = math.tanh %605 : vector<2x128xf32>
    %cst_202 = arith.constant 1.000000e+00 : f32
    %607 = vector.broadcast %cst_202 : f32 to vector<2x128xf32>
    %608 = arith.subf %607, %600 : vector<2x128xf32>
    %609 = arith.mulf %608, %606 : vector<2x128xf32>
    %610 = arith.mulf %600, %549 : vector<2x128xf32>
    %611 = arith.addf %609, %610 : vector<2x128xf32>
    %c16_203 = arith.constant 16 : index
    %c0_204 = arith.constant 0 : index
    %612 = vector.load %arg21[%c16_203, %c0_204] : memref<34x128xf32, #tpu.memory_space<vmem>>, vector<2x128xf32>
    tpu.vector_store %arg21[%c16_203, %c0_204], %581 {strides = array<i32>} : memref<34x128xf32, #tpu.memory_space<vmem>>, vector<2x128xf32>,
    %c16_205 = arith.constant 16 : index
    %c0_206 = arith.constant 0 : index
    %613 = vector.load %arg22[%c16_205, %c0_206] : memref<34x128xf32, #tpu.memory_space<vmem>>, vector<2x128xf32>
    tpu.vector_store %arg22[%c16_205, %c0_206], %611 {strides = array<i32>} : memref<34x128xf32, #tpu.memory_space<vmem>>, vector<2x128xf32>,
    %c18_207 = arith.constant 18 : index
    %c0_208 = arith.constant 0 : index
    %614 = vector.load %arg19[%c18_207, %c0_208] : memref<34x384xf32, #tpu.memory_space<vmem>>, vector<2x384xf32>
    %c0_209 = arith.constant 0 : index
    %c0_210 = arith.constant 0 : index
    %615 = vector.load %arg12[%c0_209, %c0_210] : memref<128x384xf32, #tpu.memory_space<vmem>>, vector<128x384xf32>
    %cst_211 = arith.constant dense<0.000000e+00> : vector<2x384xf32>
    %616 = tpu.matmul %581, %615, %cst_211 {dimension_numbers = #tpu.dot_dimension_numbers<[1], [0], [0], [1], [0, 0, 1, 1], [], []>} : vector<2x128xf32>, vector<128x384xf32>, vector<2x384xf32> -> vector<2x384xf32>
    %617 = vector.extract_strided_slice %614 {offsets = [0, 0], sizes = [2, 128], strides = [1, 1]} : vector<2x384xf32> to vector<2x128xf32>
    %618 = vector.extract_strided_slice %616 {offsets = [0, 0], sizes = [2, 128], strides = [1, 1]} : vector<2x384xf32> to vector<2x128xf32>
    %619 = arith.addf %617, %618 : vector<2x128xf32>
    %620 = arith.negf %619 : vector<2x128xf32>
    %621 = math.exp %620 : vector<2x128xf32>
    %cst_212 = arith.constant 1.000000e+00 : f32
    %622 = vector.broadcast %cst_212 : f32 to vector<2x128xf32>
    %623 = arith.addf %622, %621 : vector<2x128xf32>
    %624 = arith.divf %622, %623 : vector<2x128xf32>
    %625 = vector.extract_strided_slice %614 {offsets = [0, 128], sizes = [2, 128], strides = [1, 1]} : vector<2x384xf32> to vector<2x128xf32>
    %626 = vector.extract_strided_slice %616 {offsets = [0, 128], sizes = [2, 128], strides = [1, 1]} : vector<2x384xf32> to vector<2x128xf32>
    %627 = arith.addf %625, %626 : vector<2x128xf32>
    %628 = arith.negf %627 : vector<2x128xf32>
    %629 = math.exp %628 : vector<2x128xf32>
    %cst_213 = arith.constant 1.000000e+00 : f32
    %630 = vector.broadcast %cst_213 : f32 to vector<2x128xf32>
    %631 = arith.addf %630, %629 : vector<2x128xf32>
    %632 = arith.divf %630, %631 : vector<2x128xf32>
    %633 = vector.extract_strided_slice %614 {offsets = [0, 256], sizes = [2, 128], strides = [1, 1]} : vector<2x384xf32> to vector<2x128xf32>
    %634 = vector.extract_strided_slice %616 {offsets = [0, 256], sizes = [2, 128], strides = [1, 1]} : vector<2x384xf32> to vector<2x128xf32>
    %635 = arith.addf %634, %50 : vector<2x128xf32>
    %636 = arith.mulf %624, %635 : vector<2x128xf32>
    %637 = arith.addf %633, %636 : vector<2x128xf32>
    %638 = math.tanh %637 : vector<2x128xf32>
    %cst_214 = arith.constant 1.000000e+00 : f32
    %639 = vector.broadcast %cst_214 : f32 to vector<2x128xf32>
    %640 = arith.subf %639, %632 : vector<2x128xf32>
    %641 = arith.mulf %640, %638 : vector<2x128xf32>
    %642 = arith.mulf %632, %581 : vector<2x128xf32>
    %643 = arith.addf %641, %642 : vector<2x128xf32>
    %c14_215 = arith.constant 14 : index
    %c0_216 = arith.constant 0 : index
    %644 = vector.load %arg20[%c14_215, %c0_216] : memref<34x384xf32, #tpu.memory_space<vmem>>, vector<2x384xf32>
    %c0_217 = arith.constant 0 : index
    %c0_218 = arith.constant 0 : index
    %645 = vector.load %arg13[%c0_217, %c0_218] : memref<128x384xf32, #tpu.memory_space<vmem>>, vector<128x384xf32>
    %cst_219 = arith.constant dense<0.000000e+00> : vector<2x384xf32>
    %646 = tpu.matmul %611, %645, %cst_219 {dimension_numbers = #tpu.dot_dimension_numbers<[1], [0], [0], [1], [0, 0, 1, 1], [], []>} : vector<2x128xf32>, vector<128x384xf32>, vector<2x384xf32> -> vector<2x384xf32>
    %647 = vector.extract_strided_slice %644 {offsets = [0, 0], sizes = [2, 128], strides = [1, 1]} : vector<2x384xf32> to vector<2x128xf32>
    %648 = vector.extract_strided_slice %646 {offsets = [0, 0], sizes = [2, 128], strides = [1, 1]} : vector<2x384xf32> to vector<2x128xf32>
    %649 = arith.addf %647, %648 : vector<2x128xf32>
    %650 = arith.negf %649 : vector<2x128xf32>
    %651 = math.exp %650 : vector<2x128xf32>
    %cst_220 = arith.constant 1.000000e+00 : f32
    %652 = vector.broadcast %cst_220 : f32 to vector<2x128xf32>
    %653 = arith.addf %652, %651 : vector<2x128xf32>
    %654 = arith.divf %652, %653 : vector<2x128xf32>
    %655 = vector.extract_strided_slice %644 {offsets = [0, 128], sizes = [2, 128], strides = [1, 1]} : vector<2x384xf32> to vector<2x128xf32>
    %656 = vector.extract_strided_slice %646 {offsets = [0, 128], sizes = [2, 128], strides = [1, 1]} : vector<2x384xf32> to vector<2x128xf32>
    %657 = arith.addf %655, %656 : vector<2x128xf32>
    %658 = arith.negf %657 : vector<2x128xf32>
    %659 = math.exp %658 : vector<2x128xf32>
    %cst_221 = arith.constant 1.000000e+00 : f32
    %660 = vector.broadcast %cst_221 : f32 to vector<2x128xf32>
    %661 = arith.addf %660, %659 : vector<2x128xf32>
    %662 = arith.divf %660, %661 : vector<2x128xf32>
    %663 = vector.extract_strided_slice %644 {offsets = [0, 256], sizes = [2, 128], strides = [1, 1]} : vector<2x384xf32> to vector<2x128xf32>
    %664 = vector.extract_strided_slice %646 {offsets = [0, 256], sizes = [2, 128], strides = [1, 1]} : vector<2x384xf32> to vector<2x128xf32>
    %665 = arith.addf %664, %53 : vector<2x128xf32>
    %666 = arith.mulf %654, %665 : vector<2x128xf32>
    %667 = arith.addf %663, %666 : vector<2x128xf32>
    %668 = math.tanh %667 : vector<2x128xf32>
    %cst_222 = arith.constant 1.000000e+00 : f32
    %669 = vector.broadcast %cst_222 : f32 to vector<2x128xf32>
    %670 = arith.subf %669, %662 : vector<2x128xf32>
    %671 = arith.mulf %670, %668 : vector<2x128xf32>
    %672 = arith.mulf %662, %611 : vector<2x128xf32>
    %673 = arith.addf %671, %672 : vector<2x128xf32>
    %c18_223 = arith.constant 18 : index
    %c0_224 = arith.constant 0 : index
    %674 = vector.load %arg21[%c18_223, %c0_224] : memref<34x128xf32, #tpu.memory_space<vmem>>, vector<2x128xf32>
    tpu.vector_store %arg21[%c18_223, %c0_224], %643 {strides = array<i32>} : memref<34x128xf32, #tpu.memory_space<vmem>>, vector<2x128xf32>,
    %c14_225 = arith.constant 14 : index
    %c0_226 = arith.constant 0 : index
    %675 = vector.load %arg22[%c14_225, %c0_226] : memref<34x128xf32, #tpu.memory_space<vmem>>, vector<2x128xf32>
    tpu.vector_store %arg22[%c14_225, %c0_226], %673 {strides = array<i32>} : memref<34x128xf32, #tpu.memory_space<vmem>>, vector<2x128xf32>,
    %c20_227 = arith.constant 20 : index
    %c0_228 = arith.constant 0 : index
    %676 = vector.load %arg19[%c20_227, %c0_228] : memref<34x384xf32, #tpu.memory_space<vmem>>, vector<2x384xf32>
    %c0_229 = arith.constant 0 : index
    %c0_230 = arith.constant 0 : index
    %677 = vector.load %arg12[%c0_229, %c0_230] : memref<128x384xf32, #tpu.memory_space<vmem>>, vector<128x384xf32>
    %cst_231 = arith.constant dense<0.000000e+00> : vector<2x384xf32>
    %678 = tpu.matmul %643, %677, %cst_231 {dimension_numbers = #tpu.dot_dimension_numbers<[1], [0], [0], [1], [0, 0, 1, 1], [], []>} : vector<2x128xf32>, vector<128x384xf32>, vector<2x384xf32> -> vector<2x384xf32>
    %679 = vector.extract_strided_slice %676 {offsets = [0, 0], sizes = [2, 128], strides = [1, 1]} : vector<2x384xf32> to vector<2x128xf32>
    %680 = vector.extract_strided_slice %678 {offsets = [0, 0], sizes = [2, 128], strides = [1, 1]} : vector<2x384xf32> to vector<2x128xf32>
    %681 = arith.addf %679, %680 : vector<2x128xf32>
    %682 = arith.negf %681 : vector<2x128xf32>
    %683 = math.exp %682 : vector<2x128xf32>
    %cst_232 = arith.constant 1.000000e+00 : f32
    %684 = vector.broadcast %cst_232 : f32 to vector<2x128xf32>
    %685 = arith.addf %684, %683 : vector<2x128xf32>
    %686 = arith.divf %684, %685 : vector<2x128xf32>
    %687 = vector.extract_strided_slice %676 {offsets = [0, 128], sizes = [2, 128], strides = [1, 1]} : vector<2x384xf32> to vector<2x128xf32>
    %688 = vector.extract_strided_slice %678 {offsets = [0, 128], sizes = [2, 128], strides = [1, 1]} : vector<2x384xf32> to vector<2x128xf32>
    %689 = arith.addf %687, %688 : vector<2x128xf32>
    %690 = arith.negf %689 : vector<2x128xf32>
    %691 = math.exp %690 : vector<2x128xf32>
    %cst_233 = arith.constant 1.000000e+00 : f32
    %692 = vector.broadcast %cst_233 : f32 to vector<2x128xf32>
    %693 = arith.addf %692, %691 : vector<2x128xf32>
    %694 = arith.divf %692, %693 : vector<2x128xf32>
    %695 = vector.extract_strided_slice %676 {offsets = [0, 256], sizes = [2, 128], strides = [1, 1]} : vector<2x384xf32> to vector<2x128xf32>
    %696 = vector.extract_strided_slice %678 {offsets = [0, 256], sizes = [2, 128], strides = [1, 1]} : vector<2x384xf32> to vector<2x128xf32>
    %697 = arith.addf %696, %50 : vector<2x128xf32>
    %698 = arith.mulf %686, %697 : vector<2x128xf32>
    %699 = arith.addf %695, %698 : vector<2x128xf32>
    %700 = math.tanh %699 : vector<2x128xf32>
    %cst_234 = arith.constant 1.000000e+00 : f32
    %701 = vector.broadcast %cst_234 : f32 to vector<2x128xf32>
    %702 = arith.subf %701, %694 : vector<2x128xf32>
    %703 = arith.mulf %702, %700 : vector<2x128xf32>
    %704 = arith.mulf %694, %643 : vector<2x128xf32>
    %705 = arith.addf %703, %704 : vector<2x128xf32>
    %c12_235 = arith.constant 12 : index
    %c0_236 = arith.constant 0 : index
    %706 = vector.load %arg20[%c12_235, %c0_236] : memref<34x384xf32, #tpu.memory_space<vmem>>, vector<2x384xf32>
    %c0_237 = arith.constant 0 : index
    %c0_238 = arith.constant 0 : index
    %707 = vector.load %arg13[%c0_237, %c0_238] : memref<128x384xf32, #tpu.memory_space<vmem>>, vector<128x384xf32>
    %cst_239 = arith.constant dense<0.000000e+00> : vector<2x384xf32>
    %708 = tpu.matmul %673, %707, %cst_239 {dimension_numbers = #tpu.dot_dimension_numbers<[1], [0], [0], [1], [0, 0, 1, 1], [], []>} : vector<2x128xf32>, vector<128x384xf32>, vector<2x384xf32> -> vector<2x384xf32>
    %709 = vector.extract_strided_slice %706 {offsets = [0, 0], sizes = [2, 128], strides = [1, 1]} : vector<2x384xf32> to vector<2x128xf32>
    %710 = vector.extract_strided_slice %708 {offsets = [0, 0], sizes = [2, 128], strides = [1, 1]} : vector<2x384xf32> to vector<2x128xf32>
    %711 = arith.addf %709, %710 : vector<2x128xf32>
    %712 = arith.negf %711 : vector<2x128xf32>
    %713 = math.exp %712 : vector<2x128xf32>
    %cst_240 = arith.constant 1.000000e+00 : f32
    %714 = vector.broadcast %cst_240 : f32 to vector<2x128xf32>
    %715 = arith.addf %714, %713 : vector<2x128xf32>
    %716 = arith.divf %714, %715 : vector<2x128xf32>
    %717 = vector.extract_strided_slice %706 {offsets = [0, 128], sizes = [2, 128], strides = [1, 1]} : vector<2x384xf32> to vector<2x128xf32>
    %718 = vector.extract_strided_slice %708 {offsets = [0, 128], sizes = [2, 128], strides = [1, 1]} : vector<2x384xf32> to vector<2x128xf32>
    %719 = arith.addf %717, %718 : vector<2x128xf32>
    %720 = arith.negf %719 : vector<2x128xf32>
    %721 = math.exp %720 : vector<2x128xf32>
    %cst_241 = arith.constant 1.000000e+00 : f32
    %722 = vector.broadcast %cst_241 : f32 to vector<2x128xf32>
    %723 = arith.addf %722, %721 : vector<2x128xf32>
    %724 = arith.divf %722, %723 : vector<2x128xf32>
    %725 = vector.extract_strided_slice %706 {offsets = [0, 256], sizes = [2, 128], strides = [1, 1]} : vector<2x384xf32> to vector<2x128xf32>
    %726 = vector.extract_strided_slice %708 {offsets = [0, 256], sizes = [2, 128], strides = [1, 1]} : vector<2x384xf32> to vector<2x128xf32>
    %727 = arith.addf %726, %53 : vector<2x128xf32>
    %728 = arith.mulf %716, %727 : vector<2x128xf32>
    %729 = arith.addf %725, %728 : vector<2x128xf32>
    %730 = math.tanh %729 : vector<2x128xf32>
    %cst_242 = arith.constant 1.000000e+00 : f32
    %731 = vector.broadcast %cst_242 : f32 to vector<2x128xf32>
    %732 = arith.subf %731, %724 : vector<2x128xf32>
    %733 = arith.mulf %732, %730 : vector<2x128xf32>
    %734 = arith.mulf %724, %673 : vector<2x128xf32>
    %735 = arith.addf %733, %734 : vector<2x128xf32>
    %c20_243 = arith.constant 20 : index
    %c0_244 = arith.constant 0 : index
    %736 = vector.load %arg21[%c20_243, %c0_244] : memref<34x128xf32, #tpu.memory_space<vmem>>, vector<2x128xf32>
    tpu.vector_store %arg21[%c20_243, %c0_244], %705 {strides = array<i32>} : memref<34x128xf32, #tpu.memory_space<vmem>>, vector<2x128xf32>,
    %c12_245 = arith.constant 12 : index
    %c0_246 = arith.constant 0 : index
    %737 = vector.load %arg22[%c12_245, %c0_246] : memref<34x128xf32, #tpu.memory_space<vmem>>, vector<2x128xf32>
    tpu.vector_store %arg22[%c12_245, %c0_246], %735 {strides = array<i32>} : memref<34x128xf32, #tpu.memory_space<vmem>>, vector<2x128xf32>,
    %c22_247 = arith.constant 22 : index
    %c0_248 = arith.constant 0 : index
    %738 = vector.load %arg19[%c22_247, %c0_248] : memref<34x384xf32, #tpu.memory_space<vmem>>, vector<2x384xf32>
    %c0_249 = arith.constant 0 : index
    %c0_250 = arith.constant 0 : index
    %739 = vector.load %arg12[%c0_249, %c0_250] : memref<128x384xf32, #tpu.memory_space<vmem>>, vector<128x384xf32>
    %cst_251 = arith.constant dense<0.000000e+00> : vector<2x384xf32>
    %740 = tpu.matmul %705, %739, %cst_251 {dimension_numbers = #tpu.dot_dimension_numbers<[1], [0], [0], [1], [0, 0, 1, 1], [], []>} : vector<2x128xf32>, vector<128x384xf32>, vector<2x384xf32> -> vector<2x384xf32>
    %741 = vector.extract_strided_slice %738 {offsets = [0, 0], sizes = [2, 128], strides = [1, 1]} : vector<2x384xf32> to vector<2x128xf32>
    %742 = vector.extract_strided_slice %740 {offsets = [0, 0], sizes = [2, 128], strides = [1, 1]} : vector<2x384xf32> to vector<2x128xf32>
    %743 = arith.addf %741, %742 : vector<2x128xf32>
    %744 = arith.negf %743 : vector<2x128xf32>
    %745 = math.exp %744 : vector<2x128xf32>
    %cst_252 = arith.constant 1.000000e+00 : f32
    %746 = vector.broadcast %cst_252 : f32 to vector<2x128xf32>
    %747 = arith.addf %746, %745 : vector<2x128xf32>
    %748 = arith.divf %746, %747 : vector<2x128xf32>
    %749 = vector.extract_strided_slice %738 {offsets = [0, 128], sizes = [2, 128], strides = [1, 1]} : vector<2x384xf32> to vector<2x128xf32>
    %750 = vector.extract_strided_slice %740 {offsets = [0, 128], sizes = [2, 128], strides = [1, 1]} : vector<2x384xf32> to vector<2x128xf32>
    %751 = arith.addf %749, %750 : vector<2x128xf32>
    %752 = arith.negf %751 : vector<2x128xf32>
    %753 = math.exp %752 : vector<2x128xf32>
    %cst_253 = arith.constant 1.000000e+00 : f32
    %754 = vector.broadcast %cst_253 : f32 to vector<2x128xf32>
    %755 = arith.addf %754, %753 : vector<2x128xf32>
    %756 = arith.divf %754, %755 : vector<2x128xf32>
    %757 = vector.extract_strided_slice %738 {offsets = [0, 256], sizes = [2, 128], strides = [1, 1]} : vector<2x384xf32> to vector<2x128xf32>
    %758 = vector.extract_strided_slice %740 {offsets = [0, 256], sizes = [2, 128], strides = [1, 1]} : vector<2x384xf32> to vector<2x128xf32>
    %759 = arith.addf %758, %50 : vector<2x128xf32>
    %760 = arith.mulf %748, %759 : vector<2x128xf32>
    %761 = arith.addf %757, %760 : vector<2x128xf32>
    %762 = math.tanh %761 : vector<2x128xf32>
    %cst_254 = arith.constant 1.000000e+00 : f32
    %763 = vector.broadcast %cst_254 : f32 to vector<2x128xf32>
    %764 = arith.subf %763, %756 : vector<2x128xf32>
    %765 = arith.mulf %764, %762 : vector<2x128xf32>
    %766 = arith.mulf %756, %705 : vector<2x128xf32>
    %767 = arith.addf %765, %766 : vector<2x128xf32>
    %c10_255 = arith.constant 10 : index
    %c0_256 = arith.constant 0 : index
    %768 = vector.load %arg20[%c10_255, %c0_256] : memref<34x384xf32, #tpu.memory_space<vmem>>, vector<2x384xf32>
    %c0_257 = arith.constant 0 : index
    %c0_258 = arith.constant 0 : index
    %769 = vector.load %arg13[%c0_257, %c0_258] : memref<128x384xf32, #tpu.memory_space<vmem>>, vector<128x384xf32>
    %cst_259 = arith.constant dense<0.000000e+00> : vector<2x384xf32>
    %770 = tpu.matmul %735, %769, %cst_259 {dimension_numbers = #tpu.dot_dimension_numbers<[1], [0], [0], [1], [0, 0, 1, 1], [], []>} : vector<2x128xf32>, vector<128x384xf32>, vector<2x384xf32> -> vector<2x384xf32>
    %771 = vector.extract_strided_slice %768 {offsets = [0, 0], sizes = [2, 128], strides = [1, 1]} : vector<2x384xf32> to vector<2x128xf32>
    %772 = vector.extract_strided_slice %770 {offsets = [0, 0], sizes = [2, 128], strides = [1, 1]} : vector<2x384xf32> to vector<2x128xf32>
    %773 = arith.addf %771, %772 : vector<2x128xf32>
    %774 = arith.negf %773 : vector<2x128xf32>
    %775 = math.exp %774 : vector<2x128xf32>
    %cst_260 = arith.constant 1.000000e+00 : f32
    %776 = vector.broadcast %cst_260 : f32 to vector<2x128xf32>
    %777 = arith.addf %776, %775 : vector<2x128xf32>
    %778 = arith.divf %776, %777 : vector<2x128xf32>
    %779 = vector.extract_strided_slice %768 {offsets = [0, 128], sizes = [2, 128], strides = [1, 1]} : vector<2x384xf32> to vector<2x128xf32>
    %780 = vector.extract_strided_slice %770 {offsets = [0, 128], sizes = [2, 128], strides = [1, 1]} : vector<2x384xf32> to vector<2x128xf32>
    %781 = arith.addf %779, %780 : vector<2x128xf32>
    %782 = arith.negf %781 : vector<2x128xf32>
    %783 = math.exp %782 : vector<2x128xf32>
    %cst_261 = arith.constant 1.000000e+00 : f32
    %784 = vector.broadcast %cst_261 : f32 to vector<2x128xf32>
    %785 = arith.addf %784, %783 : vector<2x128xf32>
    %786 = arith.divf %784, %785 : vector<2x128xf32>
    %787 = vector.extract_strided_slice %768 {offsets = [0, 256], sizes = [2, 128], strides = [1, 1]} : vector<2x384xf32> to vector<2x128xf32>
    %788 = vector.extract_strided_slice %770 {offsets = [0, 256], sizes = [2, 128], strides = [1, 1]} : vector<2x384xf32> to vector<2x128xf32>
    %789 = arith.addf %788, %53 : vector<2x128xf32>
    %790 = arith.mulf %778, %789 : vector<2x128xf32>
    %791 = arith.addf %787, %790 : vector<2x128xf32>
    %792 = math.tanh %791 : vector<2x128xf32>
    %cst_262 = arith.constant 1.000000e+00 : f32
    %793 = vector.broadcast %cst_262 : f32 to vector<2x128xf32>
    %794 = arith.subf %793, %786 : vector<2x128xf32>
    %795 = arith.mulf %794, %792 : vector<2x128xf32>
    %796 = arith.mulf %786, %735 : vector<2x128xf32>
    %797 = arith.addf %795, %796 : vector<2x128xf32>
    %c22_263 = arith.constant 22 : index
    %c0_264 = arith.constant 0 : index
    %798 = vector.load %arg21[%c22_263, %c0_264] : memref<34x128xf32, #tpu.memory_space<vmem>>, vector<2x128xf32>
    tpu.vector_store %arg21[%c22_263, %c0_264], %767 {strides = array<i32>} : memref<34x128xf32, #tpu.memory_space<vmem>>, vector<2x128xf32>,
    %c10_265 = arith.constant 10 : index
    %c0_266 = arith.constant 0 : index
    %799 = vector.load %arg22[%c10_265, %c0_266] : memref<34x128xf32, #tpu.memory_space<vmem>>, vector<2x128xf32>
    tpu.vector_store %arg22[%c10_265, %c0_266], %797 {strides = array<i32>} : memref<34x128xf32, #tpu.memory_space<vmem>>, vector<2x128xf32>,
    %c24_267 = arith.constant 24 : index
    %c0_268 = arith.constant 0 : index
    %800 = vector.load %arg19[%c24_267, %c0_268] : memref<34x384xf32, #tpu.memory_space<vmem>>, vector<2x384xf32>
    %c0_269 = arith.constant 0 : index
    %c0_270 = arith.constant 0 : index
    %801 = vector.load %arg12[%c0_269, %c0_270] : memref<128x384xf32, #tpu.memory_space<vmem>>, vector<128x384xf32>
    %cst_271 = arith.constant dense<0.000000e+00> : vector<2x384xf32>
    %802 = tpu.matmul %767, %801, %cst_271 {dimension_numbers = #tpu.dot_dimension_numbers<[1], [0], [0], [1], [0, 0, 1, 1], [], []>} : vector<2x128xf32>, vector<128x384xf32>, vector<2x384xf32> -> vector<2x384xf32>
    %803 = vector.extract_strided_slice %800 {offsets = [0, 0], sizes = [2, 128], strides = [1, 1]} : vector<2x384xf32> to vector<2x128xf32>
    %804 = vector.extract_strided_slice %802 {offsets = [0, 0], sizes = [2, 128], strides = [1, 1]} : vector<2x384xf32> to vector<2x128xf32>
    %805 = arith.addf %803, %804 : vector<2x128xf32>
    %806 = arith.negf %805 : vector<2x128xf32>
    %807 = math.exp %806 : vector<2x128xf32>
    %cst_272 = arith.constant 1.000000e+00 : f32
    %808 = vector.broadcast %cst_272 : f32 to vector<2x128xf32>
    %809 = arith.addf %808, %807 : vector<2x128xf32>
    %810 = arith.divf %808, %809 : vector<2x128xf32>
    %811 = vector.extract_strided_slice %800 {offsets = [0, 128], sizes = [2, 128], strides = [1, 1]} : vector<2x384xf32> to vector<2x128xf32>
    %812 = vector.extract_strided_slice %802 {offsets = [0, 128], sizes = [2, 128], strides = [1, 1]} : vector<2x384xf32> to vector<2x128xf32>
    %813 = arith.addf %811, %812 : vector<2x128xf32>
    %814 = arith.negf %813 : vector<2x128xf32>
    %815 = math.exp %814 : vector<2x128xf32>
    %cst_273 = arith.constant 1.000000e+00 : f32
    %816 = vector.broadcast %cst_273 : f32 to vector<2x128xf32>
    %817 = arith.addf %816, %815 : vector<2x128xf32>
    %818 = arith.divf %816, %817 : vector<2x128xf32>
    %819 = vector.extract_strided_slice %800 {offsets = [0, 256], sizes = [2, 128], strides = [1, 1]} : vector<2x384xf32> to vector<2x128xf32>
    %820 = vector.extract_strided_slice %802 {offsets = [0, 256], sizes = [2, 128], strides = [1, 1]} : vector<2x384xf32> to vector<2x128xf32>
    %821 = arith.addf %820, %50 : vector<2x128xf32>
    %822 = arith.mulf %810, %821 : vector<2x128xf32>
    %823 = arith.addf %819, %822 : vector<2x128xf32>
    %824 = math.tanh %823 : vector<2x128xf32>
    %cst_274 = arith.constant 1.000000e+00 : f32
    %825 = vector.broadcast %cst_274 : f32 to vector<2x128xf32>
    %826 = arith.subf %825, %818 : vector<2x128xf32>
    %827 = arith.mulf %826, %824 : vector<2x128xf32>
    %828 = arith.mulf %818, %767 : vector<2x128xf32>
    %829 = arith.addf %827, %828 : vector<2x128xf32>
    %c8_275 = arith.constant 8 : index
    %c0_276 = arith.constant 0 : index
    %830 = vector.load %arg20[%c8_275, %c0_276] : memref<34x384xf32, #tpu.memory_space<vmem>>, vector<2x384xf32>
    %c0_277 = arith.constant 0 : index
    %c0_278 = arith.constant 0 : index
    %831 = vector.load %arg13[%c0_277, %c0_278] : memref<128x384xf32, #tpu.memory_space<vmem>>, vector<128x384xf32>
    %cst_279 = arith.constant dense<0.000000e+00> : vector<2x384xf32>
    %832 = tpu.matmul %797, %831, %cst_279 {dimension_numbers = #tpu.dot_dimension_numbers<[1], [0], [0], [1], [0, 0, 1, 1], [], []>} : vector<2x128xf32>, vector<128x384xf32>, vector<2x384xf32> -> vector<2x384xf32>
    %833 = vector.extract_strided_slice %830 {offsets = [0, 0], sizes = [2, 128], strides = [1, 1]} : vector<2x384xf32> to vector<2x128xf32>
    %834 = vector.extract_strided_slice %832 {offsets = [0, 0], sizes = [2, 128], strides = [1, 1]} : vector<2x384xf32> to vector<2x128xf32>
    %835 = arith.addf %833, %834 : vector<2x128xf32>
    %836 = arith.negf %835 : vector<2x128xf32>
    %837 = math.exp %836 : vector<2x128xf32>
    %cst_280 = arith.constant 1.000000e+00 : f32
    %838 = vector.broadcast %cst_280 : f32 to vector<2x128xf32>
    %839 = arith.addf %838, %837 : vector<2x128xf32>
    %840 = arith.divf %838, %839 : vector<2x128xf32>
    %841 = vector.extract_strided_slice %830 {offsets = [0, 128], sizes = [2, 128], strides = [1, 1]} : vector<2x384xf32> to vector<2x128xf32>
    %842 = vector.extract_strided_slice %832 {offsets = [0, 128], sizes = [2, 128], strides = [1, 1]} : vector<2x384xf32> to vector<2x128xf32>
    %843 = arith.addf %841, %842 : vector<2x128xf32>
    %844 = arith.negf %843 : vector<2x128xf32>
    %845 = math.exp %844 : vector<2x128xf32>
    %cst_281 = arith.constant 1.000000e+00 : f32
    %846 = vector.broadcast %cst_281 : f32 to vector<2x128xf32>
    %847 = arith.addf %846, %845 : vector<2x128xf32>
    %848 = arith.divf %846, %847 : vector<2x128xf32>
    %849 = vector.extract_strided_slice %830 {offsets = [0, 256], sizes = [2, 128], strides = [1, 1]} : vector<2x384xf32> to vector<2x128xf32>
    %850 = vector.extract_strided_slice %832 {offsets = [0, 256], sizes = [2, 128], strides = [1, 1]} : vector<2x384xf32> to vector<2x128xf32>
    %851 = arith.addf %850, %53 : vector<2x128xf32>
    %852 = arith.mulf %840, %851 : vector<2x128xf32>
    %853 = arith.addf %849, %852 : vector<2x128xf32>
    %854 = math.tanh %853 : vector<2x128xf32>
    %cst_282 = arith.constant 1.000000e+00 : f32
    %855 = vector.broadcast %cst_282 : f32 to vector<2x128xf32>
    %856 = arith.subf %855, %848 : vector<2x128xf32>
    %857 = arith.mulf %856, %854 : vector<2x128xf32>
    %858 = arith.mulf %848, %797 : vector<2x128xf32>
    %859 = arith.addf %857, %858 : vector<2x128xf32>
    %c24_283 = arith.constant 24 : index
    %c0_284 = arith.constant 0 : index
    %860 = vector.load %arg21[%c24_283, %c0_284] : memref<34x128xf32, #tpu.memory_space<vmem>>, vector<2x128xf32>
    tpu.vector_store %arg21[%c24_283, %c0_284], %829 {strides = array<i32>} : memref<34x128xf32, #tpu.memory_space<vmem>>, vector<2x128xf32>,
    %c8_285 = arith.constant 8 : index
    %c0_286 = arith.constant 0 : index
    %861 = vector.load %arg22[%c8_285, %c0_286] : memref<34x128xf32, #tpu.memory_space<vmem>>, vector<2x128xf32>
    tpu.vector_store %arg22[%c8_285, %c0_286], %859 {strides = array<i32>} : memref<34x128xf32, #tpu.memory_space<vmem>>, vector<2x128xf32>,
    %c26_287 = arith.constant 26 : index
    %c0_288 = arith.constant 0 : index
    %862 = vector.load %arg19[%c26_287, %c0_288] : memref<34x384xf32, #tpu.memory_space<vmem>>, vector<2x384xf32>
    %c0_289 = arith.constant 0 : index
    %c0_290 = arith.constant 0 : index
    %863 = vector.load %arg12[%c0_289, %c0_290] : memref<128x384xf32, #tpu.memory_space<vmem>>, vector<128x384xf32>
    %cst_291 = arith.constant dense<0.000000e+00> : vector<2x384xf32>
    %864 = tpu.matmul %829, %863, %cst_291 {dimension_numbers = #tpu.dot_dimension_numbers<[1], [0], [0], [1], [0, 0, 1, 1], [], []>} : vector<2x128xf32>, vector<128x384xf32>, vector<2x384xf32> -> vector<2x384xf32>
    %865 = vector.extract_strided_slice %862 {offsets = [0, 0], sizes = [2, 128], strides = [1, 1]} : vector<2x384xf32> to vector<2x128xf32>
    %866 = vector.extract_strided_slice %864 {offsets = [0, 0], sizes = [2, 128], strides = [1, 1]} : vector<2x384xf32> to vector<2x128xf32>
    %867 = arith.addf %865, %866 : vector<2x128xf32>
    %868 = arith.negf %867 : vector<2x128xf32>
    %869 = math.exp %868 : vector<2x128xf32>
    %cst_292 = arith.constant 1.000000e+00 : f32
    %870 = vector.broadcast %cst_292 : f32 to vector<2x128xf32>
    %871 = arith.addf %870, %869 : vector<2x128xf32>
    %872 = arith.divf %870, %871 : vector<2x128xf32>
    %873 = vector.extract_strided_slice %862 {offsets = [0, 128], sizes = [2, 128], strides = [1, 1]} : vector<2x384xf32> to vector<2x128xf32>
    %874 = vector.extract_strided_slice %864 {offsets = [0, 128], sizes = [2, 128], strides = [1, 1]} : vector<2x384xf32> to vector<2x128xf32>
    %875 = arith.addf %873, %874 : vector<2x128xf32>
    %876 = arith.negf %875 : vector<2x128xf32>
    %877 = math.exp %876 : vector<2x128xf32>
    %cst_293 = arith.constant 1.000000e+00 : f32
    %878 = vector.broadcast %cst_293 : f32 to vector<2x128xf32>
    %879 = arith.addf %878, %877 : vector<2x128xf32>
    %880 = arith.divf %878, %879 : vector<2x128xf32>
    %881 = vector.extract_strided_slice %862 {offsets = [0, 256], sizes = [2, 128], strides = [1, 1]} : vector<2x384xf32> to vector<2x128xf32>
    %882 = vector.extract_strided_slice %864 {offsets = [0, 256], sizes = [2, 128], strides = [1, 1]} : vector<2x384xf32> to vector<2x128xf32>
    %883 = arith.addf %882, %50 : vector<2x128xf32>
    %884 = arith.mulf %872, %883 : vector<2x128xf32>
    %885 = arith.addf %881, %884 : vector<2x128xf32>
    %886 = math.tanh %885 : vector<2x128xf32>
    %cst_294 = arith.constant 1.000000e+00 : f32
    %887 = vector.broadcast %cst_294 : f32 to vector<2x128xf32>
    %888 = arith.subf %887, %880 : vector<2x128xf32>
    %889 = arith.mulf %888, %886 : vector<2x128xf32>
    %890 = arith.mulf %880, %829 : vector<2x128xf32>
    %891 = arith.addf %889, %890 : vector<2x128xf32>
    %c6_295 = arith.constant 6 : index
    %c0_296 = arith.constant 0 : index
    %892 = vector.load %arg20[%c6_295, %c0_296] : memref<34x384xf32, #tpu.memory_space<vmem>>, vector<2x384xf32>
    %c0_297 = arith.constant 0 : index
    %c0_298 = arith.constant 0 : index
    %893 = vector.load %arg13[%c0_297, %c0_298] : memref<128x384xf32, #tpu.memory_space<vmem>>, vector<128x384xf32>
    %cst_299 = arith.constant dense<0.000000e+00> : vector<2x384xf32>
    %894 = tpu.matmul %859, %893, %cst_299 {dimension_numbers = #tpu.dot_dimension_numbers<[1], [0], [0], [1], [0, 0, 1, 1], [], []>} : vector<2x128xf32>, vector<128x384xf32>, vector<2x384xf32> -> vector<2x384xf32>
    %895 = vector.extract_strided_slice %892 {offsets = [0, 0], sizes = [2, 128], strides = [1, 1]} : vector<2x384xf32> to vector<2x128xf32>
    %896 = vector.extract_strided_slice %894 {offsets = [0, 0], sizes = [2, 128], strides = [1, 1]} : vector<2x384xf32> to vector<2x128xf32>
    %897 = arith.addf %895, %896 : vector<2x128xf32>
    %898 = arith.negf %897 : vector<2x128xf32>
    %899 = math.exp %898 : vector<2x128xf32>
    %cst_300 = arith.constant 1.000000e+00 : f32
    %900 = vector.broadcast %cst_300 : f32 to vector<2x128xf32>
    %901 = arith.addf %900, %899 : vector<2x128xf32>
    %902 = arith.divf %900, %901 : vector<2x128xf32>
    %903 = vector.extract_strided_slice %892 {offsets = [0, 128], sizes = [2, 128], strides = [1, 1]} : vector<2x384xf32> to vector<2x128xf32>
    %904 = vector.extract_strided_slice %894 {offsets = [0, 128], sizes = [2, 128], strides = [1, 1]} : vector<2x384xf32> to vector<2x128xf32>
    %905 = arith.addf %903, %904 : vector<2x128xf32>
    %906 = arith.negf %905 : vector<2x128xf32>
    %907 = math.exp %906 : vector<2x128xf32>
    %cst_301 = arith.constant 1.000000e+00 : f32
    %908 = vector.broadcast %cst_301 : f32 to vector<2x128xf32>
    %909 = arith.addf %908, %907 : vector<2x128xf32>
    %910 = arith.divf %908, %909 : vector<2x128xf32>
    %911 = vector.extract_strided_slice %892 {offsets = [0, 256], sizes = [2, 128], strides = [1, 1]} : vector<2x384xf32> to vector<2x128xf32>
    %912 = vector.extract_strided_slice %894 {offsets = [0, 256], sizes = [2, 128], strides = [1, 1]} : vector<2x384xf32> to vector<2x128xf32>
    %913 = arith.addf %912, %53 : vector<2x128xf32>
    %914 = arith.mulf %902, %913 : vector<2x128xf32>
    %915 = arith.addf %911, %914 : vector<2x128xf32>
    %916 = math.tanh %915 : vector<2x128xf32>
    %cst_302 = arith.constant 1.000000e+00 : f32
    %917 = vector.broadcast %cst_302 : f32 to vector<2x128xf32>
    %918 = arith.subf %917, %910 : vector<2x128xf32>
    %919 = arith.mulf %918, %916 : vector<2x128xf32>
    %920 = arith.mulf %910, %859 : vector<2x128xf32>
    %921 = arith.addf %919, %920 : vector<2x128xf32>
    %c26_303 = arith.constant 26 : index
    %c0_304 = arith.constant 0 : index
    %922 = vector.load %arg21[%c26_303, %c0_304] : memref<34x128xf32, #tpu.memory_space<vmem>>, vector<2x128xf32>
    tpu.vector_store %arg21[%c26_303, %c0_304], %891 {strides = array<i32>} : memref<34x128xf32, #tpu.memory_space<vmem>>, vector<2x128xf32>,
    %c6_305 = arith.constant 6 : index
    %c0_306 = arith.constant 0 : index
    %923 = vector.load %arg22[%c6_305, %c0_306] : memref<34x128xf32, #tpu.memory_space<vmem>>, vector<2x128xf32>
    tpu.vector_store %arg22[%c6_305, %c0_306], %921 {strides = array<i32>} : memref<34x128xf32, #tpu.memory_space<vmem>>, vector<2x128xf32>,
    %c28_307 = arith.constant 28 : index
    %c0_308 = arith.constant 0 : index
    %924 = vector.load %arg19[%c28_307, %c0_308] : memref<34x384xf32, #tpu.memory_space<vmem>>, vector<2x384xf32>
    %c0_309 = arith.constant 0 : index
    %c0_310 = arith.constant 0 : index
    %925 = vector.load %arg12[%c0_309, %c0_310] : memref<128x384xf32, #tpu.memory_space<vmem>>, vector<128x384xf32>
    %cst_311 = arith.constant dense<0.000000e+00> : vector<2x384xf32>
    %926 = tpu.matmul %891, %925, %cst_311 {dimension_numbers = #tpu.dot_dimension_numbers<[1], [0], [0], [1], [0, 0, 1, 1], [], []>} : vector<2x128xf32>, vector<128x384xf32>, vector<2x384xf32> -> vector<2x384xf32>
    %927 = vector.extract_strided_slice %924 {offsets = [0, 0], sizes = [2, 128], strides = [1, 1]} : vector<2x384xf32> to vector<2x128xf32>
    %928 = vector.extract_strided_slice %926 {offsets = [0, 0], sizes = [2, 128], strides = [1, 1]} : vector<2x384xf32> to vector<2x128xf32>
    %929 = arith.addf %927, %928 : vector<2x128xf32>
    %930 = arith.negf %929 : vector<2x128xf32>
    %931 = math.exp %930 : vector<2x128xf32>
    %cst_312 = arith.constant 1.000000e+00 : f32
    %932 = vector.broadcast %cst_312 : f32 to vector<2x128xf32>
    %933 = arith.addf %932, %931 : vector<2x128xf32>
    %934 = arith.divf %932, %933 : vector<2x128xf32>
    %935 = vector.extract_strided_slice %924 {offsets = [0, 128], sizes = [2, 128], strides = [1, 1]} : vector<2x384xf32> to vector<2x128xf32>
    %936 = vector.extract_strided_slice %926 {offsets = [0, 128], sizes = [2, 128], strides = [1, 1]} : vector<2x384xf32> to vector<2x128xf32>
    %937 = arith.addf %935, %936 : vector<2x128xf32>
    %938 = arith.negf %937 : vector<2x128xf32>
    %939 = math.exp %938 : vector<2x128xf32>
    %cst_313 = arith.constant 1.000000e+00 : f32
    %940 = vector.broadcast %cst_313 : f32 to vector<2x128xf32>
    %941 = arith.addf %940, %939 : vector<2x128xf32>
    %942 = arith.divf %940, %941 : vector<2x128xf32>
    %943 = vector.extract_strided_slice %924 {offsets = [0, 256], sizes = [2, 128], strides = [1, 1]} : vector<2x384xf32> to vector<2x128xf32>
    %944 = vector.extract_strided_slice %926 {offsets = [0, 256], sizes = [2, 128], strides = [1, 1]} : vector<2x384xf32> to vector<2x128xf32>
    %945 = arith.addf %944, %50 : vector<2x128xf32>
    %946 = arith.mulf %934, %945 : vector<2x128xf32>
    %947 = arith.addf %943, %946 : vector<2x128xf32>
    %948 = math.tanh %947 : vector<2x128xf32>
    %cst_314 = arith.constant 1.000000e+00 : f32
    %949 = vector.broadcast %cst_314 : f32 to vector<2x128xf32>
    %950 = arith.subf %949, %942 : vector<2x128xf32>
    %951 = arith.mulf %950, %948 : vector<2x128xf32>
    %952 = arith.mulf %942, %891 : vector<2x128xf32>
    %953 = arith.addf %951, %952 : vector<2x128xf32>
    %c4_315 = arith.constant 4 : index
    %c0_316 = arith.constant 0 : index
    %954 = vector.load %arg20[%c4_315, %c0_316] : memref<34x384xf32, #tpu.memory_space<vmem>>, vector<2x384xf32>
    %c0_317 = arith.constant 0 : index
    %c0_318 = arith.constant 0 : index
    %955 = vector.load %arg13[%c0_317, %c0_318] : memref<128x384xf32, #tpu.memory_space<vmem>>, vector<128x384xf32>
    %cst_319 = arith.constant dense<0.000000e+00> : vector<2x384xf32>
    %956 = tpu.matmul %921, %955, %cst_319 {dimension_numbers = #tpu.dot_dimension_numbers<[1], [0], [0], [1], [0, 0, 1, 1], [], []>} : vector<2x128xf32>, vector<128x384xf32>, vector<2x384xf32> -> vector<2x384xf32>
    %957 = vector.extract_strided_slice %954 {offsets = [0, 0], sizes = [2, 128], strides = [1, 1]} : vector<2x384xf32> to vector<2x128xf32>
    %958 = vector.extract_strided_slice %956 {offsets = [0, 0], sizes = [2, 128], strides = [1, 1]} : vector<2x384xf32> to vector<2x128xf32>
    %959 = arith.addf %957, %958 : vector<2x128xf32>
    %960 = arith.negf %959 : vector<2x128xf32>
    %961 = math.exp %960 : vector<2x128xf32>
    %cst_320 = arith.constant 1.000000e+00 : f32
    %962 = vector.broadcast %cst_320 : f32 to vector<2x128xf32>
    %963 = arith.addf %962, %961 : vector<2x128xf32>
    %964 = arith.divf %962, %963 : vector<2x128xf32>
    %965 = vector.extract_strided_slice %954 {offsets = [0, 128], sizes = [2, 128], strides = [1, 1]} : vector<2x384xf32> to vector<2x128xf32>
    %966 = vector.extract_strided_slice %956 {offsets = [0, 128], sizes = [2, 128], strides = [1, 1]} : vector<2x384xf32> to vector<2x128xf32>
    %967 = arith.addf %965, %966 : vector<2x128xf32>
    %968 = arith.negf %967 : vector<2x128xf32>
    %969 = math.exp %968 : vector<2x128xf32>
    %cst_321 = arith.constant 1.000000e+00 : f32
    %970 = vector.broadcast %cst_321 : f32 to vector<2x128xf32>
    %971 = arith.addf %970, %969 : vector<2x128xf32>
    %972 = arith.divf %970, %971 : vector<2x128xf32>
    %973 = vector.extract_strided_slice %954 {offsets = [0, 256], sizes = [2, 128], strides = [1, 1]} : vector<2x384xf32> to vector<2x128xf32>
    %974 = vector.extract_strided_slice %956 {offsets = [0, 256], sizes = [2, 128], strides = [1, 1]} : vector<2x384xf32> to vector<2x128xf32>
    %975 = arith.addf %974, %53 : vector<2x128xf32>
    %976 = arith.mulf %964, %975 : vector<2x128xf32>
    %977 = arith.addf %973, %976 : vector<2x128xf32>
    %978 = math.tanh %977 : vector<2x128xf32>
    %cst_322 = arith.constant 1.000000e+00 : f32
    %979 = vector.broadcast %cst_322 : f32 to vector<2x128xf32>
    %980 = arith.subf %979, %972 : vector<2x128xf32>
    %981 = arith.mulf %980, %978 : vector<2x128xf32>
    %982 = arith.mulf %972, %921 : vector<2x128xf32>
    %983 = arith.addf %981, %982 : vector<2x128xf32>
    %c28_323 = arith.constant 28 : index
    %c0_324 = arith.constant 0 : index
    %984 = vector.load %arg21[%c28_323, %c0_324] : memref<34x128xf32, #tpu.memory_space<vmem>>, vector<2x128xf32>
    tpu.vector_store %arg21[%c28_323, %c0_324], %953 {strides = array<i32>} : memref<34x128xf32, #tpu.memory_space<vmem>>, vector<2x128xf32>,
    %c4_325 = arith.constant 4 : index
    %c0_326 = arith.constant 0 : index
    %985 = vector.load %arg22[%c4_325, %c0_326] : memref<34x128xf32, #tpu.memory_space<vmem>>, vector<2x128xf32>
    tpu.vector_store %arg22[%c4_325, %c0_326], %983 {strides = array<i32>} : memref<34x128xf32, #tpu.memory_space<vmem>>, vector<2x128xf32>,
    %c30_327 = arith.constant 30 : index
    %c0_328 = arith.constant 0 : index
    %986 = vector.load %arg19[%c30_327, %c0_328] : memref<34x384xf32, #tpu.memory_space<vmem>>, vector<2x384xf32>
    %c0_329 = arith.constant 0 : index
    %c0_330 = arith.constant 0 : index
    %987 = vector.load %arg12[%c0_329, %c0_330] : memref<128x384xf32, #tpu.memory_space<vmem>>, vector<128x384xf32>
    %cst_331 = arith.constant dense<0.000000e+00> : vector<2x384xf32>
    %988 = tpu.matmul %953, %987, %cst_331 {dimension_numbers = #tpu.dot_dimension_numbers<[1], [0], [0], [1], [0, 0, 1, 1], [], []>} : vector<2x128xf32>, vector<128x384xf32>, vector<2x384xf32> -> vector<2x384xf32>
    %989 = vector.extract_strided_slice %986 {offsets = [0, 0], sizes = [2, 128], strides = [1, 1]} : vector<2x384xf32> to vector<2x128xf32>
    %990 = vector.extract_strided_slice %988 {offsets = [0, 0], sizes = [2, 128], strides = [1, 1]} : vector<2x384xf32> to vector<2x128xf32>
    %991 = arith.addf %989, %990 : vector<2x128xf32>
    %992 = arith.negf %991 : vector<2x128xf32>
    %993 = math.exp %992 : vector<2x128xf32>
    %cst_332 = arith.constant 1.000000e+00 : f32
    %994 = vector.broadcast %cst_332 : f32 to vector<2x128xf32>
    %995 = arith.addf %994, %993 : vector<2x128xf32>
    %996 = arith.divf %994, %995 : vector<2x128xf32>
    %997 = vector.extract_strided_slice %986 {offsets = [0, 128], sizes = [2, 128], strides = [1, 1]} : vector<2x384xf32> to vector<2x128xf32>
    %998 = vector.extract_strided_slice %988 {offsets = [0, 128], sizes = [2, 128], strides = [1, 1]} : vector<2x384xf32> to vector<2x128xf32>
    %999 = arith.addf %997, %998 : vector<2x128xf32>
    %1000 = arith.negf %999 : vector<2x128xf32>
    %1001 = math.exp %1000 : vector<2x128xf32>
    %cst_333 = arith.constant 1.000000e+00 : f32
    %1002 = vector.broadcast %cst_333 : f32 to vector<2x128xf32>
    %1003 = arith.addf %1002, %1001 : vector<2x128xf32>
    %1004 = arith.divf %1002, %1003 : vector<2x128xf32>
    %1005 = vector.extract_strided_slice %986 {offsets = [0, 256], sizes = [2, 128], strides = [1, 1]} : vector<2x384xf32> to vector<2x128xf32>
    %1006 = vector.extract_strided_slice %988 {offsets = [0, 256], sizes = [2, 128], strides = [1, 1]} : vector<2x384xf32> to vector<2x128xf32>
    %1007 = arith.addf %1006, %50 : vector<2x128xf32>
    %1008 = arith.mulf %996, %1007 : vector<2x128xf32>
    %1009 = arith.addf %1005, %1008 : vector<2x128xf32>
    %1010 = math.tanh %1009 : vector<2x128xf32>
    %cst_334 = arith.constant 1.000000e+00 : f32
    %1011 = vector.broadcast %cst_334 : f32 to vector<2x128xf32>
    %1012 = arith.subf %1011, %1004 : vector<2x128xf32>
    %1013 = arith.mulf %1012, %1010 : vector<2x128xf32>
    %1014 = arith.mulf %1004, %953 : vector<2x128xf32>
    %1015 = arith.addf %1013, %1014 : vector<2x128xf32>
    %c2_335 = arith.constant 2 : index
    %c0_336 = arith.constant 0 : index
    %1016 = vector.load %arg20[%c2_335, %c0_336] : memref<34x384xf32, #tpu.memory_space<vmem>>, vector<2x384xf32>
    %c0_337 = arith.constant 0 : index
    %c0_338 = arith.constant 0 : index
    %1017 = vector.load %arg13[%c0_337, %c0_338] : memref<128x384xf32, #tpu.memory_space<vmem>>, vector<128x384xf32>
    %cst_339 = arith.constant dense<0.000000e+00> : vector<2x384xf32>
    %1018 = tpu.matmul %983, %1017, %cst_339 {dimension_numbers = #tpu.dot_dimension_numbers<[1], [0], [0], [1], [0, 0, 1, 1], [], []>} : vector<2x128xf32>, vector<128x384xf32>, vector<2x384xf32> -> vector<2x384xf32>
    %1019 = vector.extract_strided_slice %1016 {offsets = [0, 0], sizes = [2, 128], strides = [1, 1]} : vector<2x384xf32> to vector<2x128xf32>
    %1020 = vector.extract_strided_slice %1018 {offsets = [0, 0], sizes = [2, 128], strides = [1, 1]} : vector<2x384xf32> to vector<2x128xf32>
    %1021 = arith.addf %1019, %1020 : vector<2x128xf32>
    %1022 = arith.negf %1021 : vector<2x128xf32>
    %1023 = math.exp %1022 : vector<2x128xf32>
    %cst_340 = arith.constant 1.000000e+00 : f32
    %1024 = vector.broadcast %cst_340 : f32 to vector<2x128xf32>
    %1025 = arith.addf %1024, %1023 : vector<2x128xf32>
    %1026 = arith.divf %1024, %1025 : vector<2x128xf32>
    %1027 = vector.extract_strided_slice %1016 {offsets = [0, 128], sizes = [2, 128], strides = [1, 1]} : vector<2x384xf32> to vector<2x128xf32>
    %1028 = vector.extract_strided_slice %1018 {offsets = [0, 128], sizes = [2, 128], strides = [1, 1]} : vector<2x384xf32> to vector<2x128xf32>
    %1029 = arith.addf %1027, %1028 : vector<2x128xf32>
    %1030 = arith.negf %1029 : vector<2x128xf32>
    %1031 = math.exp %1030 : vector<2x128xf32>
    %cst_341 = arith.constant 1.000000e+00 : f32
    %1032 = vector.broadcast %cst_341 : f32 to vector<2x128xf32>
    %1033 = arith.addf %1032, %1031 : vector<2x128xf32>
    %1034 = arith.divf %1032, %1033 : vector<2x128xf32>
    %1035 = vector.extract_strided_slice %1016 {offsets = [0, 256], sizes = [2, 128], strides = [1, 1]} : vector<2x384xf32> to vector<2x128xf32>
    %1036 = vector.extract_strided_slice %1018 {offsets = [0, 256], sizes = [2, 128], strides = [1, 1]} : vector<2x384xf32> to vector<2x128xf32>
    %1037 = arith.addf %1036, %53 : vector<2x128xf32>
    %1038 = arith.mulf %1026, %1037 : vector<2x128xf32>
    %1039 = arith.addf %1035, %1038 : vector<2x128xf32>
    %1040 = math.tanh %1039 : vector<2x128xf32>
    %cst_342 = arith.constant 1.000000e+00 : f32
    %1041 = vector.broadcast %cst_342 : f32 to vector<2x128xf32>
    %1042 = arith.subf %1041, %1034 : vector<2x128xf32>
    %1043 = arith.mulf %1042, %1040 : vector<2x128xf32>
    %1044 = arith.mulf %1034, %983 : vector<2x128xf32>
    %1045 = arith.addf %1043, %1044 : vector<2x128xf32>
    %c30_343 = arith.constant 30 : index
    %c0_344 = arith.constant 0 : index
    %1046 = vector.load %arg21[%c30_343, %c0_344] : memref<34x128xf32, #tpu.memory_space<vmem>>, vector<2x128xf32>
    tpu.vector_store %arg21[%c30_343, %c0_344], %1015 {strides = array<i32>} : memref<34x128xf32, #tpu.memory_space<vmem>>, vector<2x128xf32>,
    %c2_345 = arith.constant 2 : index
    %c0_346 = arith.constant 0 : index
    %1047 = vector.load %arg22[%c2_345, %c0_346] : memref<34x128xf32, #tpu.memory_space<vmem>>, vector<2x128xf32>
    tpu.vector_store %arg22[%c2_345, %c0_346], %1045 {strides = array<i32>} : memref<34x128xf32, #tpu.memory_space<vmem>>, vector<2x128xf32>,
    %c32_347 = arith.constant 32 : index
    %c0_348 = arith.constant 0 : index
    %1048 = vector.load %arg19[%c32_347, %c0_348] : memref<34x384xf32, #tpu.memory_space<vmem>>, vector<2x384xf32>
    %c0_349 = arith.constant 0 : index
    %c0_350 = arith.constant 0 : index
    %1049 = vector.load %arg12[%c0_349, %c0_350] : memref<128x384xf32, #tpu.memory_space<vmem>>, vector<128x384xf32>
    %cst_351 = arith.constant dense<0.000000e+00> : vector<2x384xf32>
    %1050 = tpu.matmul %1015, %1049, %cst_351 {dimension_numbers = #tpu.dot_dimension_numbers<[1], [0], [0], [1], [0, 0, 1, 1], [], []>} : vector<2x128xf32>, vector<128x384xf32>, vector<2x384xf32> -> vector<2x384xf32>
    %1051 = vector.extract_strided_slice %1048 {offsets = [0, 0], sizes = [2, 128], strides = [1, 1]} : vector<2x384xf32> to vector<2x128xf32>
    %1052 = vector.extract_strided_slice %1050 {offsets = [0, 0], sizes = [2, 128], strides = [1, 1]} : vector<2x384xf32> to vector<2x128xf32>
    %1053 = arith.addf %1051, %1052 : vector<2x128xf32>
    %1054 = arith.negf %1053 : vector<2x128xf32>
    %1055 = math.exp %1054 : vector<2x128xf32>
    %cst_352 = arith.constant 1.000000e+00 : f32
    %1056 = vector.broadcast %cst_352 : f32 to vector<2x128xf32>
    %1057 = arith.addf %1056, %1055 : vector<2x128xf32>
    %1058 = arith.divf %1056, %1057 : vector<2x128xf32>
    %1059 = vector.extract_strided_slice %1048 {offsets = [0, 128], sizes = [2, 128], strides = [1, 1]} : vector<2x384xf32> to vector<2x128xf32>
    %1060 = vector.extract_strided_slice %1050 {offsets = [0, 128], sizes = [2, 128], strides = [1, 1]} : vector<2x384xf32> to vector<2x128xf32>
    %1061 = arith.addf %1059, %1060 : vector<2x128xf32>
    %1062 = arith.negf %1061 : vector<2x128xf32>
    %1063 = math.exp %1062 : vector<2x128xf32>
    %cst_353 = arith.constant 1.000000e+00 : f32
    %1064 = vector.broadcast %cst_353 : f32 to vector<2x128xf32>
    %1065 = arith.addf %1064, %1063 : vector<2x128xf32>
    %1066 = arith.divf %1064, %1065 : vector<2x128xf32>
    %1067 = vector.extract_strided_slice %1048 {offsets = [0, 256], sizes = [2, 128], strides = [1, 1]} : vector<2x384xf32> to vector<2x128xf32>
    %1068 = vector.extract_strided_slice %1050 {offsets = [0, 256], sizes = [2, 128], strides = [1, 1]} : vector<2x384xf32> to vector<2x128xf32>
    %1069 = arith.addf %1068, %50 : vector<2x128xf32>
    %1070 = arith.mulf %1058, %1069 : vector<2x128xf32>
    %1071 = arith.addf %1067, %1070 : vector<2x128xf32>
    %1072 = math.tanh %1071 : vector<2x128xf32>
    %cst_354 = arith.constant 1.000000e+00 : f32
    %1073 = vector.broadcast %cst_354 : f32 to vector<2x128xf32>
    %1074 = arith.subf %1073, %1066 : vector<2x128xf32>
    %1075 = arith.mulf %1074, %1072 : vector<2x128xf32>
    %1076 = arith.mulf %1066, %1015 : vector<2x128xf32>
    %1077 = arith.addf %1075, %1076 : vector<2x128xf32>
    %c0_355 = arith.constant 0 : index
    %c0_356 = arith.constant 0 : index
    %1078 = vector.load %arg20[%c0_355, %c0_356] : memref<34x384xf32, #tpu.memory_space<vmem>>, vector<2x384xf32>
    %c0_357 = arith.constant 0 : index
    %c0_358 = arith.constant 0 : index
    %1079 = vector.load %arg13[%c0_357, %c0_358] : memref<128x384xf32, #tpu.memory_space<vmem>>, vector<128x384xf32>
    %cst_359 = arith.constant dense<0.000000e+00> : vector<2x384xf32>
    %1080 = tpu.matmul %1045, %1079, %cst_359 {dimension_numbers = #tpu.dot_dimension_numbers<[1], [0], [0], [1], [0, 0, 1, 1], [], []>} : vector<2x128xf32>, vector<128x384xf32>, vector<2x384xf32> -> vector<2x384xf32>
    %1081 = vector.extract_strided_slice %1078 {offsets = [0, 0], sizes = [2, 128], strides = [1, 1]} : vector<2x384xf32> to vector<2x128xf32>
    %1082 = vector.extract_strided_slice %1080 {offsets = [0, 0], sizes = [2, 128], strides = [1, 1]} : vector<2x384xf32> to vector<2x128xf32>
    %1083 = arith.addf %1081, %1082 : vector<2x128xf32>
    %1084 = arith.negf %1083 : vector<2x128xf32>
    %1085 = math.exp %1084 : vector<2x128xf32>
    %cst_360 = arith.constant 1.000000e+00 : f32
    %1086 = vector.broadcast %cst_360 : f32 to vector<2x128xf32>
    %1087 = arith.addf %1086, %1085 : vector<2x128xf32>
    %1088 = arith.divf %1086, %1087 : vector<2x128xf32>
    %1089 = vector.extract_strided_slice %1078 {offsets = [0, 128], sizes = [2, 128], strides = [1, 1]} : vector<2x384xf32> to vector<2x128xf32>
    %1090 = vector.extract_strided_slice %1080 {offsets = [0, 128], sizes = [2, 128], strides = [1, 1]} : vector<2x384xf32> to vector<2x128xf32>
    %1091 = arith.addf %1089, %1090 : vector<2x128xf32>
    %1092 = arith.negf %1091 : vector<2x128xf32>
    %1093 = math.exp %1092 : vector<2x128xf32>
    %cst_361 = arith.constant 1.000000e+00 : f32
    %1094 = vector.broadcast %cst_361 : f32 to vector<2x128xf32>
    %1095 = arith.addf %1094, %1093 : vector<2x128xf32>
    %1096 = arith.divf %1094, %1095 : vector<2x128xf32>
    %1097 = vector.extract_strided_slice %1078 {offsets = [0, 256], sizes = [2, 128], strides = [1, 1]} : vector<2x384xf32> to vector<2x128xf32>
    %1098 = vector.extract_strided_slice %1080 {offsets = [0, 256], sizes = [2, 128], strides = [1, 1]} : vector<2x384xf32> to vector<2x128xf32>
    %1099 = arith.addf %1098, %53 : vector<2x128xf32>
    %1100 = arith.mulf %1088, %1099 : vector<2x128xf32>
    %1101 = arith.addf %1097, %1100 : vector<2x128xf32>
    %1102 = math.tanh %1101 : vector<2x128xf32>
    %cst_362 = arith.constant 1.000000e+00 : f32
    %1103 = vector.broadcast %cst_362 : f32 to vector<2x128xf32>
    %1104 = arith.subf %1103, %1096 : vector<2x128xf32>
    %1105 = arith.mulf %1104, %1102 : vector<2x128xf32>
    %1106 = arith.mulf %1096, %1045 : vector<2x128xf32>
    %1107 = arith.addf %1105, %1106 : vector<2x128xf32>
    %c32_363 = arith.constant 32 : index
    %c0_364 = arith.constant 0 : index
    %1108 = vector.load %arg21[%c32_363, %c0_364] : memref<34x128xf32, #tpu.memory_space<vmem>>, vector<2x128xf32>
    tpu.vector_store %arg21[%c32_363, %c0_364], %1077 {strides = array<i32>} : memref<34x128xf32, #tpu.memory_space<vmem>>, vector<2x128xf32>,
    %c0_365 = arith.constant 0 : index
    %c0_366 = arith.constant 0 : index
    %1109 = vector.load %arg22[%c0_365, %c0_366] : memref<34x128xf32, #tpu.memory_space<vmem>>, vector<2x128xf32>
    tpu.vector_store %arg22[%c0_365, %c0_366], %1107 {strides = array<i32>} : memref<34x128xf32, #tpu.memory_space<vmem>>, vector<2x128xf32>,
    %c0_367 = arith.constant 0 : index
    %c0_368 = arith.constant 0 : index
    %1110 = vector.load %arg16[%c0_367, %c0_368] : memref<256x16xf32, #tpu.memory_space<vmem>>, vector<256x16xf32>
    %c0_369 = arith.constant 0 : index
    %c0_370 = arith.constant 0 : index
    %1111 = vector.load %arg21[%c0_369, %c0_370] : memref<34x128xf32, #tpu.memory_space<vmem>>, vector<34x128xf32>
    %1112 = vector.extract_strided_slice %1110 {offsets = [0, 0], sizes = [128, 16], strides = [1, 1]} : vector<256x16xf32> to vector<128x16xf32>
    %cst_371 = arith.constant dense<0.000000e+00> : vector<34x16xf32>
    %1113 = tpu.matmul %1111, %1112, %cst_371 {dimension_numbers = #tpu.dot_dimension_numbers<[1], [0], [0], [1], [0, 0, 1, 1], [], []>} : vector<34x128xf32>, vector<128x16xf32>, vector<34x16xf32> -> vector<34x16xf32>
    %c0_372 = arith.constant 0 : index
    %c0_373 = arith.constant 0 : index
    %1114 = vector.load %arg22[%c0_372, %c0_373] : memref<34x128xf32, #tpu.memory_space<vmem>>, vector<34x128xf32>
    %1115 = vector.extract_strided_slice %1110 {offsets = [128, 0], sizes = [128, 16], strides = [1, 1]} : vector<256x16xf32> to vector<128x16xf32>
    %cst_374 = arith.constant dense<0.000000e+00> : vector<34x16xf32>
    %1116 = tpu.matmul %1114, %1115, %cst_374 {dimension_numbers = #tpu.dot_dimension_numbers<[1], [0], [0], [1], [0, 0, 1, 1], [], []>} : vector<34x128xf32>, vector<128x16xf32>, vector<34x16xf32> -> vector<34x16xf32>
    %1117 = arith.addf %1113, %1116 : vector<34x16xf32>
    %c0_375 = arith.constant 0 : index
    %c0_376 = arith.constant 0 : index
    %1118 = vector.load %arg17[%c0_375, %c0_376] : memref<1x16xf32, #tpu.memory_space<vmem>>, vector<1x16xf32>
    %1119 = vector.broadcast %1118 : vector<1x16xf32> to vector<34x16xf32>
    %1120 = arith.addf %1117, %1119 : vector<34x16xf32>
    %c0_377 = arith.constant 0 : index
    %c0_378 = arith.constant 0 : index
    %1121 = vector.load %arg9[%c0_377, %c0_378] : memref<34x34xf32, #tpu.memory_space<vmem>>, vector<34x34xf32>
    %cst_379 = arith.constant dense<0.000000e+00> : vector<34x16xf32>
    %1122 = tpu.matmul %1121, %1120, %cst_379 {dimension_numbers = #tpu.dot_dimension_numbers<[1], [0], [0], [1], [0, 0, 1, 1], [], []>} : vector<34x34xf32>, vector<34x16xf32>, vector<34x16xf32> -> vector<34x16xf32>
    %c0_380 = arith.constant 0 : index
    %c0_381 = arith.constant 0 : index
    %1123 = vector.load %arg18[%c0_380, %c0_381] : memref<34x16xf32, #tpu.memory_space<vmem>>, vector<34x16xf32>
    tpu.vector_store %arg18[%c0_380, %c0_381], %1122 {strides = array<i32>} : memref<34x16xf32, #tpu.memory_space<vmem>>, vector<34x16xf32>,
    return
  }
}

</mosaic_0001>

<bundles_post_ra>
// kernel: timbre_encoder_forward.1
= control target key start
LH: loop header
LB: loop body
LE: loop exit
PB: predicated region body
PF: predicated region fallthrough
CT: control target
= control target key end

     0   :  { %vm593_vm0 = vcmask 261120   ;;  %vm651_vm1 = vcmask 1041408   ;;  %vm647_vm2 = vcmask 277504   ;;  %vm676_vm3 = vcmask 15360   ;;  %s14527_s1 = inlined_call_operand.vmem [shape: f32[256,512], index: 1, kind: input, shape index: {}]   ;;  %s14528_s0 = inlined_call_operand.vmem [shape: f32[34,256], index: 0, kind: input, shape index: {}]   ;;  %s14529_s2 = inlined_call_operand.vmem [shape: f32[256,32], index: 2, kind: input, shape index: {}]   ;;  %s14530_s3 = inlined_call_operand.vmem [shape: f32[32,16], index: 3, kind: input, shape index: {}]   ;;  %s14531_s6 = inlined_call_operand.vmem [shape: f32[2,34], index: 6, kind: input, shape index: {}]   ;;  %s14532_s7 = inlined_call_operand.vmem [shape: f32[34,2], index: 7, kind: input, shape index: {}]   ;;  %s14533_s4 = inlined_call_operand.vmem [shape: f32[1,16], index: 4, kind: input, shape index: {}]   ;;  %s14534_s5 = inlined_call_operand.vmem [shape: f32[1,16], index: 5, kind: input, shape index: {}]   ;;  %s14535_s8 = inlined_call_operand.vmem [shape: f32[34,34], index: 8, kind: input, shape index: {}]   ;;  %s14536_s10 = inlined_call_operand.vmem [shape: f32[16,768], index: 10, kind: input, shape index: {}]   ;;  %s14537_s12 = inlined_call_operand.vmem [shape: f32[128,384], index: 12, kind: input, shape index: {}]   ;;  %s14538_s13 = inlined_call_operand.vmem [shape: f32[128,384], index: 13, kind: input, shape index: {}]   ;;  %s14539_s14 = inlined_call_operand.vmem [shape: f32[1,128], index: 14, kind: input, shape index: {}]   ;;  %s14540_s15 = inlined_call_operand.vmem [shape: f32[1,128], index: 15, kind: input, shape index: {}]   ;;  %s14541_s11 = inlined_call_operand.vmem [shape: f32[1,768], index: 11, kind: input, shape index: {}]   ;;  %s14542_s16 = inlined_call_operand.vmem [shape: f32[256,16], index: 16, kind: input, shape index: {}]   ;;  %s14543_s17 = inlined_call_operand.vmem [shape: f32[1,16], index: 17, kind: input, shape index: {}]   ;;  %s14544_s9 = inlined_call_operand.vmem [shape: f32[34,34], index: 9, kind: input, shape index: {}]   ;;  %s14545_s18 = inlined_call_operand.vmem [shape: f32[34,16], index: 18, kind: output, shape index: {}]  }
   0x1   :  { %14700 = sst [smem:[#allocation34_spill]] %s14527_s1 }
   0x2   :  { %14701 = sst [smem:[#allocation35_spill]] %s14528_s0 }
   0x3   :  { %14702 = sst [smem:[#allocation36_spill]] %s14529_s2 }
   0x4   :  { %s14703_s29 = sld [smem:[#allocation34_spill]] }
   0x5   :  { %s14704_s19 = sld [smem:[#allocation35_spill]] }
   0x6   :  { %s14705_s21 = sld [smem:[#allocation36_spill]] }
   0xa   :  { %v129_v0 = vld [vmem:[%s14703_s29 + $0x1e0] sm:$0xff]  ;;  %v130_v2 = vld [vmem:[%s14703_s29 + $0x1e8] sm:$0xff] }
   0xb   :  { %v193_v1 = vld [vmem:[%s14703_s29 + $0x3e0] sm:$0xff]  ;;  %197 = vmatpush.msra.mxu0 %v129_v0  ;;  %v194_v3 = vld [vmem:[%s14703_s29 + $0x3e8] sm:$0xff]  ;;  %261 = vmatpush.msra.mxu2 %v130_v2  ;;  %v131_v2 = vld [vmem:[%s14703_s29 + $0x1f0] sm:$0xff] }
   0xc   :  { %229 = vmatpush.msra.mxu1 %v193_v1  ;;  %v125_v4 = vld [vmem:[%s14703_s29 + $0x1c0] sm:$0xff]  ;;  %293 = vmatpush.msra.mxu3 %v194_v3  ;;  %v126_v6 = vld [vmem:[%s14703_s29 + $0x1c8] sm:$0xff]  ;;  %v195_v3 = vld [vmem:[%s14703_s29 + $0x3f0] sm:$0xff] }
   0xd   :  { %v189_v5 = vld [vmem:[%s14703_s29 + $0x3c0] sm:$0xff]  ;;  %v190_v7 = vld [vmem:[%s14703_s29 + $0x3c8] sm:$0xff]  ;;  %198 = vmatpush.msra.mxu0 %v125_v4  ;;  %262 = vmatpush.msra.mxu2 %v126_v6  ;;  %v132_v4 = vld [vmem:[%s14703_s29 + $0x1f8] sm:$0xff] }
   0xe   :  { %v121_v8 = vld [vmem:[%s14703_s29 + $0x1a0] sm:$0xff]  ;;  %230 = vmatpush.msra.mxu1 %v189_v5  ;;  %v122_v10 = vld [vmem:[%s14703_s29 + $0x1a8] sm:$0xff]  ;;  %294 = vmatpush.msra.mxu3 %v190_v7  ;;  %v196_v5 = vld [vmem:[%s14703_s29 + $0x3f8] sm:$0xff] }
   0xf   :  { %v185_v9 = vld [vmem:[%s14703_s29 + $0x3a0] sm:$0xff]  ;;  %v186_v11 = vld [vmem:[%s14703_s29 + $0x3a8] sm:$0xff]  ;;  %199 = vmatpush.msra.mxu0 %v121_v8  ;;  %263 = vmatpush.msra.mxu2 %v122_v10  ;;  %v127_v6 = vld [vmem:[%s14703_s29 + $0x1d0] sm:$0xff] }
  0x10   :  { %v117_v12 = vld [vmem:[%s14703_s29 + $0x180] sm:$0xff]  ;;  %231 = vmatpush.msra.mxu1 %v185_v9  ;;  %v118_v14 = vld [vmem:[%s14703_s29 + $0x188] sm:$0xff]  ;;  %295 = vmatpush.msra.mxu3 %v186_v11  ;;  %v191_v7 = vld [vmem:[%s14703_s29 + $0x3d0] sm:$0xff] }
  0x11   :  { %v181_v13 = vld [vmem:[%s14703_s29 + $0x380] sm:$0xff]  ;;  %v182_v15 = vld [vmem:[%s14703_s29 + $0x388] sm:$0xff]  ;;  %200 = vmatpush.msra.mxu0 %v117_v12  ;;  %264 = vmatpush.msra.mxu2 %v118_v14  ;;  %v128_v8 = vld [vmem:[%s14703_s29 + $0x1d8] sm:$0xff] }
  0x12   :  { %v113_v16 = vld [vmem:[%s14703_s29 + $0x160] sm:$0xff]  ;;  %232 = vmatpush.msra.mxu1 %v181_v13  ;;  %v114_v18 = vld [vmem:[%s14703_s29 + $0x168] sm:$0xff]  ;;  %296 = vmatpush.msra.mxu3 %v182_v15  ;;  %v192_v9 = vld [vmem:[%s14703_s29 + $0x3d8] sm:$0xff] }
  0x13   :  { %v177_v17 = vld [vmem:[%s14703_s29 + $0x360] sm:$0xff]  ;;  %v178_v19 = vld [vmem:[%s14703_s29 + $0x368] sm:$0xff]  ;;  %201 = vmatpush.msra.mxu0 %v113_v16  ;;  %265 = vmatpush.msra.mxu2 %v114_v18  ;;  %v123_v10 = vld [vmem:[%s14703_s29 + $0x1b0] sm:$0xff] }
  0x14   :  { %v109_v20 = vld [vmem:[%s14703_s29 + $0x140] sm:$0xff]  ;;  %233 = vmatpush.msra.mxu1 %v177_v17  ;;  %v110_v22 = vld [vmem:[%s14703_s29 + $0x148] sm:$0xff]  ;;  %297 = vmatpush.msra.mxu3 %v178_v19  ;;  %v187_v11 = vld [vmem:[%s14703_s29 + $0x3b0] sm:$0xff] }
  0x15   :  { %v173_v21 = vld [vmem:[%s14703_s29 + $0x340] sm:$0xff]  ;;  %v174_v23 = vld [vmem:[%s14703_s29 + $0x348] sm:$0xff]  ;;  %202 = vmatpush.msra.mxu0 %v109_v20  ;;  %266 = vmatpush.msra.mxu2 %v110_v22  ;;  %v124_v12 = vld [vmem:[%s14703_s29 + $0x1b8] sm:$0xff] }
  0x16   :  { %v105_v24 = vld [vmem:[%s14703_s29 + $0x120] sm:$0xff]  ;;  %234 = vmatpush.msra.mxu1 %v173_v21  ;;  %v106_v26 = vld [vmem:[%s14703_s29 + $0x128] sm:$0xff]  ;;  %298 = vmatpush.msra.mxu3 %v174_v23  ;;  %v188_v13 = vld [vmem:[%s14703_s29 + $0x3b8] sm:$0xff] }
  0x17   :  { %v169_v25 = vld [vmem:[%s14703_s29 + $0x320] sm:$0xff]  ;;  %v170_v27 = vld [vmem:[%s14703_s29 + $0x328] sm:$0xff]  ;;  %203 = vmatpush.msra.mxu0 %v105_v24  ;;  %267 = vmatpush.msra.mxu2 %v106_v26  ;;  %v8029_v14 = vld [vmem:[%s14704_s19 + $0x10] sm:$0xff] }
  0x18   :  { %v101_v28 = vld [vmem:[%s14703_s29 + $0x100] sm:$0xff]  ;;  %235 = vmatpush.msra.mxu1 %v169_v25  ;;  %v102_v30 = vld [vmem:[%s14703_s29 + $0x108] sm:$0xff]  ;;  %299 = vmatpush.msra.mxu3 %v170_v27  ;;  %v8034_v15 = vld [vmem:[%s14704_s19 + $0x18] sm:$0xff] }
  0x19   :  { %v165_v29 = vld [vmem:[%s14703_s29 + $0x300] sm:$0xff]  ;;  %v166_v31 = vld [vmem:[%s14703_s29 + $0x308] sm:$0xff]  ;;  %204 = vmatpush.msra.mxu0 %v101_v28  ;;  %268 = vmatpush.msra.mxu2 %v102_v30  ;;  %v119_v16 = vld [vmem:[%s14703_s29 + $0x190] sm:$0xff] }
  0x1a   :  { %v97_v32 = vld [vmem:[%s14703_s29 + $0xe0] sm:$0xff]  ;;  %236 = vmatpush.msra.mxu1 %v165_v29  ;;  %v98_v34 = vld [vmem:[%s14703_s29 + $0xe8] sm:$0xff]  ;;  %300 = vmatpush.msra.mxu3 %v166_v31  ;;  %v183_v17 = vld [vmem:[%s14703_s29 + $0x390] sm:$0xff] }
  0x1b   :  { %v161_v33 = vld [vmem:[%s14703_s29 + $0x2e0] sm:$0xff]  ;;  %v162_v35 = vld [vmem:[%s14703_s29 + $0x2e8] sm:$0xff]  ;;  %205 = vmatpush.msra.mxu0 %v97_v32  ;;  %269 = vmatpush.msra.mxu2 %v98_v34  ;;  %v120_v18 = vld [vmem:[%s14703_s29 + $0x198] sm:$0xff] }
  0x1c   :  { %v93_v36 = vld [vmem:[%s14703_s29 + $0xc0] sm:$0xff]  ;;  %237 = vmatpush.msra.mxu1 %v161_v33  ;;  %v94_v38 = vld [vmem:[%s14703_s29 + $0xc8] sm:$0xff]  ;;  %301 = vmatpush.msra.mxu3 %v162_v35  ;;  %v184_v19 = vld [vmem:[%s14703_s29 + $0x398] sm:$0xff] }
  0x1d   :  { %v157_v37 = vld [vmem:[%s14703_s29 + $0x2c0] sm:$0xff]  ;;  %v158_v39 = vld [vmem:[%s14703_s29 + $0x2c8] sm:$0xff]  ;;  %206 = vmatpush.msra.mxu0 %v93_v36  ;;  %270 = vmatpush.msra.mxu2 %v94_v38  ;;  %v115_v20 = vld [vmem:[%s14703_s29 + $0x170] sm:$0xff] }
  0x1e   :  { %v89_v40 = vld [vmem:[%s14703_s29 + $0xa0] sm:$0xff]  ;;  %238 = vmatpush.msra.mxu1 %v157_v37  ;;  %v90_v42 = vld [vmem:[%s14703_s29 + $0xa8] sm:$0xff]  ;;  %302 = vmatpush.msra.mxu3 %v158_v39  ;;  %v179_v21 = vld [vmem:[%s14703_s29 + $0x370] sm:$0xff] }
  0x1f   :  { %v153_v41 = vld [vmem:[%s14703_s29 + $0x2a0] sm:$0xff]  ;;  %v154_v43 = vld [vmem:[%s14703_s29 + $0x2a8] sm:$0xff]  ;;  %207 = vmatpush.msra.mxu0 %v89_v40  ;;  %271 = vmatpush.msra.mxu2 %v90_v42  ;;  %v116_v22 = vld [vmem:[%s14703_s29 + $0x178] sm:$0xff] }
  0x20   :  { %v85_v44 = vld [vmem:[%s14703_s29 + $0x80] sm:$0xff]  ;;  %239 = vmatpush.msra.mxu1 %v153_v41  ;;  %v86_v46 = vld [vmem:[%s14703_s29 + $0x88] sm:$0xff]  ;;  %303 = vmatpush.msra.mxu3 %v154_v43  ;;  %v180_v23 = vld [vmem:[%s14703_s29 + $0x378] sm:$0xff] }
  0x21   :  { %v149_v45 = vld [vmem:[%s14703_s29 + $0x280] sm:$0xff]  ;;  %v150_v47 = vld [vmem:[%s14703_s29 + $0x288] sm:$0xff]  ;;  %208 = vmatpush.msra.mxu0 %v85_v44  ;;  %272 = vmatpush.msra.mxu2 %v86_v46  ;;  %v111_v24 = vld [vmem:[%s14703_s29 + $0x150] sm:$0xff] }
  0x22   :  { %v81_v48 = vld [vmem:[%s14703_s29 + $0x60] sm:$0xff]  ;;  %240 = vmatpush.msra.mxu1 %v149_v45  ;;  %v82_v50 = vld [vmem:[%s14703_s29 + $0x68] sm:$0xff]  ;;  %304 = vmatpush.msra.mxu3 %v150_v47  ;;  %v175_v25 = vld [vmem:[%s14703_s29 + $0x350] sm:$0xff] }
  0x23   :  { %v145_v49 = vld [vmem:[%s14703_s29 + $0x260] sm:$0xff]  ;;  %v146_v51 = vld [vmem:[%s14703_s29 + $0x268] sm:$0xff]  ;;  %209 = vmatpush.msra.mxu0 %v81_v48  ;;  %273 = vmatpush.msra.mxu2 %v82_v50  ;;  %v112_v26 = vld [vmem:[%s14703_s29 + $0x158] sm:$0xff] }
  0x24   :  { %v77_v52 = vld [vmem:[%s14703_s29 + $0x40] sm:$0xff]  ;;  %241 = vmatpush.msra.mxu1 %v145_v49  ;;  %v78_v54 = vld [vmem:[%s14703_s29 + $0x48] sm:$0xff]  ;;  %305 = vmatpush.msra.mxu3 %v146_v51  ;;  %v176_v27 = vld [vmem:[%s14703_s29 + $0x358] sm:$0xff] }
  0x25   :  { %v141_v53 = vld [vmem:[%s14703_s29 + $0x240] sm:$0xff]  ;;  %v142_v55 = vld [vmem:[%s14703_s29 + $0x248] sm:$0xff]  ;;  %210 = vmatpush.msra.mxu0 %v77_v52  ;;  %274 = vmatpush.msra.mxu2 %v78_v54  ;;  %v107_v30 = vld [vmem:[%s14703_s29 + $0x130] sm:$0xff] }
  0x26   :  { %v73_v56 = vld [vmem:[%s14703_s29 + $0x20] sm:$0xff]  ;;  %242 = vmatpush.msra.mxu1 %v141_v53  ;;  %v74_v58 = vld [vmem:[%s14703_s29 + $0x28] sm:$0xff]  ;;  %306 = vmatpush.msra.mxu3 %v142_v55  ;;  %v171_v31 = vld [vmem:[%s14703_s29 + $0x330] sm:$0xff] }
  0x27   :  { %v137_v57 = vld [vmem:[%s14703_s29 + $0x220] sm:$0xff]  ;;  %v138_v59 = vld [vmem:[%s14703_s29 + $0x228] sm:$0xff]  ;;  %211 = vmatpush.msra.mxu0 %v73_v56  ;;  %275 = vmatpush.msra.mxu2 %v74_v58  ;;  %v108_v32 = vld [vmem:[%s14703_s29 + $0x138] sm:$0xff] }
  0x28   :  { %v69_v60 = vld [vmem:[%s14703_s29] sm:$0xff]  ;;  %243 = vmatpush.msra.mxu1 %v137_v57  ;;  %v70_v62 = vld [vmem:[%s14703_s29 + $0x8] sm:$0xff]  ;;  %307 = vmatpush.msra.mxu3 %v138_v59  ;;  %v172_v33 = vld [vmem:[%s14703_s29 + $0x338] sm:$0xff] }
  0x29   :  { %v133_v61 = vld [vmem:[%s14703_s29 + $0x200] sm:$0xff]  ;;  %v134_v63 = vld [vmem:[%s14703_s29 + $0x208] sm:$0xff]  ;;  %212 = vmatpush.msra.mxu0 %v69_v60  ;;  %276 = vmatpush.msra.mxu2 %v70_v62  ;;  %v103_v34 = vld [vmem:[%s14703_s29 + $0x110] sm:$0xff] }
  0x2a   :  { %v7979_v0 = vld [vmem:[%s14704_s19] sm:$0xff]  ;;  %v7984_v1 = vld [vmem:[%s14704_s19 + $0x8] sm:$0xff]  ;;  %244 = vmatpush.msra.mxu1 %v133_v61  ;;  %308 = vmatpush.msra.mxu3 %v134_v63  ;;  %v167_v35 = vld [vmem:[%s14703_s29 + $0x310] sm:$0xff] }
  0x2b   :  { %213 = vmatmul.f32.vlgmr.msra.gmra.mxu0 %v7979_v0  ;;  %245 = vmatmul.f32.vlgmr.msra.gmra.mxu1 %v7984_v1  ;;  %v8079_v28 = vld [vmem:[%s14704_s19 + $0x20] sm:$0xff]  ;;  %v8084_v29 = vld [vmem:[%s14704_s19 + $0x28] sm:$0xff]  ;;  %v104_v36 = vld [vmem:[%s14703_s29 + $0x118] sm:$0xff] }
  0x2c   :  { %277 = vmatmul.f32.vlgmr.msra.gmra.mxu2 %v7979_v0  ;;  %309 = vmatmul.f32.vlgmr.msra.gmra.mxu3 %v7984_v1  ;;  %v168_v37 = vld [vmem:[%s14703_s29 + $0x318] sm:$0xff]  ;;  %v99_v38 = vld [vmem:[%s14703_s29 + $0xf0] sm:$0xff]  ;;  %v67_v56 = vld [vmem:[%s14704_s19 + $0x40] sm:$0x3] }
  0x2d   :  { %325 = vmatpush.msrb.mxu0 %v131_v2  ;;  %357 = vmatpush.msrb.mxu1 %v195_v3  ;;  %v163_v39 = vld [vmem:[%s14703_s29 + $0x2f0] sm:$0xff]  ;;  %v100_v40 = vld [vmem:[%s14703_s29 + $0xf8] sm:$0xff]  ;;  %v68_v57 = vld [vmem:[%s14704_s19 + $0x48] sm:$0x3] }
  0x2e   :  { %389 = vmatpush.msrb.mxu2 %v132_v4  ;;  %421 = vmatpush.msrb.mxu3 %v196_v5  ;;  %v164_v41 = vld [vmem:[%s14703_s29 + $0x2f8] sm:$0xff]  ;;  %v8129_v42 = vld [vmem:[%s14704_s19 + $0x30] sm:$0xff] }
  0x2f   :  { %326 = vmatpush.msrb.mxu0 %v127_v6  ;;  %358 = vmatpush.msrb.mxu1 %v191_v7  ;;  %v8134_v43 = vld [vmem:[%s14704_s19 + $0x38] sm:$0xff]  ;;  %v95_v44 = vld [vmem:[%s14703_s29 + $0xd0] sm:$0xff] }
  0x30   :  { %390 = vmatpush.msrb.mxu2 %v128_v8  ;;  %422 = vmatpush.msrb.mxu3 %v192_v9  ;;  %v159_v45 = vld [vmem:[%s14703_s29 + $0x2d0] sm:$0xff]  ;;  %v96_v46 = vld [vmem:[%s14703_s29 + $0xd8] sm:$0xff] }
  0x31   :  { %327 = vmatpush.msrb.mxu0 %v123_v10  ;;  %359 = vmatpush.msrb.mxu1 %v187_v11  ;;  %v160_v47 = vld [vmem:[%s14703_s29 + $0x2d8] sm:$0xff]  ;;  %v91_v48 = vld [vmem:[%s14703_s29 + $0xb0] sm:$0xff] }
  0x32   :  { %391 = vmatpush.msrb.mxu2 %v124_v12  ;;  %423 = vmatpush.msrb.mxu3 %v188_v13  ;;  %v155_v49 = vld [vmem:[%s14703_s29 + $0x2b0] sm:$0xff]  ;;  %v92_v50 = vld [vmem:[%s14703_s29 + $0xb8] sm:$0xff]  ;;  %v496_v12 = vld [vmem:[%s14705_s21 + $0x68] sm:$0xff] }
  0x33   :  { %216 = vmatmul.f32.gmra.mxu0 %v8029_v14  ;;  %248 = vmatmul.f32.gmra.mxu1 %v8034_v15  ;;  %v156_v51 = vld [vmem:[%s14703_s29 + $0x2b8] sm:$0xff]  ;;  %v87_v52 = vld [vmem:[%s14703_s29 + $0x90] sm:$0xff]  ;;  %v495_v13 = vld [vmem:[%s14705_s21 + $0x60] sm:$0xff] }
  0x34   :  { %280 = vmatmul.f32.gmra.mxu2 %v8029_v14  ;;  %312 = vmatmul.f32.gmra.mxu3 %v8034_v15  ;;  %v151_v53 = vld [vmem:[%s14703_s29 + $0x290] sm:$0xff]  ;;  %v88_v54 = vld [vmem:[%s14703_s29 + $0x98] sm:$0xff] }
  0x35   :  { %328 = vmatpush.msrb.mxu0 %v119_v16  ;;  %360 = vmatpush.msrb.mxu1 %v183_v17  ;;  %v152_v55 = vld [vmem:[%s14703_s29 + $0x298] sm:$0xff]  ;;  %v83_v58 = vld [vmem:[%s14703_s29 + $0x70] sm:$0xff] }
  0x36   :  { %392 = vmatpush.msrb.mxu2 %v120_v18  ;;  %424 = vmatpush.msrb.mxu3 %v184_v19  ;;  %v147_v59 = vld [vmem:[%s14703_s29 + $0x270] sm:$0xff]  ;;  %v84_v60 = vld [vmem:[%s14703_s29 + $0x78] sm:$0xff]  ;;  %v512_v18 = vld [vmem:[%s14705_s21 + $0xe8] sm:$0xff] }
  0x37   :  { %329 = vmatpush.msrb.mxu0 %v115_v20  ;;  %361 = vmatpush.msrb.mxu1 %v179_v21  ;;  %v148_v61 = vld [vmem:[%s14703_s29 + $0x278] sm:$0xff]  ;;  %v79_v62 = vld [vmem:[%s14703_s29 + $0x50] sm:$0xff]  ;;  %v492_v19 = vld [vmem:[%s14705_s21 + $0x48] sm:$0xff] }
  0x38   :  { %393 = vmatpush.msrb.mxu2 %v116_v22  ;;  %425 = vmatpush.msrb.mxu3 %v180_v23  ;;  %v143_v63 = vld [vmem:[%s14703_s29 + $0x250] sm:$0xff]  ;;  %v80_v2 = vld [vmem:[%s14703_s29 + $0x58] sm:$0xff]  ;;  %v511_v20 = vld [vmem:[%s14705_s21 + $0xe0] sm:$0xff] }
  0x39   :  { %330 = vmatpush.msrb.mxu0 %v111_v24  ;;  %362 = vmatpush.msrb.mxu1 %v175_v25  ;;  %v144_v3 = vld [vmem:[%s14703_s29 + $0x258] sm:$0xff]  ;;  %v75_v4 = vld [vmem:[%s14703_s29 + $0x30] sm:$0xff]  ;;  %v491_v23 = vld [vmem:[%s14705_s21 + $0x40] sm:$0xff] }
  0x3a   :  { %394 = vmatpush.msrb.mxu2 %v112_v26  ;;  %426 = vmatpush.msrb.mxu3 %v176_v27  ;;  %v139_v5 = vld [vmem:[%s14703_s29 + $0x230] sm:$0xff]  ;;  %v76_v6 = vld [vmem:[%s14703_s29 + $0x38] sm:$0xff] }
  0x3b   :  { %219 = vmatmul.f32.gmra.mxu0 %v8079_v28  ;;  %251 = vmatmul.f32.gmra.mxu1 %v8084_v29  ;;  %v140_v7 = vld [vmem:[%s14703_s29 + $0x238] sm:$0xff]  ;;  %v71_v8 = vld [vmem:[%s14703_s29 + $0x10] sm:$0xff] }
  0x3c   :  { %283 = vmatmul.f32.gmra.mxu2 %v8079_v28  ;;  %315 = vmatmul.f32.gmra.mxu3 %v8084_v29  ;;  %v135_v9 = vld [vmem:[%s14703_s29 + $0x210] sm:$0xff]  ;;  %v72_v10 = vld [vmem:[%s14703_s29 + $0x18] sm:$0xff] }
  0x3d   :  { %331 = vmatpush.msrb.mxu0 %v107_v30  ;;  %363 = vmatpush.msrb.mxu1 %v171_v31  ;;  %v136_v11 = vld [vmem:[%s14703_s29 + $0x218] sm:$0xff]  ;;  %v513_v16 = vld [vmem:[%s14705_s21 + $0xf0] sm:$0xff]  ;;  %v507_v30 = vld [vmem:[%s14705_s21 + $0xc0] sm:$0xff] }
  0x3e   :  { %395 = vmatpush.msrb.mxu2 %v108_v32  ;;  %427 = vmatpush.msrb.mxu3 %v172_v33  ;;  %v493_v17 = vld [vmem:[%s14705_s21 + $0x50] sm:$0xff]  ;;  %v510_v24 = vld [vmem:[%s14705_s21 + $0xd8] sm:$0xff] }
  0x3f   :  { %332 = vmatpush.msrb.mxu0 %v103_v34  ;;  %364 = vmatpush.msrb.mxu1 %v167_v35  ;;  %v490_v25 = vld [vmem:[%s14705_s21 + $0x38] sm:$0xff]  ;;  %v509_v26 = vld [vmem:[%s14705_s21 + $0xd0] sm:$0xff]  ;;  %v487_v35 = vld [vmem:[%s14705_s21 + $0x20] sm:$0xff] }
  0x40   :  { %396 = vmatpush.msrb.mxu2 %v104_v36  ;;  %428 = vmatpush.msrb.mxu3 %v168_v37  ;;  %v489_v27 = vld [vmem:[%s14705_s21 + $0x30] sm:$0xff]  ;;  %v506_v36 = vld [vmem:[%s14705_s21 + $0xb8] sm:$0xff] }
  0x41   :  { %333 = vmatpush.msrb.mxu0 %v99_v38  ;;  %365 = vmatpush.msrb.mxu1 %v163_v39  ;;  %v486_v37 = vld [vmem:[%s14705_s21 + $0x18] sm:$0xff]  ;;  %v505_v38 = vld [vmem:[%s14705_s21 + $0xb0] sm:$0xff] }
  0x42   :  { %397 = vmatpush.msrb.mxu2 %v100_v40  ;;  %429 = vmatpush.msrb.mxu3 %v164_v41  ;;  %v485_v39 = vld [vmem:[%s14705_s21 + $0x10] sm:$0xff]  ;;  %v504_v40 = vld [vmem:[%s14705_s21 + $0xa8] sm:$0xff] }
  0x43   :  { %222 = vmatmul.f32.gmra.mxu0 %v8129_v42  ;;  %254 = vmatmul.f32.gmra.mxu1 %v8134_v43  ;;  %v484_v41 = vld [vmem:[%s14705_s21 + $0x8] sm:$0xff] }
  0x44   :  { %286 = vmatmul.f32.gmra.mxu2 %v8129_v42  ;;  %318 = vmatmul.f32.gmra.mxu3 %v8134_v43 }
  0x45   :  { %334 = vmatpush.msrb.mxu0 %v95_v44  ;;  %366 = vmatpush.msrb.mxu1 %v159_v45 }
  0x46   :  { %398 = vmatpush.msrb.mxu2 %v96_v46  ;;  %430 = vmatpush.msrb.mxu3 %v160_v47  ;;  %v483_v47 = vld [vmem:[%s14705_s21] sm:$0xff] }
  0x47   :  { %335 = vmatpush.msrb.mxu0 %v91_v48  ;;  %367 = vmatpush.msrb.mxu1 %v155_v49  ;;  %v502_v48 = vld [vmem:[%s14705_s21 + $0x98] sm:$0xff]  ;;  %v501_v49 = vld [vmem:[%s14705_s21 + $0x90] sm:$0xff] }
  0x48   :  { %399 = vmatpush.msrb.mxu2 %v92_v50  ;;  %431 = vmatpush.msrb.mxu3 %v156_v51  ;;  %v500_v50 = vld [vmem:[%s14705_s21 + $0x88] sm:$0xff]  ;;  %v499_v51 = vld [vmem:[%s14705_s21 + $0x80] sm:$0xff] }
  0x49   :  { %336 = vmatpush.msrb.mxu0 %v87_v52  ;;  %368 = vmatpush.msrb.mxu1 %v151_v53 }
  0x4a   :  { %400 = vmatpush.msrb.mxu2 %v88_v54  ;;  %432 = vmatpush.msrb.mxu3 %v152_v55 }
  0x4b   :  { %225 = vmatmul.f32.gmra.mxu0 %v67_v56  ;;  %257 = vmatmul.f32.gmra.mxu1 %v68_v57 }
  0x4c   :  { %289 = vmatmul.f32.gmra.mxu2 %v67_v56  ;;  %321 = vmatmul.f32.gmra.mxu3 %v68_v57 }
  0x4d   :  { %337 = vmatpush.msrb.mxu0 %v83_v58  ;;  %369 = vmatpush.msrb.mxu1 %v147_v59 }
  0x4e   :  { %401 = vmatpush.msrb.mxu2 %v84_v60  ;;  %433 = vmatpush.msrb.mxu3 %v148_v61 }
  0x4f   :  { %338 = vmatpush.msrb.mxu0 %v79_v62  ;;  %370 = vmatpush.msrb.mxu1 %v143_v63 }
  0x50   :  { %402 = vmatpush.msrb.mxu2 %v80_v2  ;;  %434 = vmatpush.msrb.mxu3 %v144_v3 }
  0x51   :  { %339 = vmatpush.msrb.mxu0 %v75_v4  ;;  %371 = vmatpush.msrb.mxu1 %v139_v5 }
  0x52   :  { %403 = vmatpush.msrb.mxu2 %v76_v6  ;;  %435 = vmatpush.msrb.mxu3 %v140_v7 }
  0x53   :  { %340 = vmatpush.msrb.mxu0 %v71_v8  ;;  %372 = vmatpush.msrb.mxu1 %v135_v9 }
  0x54   :  { %404 = vmatpush.msrb.mxu2 %v72_v10  ;;  %436 = vmatpush.msrb.mxu3 %v136_v11 }
  0x55   :  { %341 = vmatmul.f32.vlgmr.msrb.gmra.mxu0 %v7979_v0  ;;  %373 = vmatmul.f32.vlgmr.msrb.gmra.mxu1 %v7984_v1 }
  0x56   :  { %405 = vmatmul.f32.vlgmr.msrb.gmra.mxu2 %v7979_v0  ;;  %437 = vmatmul.f32.vlgmr.msrb.gmra.mxu3 %v7984_v1  ;;  %v498_v0 = vld [vmem:[%s14705_s21 + $0x78] sm:$0xff]  ;;  %v497_v1 = vld [vmem:[%s14705_s21 + $0x70] sm:$0xff] }
  0x57   :  { %515 = vmatpush.msra.mxu0 %v498_v0 }
  0x59   :  { %516 = vmatpush.msra.mxu0 %v497_v1 }
  0x5b   :  { %517 = vmatpush.msra.mxu0 %v496_v12 }
  0x5d   :  { %344 = vmatmul.f32.gmra.mxu0 %v8029_v14  ;;  %376 = vmatmul.f32.gmra.mxu1 %v8034_v15 }
  0x5e   :  { %408 = vmatmul.f32.gmra.mxu2 %v8029_v14  ;;  %440 = vmatmul.f32.gmra.mxu3 %v8034_v15  ;;  %v514_v14 = vld [vmem:[%s14705_s21 + $0xf8] sm:$0xff] }
  0x5f   :  { %518 = vmatpush.msra.mxu0 %v495_v13  ;;  %547 = vmatpush.msra.mxu1 %v514_v14  ;;  %v494_v15 = vld [vmem:[%s14705_s21 + $0x58] sm:$0xff] }
  0x60   :  { %7291 = vmatpush.msra.mxu2 %v514_v14 }
  0x61   :  { %519 = vmatpush.msra.mxu0 %v494_v15  ;;  %548 = vmatpush.msra.mxu1 %v513_v16 }
  0x62   :  { %7292 = vmatpush.msra.mxu2 %v513_v16 }
  0x63   :  { %520 = vmatpush.msra.mxu0 %v493_v17  ;;  %549 = vmatpush.msra.mxu1 %v512_v18 }
  0x64   :  { %7293 = vmatpush.msra.mxu2 %v512_v18 }
  0x65   :  { %347 = vmatmul.f32.gmra.mxu0 %v8079_v28  ;;  %379 = vmatmul.f32.gmra.mxu1 %v8084_v29 }
  0x66   :  { %411 = vmatmul.f32.gmra.mxu2 %v8079_v28  ;;  %443 = vmatmul.f32.gmra.mxu3 %v8084_v29  ;;  %v508_v28 = vld [vmem:[%s14705_s21 + $0xc8] sm:$0xff] }
  0x67   :  { %521 = vmatpush.msra.mxu0 %v492_v19  ;;  %550 = vmatpush.msra.mxu1 %v511_v20  ;;  %v488_v29 = vld [vmem:[%s14705_s21 + $0x28] sm:$0xff] }
  0x68   :  { %7294 = vmatpush.msra.mxu2 %v511_v20 }
  0x69   :  { %522 = vmatpush.msra.mxu0 %v491_v23  ;;  %551 = vmatpush.msra.mxu1 %v510_v24 }
  0x6a   :  { %7295 = vmatpush.msra.mxu2 %v510_v24 }
  0x6b   :  { %523 = vmatpush.msra.mxu0 %v490_v25  ;;  %552 = vmatpush.msra.mxu1 %v509_v26 }
  0x6c   :  { %7296 = vmatpush.msra.mxu2 %v509_v26 }
  0x6d   :  { %350 = vmatmul.f32.gmra.mxu0 %v8129_v42  ;;  %382 = vmatmul.f32.gmra.mxu1 %v8134_v43 }
  0x6e   :  { %414 = vmatmul.f32.gmra.mxu2 %v8129_v42  ;;  %446 = vmatmul.f32.gmra.mxu3 %v8134_v43  ;;  %v503_v42 = vld [vmem:[%s14705_s21 + $0xa0] sm:$0xff] }
  0x6f   :  { %524 = vmatpush.msra.mxu0 %v489_v27  ;;  %553 = vmatpush.msra.mxu1 %v508_v28 }
  0x70   :  { %7297 = vmatpush.msra.mxu2 %v508_v28 }
  0x71   :  { %525 = vmatpush.msra.mxu0 %v488_v29  ;;  %554 = vmatpush.msra.mxu1 %v507_v30 }
  0x72   :  { %7298 = vmatpush.msra.mxu2 %v507_v30 }
  0x73   :  { %526 = vmatpush.msra.mxu0 %v487_v35  ;;  %555 = vmatpush.msra.mxu1 %v506_v36 }
  0x74   :  { %7299 = vmatpush.msra.mxu2 %v506_v36 }
  0x75   :  { %353 = vmatmul.f32.gmra.mxu0 %v67_v56  ;;  %385 = vmatmul.f32.gmra.mxu1 %v68_v57 }
  0x76   :  { %417 = vmatmul.f32.gmra.mxu2 %v67_v56  ;;  %449 = vmatmul.f32.gmra.mxu3 %v68_v57 }
  0x77   :  { %527 = vmatpush.msra.mxu0 %v486_v37  ;;  %556 = vmatpush.msra.mxu1 %v505_v38 }
  0x78   :  { %7300 = vmatpush.msra.mxu2 %v505_v38 }
  0x79   :  { %528 = vmatpush.msra.mxu0 %v485_v39  ;;  %557 = vmatpush.msra.mxu1 %v504_v40 }
  0x7a   :  { %7301 = vmatpush.msra.mxu2 %v504_v40 }
  0x7b   :  { %529 = vmatpush.msra.mxu0 %v484_v41  ;;  %558 = vmatpush.msra.mxu1 %v503_v42 }
  0x7c   :  { %7302 = vmatpush.msra.mxu2 %v503_v42 }
  0x7d   :  { %530 = vmatpush.msra.mxu0 %v483_v47  ;;  %559 = vmatpush.msra.mxu1 %v502_v48 }
  0x7e   :  { %7303 = vmatpush.msra.mxu2 %v502_v48 }
  0x7f   :  { %560 = vmatpush.msra.mxu1 %v501_v49 }
  0x80   :  { %7304 = vmatpush.msra.mxu2 %v501_v49 }
  0x81   :  { %561 = vmatpush.msra.mxu1 %v500_v50 }
  0x82   :  { %7305 = vmatpush.msra.mxu2 %v500_v50 }
  0x83   :  { %562 = vmatpush.msra.mxu1 %v499_v51 }
  0x84   :  { %7306 = vmatpush.msra.mxu2 %v499_v51 }
  0xa8   :  { %v8279_v21 = vpop.f32.mrf.mxu0  ;;  %v8281_v22 = vpop.f32.mrf.mxu1 }
  0xa9   :  { %v247_v62 = vadd.f32 %v8281_v22, %v8279_v21 }
  0xab   :  { %v453_v4 = vmul.f32 %v247_v62, %v247_v62 }
  0xaf   :  { %v278_v31 = vpop.f32.mrf.mxu2  ;;  %v310_v32 = vpop.f32.mrf.mxu3 }
  0xb0   :  { %v217_v33 = vpop.f32.mrf.mxu0  ;;  %v249_v34 = vpop.f32.mrf.mxu1  ;;  %v311_v7 = vadd.f32 %v310_v32, %v278_v31 }
  0xb1   :  { %v250_v8 = vadd.f32 %v249_v34, %v217_v33 }
  0xb2   :  { %v454_v13 = vmul.f32 %v311_v7, %v311_v7 }
  0xb3   :  { %v455_v15 = vmul.f32 %v250_v8, %v250_v8  ;;  %v592_v8 = vld [vmem:[%s14530_s3 + $0x18] sm:$0xff] }
  0xb4   :  { %621 = vmatpush.msrb.mxu2 %v592_v8 }
  0xb7   :  { %v281_v43 = vpop.f32.mrf.mxu2  ;;  %v313_v44 = vpop.f32.mrf.mxu3 }
  0xb8   :  { %v220_v45 = vpop.f32.mrf.mxu0  ;;  %v252_v46 = vpop.f32.mrf.mxu1  ;;  %v314_v19 = vadd.f32 %v313_v44, %v281_v43 }
  0xb9   :  { %v253_v20 = vadd.f32 %v252_v46, %v220_v45 }
  0xba   :  { %v456_v27 = vmul.f32 %v314_v19, %v314_v19 }
  0xbb   :  { %v457_v29 = vmul.f32 %v253_v20, %v253_v20 }
  0xbf   :  { %v284_v52 = vpop.f32.mrf.mxu2  ;;  %v316_v53 = vpop.f32.mrf.mxu3 }
  0xc0   :  { %v223_v54 = vpop.f32.mrf.mxu0  ;;  %v255_v55 = vpop.f32.mrf.mxu1  ;;  %v317_v33 = vadd.f32 %v316_v53, %v284_v52 }
  0xc1   :  { %v256_v34 = vadd.f32 %v255_v55, %v223_v54 }
  0xc2   :  { %v458_v41 = vmul.f32 %v317_v33, %v317_v33 }
  0xc3   :  { %v459_v43 = vmul.f32 %v256_v34, %v256_v34 }
  0xc7   :  { %v287_v56 = vpop.f32.mrf.mxu2  ;;  %v319_v57 = vpop.f32.mrf.mxu3 }
  0xc8   :  { %v226_v58 = vpop.f32.mrf.mxu0  ;;  %v258_v59 = vpop.f32.mrf.mxu1  ;;  %v320_v47 = vadd.f32 %v319_v57, %v287_v56 }
  0xc9   :  { %v259_v48 = vadd.f32 %v258_v59, %v226_v58 }
  0xca   :  { %v460_v55 = vmul.f32 %v320_v47, %v320_v47  ;;  %v643_v47 = vld [vmem:[%s14532_s7 + $0x8] sm:$0xff] }
  0xcf   :  { %v8346_v60 = vpop.f32.mrf.mxu2  ;;  %v8348_v61 = vpop.f32.mrf.mxu3 }
  0xd2   :  { %v342_v63 = vpop.f32.mrf.mxu0  ;;  %v374_v2 = vpop.f32.mrf.mxu1 }
  0xd3   :  { %v375_v3 = vadd.f32 %v374_v2, %v342_v63  ;;  %v461_v63 = vmul.f32 %v259_v48, %v259_v48  ;;  %v644_v48 = vld [vmem:[%s14532_s7 + $0x10] sm:$0xff] }
  0xd5   :  { %v463_v5 = vmul.f32 %v375_v3, %v375_v3 }
  0xd7   :  { %v473_v6 = vadd.f32 %v463_v5, %v453_v4  ;;  %v323_v5 = vadd.f32 %v8348_v61, %v8346_v60  ;;  %v590_v60 = vld [vmem:[%s14530_s3 + $0x8] sm:$0xff]  ;;  %v589_v61 = vld [vmem:[%s14530_s3] sm:$0xff] }
  0xd9   :  { %v406_v9 = vpop.f32.mrf.mxu2  ;;  %v438_v10 = vpop.f32.mrf.mxu3  ;;  %531 = vmatmul.f32.vlgmr.msra.gmra.mxu0 %v473_v6  ;;  %v462_v59 = vmul.f32 %v323_v5, %v323_v5 }
  0xda   :  { %v439_v11 = vadd.f32 %v438_v10, %v406_v9  ;;  %v345_v0 = vpop.f32.mrf.mxu0  ;;  %v377_v1 = vpop.f32.mrf.mxu1  ;;  %v591_v9 = vld [vmem:[%s14530_s3 + $0x10] sm:$0xff] }
  0xdb   :  { %v378_v12 = vadd.f32 %v377_v1, %v345_v0  ;;  %622 = vmatpush.msrb.mxu2 %v591_v9 }
  0xdc   :  { %v464_v14 = vmul.f32 %v439_v11, %v439_v11 }
  0xdd   :  { %v465_v16 = vmul.f32 %v378_v12, %v378_v12  ;;  %623 = vmatpush.msrb.mxu2 %v590_v60 }
  0xde   :  { %v474_v17 = vadd.f32 %v464_v14, %v454_v13 }
  0xdf   :  { %v475_v18 = vadd.f32 %v465_v16, %v455_v15  ;;  %624 = vmatpush.msrb.mxu2 %v589_v61 }
  0xe0   :  { %563 = vmatmul.f32.vlgmr.msra.gmra.mxu1 %v474_v17 }
  0xe1   :  { %v409_v21 = vpop.f32.mrf.mxu2  ;;  %v441_v22 = vpop.f32.mrf.mxu3  ;;  %534 = vmatmul.f32.gmra.mxu0 %v475_v18 }
  0xe2   :  { %v442_v23 = vadd.f32 %v441_v22, %v409_v21  ;;  %v348_v24 = vpop.f32.mrf.mxu0  ;;  %v380_v25 = vpop.f32.mrf.mxu1 }
  0xe3   :  { %v381_v26 = vadd.f32 %v380_v25, %v348_v24 }
  0xe4   :  { %v466_v28 = vmul.f32 %v442_v23, %v442_v23 }
  0xe5   :  { %v467_v30 = vmul.f32 %v381_v26, %v381_v26 }
  0xe6   :  { %v476_v31 = vadd.f32 %v466_v28, %v456_v27 }
  0xe7   :  { %v477_v32 = vadd.f32 %v467_v30, %v457_v29 }
  0xe8   :  { %566 = vmatmul.f32.vlgmr.msra.gmra.mxu2 %v476_v31 }
  0xe9   :  { %v412_v35 = vpop.f32.mrf.mxu2  ;;  %v444_v36 = vpop.f32.mrf.mxu3  ;;  %537 = vmatmul.f32.gmra.mxu0 %v477_v32 }
  0xea   :  { %v445_v37 = vadd.f32 %v444_v36, %v412_v35  ;;  %v351_v38 = vpop.f32.mrf.mxu0  ;;  %v383_v39 = vpop.f32.mrf.mxu1 }
  0xeb   :  { %v384_v40 = vadd.f32 %v383_v39, %v351_v38 }
  0xec   :  { %v468_v42 = vmul.f32 %v445_v37, %v445_v37 }
  0xed   :  { %v469_v44 = vmul.f32 %v384_v40, %v384_v40 }
  0xee   :  { %v478_v45 = vadd.f32 %v468_v42, %v458_v41 }
  0xef   :  { %v479_v46 = vadd.f32 %v469_v44, %v459_v43  ;;  %v641_v43 = vld [vmem:[%s14531_s6] sm:$0x3] }
  0xf0   :  { %569 = vmatmul.f32.gmra.mxu2 %v478_v45 }
  0xf1   :  { %v415_v49 = vpop.f32.mrf.mxu2  ;;  %v447_v50 = vpop.f32.mrf.mxu3  ;;  %540 = vmatmul.f32.gmra.mxu0 %v479_v46  ;;  %v642_v46 = vld [vmem:[%s14532_s7] sm:$0xff] }
  0xf2   :  { %v448_v51 = vadd.f32 %v447_v50, %v415_v49  ;;  %v354_v52 = vpop.f32.mrf.mxu0  ;;  %v386_v53 = vpop.f32.mrf.mxu1  ;;  %v645_v49 = vld [vmem:[%s14532_s7 + $0x18] sm:$0xff]  ;;  %v646_v50 = vld [vmem:[%s14532_s7 + $0x20] sm:$0x3] }
  0xf3   :  { %v387_v54 = vadd.f32 %v386_v53, %v354_v52 }
  0xf4   :  { %v470_v62 = vmul.f32 %v448_v51, %v448_v51 }
  0xf5   :  { %v471_v2 = vmul.f32 %v387_v54, %v387_v54 }
  0xf6   :  { %v480_v3 = vadd.f32 %v470_v62, %v460_v55 }
  0xf7   :  { %v481_v4 = vadd.f32 %v471_v2, %v461_v63 }
  0xf8   :  { %572 = vmatmul.f32.gmra.mxu2 %v480_v3 }
  0xf9   :  { %v418_v56 = vpop.f32.mrf.mxu2  ;;  %v450_v57 = vpop.f32.mrf.mxu3  ;;  %543 = vmatmul.f32.gmra.mxu0 %v481_v4 }
  0xfa   :  { %v451_v58 = vadd.f32 %v450_v57, %v418_v56 }
  0xfc   :  { %v472_v6 = vmul.f32 %v451_v58, %v451_v58 }
  0xfe   :  { %v482_v7 = vadd.f32 %v472_v6, %v462_v59 }
 0x100   :  { %575 = vmatmul.f32.gmra.mxu2 %v482_v7 }
 0x156   :  { %v532_v10 = vpop.f32.mrf.mxu0 }
 0x157   :  { %v533_v11 = vadd.f32 1e-06, %v532_v10 }
 0x15d   :  { %v564_v0 = vpop.f32.mrf.mxu1 }
 0x15e   :  { %v565_v1 = vadd.f32 %v564_v0, %v533_v11  ;;  %v535_v12 = vpop.f32.mrf.mxu0 }
 0x15f   :  { %v536_v15 = vadd.f32 1e-06, %v535_v12 }
 0x160   :  { %7313 = vlog2.f32 %v565_v1 }
 0x166   :  { %v7314_v13 = vpop.eup %7313  ;;  %v538_v16 = vpop.f32.mrf.mxu0 }
 0x167   :  { %v580_v14 = vmul.f32 0.6931472, %v7314_v13  ;;  %v539_v19 = vadd.f32 1e-06, %v538_v16 }
 0x169   :  { %7160 = vmatmul.msk.f32.vlgmr.msrb.gmra.mxu2 %vm593_vm0, %v580_v14 }
 0x16b   :  { %v567_v17 = vpop.f32.mrf.mxu2 }
 0x16c   :  { %v568_v18 = vadd.f32 %v567_v17, %v536_v15 }
 0x16e   :  { %7315 = vlog2.f32 %v568_v18  ;;  %v541_v23 = vpop.f32.mrf.mxu0 }
 0x16f   :  { %v542_v25 = vadd.f32 1e-06, %v541_v23 }
 0x173   :  { %v570_v20 = vpop.f32.mrf.mxu2 }
 0x174   :  { %v7316_v21 = vpop.eup %7315  ;;  %v571_v22 = vadd.f32 %v570_v20, %v539_v19 }
 0x175   :  { %v582_v24 = vmul.f32 0.6931472, %v7316_v21 }
 0x176   :  { %7317 = vlog2.f32 %v571_v22  ;;  %v544_v30 = vpop.f32.mrf.mxu0 }
 0x177   :  { %7161 = vmatmul.msk.f32.gmra.mxu2 %vm593_vm0, %v582_v24  ;;  %v545_v31 = vadd.f32 1e-06, %v544_v30 }
 0x17b   :  { %v573_v26 = vpop.f32.mrf.mxu2 }
 0x17c   :  { %v7318_v27 = vpop.eup %7317  ;;  %v574_v28 = vadd.f32 %v573_v26, %v542_v25 }
 0x17d   :  { %v584_v29 = vmul.f32 0.6931472, %v7318_v27 }
 0x17e   :  { %7319 = vlog2.f32 %v574_v28 }
 0x17f   :  { %7162 = vmatmul.msk.f32.gmra.mxu2 %vm593_vm0, %v584_v29 }
 0x183   :  { %v576_v32 = vpop.f32.mrf.mxu2 }
 0x184   :  { %v7320_v33 = vpop.eup %7319  ;;  %v577_v34 = vadd.f32 %v576_v32, %v545_v31 }
 0x185   :  { %v586_v35 = vmul.f32 0.6931472, %v7320_v33 }
 0x186   :  { %7321 = vlog2.f32 %v577_v34 }
 0x187   :  { %7163 = vmatmul.msk.f32.gmra.mxu2 %vm593_vm0, %v586_v35 }
 0x18c   :  { %v7322_v36 = vpop.eup %7321 }
 0x18d   :  { %v588_v37 = vmul.f32 0.6931472, %v7322_v36 }
 0x18f   :  { %7164 = vmatmul.msk.f32.gmra.mxu2 %vm593_vm0, %v588_v37 }
 0x1ec   :  { %v626_v38 = vpop.f32.mrf.mxu2 }
 0x1fa   :  { %v629_v39 = vpop.f32.mrf.mxu2 }
 0x202   :  { %v632_v40 = vpop.f32.mrf.mxu2 }
 0x20a   :  { %v635_v41 = vpop.f32.mrf.mxu2 }
 0x212   :  { %v638_v42 = vpop.f32.mrf.mxu2 }
 0x213   :  { %7165 = vmatpush.msk.msrb.mxu1 %vm651_vm1, %v638_v42 }
 0x215   :  { %667 = vmatpush.msrb.mxu1 %v635_v41 }
 0x217   :  { %668 = vmatpush.msrb.mxu1 %v632_v40 }
 0x219   :  { %669 = vmatpush.msrb.mxu1 %v629_v39 }
 0x21b   :  { %670 = vmatpush.msrb.mxu1 %v626_v38 }
 0x21c   :  { %7166 = vmatmul.msk.f32.vlgmr.msrb.gmra.mxu1 %vm647_vm2, %v641_v43 }
 0x299   :  { %v672_v44 = vpop.f32.mrf.mxu1 }
 0x29a   :  { %v675_v45 = vmul.f32 0.05882353, %v672_v44  ;;  %v935_v44 = vld [vmem:[%s14536_s10 + $0x58] sm:$0xff] }
 0x29c   :  { %7167 = vmatpush.msk.msra.mxu3 %vm651_vm1, %v675_v45 }
 0x29d   :  { %7168 = vmatmul.msk.f32.vlgmr.msra.gmra.mxu3 %vm676_vm3, %v642_v46 }
 0x2a5   :  { %7169 = vmatmul.msk.f32.gmra.mxu3 %vm676_vm3, %v643_v47 }
 0x2ad   :  { %7170 = vmatmul.msk.f32.gmra.mxu3 %vm676_vm3, %v644_v48 }
 0x2b5   :  { %7171 = vmatmul.msk.f32.gmra.mxu3 %vm676_vm3, %v645_v49 }
 0x2bd   :  { %7172 = vmatmul.msk.f32.gmra.mxu3 %vm676_vm3, %v646_v50 }
 0x320   :  { %v712_v51 = vpop.f32.mrf.mxu3 }
 0x321   :  { %v8410_v56 = vsub.f32 %v626_v38, %v712_v51  ;;  %v7308_v51 = vld [vmem:[%s14533_s4] ss:$0 sm:$0xff] }
 0x323   :  { %v732_v59 = vmul.f32 %v8410_v56, %v8410_v56 }
 0x328   :  { %v715_v52 = vpop.f32.mrf.mxu3 }
 0x329   :  { %v8405_v4 = vsub.f32 %v629_v39, %v715_v52 }
 0x32b   :  { %v733_v58 = vmul.f32 %v8405_v4, %v8405_v4 }
 0x330   :  { %v718_v53 = vpop.f32.mrf.mxu3 }
 0x331   :  { %v8401_v2 = vsub.f32 %v632_v40, %v718_v53 }
 0x333   :  { %v734_v57 = vmul.f32 %v8401_v2, %v8401_v2 }
 0x338   :  { %v721_v54 = vpop.f32.mrf.mxu3 }
 0x339   :  { %v8397_v62 = vsub.f32 %v635_v41, %v721_v54 }
 0x33b   :  { %v735_v5 = vmul.f32 %v8397_v62, %v8397_v62 }
 0x340   :  { %v724_v55 = vpop.f32.mrf.mxu3 }
 0x341   :  { %v8399_v63 = vsub.f32 %v638_v42, %v724_v55  ;;  %v7309_v55 = vld [vmem:[%s14534_s5] ss:$0 sm:$0xff] }
 0x343   :  { %v736_v3 = vmul.f32 %v8399_v63, %v8399_v63 }
 0x345   :  { %7173 = vmatpush.msk.msra.mxu1 %vm651_vm1, %v736_v3 }
 0x347   :  { %752 = vmatpush.msra.mxu1 %v735_v5 }
 0x349   :  { %753 = vmatpush.msra.mxu1 %v734_v57 }
 0x34b   :  { %754 = vmatpush.msra.mxu1 %v733_v58 }
 0x34d   :  { %755 = vmatpush.msra.mxu1 %v732_v59 }
 0x34e   :  { %7174 = vmatmul.msk.f32.vlgmr.msra.gmra.mxu1 %vm647_vm2, %v641_v43 }
 0x3cb   :  { %v757_v6 = vpop.f32.mrf.mxu1 }
 0x3cc   :  { %v760_v7 = vmul.f32 0.05882353, %v757_v6 }
 0x3ce   :  { %7175 = vmatpush.msk.msrb.mxu1 %vm651_vm1, %v760_v7 }
 0x3cf   :  { %7176 = vmatmul.msk.f32.vlgmr.msrb.gmra.mxu1 %vm676_vm3, %v642_v46 }
 0x3d7   :  { %7177 = vmatmul.msk.f32.gmra.mxu1 %vm676_vm3, %v643_v47 }
 0x3df   :  { %7178 = vmatmul.msk.f32.gmra.mxu1 %vm676_vm3, %v644_v48 }
 0x3e7   :  { %7179 = vmatmul.msk.f32.gmra.mxu1 %vm676_vm3, %v645_v49 }
 0x3ef   :  { %7180 = vmatmul.msk.f32.gmra.mxu1 %vm676_vm3, %v646_v50 }
 0x44c   :  { %v781_v8 = vpop.f32.mrf.mxu1 }
 0x44d   :  { %v782_v11 = vadd.f32 1e-05, %v781_v8 }
 0x44f   :  { %vm802_vm3 = vweird.f32 %v782_v11 }
 0x454   :  { %v784_v9 = vpop.f32.mrf.mxu1 }
 0x455   :  { %v785_v10 = vadd.f32 1e-05, %v784_v9  ;;  %v869_v9 = vld [vmem:[%s14535_s8] sm:$0xff] }
 0x457   :  { %vm812_vm12 = vweird.f32 %v785_v10 }
 0x45c   :  { %v787_v60 = vpop.f32.mrf.mxu1 }
 0x45d   :  { %v788_v61 = vadd.f32 1e-05, %v787_v60  ;;  %v932_v60 = vld [vmem:[%s14536_s10 + $0x40] sm:$0xff] }
 0x45e   :  { %1044 = vmatpush.msra.mxu1 %v932_v60  ;;  %v8815_v60 = vld [vmem:[%s14538_s13 + $0x110] sm:$0xff] }
 0x45f   :  { %7323 = vrsqrt.f32 %v788_v61  ;;  %vm822_vm8 = vweird.f32 %v788_v61  ;;  %14712 = vst [vmem:[#allocation10_spill] sm:$0xff] %v8815_v60 }
 0x460   :  { %7325 = vrsqrt.f32 %v785_v10 }
 0x461   :  { %7327 = vrsqrt.f32 %v782_v11 }
 0x464   :  { %v790_v0 = vpop.f32.mrf.mxu1 }
 0x465   :  { %v791_v1 = vadd.f32 1e-05, %v790_v0  ;;  %v7324_v12 = vpop.eup %7323  ;;  %v872_v0 = vld [vmem:[%s14535_s8 + $0x18] sm:$0xff] }
 0x466   :  { %v7326_v13 = vpop.eup %7325  ;;  %v817_v15 = vmul.f32 %v7324_v12, %v788_v61  ;;  %vm823_vm5 = vweird.f32 %v7324_v12  ;;  %v933_v61 = vld [vmem:[%s14536_s10 + $0x48] sm:$0xff] }
 0x467   :  { %7329 = vrsqrt.f32 %v791_v1  ;;  %v7328_v14 = vpop.eup %7327  ;;  %v807_v16 = vmul.f32 %v7326_v13, %v785_v10  ;;  %vm832_vm6 = vweird.f32 %v791_v1  ;;  %vm813_vm7 = vweird.f32 %v7326_v13  ;;  %vm824_vm13 = vmor %vm822_vm8, %vm823_vm5  ;;  %v870_v10 = vld [vmem:[%s14535_s8 + $0x8] sm:$0xff] }
 0x468   :  { %v797_v19 = vmul.f32 %v7328_v14, %v782_v11  ;;  %v818_v21 = vmul.f32 %v7324_v12, %v817_v15  ;;  %vm803_vm11 = vweird.f32 %v7328_v14  ;;  %vm8425_vm14 = vmor %vm812_vm12, %vm813_vm7  ;;  %v871_v11 = vld [vmem:[%s14535_s8 + $0x10] sm:$0xff]  ;;  %v927_v15 = vld [vmem:[%s14536_s10 + $0x18] sm:$0xff]  ;;  %vm950_vm5 = vcmask 130048  }
 0x469   :  { %v808_v23 = vmul.f32 %v7326_v13, %v807_v16  ;;  %v8490_v16 = vld [vmem:[%s14537_s12 + $0x168] sm:$0xff] }
 0x46a   :  { %v798_v25 = vmul.f32 %v7328_v14, %v797_v19  ;;  %v819_v26 = vmul.f32 0.5, %v818_v21  ;;  %v8507_v19 = vld [vmem:[%s14537_s12 + $0x158] sm:$0xff]  ;;  %v8517_v21 = vld [vmem:[%s14537_s12 + $0x140] sm:$0xff] }
 0x46b   :  { %v809_v28 = vmul.f32 0.5, %v808_v23  ;;  %v8531_v23 = vld [vmem:[%s14537_s12 + $0x128] sm:$0xff] }
 0x46c   :  { %v793_v17 = vpop.f32.mrf.mxu1  ;;  %v799_v31 = vmul.f32 0.5, %v798_v25  ;;  %v820_v32 = vsub.f32 1.5, %v819_v26  ;;  %v8543_v25 = vld [vmem:[%s14537_s12 + $0x110] sm:$0xff] }
 0x46d   :  { %v7330_v18 = vpop.eup %7329  ;;  %v794_v20 = vadd.f32 1e-05, %v793_v17  ;;  %v810_v34 = vsub.f32 1.5, %v809_v28  ;;  %v8495_v17 = vld [vmem:[%s14537_s12 + $0x170] sm:$0xff]  ;;  %v8560_v28 = vld [vmem:[%s14537_s12 + $0xd8] sm:$0xff] }
 0x46e   :  { %v827_v22 = vmul.f32 %v7330_v18, %v791_v1  ;;  %vm833_vm4 = vweird.f32 %v7330_v18  ;;  %v800_v37 = vsub.f32 1.5, %v799_v31  ;;  %v821_v38 = vmul.f32 %v7324_v12, %v820_v32  ;;  %v873_v1 = vld [vmem:[%s14535_s8 + $0x20] sm:$0x3]  ;;  %v8548_v26 = vld [vmem:[%s14537_s12 + $0xf0] sm:$0xff]  ;;  %v8579_v31 = vld [vmem:[%s14537_s12 + $0xc8] sm:$0xff] }
 0x46f   :  { %7331 = vrsqrt.f32 %v794_v20  ;;  %vm834_vm9 = vmor %vm832_vm6, %vm833_vm4  ;;  %v811_v40 = vmul.f32 %v7326_v13, %v810_v34  ;;  %vm842_vm15 = vweird.f32 %v794_v20  ;;  %v8586_v32 = vld [vmem:[%s14537_s12 + $0xa8] sm:$0xff]  ;;  %v8596_v34 = vld [vmem:[%s14537_s12 + $0x90] sm:$0xff] }
 0x470   :  { %v828_v24 = vmul.f32 %v7330_v18, %v827_v22  ;;  %v801_v43 = vmul.f32 %v7328_v14, %v800_v37  ;;  %v825_v46 = vsel %vm824_vm13, %v7324_v12, %v821_v38  ;;  %vm804_vm4 = vmor %vm802_vm3, %vm803_vm11  ;;  %v924_v12 = vld [vmem:[%s14536_s10] sm:$0xff] }
 0x471   :  { %v815_v49 = vsel %vm8425_vm14, %v7326_v13, %v811_v40  ;;  %v848_v52 = vmul.f32 %v825_v46, %v8401_v2  ;;  %v925_v13 = vld [vmem:[%s14536_s10 + $0x8] sm:$0xff]  ;;  %v8526_v22 = vld [vmem:[%s14537_s12 + $0x120] sm:$0xff]  ;;  %v8665_v46 = vld [vmem:[%s14537_s12 + $0x38] sm:$0xff] }
 0x472   :  { %v829_v27 = vmul.f32 0.5, %v828_v24  ;;  %v805_v53 = vsel %vm804_vm4, %v7328_v14, %v801_v43  ;;  %v847_v3 = vmul.f32 %v815_v49, %v8405_v4  ;;  %v930_v4 = vld [vmem:[%s14536_s10 + $0x30] sm:$0xff]  ;;  %v8538_v24 = vld [vmem:[%s14537_s12 + $0x108] sm:$0xff]  ;;  %v8613_v37 = vld [vmem:[%s14537_s12 + $0x80] sm:$0xff] }
 0x473   :  { %v857_v57 = vmul.f32 %v7308_v51, %v848_v52  ;;  %v846_v58 = vmul.f32 %v805_v53, %v8410_v56  ;;  %v931_v56 = vld [vmem:[%s14536_s10 + $0x38] sm:$0xff]  ;;  %980 = vmatpush.msrb.mxu0 %v930_v4  ;;  %v926_v14 = vld [vmem:[%s14536_s10 + $0x10] sm:$0xff]  ;;  %v8629_v40 = vld [vmem:[%s14537_s12 + $0x68] sm:$0xff] }
 0x474   :  { %v830_v29 = vsub.f32 1.5, %v829_v27  ;;  %v856_v59 = vmul.f32 %v7308_v51, %v847_v3  ;;  %1012 = vmatpush.msrb.mxu3 %v931_v56  ;;  %1045 = vmatpush.msra.mxu1 %v926_v14  ;;  %v8555_v27 = vld [vmem:[%s14537_s12 + $0xf8] sm:$0xff]  ;;  %v934_v43 = vld [vmem:[%s14536_s10 + $0x50] sm:$0xff]  ;;  %v8700_v52 = vld [vmem:[%s14537_s12] sm:$0xff] }
 0x475   :  { %v7332_v30 = vpop.eup %7331  ;;  %v866_v6 = vadd.f32 %v7309_v55, %v857_v57  ;;  %v855_v2 = vmul.f32 %v7308_v51, %v846_v58  ;;  %981 = vmatpush.msrb.mxu0 %v924_v12  ;;  %v8705_v53 = vld [vmem:[%s14537_s12 + $0x8] sm:$0xff]  ;;  %v8734_v3 = vld [vmem:[%s14537_s12 + $0x160] sm:$0xff]  ;;  %v8744_v57 = vld [vmem:[%s14538_s13 + $0x170] sm:$0xff] }
 0x476   :  { %v837_v33 = vmul.f32 %v7332_v30, %v794_v20  ;;  %v831_v35 = vmul.f32 %v7330_v18, %v830_v29  ;;  %vm843_vm10 = vweird.f32 %v7332_v30  ;;  %v865_v7 = vadd.f32 %v7309_v55, %v856_v59  ;;  %1013 = vmatpush.msrb.mxu3 %v925_v13  ;;  %1247 = vmatpush.msrb.mxu1 %v8490_v16  ;;  %v8512_v20 = vld [vmem:[%s14537_s12 + $0x138] sm:$0xff]  ;;  %v8565_v29 = vld [vmem:[%s14537_s12 + $0xe0] sm:$0xff]  ;;  %v8808_v56 = vld [vmem:[%s14538_s13 + $0x108] sm:$0xff] }
 0x477   :  { %vm844_vm0 = vmor %vm842_vm15, %vm843_vm10  ;;  %v864_v8 = vadd.f32 %v7309_v55, %v855_v2  ;;  %1108 = vmatpush.msra.mxu0 %v934_v43  ;;  %14708 = vst [vmem:[#allocation6_spill] sm:$0xff] %v8744_v57  ;;  %v8751_v58 = vld [vmem:[%s14538_s13 + $0x158] sm:$0xff]  ;;  %v8858_v13 = vld [vmem:[%s14538_s13 + $0xe0] sm:$0xff] }
 0x478   :  { %v838_v36 = vmul.f32 %v7332_v30, %v837_v33  ;;  %v835_v42 = vsel %vm834_vm9, %v7330_v18, %v831_v35  ;;  %v8500_v18 = vld [vmem:[%s14537_s12 + $0x150] sm:$0xff]  ;;  %v8603_v35 = vld [vmem:[%s14537_s12 + $0x98] sm:$0xff]  ;;  %1140 = vmatpush.msra.mxu3 %v935_v44  ;;  %14709 = vst [vmem:[#allocation7_spill] sm:$0xff] %v8751_v58  ;;  %v8879_v43 = vld [vmem:[%s14538_s13 + $0xc8] sm:$0xff] }
 0x479   :  { %v849_v47 = vmul.f32 %v835_v42, %v8397_v62  ;;  %1248 = vmatpush.msrb.mxu1 %v8500_v18  ;;  %v8591_v33 = vld [vmem:[%s14537_s12 + $0xb0] sm:$0xff]  ;;  %v8762_v59 = vld [vmem:[%s14538_s13 + $0x138] sm:$0xff]  ;;  %14715 = vst [vmem:[#allocation13_spill] sm:$0xff] %v8858_v13 }
 0x47a   :  { %v839_v39 = vmul.f32 0.5, %v838_v36  ;;  %v8608_v36 = vld [vmem:[%s14537_s12 + $0x78] sm:$0xff]  ;;  %v8647_v42 = vld [vmem:[%s14537_s12 + $0x50] sm:$0xff]  ;;  %14717 = vst [vmem:[#allocation15_spill] sm:$0xff] %v8879_v43 }
 0x47b   :  { %v858_v62 = vmul.f32 %v7308_v51, %v849_v47  ;;  %1249 = vmatpush.msrb.mxu1 %v8512_v20  ;;  %v928_v47 = vld [vmem:[%s14536_s10 + $0x20] sm:$0xff]  ;;  %v8803_v4 = vld [vmem:[%s14537_s12 + $0x118] sm:$0xff]  ;;  %v8867_v14 = vld [vmem:[%s14537_s12 + $0xd0] sm:$0xff] }
 0x47c   :  { %v840_v41 = vsub.f32 1.5, %v839_v39  ;;  %v8624_v39 = vld [vmem:[%s14537_s12 + $0x60] sm:$0xff]  ;;  %1109 = vmatpush.msra.mxu0 %v928_v47  ;;  %v8848_v12 = vld [vmem:[%s14538_s13 + $0xd8] sm:$0xff]  ;;  %v8890_v47 = vld [vmem:[%s14538_s13 + $0xa8] sm:$0xff] }
 0x47d   :  { %1250 = vmatpush.msrb.mxu1 %v8526_v22  ;;  %14714 = vst [vmem:[#allocation12_spill] sm:$0xff] %v8848_v12  ;;  %v8885_v44 = vld [vmem:[%s14537_s12 + $0xb8] sm:$0xff] }
 0x47e   :  { %v841_v45 = vmul.f32 %v7332_v30, %v840_v41  ;;  %v8642_v41 = vld [vmem:[%s14537_s12 + $0x48] sm:$0xff]  ;;  %14718 = vst [vmem:[#allocation16_spill] sm:$0xff] %v8890_v47 }
 0x47f   :  { %1251 = vmatpush.msrb.mxu1 %v8538_v24 }
 0x480   :  { %v845_v48 = vsel %vm844_vm0, %v7332_v30, %v841_v45  ;;  %v8574_v30 = vld [vmem:[%s14537_s12 + $0xc0] sm:$0xff]  ;;  %v8660_v45 = vld [vmem:[%s14537_s12 + $0x30] sm:$0xff] }
 0x481   :  { %v850_v50 = vmul.f32 %v845_v48, %v8399_v63  ;;  %v867_v63 = vadd.f32 %v7309_v55, %v858_v62  ;;  %1252 = vmatpush.msrb.mxu1 %v8548_v26  ;;  %v929_v48 = vld [vmem:[%s14536_s10 + $0x28] sm:$0xff] }
 0x482   :  { %1141 = vmatpush.msra.mxu3 %v929_v48  ;;  %v8725_v62 = vld [vmem:[%s14538_s13 + $0x168] sm:$0xff]  ;;  %v8897_v48 = vld [vmem:[%s14538_s13 + $0xb0] sm:$0xff] }
 0x483   :  { %v859_v54 = vmul.f32 %v7308_v51, %v850_v50  ;;  %1253 = vmatpush.msrb.mxu1 %v8560_v28  ;;  %v8682_v50 = vld [vmem:[%s14537_s12 + $0x18] sm:$0xff]  ;;  %v8687_v51 = vld [vmem:[%s14537_s12 + $0x20] sm:$0xff]  ;;  %14719 = vst [vmem:[#allocation17_spill] sm:$0xff] %v8897_v48 }
 0x485   :  { %v868_v5 = vadd.f32 %v7309_v55, %v859_v54  ;;  %1254 = vmatpush.msrb.mxu1 %v8574_v30  ;;  %v8720_v55 = vld [vmem:[%s14537_s12 + $0x178] sm:$0xff] }
 0x487   :  { %7181 = vmatpush.msk.msra.mxu2 %vm651_vm1, %v868_v5  ;;  %1255 = vmatpush.msrb.mxu1 %v8586_v32  ;;  %v8739_v5 = vld [vmem:[%s14538_s13 + $0x150] sm:$0xff] }
 0x489   :  { %904 = vmatpush.msra.mxu2 %v867_v63  ;;  %1256 = vmatpush.msrb.mxu1 %v8596_v34  ;;  %v8757_v63 = vld [vmem:[%s14537_s12 + $0x148] sm:$0xff] }
 0x48b   :  { %905 = vmatpush.msra.mxu2 %v866_v6  ;;  %1257 = vmatpush.msrb.mxu1 %v8608_v36  ;;  %v8769_v6 = vld [vmem:[%s14538_s13 + $0x140] sm:$0xff] }
 0x48c   :  { %14710 = vst [vmem:[#allocation8_spill] sm:$0xff] %v8769_v6 }
 0x48d   :  { %906 = vmatpush.msra.mxu2 %v865_v7  ;;  %1258 = vmatpush.msrb.mxu1 %v8624_v39  ;;  %v8779_v7 = vld [vmem:[%s14537_s12 + $0x130] sm:$0xff] }
 0x48f   :  { %907 = vmatpush.msra.mxu2 %v864_v8  ;;  %1259 = vmatpush.msrb.mxu1 %v8642_v41  ;;  %v8784_v8 = vld [vmem:[%s14538_s13 + $0x120] sm:$0xff] }
 0x490   :  { %7182 = vmatmul.msk.f32.vlgmr.msra.gmra.mxu2 %vm647_vm2, %v869_v9  ;;  %v8794_v9 = vld [vmem:[%s14538_s13 + $0x128] sm:$0xff] }
 0x491   :  { %1076 = vmatpush.msrb.mxu2 %v933_v61  ;;  %1260 = vmatpush.msrb.mxu1 %v8660_v45  ;;  %14711 = vst [vmem:[#allocation9_spill] sm:$0xff] %v8794_v9  ;;  %v8821_v61 = vld [vmem:[%s14537_s12 + $0x100] sm:$0xff] }
 0x493   :  { %1077 = vmatpush.msrb.mxu2 %v927_v15  ;;  %1261 = vmatpush.msrb.mxu1 %v8682_v50  ;;  %v8872_v15 = vld [vmem:[%s14538_s13 + $0xc0] sm:$0xff] }
 0x494   :  { %14716 = vst [vmem:[#allocation14_spill] sm:$0xff] %v8872_v15 }
 0x495   :  { %1267 = vmatpush.msra.mxu2 %v8495_v17  ;;  %1262 = vmatpush.msrb.mxu1 %v8700_v52 }
 0x497   :  { %1268 = vmatpush.msra.mxu2 %v8507_v19 }
 0x498   :  { %7183 = vmatmul.msk.f32.gmra.mxu2 %vm647_vm2, %v870_v10  ;;  %v8826_v10 = vld [vmem:[%s14538_s13 + $0xf0] sm:$0xff] }
 0x499   :  { %1269 = vmatpush.msra.mxu2 %v8517_v21 }
 0x49b   :  { %1270 = vmatpush.msra.mxu2 %v8531_v23 }
 0x49d   :  { %1271 = vmatpush.msra.mxu2 %v8543_v25 }
 0x49f   :  { %1272 = vmatpush.msra.mxu2 %v8555_v27 }
 0x4a0   :  { %7184 = vmatmul.msk.f32.gmra.mxu2 %vm647_vm2, %v871_v11  ;;  %v8833_v11 = vld [vmem:[%s14538_s13 + $0xf8] sm:$0xff] }
 0x4a1   :  { %1273 = vmatpush.msra.mxu2 %v8565_v29  ;;  %14713 = vst [vmem:[#allocation11_spill] sm:$0xff] %v8833_v11 }
 0x4a3   :  { %1274 = vmatpush.msra.mxu2 %v8579_v31 }
 0x4a5   :  { %1275 = vmatpush.msra.mxu2 %v8591_v33 }
 0x4a7   :  { %1276 = vmatpush.msra.mxu2 %v8603_v35 }
 0x4a8   :  { %7185 = vmatmul.msk.f32.gmra.mxu2 %vm647_vm2, %v872_v0 }
 0x4a9   :  { %1277 = vmatpush.msra.mxu2 %v8613_v37 }
 0x4ab   :  { %1278 = vmatpush.msra.mxu2 %v8629_v40 }
 0x4ad   :  { %1279 = vmatpush.msra.mxu2 %v8647_v42 }
 0x4af   :  { %1280 = vmatpush.msra.mxu2 %v8665_v46 }
 0x4b0   :  { %7186 = vmatmul.msk.f32.gmra.mxu2 %vm647_vm2, %v873_v1  ;;  %v8843_v1 = vld [vmem:[%s14537_s12 + $0xe8] sm:$0xff] }
 0x4b1   :  { %1281 = vmatpush.msra.mxu2 %v8687_v51 }
 0x4b3   :  { %1282 = vmatpush.msra.mxu2 %v8705_v53 }
 0x513   :  { %v8619_v38 = vpop.f32.mrf.mxu2 }
 0x514   :  { %7187 = vmatmul.msk.f32.vlgmr.msrb.gmra.mxu0 %vm950_vm5, %v8619_v38  ;;  %7192 = vmatmul.msk.f32.vlgmr.msrb.gmra.mxu3 %vm950_vm5, %v8619_v38 }
 0x515   :  { %7197 = vmatmul.msk.f32.vlgmr.msra.gmra.mxu1 %vm950_vm5, %v8619_v38  ;;  %7202 = vmatmul.msk.f32.vlgmr.msrb.gmra.mxu2 %vm950_vm5, %v8619_v38 }
 0x516   :  { %1287 = vmatpush.msrb.mxu0 %v8720_v55  ;;  %1406 = vmatpush.msrb.mxu3 %v8725_v62 }
 0x517   :  { %1426 = vmatpush.msra.mxu1 %v8744_v57  ;;  %v9069_v57 = vld [vmem:[%s14538_s13 + $0x100] sm:$0xff] }
 0x518   :  { %1288 = vmatpush.msrb.mxu0 %v8734_v3  ;;  %1407 = vmatpush.msrb.mxu3 %v8739_v5 }
 0x519   :  { %1427 = vmatpush.msra.mxu1 %v8751_v58  ;;  %v9019_v58 = vld [vmem:[%s14538_s13 + $0x130] sm:$0xff] }
 0x51a   :  { %1289 = vmatpush.msrb.mxu0 %v8757_v63  ;;  %1408 = vmatpush.msrb.mxu3 %v8762_v59 }
 0x51b   :  { %v8677_v49 = vpop.f32.mrf.mxu2  ;;  %1428 = vmatpush.msra.mxu1 %v8769_v6  ;;  %v8967_v6 = vld [vmem:[%s14538_s13 + $0x160] sm:$0xff] }
 0x51c   :  { %7188 = vmatmul.msk.f32.gmra.mxu0 %vm950_vm5, %v8677_v49  ;;  %7193 = vmatmul.msk.f32.gmra.mxu3 %vm950_vm5, %v8677_v49  ;;  %14727 = vst [vmem:[#allocation25_spill] sm:$0xff] %v8967_v6 }
 0x51d   :  { %7198 = vmatmul.msk.f32.gmra.mxu1 %vm950_vm5, %v8677_v49  ;;  %7203 = vmatmul.msk.f32.gmra.mxu2 %vm950_vm5, %v8677_v49 }
 0x51e   :  { %1290 = vmatpush.msrb.mxu0 %v8779_v7  ;;  %1409 = vmatpush.msrb.mxu3 %v8784_v8 }
 0x51f   :  { %1429 = vmatpush.msra.mxu1 %v8794_v9  ;;  %v8932_v9 = vld [vmem:[%s14538_s13 + $0x78] sm:$0xff] }
 0x520   :  { %1291 = vmatpush.msrb.mxu0 %v8803_v4  ;;  %1410 = vmatpush.msrb.mxu3 %v8808_v56  ;;  %14722 = vst [vmem:[#allocation20_spill] sm:$0xff] %v8932_v9 }
 0x521   :  { %1430 = vmatpush.msra.mxu1 %v8815_v60  ;;  %v14555_v60 = vmov 0.0  }
 0x522   :  { %1292 = vmatpush.msrb.mxu0 %v8821_v61  ;;  %1411 = vmatpush.msrb.mxu3 %v8826_v10 }
 0x523   :  { %v8711_v54 = vpop.f32.mrf.mxu2  ;;  %1431 = vmatpush.msra.mxu1 %v8833_v11  ;;  %v8910_v11 = vld [vmem:[%s14538_s13 + $0x90] sm:$0xff] }
 0x524   :  { %7189 = vmatmul.msk.f32.gmra.mxu0 %vm950_vm5, %v8711_v54  ;;  %7194 = vmatmul.msk.f32.gmra.mxu3 %vm950_vm5, %v8711_v54  ;;  %14720 = vst [vmem:[#allocation18_spill] sm:$0xff] %v8910_v11 }
 0x525   :  { %7199 = vmatmul.msk.f32.gmra.mxu1 %vm950_vm5, %v8711_v54  ;;  %7204 = vmatmul.msk.f32.gmra.mxu2 %vm950_vm5, %v8711_v54 }
 0x526   :  { %1293 = vmatpush.msrb.mxu0 %v8843_v1  ;;  %1412 = vmatpush.msrb.mxu3 %v8848_v12  ;;  %v9025_v12 = vld [vmem:[%s14537_s12 + $0x28] sm:$0xff] }
 0x527   :  { %1432 = vmatpush.msra.mxu1 %v8858_v13  ;;  %v8905_v13 = vld [vmem:[%s14537_s12 + $0xa0] sm:$0xff] }
 0x528   :  { %1294 = vmatpush.msrb.mxu0 %v8867_v14  ;;  %1413 = vmatpush.msrb.mxu3 %v8872_v15  ;;  %v8981_v15 = vld [vmem:[%s14538_s13 + $0x48] sm:$0xff] }
 0x529   :  { %1433 = vmatpush.msra.mxu1 %v8879_v43  ;;  %v8920_v43 = vld [vmem:[%s14538_s13 + $0x98] sm:$0xff]  ;;  %14728 = vst [vmem:[#allocation26_spill] sm:$0xff] %v8981_v15 }
 0x52a   :  { %1295 = vmatpush.msrb.mxu0 %v8885_v44  ;;  %1414 = vmatpush.msrb.mxu3 %v8890_v47  ;;  %14721 = vst [vmem:[#allocation19_spill] sm:$0xff] %v8920_v43  ;;  %v8950_v47 = vld [vmem:[%s14538_s13 + $0x60] sm:$0xff] }
 0x52b   :  { %v8774_v2 = vpop.f32.mrf.mxu2  ;;  %1434 = vmatpush.msra.mxu1 %v8897_v48  ;;  %v8927_v48 = vld [vmem:[%s14537_s12 + $0x88] sm:$0xff]  ;;  %14724 = vst [vmem:[#allocation22_spill] sm:$0xff] %v8950_v47 }
 0x52c   :  { %7190 = vmatmul.msk.f32.gmra.mxu0 %vm950_vm5, %v8774_v2  ;;  %7195 = vmatmul.msk.f32.gmra.mxu3 %vm950_vm5, %v8774_v2 }
 0x52d   :  { %7200 = vmatmul.msk.f32.gmra.mxu1 %vm950_vm5, %v8774_v2  ;;  %7205 = vmatmul.msk.f32.gmra.mxu2 %vm950_vm5, %v8774_v2 }
 0x52e   :  { %1296 = vmatpush.msrb.mxu0 %v8905_v13  ;;  %1415 = vmatpush.msrb.mxu3 %v8910_v11  ;;  %v8955_v11 = vld [vmem:[%s14538_s13 + $0x178] sm:$0xff] }
 0x52f   :  { %1435 = vmatpush.msra.mxu1 %v8920_v43  ;;  %14725 = vst [vmem:[#allocation23_spill] sm:$0xff] %v8955_v11  ;;  %v8962_v43 = vld [vmem:[%s14538_s13 + $0x68] sm:$0xff]  ;;  %1446 = vmatpush.msrb.mxu2 %v8955_v11  ;;  %v9043_v11 = vld [vmem:[%s14538_s13 + $0x118] sm:$0xff] }
 0x530   :  { %1297 = vmatpush.msrb.mxu0 %v8927_v48  ;;  %1416 = vmatpush.msrb.mxu3 %v8932_v9  ;;  %14726 = vst [vmem:[#allocation24_spill] sm:$0xff] %v8962_v43  ;;  %v8976_v9 = vld [vmem:[%s14537_s12 + $0x58] sm:$0xff] }
 0x531   :  { %1447 = vmatpush.msrb.mxu2 %v8967_v6  ;;  %v9007_v6 = vld [vmem:[%s14538_s13 + $0x148] sm:$0xff] }
 0x532   :  { %1417 = vmatpush.msrb.mxu3 %v8950_v47  ;;  %v8997_v47 = vld [vmem:[%s14537_s12 + $0x40] sm:$0xff]  ;;  %14731 = vst [vmem:[#allocation29_spill] sm:$0xff] %v9007_v6 }
 0x533   :  { %v8838_v0 = vpop.f32.mrf.mxu2  ;;  %1448 = vmatpush.msrb.mxu2 %v9007_v6  ;;  %v9049_v6 = vld [vmem:[%s14537_s12 + $0x10] sm:$0xff] }
 0x534   :  { %7191 = vmatmul.msk.f32.gmra.mxu0 %vm950_vm5, %v8838_v0  ;;  %7196 = vmatmul.msk.f32.gmra.mxu3 %vm950_vm5, %v8838_v0 }
 0x535   :  { %7201 = vmatmul.msk.f32.gmra.mxu1 %vm950_vm5, %v8838_v0  ;;  %7206 = vmatmul.msk.f32.gmra.mxu2 %vm950_vm5, %v8838_v0 }
 0x536   :  { %1418 = vmatpush.msrb.mxu3 %v8981_v15  ;;  %v9030_v15 = vld [vmem:[%s14538_s13 + $0x18] sm:$0xff]  ;;  %1449 = vmatpush.msrb.mxu2 %v9019_v58 }
 0x537   :  { %14733 = vst [vmem:[#allocation31_spill] sm:$0xff] %v9030_v15 }
 0x538   :  { %1450 = vmatpush.msrb.mxu2 %v9043_v11 }
 0x53a   :  { %1451 = vmatpush.msrb.mxu2 %v9069_v57 }
 0x53c   :  { %7207 = vmatmul.msk.f32.vlgmr.msra.gmra.mxu0 %vm950_vm5, %v8619_v38  ;;  %7212 = vmatmul.msk.f32.vlgmr.msra.gmra.mxu3 %vm950_vm5, %v8619_v38  ;;  %v8939_v38 = vld [vmem:[%s14538_s13 + $0x80] sm:$0xff] }
 0x53d   :  { %1263 = vmatmul.f32.vlgmr.msrb.gmra.mxu1 %v14555_v60  ;;  %1283 = vmatmul.f32.vlgmr.msra.gmra.mxu2 %v14555_v60  ;;  %14723 = vst [vmem:[#allocation21_spill] sm:$0xff] %v8939_v38  ;;  %v8945_v60 = vld [vmem:[%s14537_s12 + $0x70] sm:$0xff] }
 0x53e   :  { %1436 = vmatpush.msra.mxu1 %v8939_v38  ;;  %1298 = vmatpush.msrb.mxu0 %v8945_v60  ;;  %v8987_v38 = vld [vmem:[%s14538_s13 + $0x50] sm:$0xff] }
 0x53f   :  { %14729 = vst [vmem:[#allocation27_spill] sm:$0xff] %v8987_v38 }
 0x540   :  { %1437 = vmatpush.msra.mxu1 %v8962_v43  ;;  %v9002_v43 = vld [vmem:[%s14538_s13 + $0x30] sm:$0xff]  ;;  %1299 = vmatpush.msrb.mxu0 %v8976_v9 }
 0x541   :  { %14730 = vst [vmem:[#allocation28_spill] sm:$0xff] %v9002_v43  ;;  %1419 = vmatpush.msrb.mxu3 %v9002_v43  ;;  %v9054_v43 = vld [vmem:[%s14538_s13] sm:$0xff] }
 0x542   :  { %1438 = vmatpush.msra.mxu1 %v8987_v38  ;;  %1300 = vmatpush.msrb.mxu0 %v8997_v47  ;;  %v9038_v38 = vld [vmem:[%s14538_s13 + $0x20] sm:$0xff]  ;;  %14735 = vst [vmem:[#allocation33_spill] sm:$0xff] %v9054_v43 }
 0x543   :  { %14734 = vst [vmem:[#allocation32_spill] sm:$0xff] %v9038_v38  ;;  %1420 = vmatpush.msrb.mxu3 %v9030_v15  ;;  %v14736_v15 = vmov 0.0  }
 0x544   :  { %7208 = vmatmul.msk.f32.gmra.mxu0 %vm950_vm5, %v8677_v49  ;;  %7213 = vmatmul.msk.f32.gmra.mxu3 %vm950_vm5, %v8677_v49  ;;  %v9014_v49 = vld [vmem:[%s14538_s13 + $0x38] sm:$0xff] }
 0x545   :  { %14732 = vst [vmem:[#allocation30_spill] sm:$0xff] %v9014_v49  ;;  %1439 = vmatpush.msra.mxu1 %v9014_v49  ;;  %1301 = vmatpush.msrb.mxu0 %v9025_v12  ;;  %v9063_v49 = vld [vmem:[%s14538_s13 + $0x8] sm:$0xff] }
 0x546   :  { %1421 = vmatpush.msrb.mxu3 %v9054_v43  ;;  %v9088_v43 = vld [vmem:[%s14538_s13 + $0xd0] sm:$0xff] }
 0x547   :  { %1440 = vmatpush.msra.mxu1 %v9038_v38  ;;  %1302 = vmatpush.msrb.mxu0 %v9049_v6  ;;  %v9080_v38 = vld [vmem:[%s14538_s13 + $0xe8] sm:$0xff] }
 0x548   :  { %1452 = vmatpush.msrb.mxu2 %v9080_v38  ;;  %1587 = vmatpush.msra.mxu3 %v8495_v17  ;;  %v9118_v17 = vld [vmem:[%s14538_s13 + $0x88] sm:$0xff] }
 0x549   :  { %1441 = vmatpush.msra.mxu1 %v9063_v49  ;;  %1567 = vmatpush.msra.mxu0 %v8490_v16  ;;  %v9105_v16 = vld [vmem:[%s14538_s13 + $0xa0] sm:$0xff] }
 0x54a   :  { %1442 = vmatmul.f32.vlgmr.msra.gmra.mxu1 %v14736_v15  ;;  %1453 = vmatpush.msrb.mxu2 %v9088_v43 }
 0x54b   :  { %1607 = vmatpush.msrb.mxu1 %v8720_v55  ;;  %1568 = vmatpush.msra.mxu0 %v8500_v18  ;;  %v9125_v18 = vld [vmem:[%s14538_s13 + $0x70] sm:$0xff]  ;;  %v14762_v55 = vld [vmem:[#allocation27_spill] sm:$0xff] }
 0x54c   :  { %7209 = vmatmul.msk.f32.gmra.mxu0 %vm950_vm5, %v8711_v54  ;;  %7214 = vmatmul.msk.f32.gmra.mxu3 %vm950_vm5, %v8711_v54  ;;  %v9096_v54 = vld [vmem:[%s14538_s13 + $0xb8] sm:$0xff] }
 0x54d   :  { %1588 = vmatpush.msra.mxu3 %v8507_v19  ;;  %1608 = vmatpush.msrb.mxu1 %v8734_v3  ;;  %v9134_v19 = vld [vmem:[%s14538_s13 + $0x58] sm:$0xff]  ;;  %v14763_v3 = vld [vmem:[#allocation30_spill] sm:$0xff] }
 0x54e   :  { %1569 = vmatpush.msra.mxu0 %v8512_v20  ;;  %1454 = vmatpush.msrb.mxu2 %v9096_v54  ;;  %v9143_v20 = vld [vmem:[%s14538_s13 + $0x40] sm:$0xff] }
 0x54f   :  { %1589 = vmatpush.msra.mxu3 %v8517_v21  ;;  %1609 = vmatpush.msrb.mxu1 %v8757_v63  ;;  %v9156_v21 = vld [vmem:[%s14538_s13 + $0x28] sm:$0xff] }
 0x550   :  { %1455 = vmatpush.msrb.mxu2 %v9105_v16  ;;  %1570 = vmatpush.msra.mxu0 %v8526_v22  ;;  %v9163_v22 = vld [vmem:[%s14538_s13 + $0x10] sm:$0xff] }
 0x551   :  { %1590 = vmatpush.msra.mxu3 %v8531_v23  ;;  %1610 = vmatpush.msrb.mxu1 %v8779_v7  ;;  %v14737_v23 = vld [vmem:[#allocation6_spill] sm:$0xff] }
 0x552   :  { %1456 = vmatpush.msrb.mxu2 %v9118_v17  ;;  %1571 = vmatpush.msra.mxu0 %v8538_v24  ;;  %v14738_v24 = vld [vmem:[#allocation23_spill] sm:$0xff] }
 0x553   :  { %1591 = vmatpush.msra.mxu3 %v8543_v25  ;;  %1611 = vmatpush.msrb.mxu1 %v8803_v4  ;;  %v14739_v25 = vld [vmem:[#allocation12_spill] sm:$0xff] }
 0x554   :  { %7210 = vmatmul.msk.f32.gmra.mxu0 %vm950_vm5, %v8774_v2  ;;  %7215 = vmatmul.msk.f32.gmra.mxu3 %vm950_vm5, %v8774_v2 }
 0x555   :  { %1457 = vmatpush.msrb.mxu2 %v9125_v18  ;;  %1572 = vmatpush.msra.mxu0 %v8548_v26  ;;  %v14740_v26 = vld [vmem:[#allocation7_spill] sm:$0xff] }
 0x556   :  { %1592 = vmatpush.msra.mxu3 %v8555_v27  ;;  %1612 = vmatpush.msrb.mxu1 %v8821_v61  ;;  %v14741_v27 = vld [vmem:[#allocation25_spill] sm:$0xff] }
 0x557   :  { %1458 = vmatpush.msrb.mxu2 %v9134_v19  ;;  %1573 = vmatpush.msra.mxu0 %v8560_v28  ;;  %v14742_v28 = vld [vmem:[#allocation14_spill] sm:$0xff] }
 0x558   :  { %1593 = vmatpush.msra.mxu3 %v8565_v29  ;;  %1613 = vmatpush.msrb.mxu1 %v8843_v1  ;;  %v14743_v29 = vld [vmem:[#allocation8_spill] sm:$0xff] }
 0x559   :  { %1459 = vmatpush.msrb.mxu2 %v9143_v20  ;;  %1574 = vmatpush.msra.mxu0 %v8574_v30  ;;  %v14744_v30 = vld [vmem:[#allocation29_spill] sm:$0xff] }
 0x55a   :  { %1594 = vmatpush.msra.mxu3 %v8579_v31  ;;  %1614 = vmatpush.msrb.mxu1 %v8867_v14  ;;  %v14745_v31 = vld [vmem:[#allocation16_spill] sm:$0xff] }
 0x55b   :  { %1460 = vmatpush.msrb.mxu2 %v9156_v21  ;;  %1575 = vmatpush.msra.mxu0 %v8586_v32  ;;  %v14746_v32 = vld [vmem:[#allocation9_spill] sm:$0xff] }
 0x55c   :  { %7211 = vmatmul.msk.f32.gmra.mxu0 %vm950_vm5, %v8838_v0  ;;  %7216 = vmatmul.msk.f32.gmra.mxu3 %vm950_vm5, %v8838_v0 }
 0x55d   :  { %1461 = vmatpush.msrb.mxu2 %v9163_v22  ;;  %1595 = vmatpush.msra.mxu3 %v8591_v33  ;;  %v14747_v33 = vld [vmem:[#allocation18_spill] sm:$0xff] }
 0x55e   :  { %1462 = vmatmul.f32.vlgmr.msrb.gmra.mxu2 %v14736_v15  ;;  %1615 = vmatpush.msrb.mxu1 %v8885_v44 }
 0x55f   :  { %1576 = vmatpush.msra.mxu0 %v8596_v34  ;;  %1596 = vmatpush.msra.mxu3 %v8603_v35  ;;  %v14748_v34 = vld [vmem:[#allocation10_spill] sm:$0xff]  ;;  %v14749_v35 = vld [vmem:[#allocation20_spill] sm:$0xff] }
 0x560   :  { %1616 = vmatpush.msrb.mxu1 %v8905_v13  ;;  %1738 = vmatpush.msra.mxu2 %v8725_v62  ;;  %v9244_v62 = vld [vmem:[%s14541_s11] sm:$0x3f] }
 0x561   :  { %1577 = vmatpush.msra.mxu0 %v8608_v36  ;;  %1597 = vmatpush.msra.mxu3 %v8613_v37  ;;  %v14750_v36 = vld [vmem:[#allocation11_spill] sm:$0xff]  ;;  %v14751_v37 = vld [vmem:[#allocation22_spill] sm:$0xff]  ;;  %v939_v7 = vperm.slane %v9244_v62, 1 }
 0x562   :  { %1617 = vmatpush.msrb.mxu1 %v8927_v48  ;;  %1739 = vmatpush.msra.mxu2 %v8739_v5  ;;  %v938_v5 = vperm.slane %v9244_v62, 0 }
 0x563   :  { %1578 = vmatpush.msra.mxu0 %v8624_v39  ;;  %1598 = vmatpush.msra.mxu3 %v8629_v40  ;;  %v14752_v39 = vld [vmem:[#allocation13_spill] sm:$0xff]  ;;  %v14753_v40 = vld [vmem:[#allocation26_spill] sm:$0xff] }
 0x564   :  { %1303 = vmatmul.f32.vlgmr.msrb.gmra.mxu0 %v14736_v15  ;;  %1422 = vmatmul.f32.vlgmr.msrb.gmra.mxu3 %v14736_v15 }
 0x565   :  { %1618 = vmatpush.msrb.mxu1 %v8945_v60  ;;  %1579 = vmatpush.msra.mxu0 %v8642_v41  ;;  %v14754_v41 = vld [vmem:[#allocation15_spill] sm:$0xff] }
 0x566   :  { %1740 = vmatpush.msra.mxu2 %v8762_v59  ;;  %1599 = vmatpush.msra.mxu3 %v8647_v42  ;;  %v14755_v42 = vld [vmem:[#allocation28_spill] sm:$0xff] }
 0x567   :  { %1619 = vmatpush.msrb.mxu1 %v8976_v9  ;;  %1580 = vmatpush.msra.mxu0 %v8660_v45  ;;  %v14756_v45 = vld [vmem:[#allocation17_spill] sm:$0xff] }
 0x568   :  { %1741 = vmatpush.msra.mxu2 %v8784_v8  ;;  %1600 = vmatpush.msra.mxu3 %v8665_v46  ;;  %v14757_v46 = vld [vmem:[#allocation31_spill] sm:$0xff]  ;;  %v941_v8 = vperm.slane %v9244_v62, 3 }
 0x569   :  { %1620 = vmatpush.msrb.mxu1 %v8997_v47  ;;  %1581 = vmatpush.msra.mxu0 %v8682_v50  ;;  %v14758_v50 = vld [vmem:[#allocation19_spill] sm:$0xff] }
 0x56a   :  { %1742 = vmatpush.msra.mxu2 %v8808_v56  ;;  %1601 = vmatpush.msra.mxu3 %v8687_v51  ;;  %v14759_v51 = vld [vmem:[#allocation33_spill] sm:$0xff] }
 0x56b   :  { %1621 = vmatpush.msrb.mxu1 %v9025_v12  ;;  %1582 = vmatpush.msra.mxu0 %v8700_v52  ;;  %v14760_v52 = vld [vmem:[#allocation21_spill] sm:$0xff] }
 0x56c   :  { %1743 = vmatpush.msra.mxu2 %v8826_v10  ;;  %1602 = vmatpush.msra.mxu3 %v8705_v53  ;;  %v14761_v53 = vld [vmem:[#allocation24_spill] sm:$0xff] }
 0x56d   :  { %1622 = vmatpush.msrb.mxu1 %v9049_v6  ;;  %1758 = vmatpush.msrb.mxu0 %v14737_v23 }
 0x56e   :  { %1778 = vmatpush.msrb.mxu3 %v14738_v24  ;;  %1744 = vmatpush.msra.mxu2 %v14739_v25 }
 0x56f   :  { %1759 = vmatpush.msrb.mxu0 %v14740_v26 }
 0x570   :  { %1779 = vmatpush.msrb.mxu3 %v14741_v27  ;;  %1745 = vmatpush.msra.mxu2 %v14742_v28  ;;  %v942_v28 = vperm.slane %v9244_v62, 4 }
 0x571   :  { %1760 = vmatpush.msrb.mxu0 %v14743_v29 }
 0x572   :  { %1780 = vmatpush.msrb.mxu3 %v14744_v30  ;;  %1746 = vmatpush.msra.mxu2 %v14745_v31 }
 0x573   :  { %1761 = vmatpush.msrb.mxu0 %v14746_v32 }
 0x574   :  { %1781 = vmatpush.msrb.mxu3 %v9019_v58  ;;  %1747 = vmatpush.msra.mxu2 %v14747_v33  ;;  %v940_v58 = vperm.slane %v9244_v62, 2 }
 0x575   :  { %1762 = vmatpush.msrb.mxu0 %v14748_v34 }
 0x576   :  { %1782 = vmatpush.msrb.mxu3 %v9043_v11  ;;  %1748 = vmatpush.msra.mxu2 %v14749_v35 }
 0x577   :  { %1763 = vmatpush.msrb.mxu0 %v14750_v36 }
 0x578   :  { %1783 = vmatpush.msrb.mxu3 %v9069_v57  ;;  %1749 = vmatpush.msra.mxu2 %v14751_v37  ;;  %v14764_v57 = vld [vmem:[#allocation32_spill] sm:$0xff] }
 0x579   :  { %1764 = vmatpush.msrb.mxu0 %v14752_v39  ;;  %v943_v39 = vperm.slane %v9244_v62, 5 }
 0x57a   :  { %1784 = vmatpush.msrb.mxu3 %v9080_v38  ;;  %1750 = vmatpush.msra.mxu2 %v14753_v40 }
 0x57b   :  { %1765 = vmatpush.msrb.mxu0 %v14754_v41 }
 0x57c   :  { %1785 = vmatpush.msrb.mxu3 %v9088_v43  ;;  %1751 = vmatpush.msra.mxu2 %v14755_v42 }
 0x57d   :  { %1766 = vmatpush.msrb.mxu0 %v14756_v45 }
 0x57e   :  { %1786 = vmatpush.msrb.mxu3 %v9096_v54  ;;  %1752 = vmatpush.msra.mxu2 %v14757_v46 }
 0x57f   :  { %1767 = vmatpush.msrb.mxu0 %v14758_v50 }
 0x580   :  { %1787 = vmatpush.msrb.mxu3 %v9105_v16  ;;  %1753 = vmatpush.msra.mxu2 %v14759_v51 }
 0x581   :  { %1768 = vmatpush.msrb.mxu0 %v14760_v52 }
 0x582   :  { %1788 = vmatpush.msrb.mxu3 %v9118_v17 }
 0x583   :  { %1769 = vmatpush.msrb.mxu0 %v14761_v53 }
 0x584   :  { %1789 = vmatpush.msrb.mxu3 %v9125_v18 }
 0x585   :  { %1770 = vmatpush.msrb.mxu0 %v14762_v55 }
 0x586   :  { %1790 = vmatpush.msrb.mxu3 %v9134_v19 }
 0x587   :  { %1771 = vmatpush.msrb.mxu0 %v14763_v3 }
 0x588   :  { %1791 = vmatpush.msrb.mxu3 %v9143_v20 }
 0x589   :  { %1772 = vmatpush.msrb.mxu0 %v14764_v57 }
 0x58a   :  { %1792 = vmatpush.msrb.mxu3 %v9156_v21 }
 0x58b   :  { %1773 = vmatpush.msrb.mxu0 %v9063_v49 }
 0x58c   :  { %1793 = vmatpush.msrb.mxu3 %v9163_v22 }
 0x591   :  { %v983_v63 = vpop.f32.mrf.mxu0 }
 0x592   :  { %v984_v59 = vadd.f32 %v983_v63, %v938_v5  ;;  %v1047_v6 = vpop.f32.mrf.mxu1 }
 0x593   :  { %v1048_v2 = vadd.f32 %v1047_v6, %v940_v58 }
 0x594   :  { %1158 = vst [vmem:[#allocation2 + $0x30] sm:$0xff] %v984_v59 }
 0x595   :  { %1160 = vst [vmem:[#allocation2 + $0x58] sm:$0xff] %v1048_v2 }
 0x597   :  { %v1015_v9 = vpop.f32.mrf.mxu3 }
 0x598   :  { %v1016_v4 = vadd.f32 %v1015_v9, %v939_v7  ;;  %v1079_v56 = vpop.f32.mrf.mxu2 }
 0x599   :  { %v1080_v60 = vadd.f32 %v1079_v56, %v941_v8  ;;  %v986_v61 = vpop.f32.mrf.mxu0 }
 0x59a   :  { %1159 = vst [vmem:[#allocation2] sm:$0xff] %v1016_v4  ;;  %v987_v10 = vadd.f32 %v986_v61, %v938_v5  ;;  %v1050_v11 = vpop.f32.mrf.mxu1 }
 0x59b   :  { %1173 = vst [vmem:[#allocation3 + $0x18] sm:$0xff] %v1080_v60  ;;  %v1051_v0 = vadd.f32 %v1050_v11, %v940_v58  ;;  %v1196_v35 = vld [vmem:[#allocation2 + $0x30] sm:$0x3] }
 0x59c   :  { %1161 = vst [vmem:[#allocation2 + $0x18] sm:$0xff] %v987_v10 }
 0x59d   :  { %1163 = vst [vmem:[#allocation2 + $0x68] sm:$0xff] %v1051_v0 }
 0x59f   :  { %v1018_v1 = vpop.f32.mrf.mxu3 }
 0x5a0   :  { %v1019_v12 = vadd.f32 %v1018_v1, %v939_v7  ;;  %v1082_v13 = vpop.f32.mrf.mxu2 }
 0x5a1   :  { %v1083_v14 = vadd.f32 %v1082_v13, %v941_v8  ;;  %v989_v15 = vpop.f32.mrf.mxu0  ;;  %v1197_v45 = vld [vmem:[#allocation2] sm:$0x3] }
 0x5a2   :  { %1162 = vst [vmem:[#allocation2 + $0x50] sm:$0xff] %v1019_v12  ;;  %v990_v43 = vadd.f32 %v989_v15, %v938_v5  ;;  %v1053_v44 = vpop.f32.mrf.mxu1 }
 0x5a3   :  { %1176 = vst [vmem:[#allocation3] sm:$0xff] %v1083_v14  ;;  %v1054_v47 = vadd.f32 %v1053_v44, %v940_v58 }
 0x5a4   :  { %1164 = vst [vmem:[#allocation2 + $0x8] sm:$0xff] %v990_v43  ;;  %v9261_v43 = vld [vmem:[%s14539_s14] ss:$0 sm:$0xff] }
 0x5a5   :  { %1166 = vst [vmem:[#allocation2 + $0x40] sm:$0xff] %v1054_v47 }
 0x5a7   :  { %v1021_v48 = vpop.f32.mrf.mxu3 }
 0x5a8   :  { %v1022_v38 = vadd.f32 %v1021_v48, %v939_v7  ;;  %v1085_v49 = vpop.f32.mrf.mxu2 }
 0x5a9   :  { %v1086_v54 = vadd.f32 %v1085_v49, %v941_v8  ;;  %v992_v16 = vpop.f32.mrf.mxu0 }
 0x5aa   :  { %1165 = vst [vmem:[#allocation2 + $0x48] sm:$0xff] %v1022_v38  ;;  %v993_v17 = vadd.f32 %v992_v16, %v938_v5  ;;  %v1056_v18 = vpop.f32.mrf.mxu1 }
 0x5ab   :  { %1179 = vst [vmem:[#allocation3 + $0x38] sm:$0xff] %v1086_v54  ;;  %v1057_v19 = vadd.f32 %v1056_v18, %v940_v58 }
 0x5ac   :  { %1167 = vst [vmem:[#allocation2 + $0x20] sm:$0xff] %v993_v17 }
 0x5ad   :  { %1169 = vst [vmem:[#allocation2 + $0x38] sm:$0xff] %v1057_v19 }
 0x5af   :  { %v1024_v20 = vpop.f32.mrf.mxu3 }
 0x5b0   :  { %v1025_v21 = vadd.f32 %v1024_v20, %v939_v7  ;;  %v1088_v22 = vpop.f32.mrf.mxu2 }
 0x5b1   :  { %v1089_v23 = vadd.f32 %v1088_v22, %v941_v8  ;;  %v995_v24 = vpop.f32.mrf.mxu0 }
 0x5b2   :  { %1168 = vst [vmem:[#allocation2 + $0x10] sm:$0xff] %v1025_v21  ;;  %v996_v25 = vadd.f32 %v995_v24, %v938_v5  ;;  %v1059_v26 = vpop.f32.mrf.mxu1 }
 0x5b3   :  { %1182 = vst [vmem:[#allocation3 + $0x28] sm:$0xff] %v1089_v23  ;;  %v1060_v27 = vadd.f32 %v1059_v26, %v940_v58  ;;  %v1198_v26 = vld [vmem:[#allocation2 + $0x58] sm:$0x3] }
 0x5b4   :  { %1170 = vst [vmem:[#allocation2 + $0x60] sm:$0x3] %v996_v25 }
 0x5b5   :  { %1172 = vst [vmem:[#allocation2 + $0x28] sm:$0x3] %v1060_v27 }
 0x5b7   :  { %v1027_v29 = vpop.f32.mrf.mxu3 }
 0x5b8   :  { %v1028_v30 = vadd.f32 %v1027_v29, %v939_v7  ;;  %v1091_v31 = vpop.f32.mrf.mxu2 }
 0x5b9   :  { %v1092_v32 = vadd.f32 %v1091_v31, %v941_v8  ;;  %v1111_v33 = vpop.f32.mrf.mxu0 }
 0x5ba   :  { %1171 = vst [vmem:[#allocation2 + $0x70] sm:$0x3] %v1028_v30  ;;  %v1112_v34 = vadd.f32 %v1111_v33, %v942_v28  ;;  %v1264_v36 = vpop.f32.mrf.mxu1 }
 0x5bb   :  { %1185 = vst [vmem:[#allocation3 + $0x60] sm:$0x3] %v1092_v32  ;;  %v1307_v37 = vadd.f32 %v1264_v36, %v1196_v35 }
 0x5bc   :  { %1174 = vst [vmem:[#allocation3 + $0x30] sm:$0xff] %v1112_v34 }
 0x5bd   :  { %v7217_v40 = vmul.f32 -1.442695, %v1307_v37 }
 0x5bf   :  { %7333 = vpow2.f32 %v7217_v40  ;;  %v1143_v41 = vpop.f32.mrf.mxu3 }
 0x5c0   :  { %v1144_v42 = vadd.f32 %v1143_v41, %v943_v39  ;;  %v1284_v46 = vpop.f32.mrf.mxu2 }
 0x5c1   :  { %v1327_v50 = vadd.f32 %v1284_v46, %v1197_v45  ;;  %v1114_v51 = vpop.f32.mrf.mxu0 }
 0x5c2   :  { %1175 = vst [vmem:[#allocation3 + $0x70] sm:$0xff] %v1144_v42  ;;  %v1115_v52 = vadd.f32 %v1114_v51, %v942_v28  ;;  %v1355_v30 = vld [vmem:[#allocation3 + $0x60] sm:$0x3] }
 0x5c3   :  { %v7218_v53 = vmul.f32 -1.442695, %v1327_v50 }
 0x5c4   :  { %1177 = vst [vmem:[#allocation3 + $0x48] sm:$0xff] %v1115_v52 }
 0x5c5   :  { %v7334_v55 = vpop.eup %7333  ;;  %7335 = vpow2.f32 %v7218_v53 }
 0x5c6   :  { %v1311_v3 = vadd.f32 1.0, %v7334_v55 }
 0x5c7   :  { %v1146_v5 = vpop.f32.mrf.mxu3  ;;  %v1443_v17 = vpop.f32.mrf.mxu1 }
 0x5c8   :  { %7337 = vrcp.f32 %v1311_v3  ;;  %v1147_v57 = vadd.f32 %v1146_v5, %v943_v39  ;;  %v1323_v15 = vand.u32 2147483648, %v1311_v3  ;;  %vm1317_vm7 = vweird.f32 %v1311_v3  ;;  %v9273_v5 = vld [vmem:[%s14540_s15] ss:$0 sm:$0xff] }
 0x5c9   :  { %v1117_v58 = vpop.f32.mrf.mxu0  ;;  %v1321_v44 = vand.u32 2147483647, %v1311_v3 }
 0x5ca   :  { %1178 = vst [vmem:[#allocation3 + $0x50] sm:$0xff] %v1147_v57  ;;  %v1118_v62 = vadd.f32 %v1117_v58, %v942_v28  ;;  %v1324_v16 = vor.u32 1.1754944e-38, %v1323_v15 }
 0x5cb   :  { %v7336_v63 = vpop.eup %7335  ;;  %vm1322_vm9 = vcmp.eq.f32.partialorder %v1321_v44, 8.507059e+37 }
 0x5cc   :  { %v1331_v59 = vadd.f32 1.0, %v7336_v63  ;;  %1180 = vst [vmem:[#allocation3 + $0x8] sm:$0xff] %v1118_v62 }
 0x5ce   :  { %v7338_v6 = vpop.eup %7337  ;;  %7339 = vrcp.f32 %v1331_v59  ;;  %v1343_v22 = vand.u32 2147483648, %v1331_v59  ;;  %vm1337_vm11 = vweird.f32 %v1331_v59  ;;  %v1341_v25 = vand.u32 2147483647, %v1331_v59 }
 0x5cf   :  { %v1149_v2 = vpop.f32.mrf.mxu3  ;;  %v1313_v8 = vmul.f32 %v7338_v6, %v1311_v3  ;;  %vm1318_vm6 = vweird.f32 %v7338_v6 }
 0x5d0   :  { %v1150_v7 = vadd.f32 %v1149_v2, %v943_v39  ;;  %vm1319_vm8 = vmor %vm1317_vm7, %vm1318_vm6  ;;  %v1344_v32 = vor.u32 1.1754944e-38, %v1343_v22  ;;  %vm1342_vm13 = vcmp.eq.f32.partialorder %v1341_v25, 8.507059e+37  ;;  %v9339_v22 = vld [vmem:[%s14537_s12 + $0x120] sm:$0xff]  ;;  %v9357_v25 = vld [vmem:[%s14537_s12 + $0x108] sm:$0xff] }
 0x5d1   :  { %v1120_v9 = vpop.f32.mrf.mxu0  ;;  %v1314_v60 = vsub.f32 1.0, %v1313_v8 }
 0x5d2   :  { %1181 = vst [vmem:[#allocation3 + $0x40] sm:$0xff] %v1150_v7  ;;  %v1121_v4 = vadd.f32 %v1120_v9, %v942_v28 }
 0x5d3   :  { %v1315_v0 = vmul.f32 %v7338_v6, %v1314_v60 }
 0x5d4   :  { %v7340_v56 = vpop.eup %7339  ;;  %1183 = vst [vmem:[#allocation3 + $0x20] sm:$0xff] %v1121_v4 }
 0x5d5   :  { %v1333_v61 = vmul.f32 %v7340_v56, %v1331_v59  ;;  %v1316_v14 = vadd.f32 %v7338_v6, %v1315_v0  ;;  %vm1338_vm10 = vweird.f32 %v7340_v56 }
 0x5d6   :  { %vm1339_vm12 = vmor %vm1337_vm11, %vm1338_vm10 }
 0x5d7   :  { %v1152_v10 = vpop.f32.mrf.mxu3  ;;  %v1334_v13 = vsub.f32 1.0, %v1333_v61  ;;  %v1320_v49 = vsel %vm1319_vm8, %v7338_v6, %v1316_v14 }
 0x5d8   :  { %v1153_v11 = vadd.f32 %v1152_v10, %v943_v39  ;;  %v1325_v20 = vsel %vm1322_vm9, %v1324_v16, %v1320_v49  ;;  %v9290_v49 = vld [vmem:[%s14537_s12 + $0x170] sm:$0xff] }
 0x5d9   :  { %v1123_v1 = vpop.f32.mrf.mxu0  ;;  %v1335_v47 = vmul.f32 %v7340_v56, %v1334_v13  ;;  %1934 = vmatpush.msrb.mxu2 %v9290_v49  ;;  %v9303_v16 = vld [vmem:[%s14537_s12 + $0x150] sm:$0xff] }
 0x5da   :  { %1184 = vst [vmem:[#allocation3 + $0x68] sm:$0xff] %v1153_v11  ;;  %v1124_v12 = vadd.f32 %v1123_v1, %v942_v28 }
 0x5db   :  { %v1336_v19 = vadd.f32 %v7340_v56, %v1335_v47 }
 0x5dc   :  { %1186 = vst [vmem:[#allocation3 + $0x58] sm:$0x3] %v1124_v12 }
 0x5dd   :  { %v1340_v29 = vsel %vm1339_vm12, %v7340_v56, %v1336_v19  ;;  %v9321_v19 = vld [vmem:[%s14537_s12 + $0x138] sm:$0xff] }
 0x5de   :  { %v1345_v34 = vsel %vm1342_vm13, %v1344_v32, %v1340_v29  ;;  %v9380_v29 = vld [vmem:[%s14537_s12 + $0xf8] sm:$0xff] }
 0x5df   :  { %v1155_v48 = vpop.f32.mrf.mxu3  ;;  %v1351_v36 = vsub.f32 1.0, %v1345_v34  ;;  %v1353_v41 = vmul.f32 0.0, %v1345_v34  ;;  %v9393_v32 = vld [vmem:[%s14537_s12 + $0xd8] sm:$0xff]  ;;  %v9403_v34 = vld [vmem:[%s14537_s12 + $0xe8] sm:$0xff] }
 0x5e0   :  { %v1156_v38 = vadd.f32 %v1155_v48, %v943_v39 }
 0x5e1   :  { %v1304_v54 = vpop.f32.mrf.mxu0  ;;  %v1463_v58 = vpop.f32.mrf.mxu2 }
 0x5e2   :  { %1187 = vst [vmem:[#allocation3 + $0x10] sm:$0x3] %v1156_v38  ;;  %v1347_v18 = vadd.f32 %v9261_v43, %v1304_v54  ;;  %v1506_v7 = vadd.f32 %v9273_v5, %v1463_v58  ;;  %v9285_v38 = vld [vmem:[%s14537_s12 + $0x168] sm:$0xff]  ;;  %v9295_v54 = vld [vmem:[%s14537_s12 + $0x178] sm:$0xff] }
 0x5e3   :  { %v1356_v21 = vld [vmem:[#allocation3 + $0x58] sm:$0x3]  ;;  %1914 = vmatpush.msra.mxu1 %v9285_v38 }
 0x5e4   :  { %v1348_v23 = vmul.f32 %v1347_v18, %v1325_v20  ;;  %v1486_v24 = vadd.f32 %v1443_v17, %v1356_v21  ;;  %v9308_v17 = vld [vmem:[%s14537_s12 + $0x158] sm:$0xff]  ;;  %v9313_v18 = vld [vmem:[%s14537_s12 + $0x160] sm:$0xff]  ;;  %v9331_v21 = vld [vmem:[%s14537_s12 + $0x148] sm:$0xff] }
 0x5e5   :  { %1915 = vmatpush.msra.mxu1 %v9303_v16  ;;  %1935 = vmatpush.msrb.mxu2 %v9308_v17  ;;  %v9326_v20 = vld [vmem:[%s14537_s12 + $0x140] sm:$0xff] }
 0x5e6   :  { %v1349_v27 = vadd.f32 %v1348_v23, %v1198_v26  ;;  %v7220_v28 = vmul.f32 -1.442695, %v1486_v24  ;;  %v9344_v23 = vld [vmem:[%s14537_s12 + $0x128] sm:$0xff]  ;;  %v9349_v24 = vld [vmem:[%s14537_s12 + $0x130] sm:$0xff] }
 0x5e7   :  { %v1423_v31 = vpop.f32.mrf.mxu3  ;;  %1916 = vmatpush.msra.mxu1 %v9321_v19  ;;  %1936 = vmatpush.msrb.mxu2 %v9326_v20  ;;  %v9362_v26 = vld [vmem:[%s14537_s12 + $0x110] sm:$0xff] }
 0x5e8   :  { %7341 = vtanh.f32 %v1349_v27  ;;  %v1466_v33 = vadd.f32 %v1423_v31, %v1355_v30  ;;  %v9367_v27 = vld [vmem:[%s14537_s12 + $0x118] sm:$0xff]  ;;  %v9385_v30 = vld [vmem:[%s14537_s12 + $0x100] sm:$0xff] }
 0x5e9   :  { %7343 = vpow2.f32 %v7220_v28  ;;  %v1357_v11 = vld [vmem:[#allocation3 + $0x10] sm:$0x3]  ;;  %1917 = vmatpush.msra.mxu1 %v9339_v22  ;;  %1937 = vmatpush.msrb.mxu2 %v9344_v23  ;;  %v9375_v28 = vld [vmem:[%s14537_s12 + $0xf0] sm:$0xff] }
 0x5ea   :  { %v7219_v35 = vmul.f32 -1.442695, %v1466_v33  ;;  %v9398_v33 = vld [vmem:[%s14537_s12 + $0xe0] sm:$0xff] }
 0x5eb   :  { %1918 = vmatpush.msra.mxu1 %v9357_v25  ;;  %1938 = vmatpush.msrb.mxu2 %v9362_v26 }
 0x5ec   :  { %7345 = vpow2.f32 %v7219_v35  ;;  %v1516_v35 = vld [vmem:[#allocation2 + $0x30] sm:$0xc] }
 0x5ed   :  { %1919 = vmatpush.msra.mxu1 %v9375_v28  ;;  %1939 = vmatpush.msrb.mxu2 %v9380_v29 }
 0x5ee   :  { %v7342_v37 = vpop.eup %7341 }
 0x5ef   :  { %v7344_v39 = vpop.eup %7343  ;;  %v1352_v40 = vmul.f32 %v7342_v37, %v1351_v36  ;;  %1920 = vmatpush.msra.mxu1 %v9393_v32  ;;  %1940 = vmatpush.msrb.mxu2 %v9398_v33  ;;  %v9411_v37 = vld [vmem:[%s14537_s12 + $0xc0] sm:$0xff] }
 0x5f0   :  { %v1490_v42 = vadd.f32 1.0, %v7344_v39  ;;  %v9416_v39 = vld [vmem:[%s14537_s12 + $0xc8] sm:$0xff] }
 0x5f1   :  { %v9264_v45 = vadd.f32 %v1353_v41, %v1352_v40  ;;  %v9421_v40 = vld [vmem:[%s14537_s12 + $0xd0] sm:$0xff]  ;;  %1921 = vmatpush.msra.mxu1 %v9411_v37  ;;  %1941 = vmatpush.msrb.mxu2 %v9416_v39 }
 0x5f2   :  { %v7346_v46 = vpop.eup %7345  ;;  %7347 = vrcp.f32 %v1490_v42  ;;  %v1502_v60 = vand.u32 2147483648, %v1490_v42  ;;  %vm1496_vm6 = vweird.f32 %v1490_v42  ;;  %v1500_v10 = vand.u32 2147483647, %v1490_v42 }
 0x5f3   :  { %v1470_v50 = vadd.f32 1.0, %v7346_v46  ;;  %1514 = vst [vmem:[#allocation4 + $0x8] sm:$0x3] %v9264_v45  ;;  %1583 = vmatmul.f32.vlgmr.msra.gmra.mxu0 %v9264_v45  ;;  %1603 = vmatmul.f32.vlgmr.msra.gmra.mxu3 %v9264_v45  ;;  %v9434_v46 = vld [vmem:[%s14537_s12 + $0xb0] sm:$0xff] }
 0x5f4   :  { %1623 = vmatmul.f32.vlgmr.msrb.gmra.mxu1 %v9264_v45  ;;  %v1503_v12 = vor.u32 1.1754944e-38, %v1502_v60  ;;  %vm1501_vm8 = vcmp.eq.f32.partialorder %v1500_v10, 8.507059e+37  ;;  %1954 = vmatpush.msra.mxu0 %v9295_v54  ;;  %v9511_v60 = vld [vmem:[%s14537_s12 + $0x58] sm:$0xff] }
 0x5f5   :  { %7349 = vrcp.f32 %v1470_v50  ;;  %v1482_v62 = vand.u32 2147483648, %v1470_v50  ;;  %v1480_v59 = vand.u32 2147483647, %v1470_v50  ;;  %vm1476_vm15 = vweird.f32 %v1470_v50  ;;  %1942 = vmatpush.msrb.mxu2 %v9434_v46 }
 0x5f6   :  { %1955 = vmatpush.msra.mxu0 %v9313_v18 }
 0x5f7   :  { %v1483_v8 = vor.u32 1.1754944e-38, %v1482_v62  ;;  %vm1481_vm3 = vcmp.eq.f32.partialorder %v1480_v59, 8.507059e+37  ;;  %v9465_v62 = vld [vmem:[%s14537_s12 + $0x78] sm:$0xff]  ;;  %v9475_v59 = vld [vmem:[%s14537_s12 + $0x88] sm:$0xff] }
 0x5f8   :  { %v7348_v51 = vpop.eup %7347  ;;  %1956 = vmatpush.msra.mxu0 %v9331_v21 }
 0x5f9   :  { %v1492_v52 = vmul.f32 %v7348_v51, %v1490_v42  ;;  %vm1497_vm4 = vweird.f32 %v7348_v51  ;;  %v9429_v42 = vld [vmem:[%s14537_s12 + $0xa8] sm:$0xff] }
 0x5fa   :  { %vm1498_vm7 = vmor %vm1496_vm6, %vm1497_vm4  ;;  %1957 = vmatpush.msra.mxu0 %v9349_v24  ;;  %1922 = vmatpush.msra.mxu1 %v9429_v42 }
 0x5fb   :  { %v7350_v53 = vpop.eup %7349  ;;  %v1493_v3 = vsub.f32 1.0, %v1492_v52 }
 0x5fc   :  { %v1472_v55 = vmul.f32 %v7350_v53, %v1470_v50  ;;  %vm1477_vm14 = vweird.f32 %v7350_v53  ;;  %1958 = vmatpush.msra.mxu0 %v9367_v27  ;;  %v9439_v50 = vld [vmem:[%s14537_s12 + $0xb8] sm:$0xff] }
 0x5fd   :  { %v1494_v6 = vmul.f32 %v7348_v51, %v1493_v3  ;;  %vm1478_vm0 = vmor %vm1476_vm15, %vm1477_vm14  ;;  %v9457_v3 = vld [vmem:[%s14537_s12 + $0xa0] sm:$0xff] }
 0x5fe   :  { %v1473_v57 = vsub.f32 1.0, %v1472_v55  ;;  %1959 = vmatpush.msra.mxu0 %v9385_v30  ;;  %v9452_v55 = vld [vmem:[%s14537_s12 + $0x98] sm:$0xff] }
 0x5ff   :  { %v1495_v4 = vadd.f32 %v7348_v51, %v1494_v6  ;;  %1943 = vmatpush.msrb.mxu2 %v9452_v55 }
 0x600   :  { %v1474_v63 = vmul.f32 %v7350_v53, %v1473_v57  ;;  %1960 = vmatpush.msra.mxu0 %v9403_v34  ;;  %v1517_v57 = vld [vmem:[#allocation2] sm:$0xc] }
 0x601   :  { %v1499_v1 = vsel %vm1498_vm7, %v7348_v51, %v1495_v4  ;;  %v9501_v4 = vld [vmem:[%s14537_s12 + $0x48] sm:$0xff] }
 0x602   :  { %v1475_v2 = vadd.f32 %v7350_v53, %v1474_v63  ;;  %v1504_v13 = vsel %vm1501_vm8, %v1503_v12, %v1499_v1  ;;  %1961 = vmatpush.msra.mxu0 %v9421_v40  ;;  %v9470_v63 = vld [vmem:[%s14537_s12 + $0x80] sm:$0xff]  ;;  %v9537_v12 = vld [vmem:[%s14537_s12 + $0x18] sm:$0xff] }
 0x603   :  { %v1510_v14 = vsub.f32 1.0, %v1504_v13  ;;  %v1512_v47 = vmul.f32 0.0, %v1504_v13  ;;  %1944 = vmatpush.msrb.mxu2 %v9470_v63  ;;  %v9529_v1 = vld [vmem:[%s14537_s12 + $0x40] sm:$0xff] }
 0x604   :  { %v1479_v9 = vsel %vm1478_vm0, %v7350_v53, %v1475_v2  ;;  %1962 = vmatpush.msra.mxu0 %v9439_v50  ;;  %v9447_v53 = vld [vmem:[%s14537_s12 + $0x90] sm:$0xff]  ;;  %v9483_v2 = vld [vmem:[%s14537_s12 + $0x60] sm:$0xff]  ;;  %14766 = vst [vmem:[#allocation23_spill] sm:$0xff] %v9529_v1 }
 0x605   :  { %v1484_v56 = vsel %vm1481_vm3, %v1483_v8, %v1479_v9  ;;  %1923 = vmatpush.msra.mxu1 %v9447_v53  ;;  %v9493_v8 = vld [vmem:[%s14537_s12 + $0x70] sm:$0xff]  ;;  %v9542_v13 = vld [vmem:[%s14537_s12 + $0x20] sm:$0xff] }
 0x606   :  { %v1507_v61 = vmul.f32 %v1506_v7, %v1484_v56  ;;  %1963 = vmatpush.msra.mxu0 %v9457_v3  ;;  %v9488_v7 = vld [vmem:[%s14537_s12 + $0x68] sm:$0xff]  ;;  %v9506_v56 = vld [vmem:[%s14537_s12 + $0x50] sm:$0xff]  ;;  %14767 = vst [vmem:[#allocation12_spill] sm:$0xff] %v9542_v13 }
 0x607   :  { %1924 = vmatpush.msra.mxu1 %v9465_v62  ;;  %1945 = vmatpush.msrb.mxu2 %v9488_v7 }
 0x608   :  { %v1508_v0 = vadd.f32 %v1507_v61, %v1357_v11  ;;  %1964 = vmatpush.msra.mxu0 %v9475_v59  ;;  %v9519_v11 = vld [vmem:[%s14537_s12 + $0x30] sm:$0xff] }
 0x609   :  { %1925 = vmatpush.msra.mxu1 %v9483_v2  ;;  %1946 = vmatpush.msrb.mxu2 %v9506_v56 }
 0x60a   :  { %7351 = vtanh.f32 %v1508_v0  ;;  %1965 = vmatpush.msra.mxu0 %v9493_v8  ;;  %v9524_v0 = vld [vmem:[%s14537_s12 + $0x38] sm:$0xff] }
 0x60b   :  { %1926 = vmatpush.msra.mxu1 %v9501_v4  ;;  %14765 = vst [vmem:[#allocation6_spill] sm:$0xff] %v9524_v0  ;;  %1947 = vmatpush.msrb.mxu2 %v9524_v0  ;;  %v9897_v0 = vld [vmem:[%s14538_s13 + $0x8] sm:$0xff] }
 0x60c   :  { %1966 = vmatpush.msra.mxu0 %v9511_v60 }
 0x60d   :  { %1927 = vmatpush.msra.mxu1 %v9519_v11  ;;  %1948 = vmatpush.msrb.mxu2 %v9542_v13  ;;  %v9757_v13 = vld [vmem:[%s14538_s13 + $0xb0] sm:$0xff] }
 0x60e   :  { %1967 = vmatpush.msra.mxu0 %v9529_v1  ;;  %v9859_v1 = vld [vmem:[%s14538_s13 + $0x38] sm:$0xff] }
 0x60f   :  { %1928 = vmatpush.msra.mxu1 %v9537_v12 }
 0x610   :  { %v7352_v15 = vpop.eup %7351 }
 0x611   :  { %v1511_v44 = vmul.f32 %v7352_v15, %v1510_v14  ;;  %v9547_v14 = vld [vmem:[%s14537_s12 + $0x28] sm:$0xff]  ;;  %v9555_v15 = vld [vmem:[%s14537_s12] sm:$0xff] }
 0x612   :  { %14768 = vst [vmem:[#allocation7_spill] sm:$0xff] %v9547_v14  ;;  %1968 = vmatpush.msra.mxu0 %v9547_v14  ;;  %1929 = vmatpush.msra.mxu1 %v9555_v15  ;;  %v9694_v14 = vld [vmem:[%s14538_s13 + $0xf0] sm:$0xff] }
 0x613   :  { %v9276_v48 = vadd.f32 %v1512_v47, %v1511_v44  ;;  %v9560_v44 = vld [vmem:[%s14537_s12 + $0x8] sm:$0xff]  ;;  %v9565_v47 = vld [vmem:[%s14537_s12 + $0x10] sm:$0xff] }
 0x614   :  { %14769 = vst [vmem:[#allocation25_spill] sm:$0xff] %v9560_v44  ;;  %1949 = vmatpush.msrb.mxu2 %v9560_v44  ;;  %1969 = vmatpush.msra.mxu0 %v9565_v47 }
 0x615   :  { %1515 = vst [vmem:[#allocation5 + $0x8] sm:$0x3] %v9276_v48  ;;  %1754 = vmatmul.f32.vlgmr.msra.gmra.mxu2 %v9276_v48  ;;  %1774 = vmatmul.f32.vlgmr.msrb.gmra.mxu0 %v9276_v48 }
 0x616   :  { %1794 = vmatmul.f32.vlgmr.msrb.gmra.mxu3 %v9276_v48  ;;  %14770 = vst [vmem:[#allocation14_spill] sm:$0xff] %v9565_v47  ;;  %2262 = vmatpush.msrb.mxu0 %v9285_v38  ;;  %v9583_v38 = vld [vmem:[%s14538_s13 + $0x168] sm:$0xff]  ;;  %v1688_v47 = vld [vmem:[#allocation3 + $0x20] sm:$0xc0] }
 0x617   :  { %2087 = vmatpush.msra.mxu3 %v9583_v38 }
 0x618   :  { %2263 = vmatpush.msrb.mxu0 %v9303_v16  ;;  %v9588_v16 = vld [vmem:[%s14538_s13 + $0x170] sm:$0xff] }
 0x619   :  { %2107 = vmatpush.msrb.mxu1 %v9588_v16 }
 0x61a   :  { %2264 = vmatpush.msrb.mxu0 %v9321_v19  ;;  %v9593_v19 = vld [vmem:[%s14538_s13 + $0x178] sm:$0xff] }
 0x61b   :  { %14771 = vst [vmem:[#allocation8_spill] sm:$0xff] %v9593_v19  ;;  %2127 = vmatpush.msra.mxu2 %v9593_v19 }
 0x61c   :  { %2265 = vmatpush.msrb.mxu0 %v9339_v22 }
 0x61e   :  { %2266 = vmatpush.msrb.mxu0 %v9357_v25  ;;  %v9623_v25 = vld [vmem:[%s14538_s13 + $0x138] sm:$0xff] }
 0x620   :  { %2267 = vmatpush.msrb.mxu0 %v9375_v28  ;;  %v9646_v28 = vld [vmem:[%s14538_s13 + $0x120] sm:$0xff] }
 0x622   :  { %2268 = vmatpush.msrb.mxu0 %v9393_v32  ;;  %v9672_v32 = vld [vmem:[%s14538_s13 + $0x108] sm:$0xff] }
 0x624   :  { %2269 = vmatpush.msrb.mxu0 %v9411_v37  ;;  %v9699_v37 = vld [vmem:[%s14538_s13 + $0xf8] sm:$0xff] }
 0x626   :  { %2270 = vmatpush.msrb.mxu0 %v9429_v42  ;;  %v9723_v42 = vld [vmem:[%s14538_s13 + $0xe8] sm:$0xff] }
 0x627   :  { %14779 = vst [vmem:[#allocation20_spill] sm:$0xff] %v9723_v42 }
 0x628   :  { %2271 = vmatpush.msrb.mxu0 %v9447_v53  ;;  %v9738_v53 = vld [vmem:[%s14538_s13 + $0xc8] sm:$0xff] }
 0x62a   :  { %2272 = vmatpush.msrb.mxu0 %v9465_v62  ;;  %v9762_v62 = vld [vmem:[%s14538_s13 + $0xb8] sm:$0xff] }
 0x62b   :  { %14781 = vst [vmem:[#allocation22_spill] sm:$0xff] %v9762_v62 }
 0x62c   :  { %2273 = vmatpush.msrb.mxu0 %v9483_v2  ;;  %v9783_v2 = vld [vmem:[%s14538_s13 + $0xa0] sm:$0xff] }
 0x62d   :  { %14783 = vst [vmem:[#allocation26_spill] sm:$0xff] %v9783_v2 }
 0x62e   :  { %2274 = vmatpush.msrb.mxu0 %v9501_v4  ;;  %v9801_v4 = vld [vmem:[%s14538_s13 + $0x80] sm:$0xff] }
 0x630   :  { %2275 = vmatpush.msrb.mxu0 %v9519_v11  ;;  %v9819_v11 = vld [vmem:[%s14538_s13 + $0x68] sm:$0xff] }
 0x632   :  { %2276 = vmatpush.msrb.mxu0 %v9537_v12  ;;  %v9864_v12 = vld [vmem:[%s14538_s13 + $0x40] sm:$0xff] }
 0x633   :  { %14789 = vst [vmem:[#allocation33_spill] sm:$0xff] %v9864_v12 }
 0x634   :  { %2277 = vmatpush.msrb.mxu0 %v9555_v15  ;;  %v9884_v15 = vld [vmem:[%s14538_s13 + $0x28] sm:$0xff] }
 0x635   :  { %14791 = vst [vmem:[#allocation24_spill] sm:$0xff] %v9884_v15 }
 0x670   :  { %v1584_v31 = vpop.f32.mrf.mxu0 }
 0x671   :  { %v1628_v36 = vrot.slane %v1584_v31, 6 }
 0x673   :  { %v1630_v41 = vadd.f32 %v1628_v36, %v1516_v35 }
 0x675   :  { %v7221_v51 = vmul.f32 -1.442695, %v1630_v41 }
 0x676   :  { %v1604_v52 = vpop.f32.mrf.mxu3 }
 0x677   :  { %7353 = vpow2.f32 %v7221_v51  ;;  %v1651_v58 = vrot.slane %v1604_v52, 6  ;;  %v1624_v51 = vpop.f32.mrf.mxu1 }
 0x679   :  { %v1653_v6 = vadd.f32 %v1651_v58, %v1517_v57 }
 0x67b   :  { %v7222_v9 = vmul.f32 -1.442695, %v1653_v6 }
 0x67d   :  { %v7354_v61 = vpop.eup %7353  ;;  %7355 = vpow2.f32 %v7222_v9  ;;  %v1673_v9 = vadd.f32 %v9261_v43, %v1624_v51 }
 0x67e   :  { %v1634_v10 = vadd.f32 1.0, %v7354_v61 }
 0x680   :  { %7357 = vrcp.f32 %v1634_v10  ;;  %v1646_v57 = vand.u32 2147483648, %v1634_v10  ;;  %v1644_v6 = vand.u32 2147483647, %v1634_v10  ;;  %vm1640_vm10 = vweird.f32 %v1634_v10 }
 0x682   :  { %vm1645_vm12 = vcmp.eq.f32.partialorder %v1644_v6, 8.507059e+37  ;;  %v9633_v6 = vld [vmem:[%s14538_s13 + $0x148] sm:$0xff] }
 0x683   :  { %v7356_v31 = vpop.eup %7355  ;;  %14773 = vst [vmem:[#allocation16_spill] sm:$0xff] %v9633_v6 }
 0x684   :  { %v9569_v35 = vadd.f32 1.0, %v7356_v31  ;;  %v1647_v31 = vor.u32 1.1754944e-38, %v1646_v57  ;;  %v9616_v57 = vld [vmem:[%s14538_s13 + $0x160] sm:$0xff] }
 0x685   :  { %14772 = vst [vmem:[#allocation29_spill] sm:$0xff] %v9616_v57  ;;  %2128 = vmatpush.msra.mxu2 %v9616_v57 }
 0x686   :  { %v7358_v36 = vpop.eup %7357  ;;  %7359 = vrcp.f32 %v9569_v35  ;;  %vm1663_vm14 = vweird.f32 %v9569_v35 }
 0x687   :  { %v1636_v41 = vmul.f32 %v7358_v36, %v1634_v10  ;;  %vm1641_vm9 = vweird.f32 %v7358_v36  ;;  %v9608_v10 = vld [vmem:[%s14538_s13 + $0x158] sm:$0xff]  ;;  %2129 = vmatpush.msra.mxu2 %v9633_v6 }
 0x688   :  { %vm1642_vm11 = vmor %vm1640_vm10, %vm1641_vm9  ;;  %2108 = vmatpush.msrb.mxu1 %v9608_v10 }
 0x689   :  { %v1637_v52 = vsub.f32 1.0, %v1636_v41  ;;  %v9603_v41 = vld [vmem:[%s14538_s13 + $0x150] sm:$0xff] }
 0x68a   :  { %2088 = vmatpush.msra.mxu3 %v9603_v41 }
 0x68b   :  { %v1638_v58 = vmul.f32 %v7358_v36, %v1637_v52  ;;  %v1675_v52 = vrot.slane %v1673_v9, 6  ;;  %v1518_v9 = vld [vmem:[#allocation2 + $0x58] sm:$0xc] }
 0x68c   :  { %v9578_v61 = vpop.eup %7359  ;;  %2089 = vmatpush.msra.mxu3 %v9623_v25 }
 0x68d   :  { %v1639_v43 = vadd.f32 %v7358_v36, %v1638_v58  ;;  %v1659_v22 = vmul.f32 %v9578_v61, %v9569_v35  ;;  %vm1664_vm13 = vweird.f32 %v9578_v61 }
 0x68e   :  { %vm9662_vm15 = vmor %vm1663_vm14, %vm1664_vm13  ;;  %2090 = vmatpush.msra.mxu3 %v9646_v28 }
 0x68f   :  { %v1643_v51 = vsel %vm1642_vm11, %v7358_v36, %v1639_v43  ;;  %v1660_v58 = vsub.f32 1.0, %v1659_v22  ;;  %v9628_v36 = vld [vmem:[%s14538_s13 + $0x140] sm:$0xff] }
 0x690   :  { %v1648_v19 = vsel %vm1645_vm12, %v1647_v31, %v1643_v51  ;;  %v1669_v31 = vand.u32 2147483648, %v9569_v35  ;;  %2109 = vmatpush.msrb.mxu1 %v9628_v36  ;;  %v1667_v51 = vand.u32 2147483647, %v9569_v35  ;;  %2091 = vmatpush.msra.mxu3 %v9672_v32 }
 0x691   :  { %v1677_v43 = vmul.f32 %v1675_v52, %v1648_v19  ;;  %v1661_v22 = vmul.f32 %v9578_v61, %v1660_v58  ;;  %v9651_v19 = vld [vmem:[%s14538_s13 + $0x128] sm:$0xff]  ;;  %v9656_v52 = vld [vmem:[%s14538_s13 + $0x130] sm:$0xff] }
 0x692   :  { %v1775_v57 = vpop.f32.mrf.mxu0  ;;  %14774 = vst [vmem:[#allocation9_spill] sm:$0xff] %v9656_v52  ;;  %2110 = vmatpush.msrb.mxu1 %v9651_v19  ;;  %2130 = vmatpush.msra.mxu2 %v9656_v52  ;;  %vm1668_vm0 = vcmp.eq.f32.partialorder %v1667_v51, 8.507059e+37  ;;  %v9718_v51 = vld [vmem:[%s14538_s13 + $0xe0] sm:$0xff] }
 0x693   :  { %v1678_v35 = vadd.f32 %v1677_v43, %v1518_v9  ;;  %v1662_v58 = vadd.f32 %v9578_v61, %v1661_v22  ;;  %v1822_v44 = vrot.slane %v1775_v57, 2  ;;  %v9677_v9 = vld [vmem:[%s14538_s13 + $0x110] sm:$0xff]  ;;  %v9682_v57 = vld [vmem:[%s14538_s13 + $0x118] sm:$0xff]  ;;  %v1670_v43 = vor.u32 1.1754944e-38, %v1669_v31  ;;  %2092 = vmatpush.msra.mxu3 %v9694_v14 }
 0x694   :  { %14777 = vst [vmem:[#allocation18_spill] sm:$0xff] %v9682_v57  ;;  %2111 = vmatpush.msrb.mxu1 %v9677_v9  ;;  %2131 = vmatpush.msra.mxu2 %v9682_v57  ;;  %v9713_v31 = vld [vmem:[%s14538_s13 + $0xd8] sm:$0xff]  ;;  %v9752_v57 = vld [vmem:[%s14538_s13 + $0xa8] sm:$0xff] }
 0x695   :  { %7361 = vtanh.f32 %v1678_v35  ;;  %v1824_v22 = vadd.f32 %v1822_v44, %v1688_v47  ;;  %v1666_v52 = vsel %vm9662_vm15, %v9578_v61, %v1662_v58  ;;  %v9704_v44 = vld [vmem:[%s14538_s13 + $0x100] sm:$0xff]  ;;  %2093 = vmatpush.msra.mxu3 %v9713_v31 }
 0x696   :  { %14778 = vst [vmem:[#allocation10_spill] sm:$0xff] %v9704_v44  ;;  %v1671_v61 = vsel %vm1668_vm0, %v1670_v43, %v1666_v52  ;;  %2112 = vmatpush.msrb.mxu1 %v9699_v37  ;;  %2132 = vmatpush.msra.mxu2 %v9704_v44  ;;  %v1687_v52 = vld [vmem:[#allocation3 + $0x28] sm:$0xc0]  ;;  %v1683_v43 = vrot.slane %v9264_v45, 6 }
 0x697   :  { %v7224_v47 = vmul.f32 -1.442695, %v1824_v22  ;;  %v1680_v58 = vsub.f32 1.0, %v1671_v61  ;;  %v9733_v22 = vld [vmem:[%s14538_s13 + $0xc0] sm:$0xff] }
 0x698   :  { %v1755_v6 = vpop.f32.mrf.mxu2  ;;  %2113 = vmatpush.msrb.mxu1 %v9718_v51  ;;  %2133 = vmatpush.msra.mxu2 %v9723_v42  ;;  %v1685_v44 = vmul.f32 %v1683_v43, %v1671_v61 }
 0x699   :  { %7363 = vpow2.f32 %v7224_v47  ;;  %v1799_v35 = vrot.slane %v1755_v6, 2  ;;  %v9743_v47 = vld [vmem:[%s14538_s13 + $0xd0] sm:$0xff]  ;;  %2094 = vmatpush.msra.mxu3 %v9733_v22 }
 0x69a   :  { %14780 = vst [vmem:[#allocation11_spill] sm:$0xff] %v9743_v47  ;;  %2114 = vmatpush.msrb.mxu1 %v9738_v53  ;;  %2134 = vmatpush.msra.mxu2 %v9743_v47  ;;  %v9854_v47 = vld [vmem:[%s14538_s13 + $0x30] sm:$0xff] }
 0x69b   :  { %v7362_v45 = vpop.eup %7361  ;;  %v1801_v6 = vadd.f32 %v1799_v35, %v1687_v52  ;;  %2095 = vmatpush.msra.mxu3 %v9752_v57  ;;  %v9773_v35 = vld [vmem:[%s14538_s13 + $0x90] sm:$0xff]  ;;  %14788 = vst [vmem:[#allocation19_spill] sm:$0xff] %v9854_v47 }
 0x69c   :  { %v1681_v42 = vmul.f32 %v7362_v45, %v1680_v58  ;;  %2115 = vmatpush.msrb.mxu1 %v9757_v13  ;;  %2135 = vmatpush.msra.mxu2 %v9762_v62  ;;  %v9778_v58 = vld [vmem:[%s14538_s13 + $0x98] sm:$0xff] }
 0x69d   :  { %v7223_v61 = vmul.f32 -1.442695, %v1801_v6  ;;  %2096 = vmatpush.msra.mxu3 %v9773_v35  ;;  %v9796_v45 = vld [vmem:[%s14538_s13 + $0x78] sm:$0xff]  ;;  %v9809_v6 = vld [vmem:[%s14538_s13 + $0x88] sm:$0xff] }
 0x69e   :  { %v9767_v52 = vadd.f32 %v1685_v44, %v1681_v42  ;;  %2116 = vmatpush.msrb.mxu1 %v9778_v58  ;;  %2136 = vmatpush.msra.mxu2 %v9783_v2  ;;  %14784 = vst [vmem:[#allocation15_spill] sm:$0xff] %v9809_v6  ;;  %v9838_v2 = vld [vmem:[%s14538_s13 + $0x50] sm:$0xff] }
 0x69f   :  { %v7364_v44 = vpop.eup %7363  ;;  %7365 = vpow2.f32 %v7223_v61  ;;  %2097 = vmatpush.msra.mxu3 %v9796_v45  ;;  %v9814_v61 = vld [vmem:[%s14538_s13 + $0x60] sm:$0xff] }
 0x6a0   :  { %14782 = vst [vmem:[#allocation13_spill] sm:$0xff] %v9767_v52  ;;  %v9788_v42 = vadd.f32 1.0, %v7364_v44  ;;  %v1912_v43 = vrot.slane %v9767_v52, 2  ;;  %2117 = vmatpush.msrb.mxu1 %v9801_v4  ;;  %v9824_v44 = vld [vmem:[%s14538_s13 + $0x70] sm:$0xff]  ;;  %2137 = vmatpush.msra.mxu2 %v9809_v6 }
 0x6a1   :  { %1858 = vst [vmem:[#allocation4 + $0x8] sm:$0xc] %v9767_v52  ;;  %2098 = vmatpush.msra.mxu3 %v9814_v61  ;;  %v9833_v52 = vld [vmem:[%s14538_s13 + $0x48] sm:$0xff] }
 0x6a2   :  { %1930 = vmatmul.f32.vlgmr.msra.gmra.mxu1 %v1912_v43  ;;  %1950 = vmatmul.f32.vlgmr.msrb.gmra.mxu2 %v1912_v43  ;;  %14785 = vst [vmem:[#allocation28_spill] sm:$0xff] %v9824_v44  ;;  %7367 = vrcp.f32 %v9788_v42  ;;  %vm1834_vm9 = vweird.f32 %v9788_v42 }
 0x6a3   :  { %1970 = vmatmul.f32.vlgmr.msra.gmra.mxu0 %v1912_v43  ;;  %2118 = vmatpush.msrb.mxu1 %v9819_v11  ;;  %14786 = vst [vmem:[#allocation17_spill] sm:$0xff] %v9833_v52  ;;  %v9843_v43 = vld [vmem:[%s14538_s13 + $0x58] sm:$0xff] }
 0x6a4   :  { %14787 = vst [vmem:[#allocation31_spill] sm:$0xff] %v9843_v43  ;;  %2138 = vmatpush.msra.mxu2 %v9824_v44  ;;  %2099 = vmatpush.msra.mxu3 %v9833_v52  ;;  %v9879_v44 = vld [vmem:[%s14538_s13 + $0x20] sm:$0xff] }
 0x6a5   :  { %v7366_v6 = vpop.eup %7365  ;;  %2119 = vmatpush.msrb.mxu1 %v9838_v2  ;;  %2455 = vmatpush.msra.mxu0 %v9588_v16 }
 0x6a6   :  { %v9847_v62 = vadd.f32 1.0, %v7366_v6  ;;  %2139 = vmatpush.msra.mxu2 %v9843_v43  ;;  %2100 = vmatpush.msra.mxu3 %v9854_v47  ;;  %v9874_v6 = vld [vmem:[%s14538_s13 + $0x18] sm:$0xff]  ;;  %v9892_v47 = vld [vmem:[%s14538_s13] sm:$0xff] }
 0x6a7   :  { %2120 = vmatpush.msrb.mxu1 %v9859_v1  ;;  %14790 = vst [vmem:[#allocation21_spill] sm:$0xff] %v9874_v6  ;;  %2456 = vmatpush.msra.mxu0 %v9608_v10 }
 0x6a8   :  { %7369 = vrcp.f32 %v9847_v62  ;;  %v9886_v43 = vpop.eup %7367  ;;  %2140 = vmatpush.msra.mxu2 %v9864_v12  ;;  %2101 = vmatpush.msra.mxu3 %v9874_v6  ;;  %v9905_v12 = vld [vmem:[%s14538_s13 + $0x10] sm:$0xff]  ;;  %v1795_v6 = vpop.f32.mrf.mxu3  ;;  %vm1811_vm4 = vweird.f32 %v9847_v62 }
 0x6a9   :  { %2121 = vmatpush.msrb.mxu1 %v9879_v44  ;;  %14792 = vst [vmem:[#allocation27_spill] sm:$0xff] %v9905_v12  ;;  %v1830_v52 = vmul.f32 %v9886_v43, %v9788_v42  ;;  %2457 = vmatpush.msra.mxu0 %v9628_v36  ;;  %vm1835_vm8 = vweird.f32 %v9886_v43  ;;  %v14801_v36 = vld [vmem:[#allocation14_spill] sm:$0xff] }
 0x6aa   :  { %2141 = vmatpush.msra.mxu2 %v9884_v15  ;;  %2102 = vmatpush.msra.mxu3 %v9892_v47  ;;  %vm1836_vm10 = vmor %vm1834_vm9, %vm1835_vm8 }
 0x6ab   :  { %2122 = vmatpush.msrb.mxu1 %v9897_v0  ;;  %v1831_v10 = vsub.f32 1.0, %v1830_v52  ;;  %2458 = vmatpush.msra.mxu0 %v9651_v19  ;;  %v14803_v19 = vld [vmem:[#allocation29_spill] sm:$0xff] }
 0x6ac   :  { %2142 = vmatpush.msra.mxu2 %v9905_v12  ;;  %2282 = vmatpush.msrb.mxu3 %v9290_v49  ;;  %v1817_v49 = vand.u32 2147483648, %v9847_v62  ;;  %v14815_v52 = vld [vmem:[#allocation33_spill] sm:$0xff] }
 0x6ad   :  { %2302 = vmatpush.msra.mxu1 %v9295_v54  ;;  %2459 = vmatpush.msra.mxu0 %v9677_v9  ;;  %v14806_v9 = vld [vmem:[#allocation18_spill] sm:$0xff] }
 0x6ae   :  { %v7370_v16 = vpop.eup %7369  ;;  %2435 = vmatpush.msrb.mxu2 %v9583_v38  ;;  %2283 = vmatpush.msrb.mxu3 %v9308_v17  ;;  %v1815_v17 = vand.u32 2147483647, %v9847_v62  ;;  %v1844_v38 = vadd.f32 %v9273_v5, %v1795_v6 }
 0x6af   :  { %v1807_v15 = vmul.f32 %v7370_v16, %v9847_v62  ;;  %2303 = vmatpush.msra.mxu1 %v9313_v18  ;;  %vm1812_vm3 = vweird.f32 %v7370_v16  ;;  %v1832_v18 = vmul.f32 %v9886_v43, %v1831_v10  ;;  %2460 = vmatpush.msra.mxu0 %v9699_v37  ;;  %v14808_v37 = vld [vmem:[#allocation20_spill] sm:$0xff]  ;;  %v14814_v62 = vld [vmem:[#allocation31_spill] sm:$0xff] }
 0x6b0   :  { %2436 = vmatpush.msrb.mxu2 %v9603_v41  ;;  %2284 = vmatpush.msrb.mxu3 %v9326_v20  ;;  %vm1813_vm6 = vmor %vm1811_vm4, %vm1812_vm3  ;;  %vm1816_vm7 = vcmp.eq.f32.partialorder %v1815_v17, 8.507059e+37 }
 0x6b1   :  { %v1808_v12 = vsub.f32 1.0, %v1807_v15  ;;  %2304 = vmatpush.msra.mxu1 %v9331_v21  ;;  %v1818_v21 = vor.u32 1.1754944e-38, %v1817_v49  ;;  %2461 = vmatpush.msra.mxu0 %v9718_v51  ;;  %v14810_v51 = vld [vmem:[#allocation22_spill] sm:$0xff] }
 0x6b2   :  { %2437 = vmatpush.msrb.mxu2 %v9623_v25  ;;  %2285 = vmatpush.msrb.mxu3 %v9344_v23  ;;  %v1846_v23 = vrot.slane %v1844_v38, 2  ;;  %v1689_v25 = vld [vmem:[#allocation3 + $0x68] sm:$0xc0] }
 0x6b3   :  { %v1809_v54 = vmul.f32 %v7370_v16, %v1808_v12  ;;  %2305 = vmatpush.msra.mxu1 %v9349_v24  ;;  %2462 = vmatpush.msra.mxu0 %v9738_v53  ;;  %v14812_v53 = vld [vmem:[#allocation15_spill] sm:$0xff] }
 0x6b4   :  { %2438 = vmatpush.msrb.mxu2 %v9646_v28  ;;  %2286 = vmatpush.msrb.mxu3 %v9362_v26  ;;  %v1833_v26 = vadd.f32 %v9886_v43, %v1832_v18  ;;  %v14802_v28 = vld [vmem:[#allocation8_spill] sm:$0xff] }
 0x6b5   :  { %v1810_v20 = vadd.f32 %v7370_v16, %v1809_v54  ;;  %2306 = vmatpush.msra.mxu1 %v9367_v27  ;;  %v1840_v27 = vand.u32 2147483648, %v9788_v42  ;;  %2463 = vmatpush.msra.mxu0 %v9757_v13  ;;  %v14800_v13 = vld [vmem:[#allocation21_spill] sm:$0xff] }
 0x6b6   :  { %2439 = vmatpush.msrb.mxu2 %v9672_v32  ;;  %2287 = vmatpush.msrb.mxu3 %v9380_v29  ;;  %v1838_v29 = vand.u32 2147483647, %v9788_v42  ;;  %v14804_v32 = vld [vmem:[#allocation16_spill] sm:$0xff] }
 0x6b7   :  { %v1814_v5 = vsel %vm1813_vm6, %v7370_v16, %v1810_v20  ;;  %2307 = vmatpush.msra.mxu1 %v9385_v30  ;;  %2464 = vmatpush.msra.mxu0 %v9778_v58  ;;  %v14817_v58 = vld [vmem:[#allocation27_spill] sm:$0xff] }
 0x6b8   :  { %v1819_v24 = vsel %vm1816_vm7, %v1818_v21, %v1814_v5  ;;  %2440 = vmatpush.msrb.mxu2 %v9694_v14  ;;  %2288 = vmatpush.msrb.mxu3 %v9398_v33  ;;  %v1837_v14 = vsel %vm1836_vm10, %v9886_v43, %v1833_v26  ;;  %v1841_v33 = vor.u32 1.1754944e-38, %v1840_v27  ;;  %vm1839_vm11 = vcmp.eq.f32.partialorder %v1838_v29, 8.507059e+37  ;;  %v1861_v43 = vld [vmem:[#allocation2] sm:$0x30] }
 0x6b9   :  { %v1848_v41 = vmul.f32 %v1846_v23, %v1819_v24  ;;  %2308 = vmatpush.msra.mxu1 %v9403_v34  ;;  %2465 = vmatpush.msra.mxu0 %v9801_v4  ;;  %v10012_v23 = vld [vmem:[%s14539_s14] ss:$0 sm:$0xff] }
 0x6ba   :  { %2441 = vmatpush.msrb.mxu2 %v9713_v31  ;;  %2289 = vmatpush.msrb.mxu3 %v9416_v39  ;;  %v1842_v34 = vsel %vm1839_vm11, %v1841_v33, %v1837_v14  ;;  %v14809_v31 = vld [vmem:[#allocation11_spill] sm:$0xff] }
 0x6bb   :  { %v1849_v30 = vadd.f32 %v1848_v41, %v1689_v25  ;;  %2309 = vmatpush.msra.mxu1 %v9421_v40  ;;  %2466 = vmatpush.msra.mxu0 %v9819_v11  ;;  %v1851_v39 = vsub.f32 1.0, %v1842_v34  ;;  %v1854_v40 = vrot.slane %v9276_v48, 2 }
 0x6bc   :  { %2442 = vmatpush.msrb.mxu2 %v9733_v22  ;;  %2290 = vmatpush.msrb.mxu3 %v9434_v46  ;;  %v14811_v22 = vld [vmem:[#allocation26_spill] sm:$0xff] }
 0x6bd   :  { %7371 = vtanh.f32 %v1849_v30  ;;  %2310 = vmatpush.msra.mxu1 %v9439_v50  ;;  %2467 = vmatpush.msra.mxu0 %v9838_v2 }
 0x6be   :  { %2443 = vmatpush.msrb.mxu2 %v9752_v57  ;;  %2291 = vmatpush.msrb.mxu3 %v9452_v55  ;;  %v1856_v55 = vmul.f32 %v1854_v40, %v1842_v34  ;;  %v14807_v57 = vld [vmem:[#allocation10_spill] sm:$0xff] }
 0x6bf   :  { %2311 = vmatpush.msra.mxu1 %v9457_v3  ;;  %2468 = vmatpush.msra.mxu0 %v9859_v1  ;;  %v14793_v3 = vld [vmem:[#allocation17_spill] sm:$0xff] }
 0x6c0   :  { %2444 = vmatpush.msrb.mxu2 %v9773_v35  ;;  %2292 = vmatpush.msrb.mxu3 %v9470_v63  ;;  %v14794_v63 = vld [vmem:[#allocation6_spill] sm:$0xff]  ;;  %v14799_v1 = vld [vmem:[#allocation25_spill] sm:$0xff]  ;;  %v14816_v35 = vld [vmem:[#allocation24_spill] sm:$0xff] }
 0x6c1   :  { %2312 = vmatpush.msra.mxu1 %v9475_v59  ;;  %2469 = vmatpush.msra.mxu0 %v9879_v44 }
 0x6c2   :  { %2445 = vmatpush.msrb.mxu2 %v9796_v45  ;;  %2293 = vmatpush.msrb.mxu3 %v9488_v7  ;;  %v14795_v7 = vld [vmem:[#allocation23_spill] sm:$0xff]  ;;  %v1860_v45 = vld [vmem:[#allocation2 + $0x30] sm:$0x30] }
 0x6c3   :  { %v7372_v46 = vpop.eup %7371  ;;  %2313 = vmatpush.msra.mxu1 %v9493_v8  ;;  %v14796_v8 = vld [vmem:[#allocation19_spill] sm:$0xff]  ;;  %2470 = vmatpush.msra.mxu0 %v9897_v0  ;;  %v14805_v0 = vld [vmem:[#allocation9_spill] sm:$0xff] }
 0x6c4   :  { %v1852_v50 = vmul.f32 %v7372_v46, %v1851_v39  ;;  %2446 = vmatpush.msrb.mxu2 %v9814_v61  ;;  %2294 = vmatpush.msrb.mxu3 %v9506_v56  ;;  %v14797_v56 = vld [vmem:[#allocation12_spill] sm:$0xff]  ;;  %v1862_v46 = vld [vmem:[#allocation2 + $0x58] sm:$0x30] }
 0x6c5   :  { %2314 = vmatpush.msra.mxu1 %v9511_v60  ;;  %v14798_v60 = vld [vmem:[#allocation7_spill] sm:$0xff] }
 0x6c6   :  { %v9976_v48 = vadd.f32 %v1856_v55, %v1852_v50  ;;  %2447 = vmatpush.msrb.mxu2 %v14793_v3  ;;  %2295 = vmatpush.msrb.mxu3 %v14794_v63 }
 0x6c7   :  { %2315 = vmatpush.msra.mxu1 %v14795_v7 }
 0x6c8   :  { %1859 = vst [vmem:[#allocation5 + $0x18] sm:$0xc0] %v9976_v48  ;;  %v2085_v59 = vrot.slane %v9976_v48, 6  ;;  %2448 = vmatpush.msrb.mxu2 %v14796_v8  ;;  %2296 = vmatpush.msrb.mxu3 %v14797_v56 }
 0x6c9   :  { %2316 = vmatpush.msra.mxu1 %v14798_v60  ;;  %v2034_v60 = vld [vmem:[#allocation3 + $0x20] sm:$0x30] }
 0x6ca   :  { %2103 = vmatmul.f32.vlgmr.msra.gmra.mxu3 %v2085_v59  ;;  %2123 = vmatmul.f32.vlgmr.msrb.gmra.mxu1 %v2085_v59 }
 0x6cb   :  { %2143 = vmatmul.f32.vlgmr.msra.gmra.mxu2 %v2085_v59  ;;  %2297 = vmatpush.msrb.mxu3 %v14799_v1 }
 0x6cc   :  { %2449 = vmatpush.msrb.mxu2 %v14800_v13  ;;  %2317 = vmatpush.msra.mxu1 %v14801_v36  ;;  %v14818_v13 = vld [vmem:[#allocation13_spill] sm:$0xff] }
 0x6cd   :  { %2475 = vmatpush.msra.mxu3 %v14802_v28  ;;  %v2029_v36 = vrot.slane %v14818_v13, 6  ;;  %v10098_v13 = vld [vmem:[%s14537_s12 + $0x130] sm:$0xff] }
 0x6ce   :  { %2450 = vmatpush.msrb.mxu2 %v9892_v47  ;;  %v14813_v47 = vld [vmem:[#allocation28_spill] sm:$0xff] }
 0x6cf   :  { %2476 = vmatpush.msra.mxu3 %v14803_v19 }
 0x6d1   :  { %2477 = vmatpush.msra.mxu3 %v14804_v32 }
 0x6d3   :  { %2478 = vmatpush.msra.mxu3 %v14805_v0 }
 0x6d5   :  { %2479 = vmatpush.msra.mxu3 %v14806_v9 }
 0x6d7   :  { %2480 = vmatpush.msra.mxu3 %v14807_v57 }
 0x6d9   :  { %2481 = vmatpush.msra.mxu3 %v14808_v37 }
 0x6db   :  { %2482 = vmatpush.msra.mxu3 %v14809_v31 }
 0x6dd   :  { %2483 = vmatpush.msra.mxu3 %v14810_v51  ;;  %v2033_v51 = vld [vmem:[#allocation3 + $0x28] sm:$0x30] }
 0x6df   :  { %2484 = vmatpush.msra.mxu3 %v14811_v22 }
 0x6e1   :  { %2485 = vmatpush.msra.mxu3 %v14812_v53 }
 0x6e3   :  { %2486 = vmatpush.msra.mxu3 %v14813_v47 }
 0x6e5   :  { %2487 = vmatpush.msra.mxu3 %v14814_v62 }
 0x6e7   :  { %2488 = vmatpush.msra.mxu3 %v14815_v52 }
 0x6e9   :  { %2489 = vmatpush.msra.mxu3 %v14816_v35 }
 0x6eb   :  { %2490 = vmatpush.msra.mxu3 %v14817_v58 }
 0x71f   :  { %v1931_v2 = vpop.f32.mrf.mxu1 }
 0x720   :  { %v1975_v42 = vrot.slane %v1931_v2, 4  ;;  %v1971_v38 = vpop.f32.mrf.mxu0 }
 0x721   :  { %v2020_v24 = vadd.f32 %v10012_v23, %v1971_v38 }
 0x722   :  { %v1977_v4 = vadd.f32 %v1975_v42, %v1860_v45 }
 0x723   :  { %v2022_v30 = vrot.slane %v2020_v24, 4  ;;  %v2035_v24 = vld [vmem:[#allocation3 + $0x68] sm:$0x30] }
 0x724   :  { %v7225_v61 = vmul.f32 -1.442695, %v1977_v4 }
 0x725   :  { %v1951_v11 = vpop.f32.mrf.mxu2 }
 0x726   :  { %7373 = vpow2.f32 %v7225_v61  ;;  %v1998_v44 = vrot.slane %v1951_v11, 4 }
 0x728   :  { %v2000_v12 = vadd.f32 %v1998_v44, %v1861_v43 }
 0x72a   :  { %v7226_v6 = vmul.f32 -1.442695, %v2000_v12 }
 0x72c   :  { %v7374_v15 = vpop.eup %7373  ;;  %7375 = vpow2.f32 %v7226_v6 }
 0x72d   :  { %v1981_v16 = vadd.f32 1.0, %v7374_v15  ;;  %v10023_v15 = vld [vmem:[%s14540_s15] ss:$0 sm:$0xff] }
 0x72f   :  { %7377 = vrcp.f32 %v1981_v16  ;;  %v1993_v20 = vand.u32 2147483648, %v1981_v16  ;;  %v1991_v5 = vand.u32 2147483647, %v1981_v16  ;;  %vm1987_vm13 = vweird.f32 %v1981_v16 }
 0x731   :  { %v1994_v29 = vor.u32 1.1754944e-38, %v1993_v20  ;;  %vm1992_vm15 = vcmp.eq.f32.partialorder %v1991_v5, 8.507059e+37 }
 0x732   :  { %v7376_v10 = vpop.eup %7375 }
 0x733   :  { %v2004_v49 = vadd.f32 1.0, %v7376_v10 }
 0x735   :  { %v7378_v54 = vpop.eup %7377  ;;  %7379 = vrcp.f32 %v2004_v49  ;;  %v2016_v40 = vand.u32 2147483648, %v2004_v49  ;;  %v2014_v50 = vand.u32 2147483647, %v2004_v49  ;;  %vm2010_vm3 = vweird.f32 %v2004_v49 }
 0x736   :  { %v1983_v17 = vmul.f32 %v7378_v54, %v1981_v16  ;;  %vm1988_vm12 = vweird.f32 %v7378_v54 }
 0x737   :  { %vm1989_vm14 = vmor %vm1987_vm13, %vm1988_vm12  ;;  %v2017_v59 = vor.u32 1.1754944e-38, %v2016_v40  ;;  %vm2015_vm6 = vcmp.eq.f32.partialorder %v2014_v50, 8.507059e+37  ;;  %v10034_v50 = vld [vmem:[%s14537_s12 + $0x168] sm:$0xff] }
 0x738   :  { %v1984_v18 = vsub.f32 1.0, %v1983_v17  ;;  %2610 = vmatpush.msrb.mxu1 %v10034_v50 }
 0x73a   :  { %v1985_v21 = vmul.f32 %v7378_v54, %v1984_v18 }
 0x73b   :  { %v7380_v26 = vpop.eup %7379 }
 0x73c   :  { %v1986_v27 = vadd.f32 %v7378_v54, %v1985_v21  ;;  %v2006_v41 = vmul.f32 %v7380_v26, %v2004_v49  ;;  %vm2011_vm0 = vweird.f32 %v7380_v26 }
 0x73d   :  { %vm2012_vm4 = vmor %vm2010_vm3, %vm2011_vm0 }
 0x73e   :  { %v1990_v25 = vsel %vm1989_vm14, %v7378_v54, %v1986_v27  ;;  %v2007_v14 = vsub.f32 1.0, %v2006_v41 }
 0x73f   :  { %v1995_v33 = vsel %vm1992_vm15, %v1994_v29, %v1990_v25 }
 0x740   :  { %v2024_v34 = vmul.f32 %v2022_v30, %v1995_v33  ;;  %v2008_v39 = vmul.f32 %v7380_v26, %v2007_v14  ;;  %v2202_v14 = vrot.slane %v9976_v48, 2  ;;  %v10039_v48 = vld [vmem:[%s14537_s12 + $0x170] sm:$0xff] }
 0x741   :  { %2630 = vmatpush.msra.mxu2 %v10039_v48 }
 0x742   :  { %v2025_v55 = vadd.f32 %v2024_v34, %v1862_v46  ;;  %v2009_v3 = vadd.f32 %v7380_v26, %v2008_v39 }
 0x744   :  { %7381 = vtanh.f32 %v2025_v55  ;;  %v2013_v63 = vsel %vm2012_vm4, %v7380_v26, %v2009_v3  ;;  %v10044_v55 = vld [vmem:[%s14537_s12 + $0x178] sm:$0xff]  ;;  %v10052_v3 = vld [vmem:[%s14537_s12 + $0x150] sm:$0xff] }
 0x745   :  { %v2018_v7 = vsel %vm2015_vm6, %v2017_v59, %v2013_v63  ;;  %v10057_v63 = vld [vmem:[%s14537_s12 + $0x158] sm:$0xff]  ;;  %v10062_v59 = vld [vmem:[%s14537_s12 + $0x160] sm:$0xff]  ;;  %2611 = vmatpush.msrb.mxu1 %v10052_v3 }
 0x746   :  { %v2027_v1 = vsub.f32 1.0, %v2018_v7  ;;  %v2031_v0 = vmul.f32 %v2029_v36, %v2018_v7  ;;  %2631 = vmatpush.msra.mxu2 %v10057_v63  ;;  %v10070_v7 = vld [vmem:[%s14537_s12 + $0x138] sm:$0xff]  ;;  %v10106_v36 = vld [vmem:[%s14537_s12 + $0x108] sm:$0xff] }
 0x747   :  { %v2124_v8 = vpop.f32.mrf.mxu1  ;;  %2612 = vmatpush.msrb.mxu1 %v10070_v7 }
 0x748   :  { %v2171_v56 = vrot.slane %v2124_v8, 4  ;;  %v10075_v8 = vld [vmem:[%s14537_s12 + $0x140] sm:$0xff] }
 0x749   :  { %2632 = vmatpush.msra.mxu2 %v10075_v8 }
 0x74a   :  { %v7382_v28 = vpop.eup %7381  ;;  %v2173_v19 = vadd.f32 %v2171_v56, %v2034_v60  ;;  %v10080_v56 = vld [vmem:[%s14537_s12 + $0x148] sm:$0xff]  ;;  %v10088_v60 = vld [vmem:[%s14537_s12 + $0x120] sm:$0xff] }
 0x74b   :  { %v2028_v32 = vmul.f32 %v7382_v28, %v2027_v1  ;;  %v10093_v1 = vld [vmem:[%s14537_s12 + $0x128] sm:$0xff]  ;;  %2613 = vmatpush.msrb.mxu1 %v10088_v60  ;;  %v10111_v28 = vld [vmem:[%s14537_s12 + $0x110] sm:$0xff] }
 0x74c   :  { %v7228_v9 = vmul.f32 -1.442695, %v2173_v19  ;;  %2633 = vmatpush.msra.mxu2 %v10093_v1  ;;  %v10116_v19 = vld [vmem:[%s14537_s12 + $0x118] sm:$0xff] }
 0x74d   :  { %v2104_v57 = vpop.f32.mrf.mxu3  ;;  %v10016_v37 = vadd.f32 %v2031_v0, %v2028_v32  ;;  %2614 = vmatpush.msrb.mxu1 %v10106_v36  ;;  %v10124_v32 = vld [vmem:[%s14537_s12 + $0xf0] sm:$0xff]  ;;  %v10129_v0 = vld [vmem:[%s14537_s12 + $0xf8] sm:$0xff] }
 0x74e   :  { %7383 = vpow2.f32 %v7228_v9  ;;  %v2148_v31 = vrot.slane %v2104_v57, 4  ;;  %v2144_v11 = vpop.f32.mrf.mxu2  ;;  %2634 = vmatpush.msra.mxu2 %v10111_v28  ;;  %v10134_v9 = vld [vmem:[%s14537_s12 + $0x100] sm:$0xff] }
 0x74f   :  { %2206 = vst [vmem:[#allocation4 + $0x8] sm:$0x30] %v10016_v37  ;;  %v2260_v22 = vrot.slane %v10016_v37, 4  ;;  %v2193_v16 = vadd.f32 %v10023_v15, %v2144_v11  ;;  %2615 = vmatpush.msrb.mxu1 %v10124_v32  ;;  %v10195_v11 = vld [vmem:[%s14537_s12 + $0x90] sm:$0xff] }
 0x750   :  { %v2150_v53 = vadd.f32 %v2148_v31, %v2033_v51  ;;  %2635 = vmatpush.msra.mxu2 %v10129_v0  ;;  %v10142_v51 = vld [vmem:[%s14537_s12 + $0xd8] sm:$0xff] }
 0x751   :  { %2278 = vmatmul.f32.vlgmr.msrb.gmra.mxu0 %v2260_v22  ;;  %2298 = vmatmul.f32.vlgmr.msrb.gmra.mxu3 %v2260_v22  ;;  %v2195_v38 = vrot.slane %v2193_v16, 4  ;;  %v10216_v16 = vld [vmem:[%s14537_s12 + $0x80] sm:$0xff] }
 0x752   :  { %v7227_v47 = vmul.f32 -1.442695, %v2150_v53  ;;  %2318 = vmatmul.f32.vlgmr.msra.gmra.mxu1 %v2260_v22  ;;  %2650 = vmatpush.msrb.mxu0 %v10044_v55  ;;  %v10147_v22 = vld [vmem:[%s14537_s12 + $0xe0] sm:$0xff]  ;;  %v10152_v53 = vld [vmem:[%s14537_s12 + $0xe8] sm:$0xff] }
 0x753   :  { %2616 = vmatpush.msrb.mxu1 %v10142_v51  ;;  %2636 = vmatpush.msra.mxu2 %v10147_v22 }
 0x754   :  { %v7384_v62 = vpop.eup %7383  ;;  %7385 = vpow2.f32 %v7227_v47  ;;  %2651 = vmatpush.msrb.mxu0 %v10062_v59  ;;  %v2208_v47 = vld [vmem:[#allocation2 + $0x30] sm:$0xc0] }
 0x755   :  { %v2177_v52 = vadd.f32 1.0, %v7384_v62 }
 0x756   :  { %2652 = vmatpush.msrb.mxu0 %v10080_v56 }
 0x757   :  { %7387 = vrcp.f32 %v2177_v52  ;;  %v2189_v21 = vand.u32 2147483648, %v2177_v52  ;;  %vm2183_vm12 = vweird.f32 %v2177_v52  ;;  %v2187_v26 = vand.u32 2147483647, %v2177_v52 }
 0x758   :  { %2653 = vmatpush.msrb.mxu0 %v10098_v13 }
 0x759   :  { %v2190_v29 = vor.u32 1.1754944e-38, %v2189_v21  ;;  %vm2188_vm14 = vcmp.eq.f32.partialorder %v2187_v26, 8.507059e+37  ;;  %v10247_v21 = vld [vmem:[%s14537_s12 + $0x48] sm:$0xff] }
 0x75a   :  { %v7386_v35 = vpop.eup %7385  ;;  %2654 = vmatpush.msrb.mxu0 %v10116_v19 }
 0x75b   :  { %v2154_v58 = vadd.f32 1.0, %v7386_v35  ;;  %v10165_v35 = vld [vmem:[%s14537_s12 + $0xc8] sm:$0xff] }
 0x75c   :  { %2655 = vmatpush.msrb.mxu0 %v10134_v9  ;;  %2637 = vmatpush.msra.mxu2 %v10165_v35 }
 0x75d   :  { %7389 = vrcp.f32 %v2154_v58  ;;  %v7388_v2 = vpop.eup %7387  ;;  %v2166_v43 = vand.u32 2147483648, %v2154_v58  ;;  %v2164_v6 = vand.u32 2147483647, %v2154_v58  ;;  %vm2160_vm8 = vweird.f32 %v2154_v58 }
 0x75e   :  { %v2179_v42 = vmul.f32 %v7388_v2, %v2177_v52  ;;  %vm2184_vm11 = vweird.f32 %v7388_v2  ;;  %2656 = vmatpush.msrb.mxu0 %v10152_v53  ;;  %v10160_v52 = vld [vmem:[%s14537_s12 + $0xc0] sm:$0xff] }
 0x75f   :  { %v2167_v54 = vor.u32 1.1754944e-38, %v2166_v43  ;;  %vm2165_vm10 = vcmp.eq.f32.partialorder %v2164_v6, 8.507059e+37  ;;  %vm2185_vm13 = vmor %vm2183_vm12, %vm2184_vm11  ;;  %2617 = vmatpush.msrb.mxu1 %v10160_v52  ;;  %v10205_v43 = vld [vmem:[%s14537_s12 + $0xa0] sm:$0xff]  ;;  %v10211_v6 = vld [vmem:[%s14537_s12 + $0x78] sm:$0xff] }
 0x760   :  { %v2180_v61 = vsub.f32 1.0, %v2179_v42  ;;  %v10178_v42 = vld [vmem:[%s14537_s12 + $0xa8] sm:$0xff] }
 0x761   :  { %2618 = vmatpush.msrb.mxu1 %v10178_v42 }
 0x762   :  { %v2181_v10 = vmul.f32 %v7388_v2, %v2180_v61 }
 0x763   :  { %v7390_v45 = vpop.eup %7389  ;;  %2619 = vmatpush.msrb.mxu1 %v10195_v11 }
 0x764   :  { %v2156_v4 = vmul.f32 %v7390_v45, %v2154_v58  ;;  %vm2161_vm7 = vweird.f32 %v7390_v45  ;;  %v2182_v20 = vadd.f32 %v7388_v2, %v2181_v10  ;;  %v10170_v58 = vld [vmem:[%s14537_s12 + $0xd0] sm:$0xff]  ;;  %v2209_v10 = vld [vmem:[#allocation2] sm:$0xc0] }
 0x765   :  { %vm2162_vm9 = vmor %vm2160_vm8, %vm2161_vm7  ;;  %2657 = vmatpush.msrb.mxu0 %v10170_v58  ;;  %2620 = vmatpush.msrb.mxu1 %v10211_v6 }
 0x766   :  { %v2157_v44 = vsub.f32 1.0, %v2156_v4  ;;  %v2186_v41 = vsel %vm2185_vm13, %v7388_v2, %v2182_v20  ;;  %v10188_v4 = vld [vmem:[%s14537_s12 + $0xb8] sm:$0xff] }
 0x767   :  { %v2191_v25 = vsel %vm2188_vm14, %v2190_v29, %v2186_v41  ;;  %2658 = vmatpush.msrb.mxu0 %v10188_v4  ;;  %v10270_v41 = vld [vmem:[%s14537_s12 + $0x38] sm:$0xff] }
 0x768   :  { %v2158_v12 = vmul.f32 %v7390_v45, %v2157_v44  ;;  %v2200_v30 = vsub.f32 1.0, %v2191_v25  ;;  %v2204_v39 = vmul.f32 %v2202_v14, %v2191_v25  ;;  %v10200_v44 = vld [vmem:[%s14537_s12 + $0x98] sm:$0xff]  ;;  %v10277_v25 = vld [vmem:[%s14537_s12 + $0x40] sm:$0xff] }
 0x769   :  { %2659 = vmatpush.msrb.mxu0 %v10205_v43  ;;  %v10291_v14 = vld [vmem:[%s14537_s12 + $0x20] sm:$0xff] }
 0x76a   :  { %v2159_v49 = vadd.f32 %v7390_v45, %v2158_v12 }
 0x76c   :  { %v2163_v17 = vsel %vm2162_vm9, %v7390_v45, %v2159_v49  ;;  %v10183_v45 = vld [vmem:[%s14537_s12 + $0xb0] sm:$0xff]  ;;  %v10223_v49 = vld [vmem:[%s14537_s12 + $0x88] sm:$0xff] }
 0x76d   :  { %v2168_v18 = vsel %vm2165_vm10, %v2167_v54, %v2163_v17  ;;  %2638 = vmatpush.msra.mxu2 %v10183_v45  ;;  %v10229_v17 = vld [vmem:[%s14537_s12 + $0x60] sm:$0xff]  ;;  %2660 = vmatpush.msrb.mxu0 %v10223_v49 }
 0x76e   :  { %v2197_v5 = vmul.f32 %v2195_v38, %v2168_v18  ;;  %v10234_v38 = vld [vmem:[%s14537_s12 + $0x68] sm:$0xff]  ;;  %v10241_v18 = vld [vmem:[%s14537_s12 + $0x70] sm:$0xff]  ;;  %2621 = vmatpush.msrb.mxu1 %v10229_v17 }
 0x76f   :  { %2639 = vmatpush.msra.mxu2 %v10200_v44  ;;  %2661 = vmatpush.msrb.mxu0 %v10241_v18 }
 0x770   :  { %v2198_v27 = vadd.f32 %v2197_v5, %v2035_v24  ;;  %v10252_v5 = vld [vmem:[%s14537_s12 + $0x50] sm:$0xff]  ;;  %v10259_v24 = vld [vmem:[%s14537_s12 + $0x58] sm:$0xff]  ;;  %2622 = vmatpush.msrb.mxu1 %v10247_v21 }
 0x771   :  { %2640 = vmatpush.msra.mxu2 %v10216_v16  ;;  %2662 = vmatpush.msrb.mxu0 %v10259_v24 }
 0x772   :  { %7391 = vtanh.f32 %v2198_v27  ;;  %v10265_v27 = vld [vmem:[%s14537_s12 + $0x30] sm:$0xff] }
 0x773   :  { %2641 = vmatpush.msra.mxu2 %v10234_v38  ;;  %2623 = vmatpush.msrb.mxu1 %v10265_v27 }
 0x774   :  { %2663 = vmatpush.msrb.mxu0 %v10277_v25 }
 0x775   :  { %2642 = vmatpush.msra.mxu2 %v10252_v5 }
 0x777   :  { %2643 = vmatpush.msra.mxu2 %v10270_v41 }
 0x778   :  { %v7392_v33 = vpop.eup %7391 }
 0x779   :  { %v2201_v34 = vmul.f32 %v7392_v33, %v2200_v30  ;;  %v10286_v30 = vld [vmem:[%s14537_s12 + $0x18] sm:$0xff]  ;;  %v10296_v33 = vld [vmem:[%s14537_s12 + $0x28] sm:$0xff]  ;;  %2644 = vmatpush.msra.mxu2 %v10291_v14 }
 0x77a   :  { %14819 = vst [vmem:[#allocation30_spill] sm:$0xff] %v10296_v33  ;;  %2624 = vmatpush.msrb.mxu1 %v10286_v30  ;;  %2664 = vmatpush.msrb.mxu0 %v10296_v33 }
 0x77b   :  { %v10027_v40 = vadd.f32 %v2204_v39, %v2201_v34  ;;  %v10304_v39 = vld [vmem:[%s14537_s12] sm:$0xff] }
 0x77c   :  { %2625 = vmatpush.msrb.mxu1 %v10304_v39 }
 0x77d   :  { %2207 = vst [vmem:[#allocation5 + $0x18] sm:$0x30] %v10027_v40  ;;  %v2433_v46 = vrot.slane %v10027_v40, 4 }
 0x77f   :  { %2451 = vmatmul.f32.vlgmr.msrb.gmra.mxu2 %v2433_v46  ;;  %2471 = vmatmul.f32.vlgmr.msra.gmra.mxu0 %v2433_v46 }
 0x780   :  { %2491 = vmatmul.f32.vlgmr.msra.gmra.mxu3 %v2433_v46  ;;  %v10309_v46 = vld [vmem:[%s14537_s12 + $0x8] sm:$0xff] }
 0x781   :  { %14820 = vst [vmem:[#allocation32_spill] sm:$0xff] %v10309_v46  ;;  %2645 = vmatpush.msra.mxu2 %v10309_v46 }
 0x7ce   :  { %v2279_v57 = vpop.f32.mrf.mxu0 }
 0x7cf   :  { %v2323_v31 = vrot.slane %v2279_v57, 2  ;;  %v10314_v57 = vld [vmem:[%s14537_s12 + $0x10] sm:$0xff] }
 0x7d0   :  { %14821 = vst [vmem:[#allocation17_spill] sm:$0xff] %v10314_v57  ;;  %2665 = vmatpush.msrb.mxu0 %v10314_v57 }
 0x7d1   :  { %v2325_v62 = vadd.f32 %v2323_v31, %v2208_v47 }
 0x7d2   :  { %2933 = vmatpush.msra.mxu0 %v10034_v50 }
 0x7d3   :  { %v7229_v2 = vmul.f32 -1.442695, %v2325_v62 }
 0x7d4   :  { %v2299_v61 = vpop.f32.mrf.mxu3  ;;  %2934 = vmatpush.msra.mxu0 %v10052_v3 }
 0x7d5   :  { %7393 = vpow2.f32 %v7229_v2  ;;  %v2346_v12 = vrot.slane %v2299_v61, 2  ;;  %v2319_v2 = vpop.f32.mrf.mxu1 }
 0x7d6   :  { %2935 = vmatpush.msra.mxu0 %v10070_v7 }
 0x7d7   :  { %v2348_v54 = vadd.f32 %v2346_v12, %v2209_v10 }
 0x7d8   :  { %2936 = vmatpush.msra.mxu0 %v10088_v60 }
 0x7d9   :  { %v7230_v20 = vmul.f32 -1.442695, %v2348_v54 }
 0x7da   :  { %2937 = vmatpush.msra.mxu0 %v10106_v36 }
 0x7db   :  { %v7394_v26 = vpop.eup %7393  ;;  %7395 = vpow2.f32 %v7230_v20  ;;  %v2368_v20 = vadd.f32 %v10012_v23, %v2319_v2  ;;  %v2210_v2 = vld [vmem:[#allocation2 + $0x58] sm:$0xc0] }
 0x7dc   :  { %v2329_v29 = vadd.f32 1.0, %v7394_v26  ;;  %2938 = vmatpush.msra.mxu0 %v10124_v32 }
 0x7de   :  { %7397 = vrcp.f32 %v2329_v29  ;;  %v2341_v12 = vand.u32 2147483648, %v2329_v29  ;;  %v2339_v54 = vand.u32 2147483647, %v2329_v29  ;;  %vm2335_vm0 = vweird.f32 %v2329_v29  ;;  %2939 = vmatpush.msra.mxu0 %v10142_v51  ;;  %v10338_v51 = vld [vmem:[%s14538_s13 + $0x170] sm:$0xff] }
 0x7df   :  { %2792 = vmatpush.msra.mxu1 %v10338_v51 }
 0x7e0   :  { %v2342_v50 = vor.u32 1.1754944e-38, %v2341_v12  ;;  %vm2340_vm4 = vcmp.eq.f32.partialorder %v2339_v54, 8.507059e+37  ;;  %2940 = vmatpush.msra.mxu0 %v10160_v52  ;;  %v10343_v52 = vld [vmem:[%s14538_s13 + $0x178] sm:$0xff] }
 0x7e1   :  { %v7396_v34 = vpop.eup %7395  ;;  %14822 = vst [vmem:[#allocation6_spill] sm:$0xff] %v10343_v52  ;;  %2812 = vmatpush.msrb.mxu2 %v10343_v52 }
 0x7e2   :  { %v2352_v31 = vadd.f32 1.0, %v7396_v34  ;;  %2941 = vmatpush.msra.mxu0 %v10178_v42  ;;  %v2377_v42 = vrot.slane %v10016_v37, 6  ;;  %v10362_v37 = vld [vmem:[%s14538_s13 + $0x160] sm:$0xff] }
 0x7e3   :  { %14823 = vst [vmem:[#allocation23_spill] sm:$0xff] %v10362_v37  ;;  %2813 = vmatpush.msrb.mxu2 %v10362_v37 }
 0x7e4   :  { %v7398_v47 = vpop.eup %7397  ;;  %7399 = vrcp.f32 %v2352_v31  ;;  %v2364_v23 = vand.u32 2147483648, %v2352_v31  ;;  %v2362_v60 = vand.u32 2147483647, %v2352_v31  ;;  %vm2358_vm7 = vweird.f32 %v2352_v31  ;;  %2942 = vmatpush.msra.mxu0 %v10195_v11 }
 0x7e5   :  { %v2331_v62 = vmul.f32 %v7398_v47, %v2329_v29  ;;  %vm2336_vm15 = vweird.f32 %v7398_v47 }
 0x7e6   :  { %vm2337_vm3 = vmor %vm2335_vm0, %vm2336_vm15  ;;  %v2365_v36 = vor.u32 1.1754944e-38, %v2364_v23  ;;  %vm2363_vm9 = vcmp.eq.f32.partialorder %v2362_v60, 8.507059e+37  ;;  %2943 = vmatpush.msra.mxu0 %v10211_v6  ;;  %v10381_v6 = vld [vmem:[%s14538_s13 + $0x148] sm:$0xff] }
 0x7e7   :  { %v2332_v61 = vsub.f32 1.0, %v2331_v62  ;;  %v2370_v62 = vrot.slane %v2368_v20, 2  ;;  %v10371_v20 = vld [vmem:[%s14538_s13 + $0x138] sm:$0xff]  ;;  %14824 = vst [vmem:[#allocation19_spill] sm:$0xff] %v10381_v6  ;;  %2814 = vmatpush.msrb.mxu2 %v10381_v6  ;;  %v10411_v60 = vld [vmem:[%s14538_s13 + $0x108] sm:$0xff] }
 0x7e8   :  { %2944 = vmatpush.msra.mxu0 %v10229_v17  ;;  %v10400_v17 = vld [vmem:[%s14538_s13 + $0x130] sm:$0xff]  ;;  %v10630_v6 = vld [vmem:[%s14538_s13 + $0x8] sm:$0xff] }
 0x7e9   :  { %v2333_v10 = vmul.f32 %v7398_v47, %v2332_v61  ;;  %14825 = vst [vmem:[#allocation12_spill] sm:$0xff] %v10400_v17  ;;  %2815 = vmatpush.msrb.mxu2 %v10400_v17  ;;  %v10611_v17 = vld [vmem:[%s14538_s13 + $0x20] sm:$0xff] }
 0x7ea   :  { %v7400_v26 = vpop.eup %7399  ;;  %2945 = vmatpush.msra.mxu0 %v10247_v21  ;;  %v10416_v21 = vld [vmem:[%s14538_s13 + $0x110] sm:$0xff] }
 0x7eb   :  { %v2334_v34 = vadd.f32 %v7398_v47, %v2333_v10  ;;  %v2354_v57 = vmul.f32 %v7400_v26, %v2352_v31  ;;  %vm2359_vm6 = vweird.f32 %v7400_v26  ;;  %v10352_v31 = vld [vmem:[%s14538_s13 + $0x150] sm:$0xff] }
 0x7ec   :  { %vm2360_vm8 = vmor %vm2358_vm7, %vm2359_vm6  ;;  %2946 = vmatpush.msra.mxu0 %v10265_v27  ;;  %v10441_v27 = vld [vmem:[%s14538_s13 + $0x100] sm:$0xff] }
 0x7ed   :  { %v2338_v3 = vsel %vm2337_vm3, %v7398_v47, %v2334_v34  ;;  %v2355_v46 = vsub.f32 1.0, %v2354_v57  ;;  %v10357_v47 = vld [vmem:[%s14538_s13 + $0x158] sm:$0xff]  ;;  %14828 = vst [vmem:[#allocation21_spill] sm:$0xff] %v10441_v27 }
 0x7ee   :  { %v2343_v7 = vsel %vm2340_vm4, %v2342_v50, %v2338_v3  ;;  %2793 = vmatpush.msra.mxu1 %v10357_v47  ;;  %2947 = vmatpush.msra.mxu0 %v10286_v30  ;;  %v10478_v30 = vld [vmem:[%s14538_s13 + $0xd0] sm:$0xff] }
 0x7ef   :  { %v2372_v61 = vmul.f32 %v2370_v62, %v2343_v7  ;;  %v2356_v33 = vmul.f32 %v7400_v26, %v2355_v46  ;;  %v10333_v46 = vld [vmem:[%s14538_s13 + $0x168] sm:$0xff]  ;;  %v10390_v62 = vld [vmem:[%s14538_s13 + $0x120] sm:$0xff]  ;;  %14830 = vst [vmem:[#allocation8_spill] sm:$0xff] %v10478_v30 }
 0x7f0   :  { %2772 = vmatpush.msrb.mxu3 %v10333_v46  ;;  %v10395_v7 = vld [vmem:[%s14538_s13 + $0x128] sm:$0xff]  ;;  %2948 = vmatpush.msra.mxu0 %v10304_v39  ;;  %v10497_v39 = vld [vmem:[%s14538_s13 + $0xb8] sm:$0xff] }
 0x7f1   :  { %v2373_v29 = vadd.f32 %v2372_v61, %v2210_v2  ;;  %v2357_v10 = vadd.f32 %v7400_v26, %v2356_v33  ;;  %v2382_v61 = vld [vmem:[#allocation3 + $0x20] sm:$0xc]  ;;  %14831 = vst [vmem:[#allocation29_spill] sm:$0xff] %v10497_v39 }
 0x7f2   :  { %2773 = vmatpush.msrb.mxu3 %v10352_v31 }
 0x7f3   :  { %7401 = vtanh.f32 %v2373_v29  ;;  %v2361_v57 = vsel %vm2360_vm8, %v7400_v26, %v2357_v10  ;;  %v10376_v26 = vld [vmem:[%s14538_s13 + $0x140] sm:$0xff]  ;;  %v10421_v29 = vld [vmem:[%s14538_s13 + $0x118] sm:$0xff] }
 0x7f4   :  { %v2366_v32 = vsel %vm2363_vm9, %v2365_v36, %v2361_v57  ;;  %2774 = vmatpush.msrb.mxu3 %v10371_v20  ;;  %2794 = vmatpush.msra.mxu1 %v10376_v26  ;;  %14827 = vst [vmem:[#allocation25_spill] sm:$0xff] %v10421_v29  ;;  %v10431_v36 = vld [vmem:[%s14538_s13 + $0xf0] sm:$0xff]  ;;  %v10436_v57 = vld [vmem:[%s14538_s13 + $0xf8] sm:$0xff] }
 0x7f5   :  { %v2375_v33 = vsub.f32 1.0, %v2366_v32  ;;  %v2379_v54 = vmul.f32 %v2377_v42, %v2366_v32  ;;  %2816 = vmatpush.msrb.mxu2 %v10421_v29  ;;  %v10449_v42 = vld [vmem:[%s14538_s13 + $0xd8] sm:$0xff] }
 0x7f6   :  { %2775 = vmatpush.msrb.mxu3 %v10390_v62  ;;  %2795 = vmatpush.msra.mxu1 %v10395_v7  ;;  %v10589_v29 = vld [vmem:[%s14538_s13 + $0x38] sm:$0xff] }
 0x7f7   :  { %2817 = vmatpush.msrb.mxu2 %v10441_v27  ;;  %v10583_v27 = vld [vmem:[%s14538_s13 + $0x30] sm:$0xff] }
 0x7f8   :  { %2776 = vmatpush.msrb.mxu3 %v10411_v60  ;;  %2796 = vmatpush.msra.mxu1 %v10416_v21 }
 0x7f9   :  { %v7402_v11 = vpop.eup %7401 }
 0x7fa   :  { %v2376_v12 = vmul.f32 %v7402_v11, %v2375_v33  ;;  %2777 = vmatpush.msrb.mxu3 %v10431_v36  ;;  %v10454_v11 = vld [vmem:[%s14538_s13 + $0xe0] sm:$0xff]  ;;  %2797 = vmatpush.msra.mxu1 %v10436_v57 }
 0x7fc   :  { %v2472_v34 = vpop.f32.mrf.mxu0  ;;  %v2380_v50 = vadd.f32 %v2379_v54, %v2376_v12  ;;  %v10459_v12 = vld [vmem:[%s14538_s13 + $0xe8] sm:$0xff]  ;;  %v2381_v54 = vld [vmem:[#allocation3 + $0x28] sm:$0xc]  ;;  %2778 = vmatpush.msrb.mxu3 %v10449_v42  ;;  %2798 = vmatpush.msra.mxu1 %v10454_v11 }
 0x7fd   :  { %v2519_v3 = vrot.slane %v2472_v34, 6  ;;  %14829 = vst [vmem:[#allocation14_spill] sm:$0xff] %v10459_v12  ;;  %2818 = vmatpush.msrb.mxu2 %v10459_v12  ;;  %v10568_v12 = vld [vmem:[%s14538_s13 + $0x50] sm:$0xff] }
 0x7fe   :  { %2554 = vst [vmem:[#allocation4 + $0x8] sm:$0xc0] %v2380_v50  ;;  %v10403_v23 = vrot.slane %v2380_v50, 6  ;;  %v10468_v50 = vld [vmem:[%s14538_s13 + $0xc0] sm:$0xff] }
 0x7ff   :  { %v2521_v2 = vadd.f32 %v2519_v3, %v2382_v61  ;;  %v10473_v3 = vld [vmem:[%s14538_s13 + $0xc8] sm:$0xff]  ;;  %2779 = vmatpush.msrb.mxu3 %v10468_v50  ;;  %2819 = vmatpush.msrb.mxu2 %v10478_v30 }
 0x800   :  { %14826 = vst [vmem:[#allocation7_spill] sm:$0xff] %v10403_v23  ;;  %2626 = vmatmul.f32.vlgmr.msrb.gmra.mxu1 %v10403_v23  ;;  %2646 = vmatmul.f32.vlgmr.msra.gmra.mxu2 %v10403_v23 }
 0x801   :  { %v7232_v10 = vmul.f32 -1.442695, %v2521_v2  ;;  %2666 = vmatmul.f32.vlgmr.msrb.gmra.mxu0 %v10403_v23  ;;  %v10487_v2 = vld [vmem:[%s14538_s13 + $0xa8] sm:$0xff]  ;;  %2799 = vmatpush.msra.mxu1 %v10473_v3  ;;  %v2737_v23 = vld [vmem:[%s14538_s13 + $0x80] sm:$0xff] }
 0x802   :  { %v2452_v32 = vpop.f32.mrf.mxu2  ;;  %3124 = vmatpush.msrb.mxu0 %v10338_v51  ;;  %2780 = vmatpush.msrb.mxu3 %v10487_v2  ;;  %v10516_v51 = vld [vmem:[%s14538_s13 + $0xa0] sm:$0xff] }
 0x803   :  { %7403 = vpow2.f32 %v7232_v10  ;;  %v2496_v33 = vrot.slane %v2452_v32, 6  ;;  %v10492_v10 = vld [vmem:[%s14538_s13 + $0xb0] sm:$0xff]  ;;  %14832 = vst [vmem:[#allocation16_spill] sm:$0xff] %v10516_v51  ;;  %2820 = vmatpush.msrb.mxu2 %v10497_v39  ;;  %v10550_v39 = vld [vmem:[%s14538_s13 + $0x68] sm:$0xff]  ;;  %v2492_v52 = vpop.f32.mrf.mxu3 }
 0x804   :  { %3125 = vmatpush.msrb.mxu0 %v10357_v47  ;;  %2800 = vmatpush.msra.mxu1 %v10492_v10  ;;  %v10535_v47 = vld [vmem:[%s14538_s13 + $0x88] sm:$0xff] }
 0x805   :  { %v2498_v34 = vadd.f32 %v2496_v33, %v2381_v54  ;;  %v10506_v33 = vld [vmem:[%s14538_s13 + $0x90] sm:$0xff]  ;;  %v10511_v54 = vld [vmem:[%s14538_s13 + $0x98] sm:$0xff]  ;;  %14833 = vst [vmem:[#allocation9_spill] sm:$0xff] %v10535_v47  ;;  %2821 = vmatpush.msrb.mxu2 %v10516_v51  ;;  %v10562_v51 = vld [vmem:[%s14538_s13 + $0x48] sm:$0xff] }
 0x806   :  { %2781 = vmatpush.msrb.mxu3 %v10506_v33  ;;  %3126 = vmatpush.msrb.mxu0 %v10376_v26  ;;  %v10555_v26 = vld [vmem:[%s14538_s13 + $0x70] sm:$0xff] }
 0x807   :  { %v7231_v61 = vmul.f32 -1.442695, %v2498_v34  ;;  %2801 = vmatpush.msra.mxu1 %v10511_v54  ;;  %14834 = vst [vmem:[#allocation18_spill] sm:$0xff] %v10555_v26  ;;  %2822 = vmatpush.msrb.mxu2 %v10535_v47 }
 0x808   :  { %3127 = vmatpush.msrb.mxu0 %v10395_v7  ;;  %v10573_v7 = vld [vmem:[%s14538_s13 + $0x58] sm:$0xff] }
 0x809   :  { %v7404_v32 = vpop.eup %7403  ;;  %7405 = vpow2.f32 %v7231_v61  ;;  %v10527_v61 = vld [vmem:[%s14538_s13 + $0x78] sm:$0xff]  ;;  %2802 = vmatpush.msra.mxu1 %v2737_v23  ;;  %14835 = vst [vmem:[#allocation10_spill] sm:$0xff] %v10573_v7  ;;  %2823 = vmatpush.msrb.mxu2 %v10555_v26 }
 0x80a   :  { %v10519_v34 = vadd.f32 1.0, %v7404_v32  ;;  %2782 = vmatpush.msrb.mxu3 %v10527_v61  ;;  %v10545_v32 = vld [vmem:[%s14538_s13 + $0x60] sm:$0xff]  ;;  %3128 = vmatpush.msrb.mxu0 %v10416_v21 }
 0x80b   :  { %2803 = vmatpush.msra.mxu1 %v10550_v39  ;;  %v10594_v21 = vld [vmem:[%s14538_s13 + $0x40] sm:$0xff]  ;;  %2824 = vmatpush.msrb.mxu2 %v10573_v7 }
 0x80c   :  { %7407 = vrcp.f32 %v10519_v34  ;;  %2783 = vmatpush.msrb.mxu3 %v10545_v32  ;;  %14836 = vst [vmem:[#allocation20_spill] sm:$0xff] %v10594_v21  ;;  %3129 = vmatpush.msrb.mxu0 %v10436_v57  ;;  %v10616_v57 = vld [vmem:[%s14538_s13 + $0x28] sm:$0xff]  ;;  %v10624_v7 = vld [vmem:[%s14538_s13] sm:$0xff]  ;;  %vm2531_vm15 = vweird.f32 %v10519_v34 }
 0x80d   :  { %2804 = vmatpush.msra.mxu1 %v10568_v12  ;;  %14838 = vst [vmem:[#allocation22_spill] sm:$0xff] %v10616_v57  ;;  %2825 = vmatpush.msrb.mxu2 %v10594_v21 }
 0x80e   :  { %2784 = vmatpush.msrb.mxu3 %v10562_v51  ;;  %3130 = vmatpush.msrb.mxu0 %v10454_v11  ;;  %v10635_v11 = vld [vmem:[%s14538_s13 + $0x10] sm:$0xff] }
 0x80f   :  { %v7406_v30 = vpop.eup %7405  ;;  %2805 = vmatpush.msra.mxu1 %v10589_v29  ;;  %14839 = vst [vmem:[#allocation26_spill] sm:$0xff] %v10635_v11  ;;  %2826 = vmatpush.msrb.mxu2 %v10616_v57 }
 0x810   :  { %v10576_v47 = vadd.f32 1.0, %v7406_v30  ;;  %v10603_v30 = vld [vmem:[%s14538_s13 + $0x18] sm:$0xff]  ;;  %2785 = vmatpush.msrb.mxu3 %v10583_v27  ;;  %3131 = vmatpush.msrb.mxu0 %v10473_v3 }
 0x811   :  { %14837 = vst [vmem:[#allocation11_spill] sm:$0xff] %v10603_v30  ;;  %2806 = vmatpush.msra.mxu1 %v10611_v17  ;;  %2827 = vmatpush.msrb.mxu2 %v10635_v11 }
 0x812   :  { %7409 = vrcp.f32 %v10576_v47  ;;  %v10605_v26 = vpop.eup %7407  ;;  %2786 = vmatpush.msrb.mxu3 %v10603_v30  ;;  %3132 = vmatpush.msrb.mxu0 %v10492_v10  ;;  %v2514_v10 = vand.u32 2147483648, %v10576_v47  ;;  %vm2508_vm11 = vweird.f32 %v10576_v47 }
 0x813   :  { %v2527_v21 = vmul.f32 %v10605_v26, %v10519_v34  ;;  %2807 = vmatpush.msra.mxu1 %v10630_v6  ;;  %3104 = vmatpush.msra.mxu2 %v10333_v46  ;;  %vm2532_vm14 = vweird.f32 %v10605_v26 }
 0x814   :  { %2787 = vmatpush.msrb.mxu3 %v10624_v7  ;;  %3133 = vmatpush.msrb.mxu0 %v10511_v54  ;;  %vm2533_vm0 = vmor %vm2531_vm15, %vm2532_vm14 }
 0x815   :  { %2973 = vmatpush.msrb.mxu1 %v10044_v55  ;;  %v2528_v3 = vsub.f32 1.0, %v2527_v21  ;;  %3105 = vmatpush.msra.mxu2 %v10352_v31  ;;  %v2541_v55 = vadd.f32 %v10023_v15, %v2492_v52 }
 0x816   :  { %2953 = vmatpush.msra.mxu3 %v10039_v48  ;;  %3134 = vmatpush.msrb.mxu0 %v2737_v23  ;;  %v2512_v48 = vand.u32 2147483647, %v10576_v47  ;;  %v14855_v23 = vld [vmem:[#allocation18_spill] sm:$0xff] }
 0x817   :  { %2974 = vmatpush.msrb.mxu1 %v10062_v59  ;;  %v2529_v46 = vmul.f32 %v10605_v26, %v2528_v3  ;;  %3106 = vmatpush.msra.mxu2 %v10371_v20  ;;  %v2515_v59 = vor.u32 1.1754944e-38, %v2514_v10  ;;  %v14851_v20 = vld [vmem:[#allocation8_spill] sm:$0xff] }
 0x818   :  { %v7410_v37 = vpop.eup %7409  ;;  %2954 = vmatpush.msra.mxu3 %v10057_v63  ;;  %3135 = vmatpush.msrb.mxu0 %v10550_v39  ;;  %vm2513_vm13 = vcmp.eq.f32.partialorder %v2512_v48, 8.507059e+37  ;;  %v2557_v39 = vld [vmem:[#allocation2 + $0x50] sm:$0x3] }
 0x819   :  { %v2504_v30 = vmul.f32 %v7410_v37, %v10576_v47  ;;  %vm2509_vm10 = vweird.f32 %v7410_v37  ;;  %2975 = vmatpush.msrb.mxu1 %v10080_v56  ;;  %3107 = vmatpush.msra.mxu2 %v10390_v62  ;;  %v14853_v62 = vld [vmem:[#allocation16_spill] sm:$0xff] }
 0x81a   :  { %2955 = vmatpush.msra.mxu3 %v10075_v8  ;;  %vm2510_vm12 = vmor %vm2508_vm11, %vm2509_vm10  ;;  %3136 = vmatpush.msrb.mxu0 %v10568_v12  ;;  %v2543_v8 = vrot.slane %v2541_v55, 6 }
 0x81b   :  { %v2505_v57 = vsub.f32 1.0, %v2504_v30  ;;  %2976 = vmatpush.msrb.mxu1 %v10098_v13  ;;  %3108 = vmatpush.msra.mxu2 %v10411_v60  ;;  %v2537_v13 = vand.u32 2147483648, %v10519_v34  ;;  %v14856_v60 = vld [vmem:[#allocation10_spill] sm:$0xff] }
 0x81c   :  { %2956 = vmatpush.msra.mxu3 %v10093_v1  ;;  %v2530_v1 = vadd.f32 %v10605_v26, %v2529_v46  ;;  %3137 = vmatpush.msrb.mxu0 %v10589_v29  ;;  %v14857_v29 = vld [vmem:[#allocation20_spill] sm:$0xff] }
 0x81d   :  { %v2506_v11 = vmul.f32 %v7410_v37, %v2505_v57  ;;  %2977 = vmatpush.msrb.mxu1 %v10116_v19  ;;  %v2383_v19 = vld [vmem:[#allocation3 + $0x68] sm:$0xc]  ;;  %3109 = vmatpush.msra.mxu2 %v10431_v36 }
 0x81e   :  { %2957 = vmatpush.msra.mxu3 %v10111_v28  ;;  %v2535_v28 = vand.u32 2147483647, %v10519_v34  ;;  %3138 = vmatpush.msrb.mxu0 %v10611_v17  ;;  %v14854_v17 = vld [vmem:[#allocation9_spill] sm:$0xff]  ;;  %v14858_v36 = vld [vmem:[#allocation22_spill] sm:$0xff] }
 0x81f   :  { %v2507_v63 = vadd.f32 %v7410_v37, %v2506_v11  ;;  %2978 = vmatpush.msrb.mxu1 %v10134_v9  ;;  %3110 = vmatpush.msra.mxu2 %v10449_v42  ;;  %v2556_v42 = vld [vmem:[#allocation2 + $0x18] sm:$0x3] }
 0x820   :  { %2958 = vmatpush.msra.mxu3 %v10129_v0  ;;  %3139 = vmatpush.msrb.mxu0 %v10630_v6  ;;  %v2538_v0 = vor.u32 1.1754944e-38, %v2537_v13  ;;  %vm2536_vm3 = vcmp.eq.f32.partialorder %v2535_v28, 8.507059e+37  ;;  %v14852_v6 = vld [vmem:[#allocation29_spill] sm:$0xff]  ;;  %v2558_v28 = vld [vmem:[#allocation2 + $0x68] sm:$0x3] }
 0x821   :  { %v2511_v15 = vsel %vm2510_vm12, %v7410_v37, %v2507_v63  ;;  %2979 = vmatpush.msrb.mxu1 %v10152_v53  ;;  %v2534_v37 = vsel %vm2533_vm0, %v10605_v26, %v2530_v1  ;;  %3111 = vmatpush.msra.mxu2 %v10468_v50  ;;  %v2550_v53 = vrot.slane %v10027_v40, 2 }
 0x822   :  { %v2516_v56 = vsel %vm2513_vm13, %v2515_v59, %v2511_v15  ;;  %2959 = vmatpush.msra.mxu3 %v10147_v22  ;;  %v2539_v9 = vsel %vm2536_vm3, %v2538_v0, %v2534_v37  ;;  %v10737_v59 = vld [vmem:[%s14539_s14] ss:$0 sm:$0xff] }
 0x823   :  { %v2545_v52 = vmul.f32 %v2543_v8, %v2516_v56  ;;  %2980 = vmatpush.msrb.mxu1 %v10170_v58  ;;  %3112 = vmatpush.msra.mxu2 %v10487_v2  ;;  %v2548_v22 = vsub.f32 1.0, %v2539_v9 }
 0x824   :  { %2960 = vmatpush.msra.mxu3 %v10165_v35 }
 0x825   :  { %v2546_v31 = vadd.f32 %v2545_v52, %v2383_v19  ;;  %2981 = vmatpush.msrb.mxu1 %v10188_v4  ;;  %3113 = vmatpush.msra.mxu2 %v10506_v33 }
 0x826   :  { %2961 = vmatpush.msra.mxu3 %v10183_v45  ;;  %v2552_v45 = vmul.f32 %v2550_v53, %v2539_v9 }
 0x827   :  { %7411 = vtanh.f32 %v2546_v31  ;;  %2982 = vmatpush.msrb.mxu1 %v10205_v43  ;;  %3114 = vmatpush.msra.mxu2 %v10527_v61  ;;  %v14841_v43 = vld [vmem:[#allocation32_spill] sm:$0xff] }
 0x828   :  { %2962 = vmatpush.msra.mxu3 %v10200_v44  ;;  %v14840_v44 = vld [vmem:[#allocation30_spill] sm:$0xff] }
 0x829   :  { %2983 = vmatpush.msrb.mxu1 %v10223_v49  ;;  %3115 = vmatpush.msra.mxu2 %v10545_v32  ;;  %v14843_v49 = vld [vmem:[#allocation6_spill] sm:$0xff] }
 0x82a   :  { %2963 = vmatpush.msra.mxu3 %v10216_v16  ;;  %v14842_v16 = vld [vmem:[#allocation17_spill] sm:$0xff] }
 0x82b   :  { %2984 = vmatpush.msrb.mxu1 %v10241_v18  ;;  %3116 = vmatpush.msra.mxu2 %v10562_v51  ;;  %v14845_v18 = vld [vmem:[#allocation23_spill] sm:$0xff] }
 0x82c   :  { %2964 = vmatpush.msra.mxu3 %v10234_v38  ;;  %v14844_v38 = vld [vmem:[#allocation11_spill] sm:$0xff] }
 0x82d   :  { %v7412_v35 = vpop.eup %7411  ;;  %2985 = vmatpush.msrb.mxu1 %v10259_v24  ;;  %3117 = vmatpush.msra.mxu2 %v10583_v27  ;;  %v14847_v24 = vld [vmem:[#allocation12_spill] sm:$0xff]  ;;  %v14859_v27 = vld [vmem:[#allocation26_spill] sm:$0xff] }
 0x82e   :  { %v2549_v58 = vmul.f32 %v7412_v35, %v2548_v22  ;;  %2965 = vmatpush.msra.mxu3 %v10252_v5  ;;  %v14846_v5 = vld [vmem:[#allocation19_spill] sm:$0xff] }
 0x82f   :  { %2986 = vmatpush.msrb.mxu1 %v10277_v25  ;;  %3118 = vmatpush.msra.mxu2 %v14844_v38  ;;  %v14849_v25 = vld [vmem:[#allocation21_spill] sm:$0xff] }
 0x830   :  { %v2553_v4 = vadd.f32 %v2552_v45, %v2549_v58  ;;  %2966 = vmatpush.msra.mxu3 %v10270_v41  ;;  %v14848_v41 = vld [vmem:[#allocation25_spill] sm:$0xff]  ;;  %v14860_v45 = vld [vmem:[#allocation7_spill] sm:$0xff] }
 0x831   :  { %2987 = vmatpush.msrb.mxu1 %v14840_v44  ;;  %3119 = vmatpush.msra.mxu2 %v10624_v7 }
 0x832   :  { %2555 = vst [vmem:[#allocation5 + $0x18] sm:$0xc] %v2553_v4  ;;  %v10703_v40 = vrot.slane %v2553_v4, 2  ;;  %2967 = vmatpush.msra.mxu3 %v10291_v14  ;;  %v14850_v14 = vld [vmem:[#allocation14_spill] sm:$0xff] }
 0x833   :  { %2988 = vmatpush.msrb.mxu1 %v14842_v16 }
 0x834   :  { %2788 = vmatmul.f32.vlgmr.msrb.gmra.mxu3 %v10703_v40  ;;  %2808 = vmatmul.f32.vlgmr.msra.gmra.mxu1 %v10703_v40 }
 0x835   :  { %2828 = vmatmul.f32.vlgmr.msrb.gmra.mxu2 %v10703_v40  ;;  %2968 = vmatpush.msra.mxu3 %v14841_v43  ;;  %v2719_v43 = vld [vmem:[#allocation3 + $0x20] sm:$0x3] }
 0x837   :  { %3144 = vmatpush.msrb.mxu3 %v14843_v49 }
 0x839   :  { %3145 = vmatpush.msrb.mxu3 %v14845_v18  ;;  %v2718_v18 = vld [vmem:[#allocation3 + $0x28] sm:$0x3] }
 0x83b   :  { %3146 = vmatpush.msrb.mxu3 %v14846_v5 }
 0x83d   :  { %3147 = vmatpush.msrb.mxu3 %v14847_v24 }
 0x83f   :  { %3148 = vmatpush.msrb.mxu3 %v14848_v41 }
 0x841   :  { %3149 = vmatpush.msrb.mxu3 %v14849_v25 }
 0x843   :  { %3150 = vmatpush.msrb.mxu3 %v14850_v14 }
 0x845   :  { %3151 = vmatpush.msrb.mxu3 %v14851_v20 }
 0x847   :  { %3152 = vmatpush.msrb.mxu3 %v14852_v6 }
 0x849   :  { %3153 = vmatpush.msrb.mxu3 %v14853_v62 }
 0x84b   :  { %3154 = vmatpush.msrb.mxu3 %v14854_v17 }
 0x84d   :  { %3155 = vmatpush.msrb.mxu3 %v14855_v23 }
 0x84f   :  { %3156 = vmatpush.msrb.mxu3 %v14856_v60 }
 0x851   :  { %3157 = vmatpush.msrb.mxu3 %v14857_v29 }
 0x853   :  { %3158 = vmatpush.msrb.mxu3 %v14858_v36 }
 0x855   :  { %3159 = vmatpush.msrb.mxu3 %v14859_v27 }
 0x87d   :  { %v2627_v12 = vpop.f32.mrf.mxu1 }
 0x87e   :  { %v2670_v50 = vadd.f32 %v2627_v12, %v2556_v42  ;;  %v2667_v10 = vpop.f32.mrf.mxu0 }
 0x87f   :  { %v2710_v15 = vadd.f32 %v10737_v59, %v2667_v10 }
 0x880   :  { %v7233_v2 = vmul.f32 -1.442695, %v2670_v50 }
 0x882   :  { %7413 = vpow2.f32 %v7233_v2 }
 0x883   :  { %v2647_v33 = vpop.f32.mrf.mxu2 }
 0x884   :  { %v2690_v54 = vadd.f32 %v2647_v33, %v2557_v39 }
 0x886   :  { %v7234_v51 = vmul.f32 -1.442695, %v2690_v54 }
 0x888   :  { %v7414_v34 = vpop.eup %7413  ;;  %7415 = vpow2.f32 %v7234_v51  ;;  %v10750_v51 = vld [vmem:[%s14540_s15] ss:$0 sm:$0xff] }
 0x889   :  { %v2674_v61 = vadd.f32 1.0, %v7414_v34 }
 0x88b   :  { %7417 = vrcp.f32 %v2674_v61  ;;  %v2686_v30 = vand.u32 2147483648, %v2674_v61  ;;  %v2684_v11 = vand.u32 2147483647, %v2674_v61  ;;  %vm2680_vm6 = vweird.f32 %v2674_v61 }
 0x88d   :  { %v2687_v46 = vor.u32 1.1754944e-38, %v2686_v30  ;;  %vm2685_vm8 = vcmp.eq.f32.partialorder %v2684_v11, 8.507059e+37 }
 0x88e   :  { %v7416_v47 = vpop.eup %7415 }
 0x88f   :  { %v2694_v32 = vadd.f32 1.0, %v7416_v47 }
 0x891   :  { %v7418_v26 = vpop.eup %7417  ;;  %7419 = vrcp.f32 %v2694_v32  ;;  %v2706_v52 = vand.u32 2147483648, %v2694_v32  ;;  %v2704_v19 = vand.u32 2147483647, %v2694_v32  ;;  %vm2700_vm10 = vweird.f32 %v2694_v32 }
 0x892   :  { %v2676_v7 = vmul.f32 %v7418_v26, %v2674_v61  ;;  %vm2681_vm4 = vweird.f32 %v7418_v26 }
 0x893   :  { %vm2682_vm7 = vmor %vm2680_vm6, %vm2681_vm4  ;;  %v2707_v0 = vor.u32 1.1754944e-38, %v2706_v52  ;;  %vm2705_vm12 = vcmp.eq.f32.partialorder %v2704_v19, 8.507059e+37  ;;  %v10799_v52 = vld [vmem:[%s14537_s12 + $0x138] sm:$0xff]  ;;  %v10809_v19 = vld [vmem:[%s14537_s12 + $0x148] sm:$0xff] }
 0x894   :  { %v2677_v21 = vsub.f32 1.0, %v2676_v7 }
 0x896   :  { %v2678_v57 = vmul.f32 %v7418_v26, %v2677_v21  ;;  %v2720_v21 = vld [vmem:[#allocation3 + $0x68] sm:$0x3] }
 0x897   :  { %v7420_v3 = vpop.eup %7419 }
 0x898   :  { %v2679_v48 = vadd.f32 %v7418_v26, %v2678_v57  ;;  %v2696_v55 = vmul.f32 %v7420_v3, %v2694_v32  ;;  %vm2701_vm9 = vweird.f32 %v7420_v3 }
 0x899   :  { %vm2702_vm11 = vmor %vm2700_vm10, %vm2701_vm9 }
 0x89a   :  { %v2683_v63 = vsel %vm2682_vm7, %v7418_v26, %v2679_v48  ;;  %v2697_v8 = vsub.f32 1.0, %v2696_v55 }
 0x89b   :  { %v2688_v56 = vsel %vm2685_vm8, %v2687_v46, %v2683_v63 }
 0x89c   :  { %v2711_v1 = vmul.f32 %v2710_v15, %v2688_v56  ;;  %v2698_v13 = vmul.f32 %v7420_v3, %v2697_v8  ;;  %v10763_v15 = vld [vmem:[%s14537_s12 + $0x168] sm:$0xff]  ;;  %v10768_v8 = vld [vmem:[%s14537_s12 + $0x170] sm:$0xff] }
 0x89d   :  { %3280 = vmatpush.msra.mxu1 %v10763_v15  ;;  %3300 = vmatpush.msrb.mxu2 %v10768_v8  ;;  %v10781_v56 = vld [vmem:[%s14537_s12 + $0x150] sm:$0xff] }
 0x89e   :  { %v2712_v31 = vadd.f32 %v2711_v1, %v2558_v28  ;;  %v2699_v37 = vadd.f32 %v7420_v3, %v2698_v13  ;;  %v10786_v1 = vld [vmem:[%s14537_s12 + $0x158] sm:$0xff]  ;;  %v10791_v13 = vld [vmem:[%s14537_s12 + $0x160] sm:$0xff] }
 0x89f   :  { %3281 = vmatpush.msra.mxu1 %v10781_v56  ;;  %3301 = vmatpush.msrb.mxu2 %v10786_v1  ;;  %v10804_v28 = vld [vmem:[%s14537_s12 + $0x140] sm:$0xff] }
 0x8a0   :  { %7421 = vtanh.f32 %v2712_v31  ;;  %v2703_v9 = vsel %vm2702_vm11, %v7420_v3, %v2699_v37  ;;  %v10817_v31 = vld [vmem:[%s14537_s12 + $0x120] sm:$0xff]  ;;  %v10822_v37 = vld [vmem:[%s14537_s12 + $0x128] sm:$0xff] }
 0x8a1   :  { %v2708_v22 = vsel %vm2705_vm12, %v2707_v0, %v2703_v9  ;;  %3282 = vmatpush.msra.mxu1 %v10799_v52  ;;  %3302 = vmatpush.msrb.mxu2 %v10804_v28  ;;  %v10827_v0 = vld [vmem:[%s14537_s12 + $0x130] sm:$0xff]  ;;  %v10835_v9 = vld [vmem:[%s14537_s12 + $0x108] sm:$0xff] }
 0x8a2   :  { %v2714_v53 = vsub.f32 1.0, %v2708_v22  ;;  %v2716_v4 = vmul.f32 %v2708_v22, %v14860_v45  ;;  %v10840_v22 = vld [vmem:[%s14537_s12 + $0x110] sm:$0xff]  ;;  %v10863_v45 = vld [vmem:[%s14537_s12 + $0x100] sm:$0xff] }
 0x8a3   :  { %3283 = vmatpush.msra.mxu1 %v10817_v31  ;;  %3303 = vmatpush.msrb.mxu2 %v10822_v37 }
 0x8a5   :  { %3284 = vmatpush.msra.mxu1 %v10835_v9  ;;  %3304 = vmatpush.msrb.mxu2 %v10840_v22 }
 0x8a6   :  { %v7422_v35 = vpop.eup %7421 }
 0x8a7   :  { %v2715_v58 = vmul.f32 %v7422_v35, %v2714_v53  ;;  %v10845_v53 = vld [vmem:[%s14537_s12 + $0x118] sm:$0xff]  ;;  %v10853_v35 = vld [vmem:[%s14537_s12 + $0xf0] sm:$0xff] }
 0x8a8   :  { %3285 = vmatpush.msra.mxu1 %v10853_v35 }
 0x8a9   :  { %v10741_v44 = vadd.f32 %v2716_v4, %v2715_v58  ;;  %v10858_v58 = vld [vmem:[%s14537_s12 + $0xf8] sm:$0xff] }
 0x8aa   :  { %3305 = vmatpush.msrb.mxu2 %v10858_v58 }
 0x8ab   :  { %2880 = vst [vmem:[#allocation4] sm:$0x3] %v10741_v44  ;;  %2949 = vmatmul.f32.vlgmr.msra.gmra.mxu0 %v10741_v44  ;;  %2969 = vmatmul.f32.vlgmr.msra.gmra.mxu3 %v10741_v44 }
 0x8ac   :  { %2989 = vmatmul.f32.vlgmr.msrb.gmra.mxu1 %v10741_v44 }
 0x8b1   :  { %v2809_v16 = vpop.f32.mrf.mxu1 }
 0x8b2   :  { %v2852_v49 = vadd.f32 %v2809_v16, %v2719_v43  ;;  %v10871_v16 = vld [vmem:[%s14537_s12 + $0xd8] sm:$0xff] }
 0x8b3   :  { %3286 = vmatpush.msra.mxu1 %v10871_v16 }
 0x8b4   :  { %v7236_v38 = vmul.f32 -1.442695, %v2852_v49  ;;  %v10876_v49 = vld [vmem:[%s14537_s12 + $0xe0] sm:$0xff] }
 0x8b5   :  { %3306 = vmatpush.msrb.mxu2 %v10876_v49 }
 0x8b6   :  { %7423 = vpow2.f32 %v7236_v38  ;;  %v10881_v38 = vld [vmem:[%s14537_s12 + $0xe8] sm:$0xff] }
 0x8b7   :  { %v2789_v5 = vpop.f32.mrf.mxu3 }
 0x8b8   :  { %v2832_v24 = vadd.f32 %v2789_v5, %v2718_v18  ;;  %v2829_v2 = vpop.f32.mrf.mxu2  ;;  %v2882_v18 = vld [vmem:[#allocation2 + $0x18] sm:$0xc] }
 0x8b9   :  { %v2872_v34 = vadd.f32 %v10750_v51, %v2829_v2 }
 0x8ba   :  { %v7235_v41 = vmul.f32 -1.442695, %v2832_v24  ;;  %v10889_v24 = vld [vmem:[%s14537_s12 + $0xc0] sm:$0xff] }
 0x8bb   :  { %3287 = vmatpush.msra.mxu1 %v10889_v24 }
 0x8bc   :  { %v7424_v25 = vpop.eup %7423  ;;  %7425 = vpow2.f32 %v7235_v41  ;;  %v10894_v41 = vld [vmem:[%s14537_s12 + $0xc8] sm:$0xff] }
 0x8bd   :  { %v2856_v14 = vadd.f32 1.0, %v7424_v25  ;;  %v10899_v25 = vld [vmem:[%s14537_s12 + $0xd0] sm:$0xff]  ;;  %3307 = vmatpush.msrb.mxu2 %v10894_v41 }
 0x8bf   :  { %7427 = vrcp.f32 %v2856_v14  ;;  %v2868_v32 = vand.u32 2147483648, %v2856_v14  ;;  %vm2862_vm4 = vweird.f32 %v2856_v14  ;;  %v2866_v7 = vand.u32 2147483647, %v2856_v14 }
 0x8c1   :  { %v2869_v11 = vor.u32 1.1754944e-38, %v2868_v32  ;;  %vm2867_vm7 = vcmp.eq.f32.partialorder %v2866_v7, 8.507059e+37  ;;  %v10988_v32 = vld [vmem:[%s14537_s12 + $0x58] sm:$0xff]  ;;  %v10994_v7 = vld [vmem:[%s14537_s12 + $0x30] sm:$0xff] }
 0x8c2   :  { %v7426_v20 = vpop.eup %7425 }
 0x8c3   :  { %v2836_v6 = vadd.f32 1.0, %v7426_v20  ;;  %v10907_v20 = vld [vmem:[%s14537_s12 + $0xa8] sm:$0xff] }
 0x8c4   :  { %3288 = vmatpush.msra.mxu1 %v10907_v20 }
 0x8c5   :  { %7429 = vrcp.f32 %v2836_v6  ;;  %v7428_v62 = vpop.eup %7427  ;;  %v2848_v27 = vand.u32 2147483648, %v2836_v6  ;;  %v2846_v12 = vand.u32 2147483647, %v2836_v6  ;;  %vm2842_vm14 = vweird.f32 %v2836_v6 }
 0x8c6   :  { %v2858_v17 = vmul.f32 %v7428_v62, %v2856_v14  ;;  %vm2863_vm3 = vweird.f32 %v7428_v62 }
 0x8c7   :  { %v2849_v33 = vor.u32 1.1754944e-38, %v2848_v27  ;;  %vm2847_vm0 = vcmp.eq.f32.partialorder %v2846_v12, 8.507059e+37  ;;  %vm2864_vm6 = vmor %vm2862_vm4, %vm2863_vm3  ;;  %v10940_v27 = vld [vmem:[%s14537_s12 + $0x78] sm:$0xff]  ;;  %v2883_v12 = vld [vmem:[#allocation2 + $0x50] sm:$0xc] }
 0x8c8   :  { %v2859_v29 = vsub.f32 1.0, %v2858_v17 }
 0x8ca   :  { %v2860_v50 = vmul.f32 %v7428_v62, %v2859_v29  ;;  %v10934_v29 = vld [vmem:[%s14537_s12 + $0xa0] sm:$0xff] }
 0x8cb   :  { %v7430_v23 = vpop.eup %7429 }
 0x8cc   :  { %v2838_v60 = vmul.f32 %v7430_v23, %v2836_v6  ;;  %vm2843_vm13 = vweird.f32 %v7430_v23  ;;  %v2861_v61 = vadd.f32 %v7428_v62, %v2860_v50  ;;  %v10912_v6 = vld [vmem:[%s14537_s12 + $0xb0] sm:$0xff]  ;;  %v10952_v50 = vld [vmem:[%s14537_s12 + $0x88] sm:$0xff] }
 0x8cd   :  { %vm2844_vm15 = vmor %vm2842_vm14, %vm2843_vm13  ;;  %3308 = vmatpush.msrb.mxu2 %v10912_v6 }
 0x8ce   :  { %v2839_v36 = vsub.f32 1.0, %v2838_v60  ;;  %v2865_v57 = vsel %vm2864_vm6, %v7428_v62, %v2861_v61  ;;  %v10917_v62 = vld [vmem:[%s14537_s12 + $0xb8] sm:$0xff]  ;;  %v10976_v61 = vld [vmem:[%s14537_s12 + $0x48] sm:$0xff] }
 0x8cf   :  { %v2870_v3 = vsel %vm2867_vm7, %v2869_v11, %v2865_v57  ;;  %v10929_v60 = vld [vmem:[%s14537_s12 + $0x98] sm:$0xff]  ;;  %v11006_v57 = vld [vmem:[%s14537_s12 + $0x40] sm:$0xff] }
 0x8d0   :  { %v2840_v42 = vmul.f32 %v7430_v23, %v2839_v36  ;;  %v2876_v10 = vsub.f32 1.0, %v2870_v3  ;;  %v2878_v46 = vmul.f32 %v2870_v3, %v10703_v40  ;;  %v10773_v40 = vld [vmem:[%s14537_s12 + $0x178] sm:$0xff]  ;;  %3309 = vmatpush.msrb.mxu2 %v10929_v60  ;;  %v11017_v3 = vld [vmem:[%s14537_s12 + $0x20] sm:$0xff] }
 0x8d1   :  { %3320 = vmatpush.msra.mxu0 %v10773_v40  ;;  %v11012_v11 = vld [vmem:[%s14537_s12 + $0x18] sm:$0xff] }
 0x8d2   :  { %v2841_v39 = vadd.f32 %v7430_v23, %v2840_v42  ;;  %v10945_v42 = vld [vmem:[%s14537_s12 + $0x80] sm:$0xff] }
 0x8d3   :  { %3321 = vmatpush.msra.mxu0 %v10791_v13  ;;  %3310 = vmatpush.msrb.mxu2 %v10945_v42 }
 0x8d4   :  { %v2845_v54 = vsel %vm2844_vm15, %v7430_v23, %v2841_v39  ;;  %v10924_v23 = vld [vmem:[%s14537_s12 + $0x90] sm:$0xff]  ;;  %v10958_v39 = vld [vmem:[%s14537_s12 + $0x60] sm:$0xff] }
 0x8d5   :  { %v2850_v47 = vsel %vm2847_vm0, %v2849_v33, %v2845_v54  ;;  %3322 = vmatpush.msra.mxu0 %v10809_v19  ;;  %3289 = vmatpush.msra.mxu1 %v10924_v23  ;;  %v10963_v33 = vld [vmem:[%s14537_s12 + $0x68] sm:$0xff]  ;;  %v10970_v54 = vld [vmem:[%s14537_s12 + $0x70] sm:$0xff] }
 0x8d6   :  { %v2873_v26 = vmul.f32 %v2872_v34, %v2850_v47  ;;  %v10981_v47 = vld [vmem:[%s14537_s12 + $0x50] sm:$0xff]  ;;  %3311 = vmatpush.msrb.mxu2 %v10963_v33 }
 0x8d7   :  { %3323 = vmatpush.msra.mxu0 %v10827_v0  ;;  %3290 = vmatpush.msra.mxu1 %v10940_v27 }
 0x8d8   :  { %v2874_v30 = vadd.f32 %v2873_v26, %v2720_v21  ;;  %v10999_v21 = vld [vmem:[%s14537_s12 + $0x38] sm:$0xff]  ;;  %3312 = vmatpush.msrb.mxu2 %v10981_v47 }
 0x8d9   :  { %3324 = vmatpush.msra.mxu0 %v10845_v53  ;;  %3291 = vmatpush.msra.mxu1 %v10958_v39 }
 0x8da   :  { %7431 = vtanh.f32 %v2874_v30  ;;  %3313 = vmatpush.msrb.mxu2 %v10999_v21 }
 0x8db   :  { %3325 = vmatpush.msra.mxu0 %v10863_v45  ;;  %3292 = vmatpush.msra.mxu1 %v10976_v61 }
 0x8dc   :  { %3314 = vmatpush.msrb.mxu2 %v11017_v3 }
 0x8dd   :  { %3326 = vmatpush.msra.mxu0 %v10881_v38  ;;  %3293 = vmatpush.msra.mxu1 %v10994_v7 }
 0x8df   :  { %3327 = vmatpush.msra.mxu0 %v10899_v25  ;;  %3294 = vmatpush.msra.mxu1 %v11012_v11 }
 0x8e0   :  { %v7432_v48 = vpop.eup %7431 }
 0x8e1   :  { %v2877_v55 = vmul.f32 %v7432_v48, %v2876_v10  ;;  %3328 = vmatpush.msra.mxu0 %v10917_v62  ;;  %v11024_v10 = vld [vmem:[%s14537_s12 + $0x28] sm:$0xff]  ;;  %v11030_v48 = vld [vmem:[%s14537_s12] sm:$0xff] }
 0x8e2   :  { %14861 = vst [vmem:[#allocation15_spill] sm:$0xff] %v11024_v10  ;;  %3295 = vmatpush.msra.mxu1 %v11030_v48 }
 0x8e3   :  { %v10754_v63 = vadd.f32 %v2878_v46, %v2877_v55  ;;  %3329 = vmatpush.msra.mxu0 %v10934_v29  ;;  %v11035_v55 = vld [vmem:[%s14537_s12 + $0x8] sm:$0xff]  ;;  %v11042_v46 = vld [vmem:[%s14537_s12 + $0x10] sm:$0xff] }
 0x8e4   :  { %14862 = vst [vmem:[#allocation28_spill] sm:$0xff] %v11035_v55  ;;  %3315 = vmatpush.msrb.mxu2 %v11035_v55 }
 0x8e5   :  { %2881 = vst [vmem:[#allocation5 + $0x18] sm:$0x3] %v10754_v63  ;;  %3120 = vmatmul.f32.vlgmr.msra.gmra.mxu2 %v10754_v63  ;;  %3140 = vmatmul.f32.vlgmr.msrb.gmra.mxu0 %v10754_v63 }
 0x8e6   :  { %3160 = vmatmul.f32.vlgmr.msrb.gmra.mxu3 %v10754_v63  ;;  %3330 = vmatpush.msra.mxu0 %v10952_v50  ;;  %14863 = vst [vmem:[#allocation31_spill] sm:$0xff] %v11042_v46 }
 0x8e8   :  { %3331 = vmatpush.msra.mxu0 %v10970_v54 }
 0x8ea   :  { %3332 = vmatpush.msra.mxu0 %v10988_v32 }
 0x8ec   :  { %3333 = vmatpush.msra.mxu0 %v11006_v57 }
 0x8ee   :  { %3334 = vmatpush.msra.mxu0 %v11024_v10 }
 0x8f0   :  { %3335 = vmatpush.msra.mxu0 %v11042_v46 }
 0x8f2   :  { %3628 = vmatpush.msrb.mxu0 %v10763_v15 }
 0x8f4   :  { %3629 = vmatpush.msrb.mxu0 %v10781_v56 }
 0x8f6   :  { %3630 = vmatpush.msrb.mxu0 %v10799_v52 }
 0x8f8   :  { %3631 = vmatpush.msrb.mxu0 %v10817_v31 }
 0x8fa   :  { %3632 = vmatpush.msrb.mxu0 %v10835_v9 }
 0x8fc   :  { %3633 = vmatpush.msrb.mxu0 %v10853_v35 }
 0x8fe   :  { %3634 = vmatpush.msrb.mxu0 %v10871_v16 }
 0x900   :  { %3635 = vmatpush.msrb.mxu0 %v10889_v24 }
 0x902   :  { %3636 = vmatpush.msrb.mxu0 %v10907_v20 }
 0x904   :  { %3637 = vmatpush.msrb.mxu0 %v10924_v23  ;;  %v3448_v23 = vld [vmem:[%s14538_s13 + $0x170] sm:$0xff] }
 0x905   :  { %3473 = vmatpush.msrb.mxu1 %v3448_v23 }
 0x906   :  { %3638 = vmatpush.msrb.mxu0 %v10940_v27  ;;  %v11080_v27 = vld [vmem:[%s14538_s13 + $0x178] sm:$0xff] }
 0x907   :  { %3493 = vmatpush.msra.mxu2 %v11080_v27 }
 0x908   :  { %3639 = vmatpush.msrb.mxu0 %v10958_v39  ;;  %v11087_v39 = vld [vmem:[%s14538_s13 + $0x150] sm:$0xff] }
 0x90a   :  { %3640 = vmatpush.msrb.mxu0 %v10976_v61  ;;  %v3445_v61 = vld [vmem:[%s14538_s13 + $0x158] sm:$0xff] }
 0x90b   :  { %3474 = vmatpush.msrb.mxu1 %v3445_v61 }
 0x90c   :  { %3641 = vmatpush.msrb.mxu0 %v10994_v7  ;;  %v11095_v7 = vld [vmem:[%s14538_s13 + $0x160] sm:$0xff] }
 0x90d   :  { %3494 = vmatpush.msra.mxu2 %v11095_v7 }
 0x90e   :  { %3642 = vmatpush.msrb.mxu0 %v11012_v11  ;;  %v11103_v11 = vld [vmem:[%s14538_s13 + $0x138] sm:$0xff] }
 0x910   :  { %3643 = vmatpush.msrb.mxu0 %v11030_v48 }
 0x928   :  { %v2950_v4 = vpop.f32.mrf.mxu0 }
 0x929   :  { %v2994_v43 = vrot.slane %v2950_v4, 6 }
 0x92b   :  { %v2996_v5 = vadd.f32 %v2994_v43, %v2882_v18 }
 0x92d   :  { %v7237_v14 = vmul.f32 -1.442695, %v2996_v5 }
 0x92e   :  { %v2970_v17 = vpop.f32.mrf.mxu3 }
 0x92f   :  { %7433 = vpow2.f32 %v7237_v14  ;;  %v3017_v36 = vrot.slane %v2970_v17, 6  ;;  %v2990_v14 = vpop.f32.mrf.mxu1 }
 0x931   :  { %v3019_v2 = vadd.f32 %v3017_v36, %v2883_v12 }
 0x933   :  { %v7238_v34 = vmul.f32 -1.442695, %v3019_v2 }
 0x935   :  { %v7434_v26 = vpop.eup %7433  ;;  %7435 = vpow2.f32 %v7238_v34  ;;  %v3039_v34 = vadd.f32 %v10737_v59, %v2990_v14  ;;  %v2884_v14 = vld [vmem:[#allocation2 + $0x68] sm:$0xc] }
 0x936   :  { %v3000_v30 = vadd.f32 1.0, %v7434_v26 }
 0x938   :  { %7437 = vrcp.f32 %v3000_v30  ;;  %v3012_v36 = vand.u32 2147483648, %v3000_v30  ;;  %v3010_v2 = vand.u32 2147483647, %v3000_v30  ;;  %vm3006_vm9 = vweird.f32 %v3000_v30 }
 0x93a   :  { %v3013_v15 = vor.u32 1.1754944e-38, %v3012_v36  ;;  %vm3011_vm11 = vcmp.eq.f32.partialorder %v3010_v2, 8.507059e+37  ;;  %v3442_v36 = vld [vmem:[%s14538_s13 + $0x140] sm:$0xff]  ;;  %v11111_v2 = vld [vmem:[%s14538_s13 + $0x148] sm:$0xff] }
 0x93b   :  { %v7436_v4 = vpop.eup %7435  ;;  %3475 = vmatpush.msrb.mxu1 %v3442_v36  ;;  %3495 = vmatpush.msra.mxu2 %v11111_v2 }
 0x93c   :  { %v3023_v43 = vadd.f32 1.0, %v7436_v4 }
 0x93e   :  { %v7438_v18 = vpop.eup %7437  ;;  %7439 = vrcp.f32 %v3023_v43  ;;  %v3035_v59 = vand.u32 2147483648, %v3023_v43  ;;  %v3033_v31 = vand.u32 2147483647, %v3023_v43  ;;  %vm3029_vm13 = vweird.f32 %v3023_v43 }
 0x93f   :  { %v3002_v5 = vmul.f32 %v7438_v18, %v3000_v30  ;;  %vm3007_vm8 = vweird.f32 %v7438_v18 }
 0x940   :  { %vm3008_vm10 = vmor %vm3006_vm9, %vm3007_vm8  ;;  %vm3034_vm15 = vcmp.eq.f32.partialorder %v3033_v31, 8.507059e+37  ;;  %v11148_v31 = vld [vmem:[%s14538_s13 + $0xf0] sm:$0xff] }
 0x941   :  { %v3003_v17 = vsub.f32 1.0, %v3002_v5  ;;  %v3041_v5 = vrot.slane %v3039_v34, 6 }
 0x943   :  { %v3004_v12 = vmul.f32 %v7438_v18, %v3003_v17 }
 0x944   :  { %v7440_v26 = vpop.eup %7439 }
 0x945   :  { %v3005_v4 = vadd.f32 %v7438_v18, %v3004_v12  ;;  %v3025_v46 = vmul.f32 %v7440_v26, %v3023_v43  ;;  %vm3030_vm12 = vweird.f32 %v7440_v26 }
 0x946   :  { %vm3031_vm14 = vmor %vm3029_vm13, %vm3030_vm12 }
 0x947   :  { %v3009_v56 = vsel %vm3008_vm10, %v7438_v18, %v3005_v4  ;;  %v3026_v55 = vsub.f32 1.0, %v3025_v46  ;;  %v3036_v46 = vor.u32 1.1754944e-38, %v3035_v59  ;;  %v3049_v18 = vrot.slane %v10741_v44, 6  ;;  %v11072_v44 = vld [vmem:[%s14538_s13 + $0x168] sm:$0xff]  ;;  %v11141_v59 = vld [vmem:[%s14538_s13 + $0x118] sm:$0xff] }
 0x948   :  { %v3014_v52 = vsel %vm3011_vm11, %v3013_v15, %v3009_v56  ;;  %3453 = vmatpush.msra.mxu3 %v11072_v44  ;;  %v3439_v4 = vld [vmem:[%s14538_s13 + $0x128] sm:$0xff]  ;;  %v11126_v15 = vld [vmem:[%s14538_s13 + $0x130] sm:$0xff]  ;;  %v3054_v56 = vld [vmem:[#allocation3 + $0x8] sm:$0xc0] }
 0x949   :  { %v3043_v17 = vmul.f32 %v3041_v5, %v3014_v52  ;;  %v3027_v10 = vmul.f32 %v7440_v26, %v3026_v55  ;;  %3476 = vmatpush.msrb.mxu1 %v3439_v4  ;;  %3496 = vmatpush.msra.mxu2 %v11126_v15  ;;  %v11133_v52 = vld [vmem:[%s14538_s13 + $0x108] sm:$0xff] }
 0x94a   :  { %3454 = vmatpush.msra.mxu3 %v11087_v39 }
 0x94b   :  { %v3044_v30 = vadd.f32 %v3043_v17, %v2884_v14  ;;  %v3028_v12 = vadd.f32 %v7440_v26, %v3027_v10  ;;  %v3436_v17 = vld [vmem:[%s14538_s13 + $0x110] sm:$0xff]  ;;  %3497 = vmatpush.msra.mxu2 %v11141_v59 }
 0x94c   :  { %3455 = vmatpush.msra.mxu3 %v11103_v11  ;;  %3477 = vmatpush.msrb.mxu1 %v3436_v17 }
 0x94d   :  { %7441 = vtanh.f32 %v3044_v30  ;;  %v3032_v9 = vsel %vm3031_vm14, %v7440_v26, %v3028_v12  ;;  %v11118_v26 = vld [vmem:[%s14538_s13 + $0x120] sm:$0xff]  ;;  %v3433_v30 = vld [vmem:[%s14538_s13 + $0xf8] sm:$0xff] }
 0x94e   :  { %v3037_v35 = vsel %vm3034_vm15, %v3036_v46, %v3032_v9  ;;  %3456 = vmatpush.msra.mxu3 %v11118_v26  ;;  %v11156_v12 = vld [vmem:[%s14538_s13 + $0x100] sm:$0xff]  ;;  %3478 = vmatpush.msrb.mxu1 %v3433_v30 }
 0x94f   :  { %v3046_v55 = vsub.f32 1.0, %v3037_v35  ;;  %v3051_v43 = vmul.f32 %v3049_v18, %v3037_v35  ;;  %14865 = vst [vmem:[#allocation24_spill] sm:$0xff] %v11156_v12  ;;  %3498 = vmatpush.msra.mxu2 %v11156_v12  ;;  %v11163_v35 = vld [vmem:[%s14538_s13 + $0xd8] sm:$0xff]  ;;  %v11171_v18 = vld [vmem:[%s14538_s13 + $0xe8] sm:$0xff] }
 0x950   :  { %3457 = vmatpush.msra.mxu3 %v11133_v52  ;;  %14866 = vst [vmem:[#allocation27_spill] sm:$0xff] %v11171_v18 }
 0x951   :  { %3499 = vmatpush.msra.mxu2 %v11171_v18 }
 0x952   :  { %3458 = vmatpush.msra.mxu3 %v11148_v31 }
 0x953   :  { %v7442_v16 = vpop.eup %7441 }
 0x954   :  { %v3047_v10 = vmul.f32 %v7442_v16, %v3046_v55  ;;  %v3430_v55 = vld [vmem:[%s14538_s13 + $0xe0] sm:$0xff]  ;;  %v3053_v16 = vld [vmem:[#allocation3 + $0x38] sm:$0xc0]  ;;  %3459 = vmatpush.msra.mxu3 %v11163_v35 }
 0x955   :  { %3479 = vmatpush.msrb.mxu1 %v3430_v55 }
 0x956   :  { %v11062_v24 = vadd.f32 %v3051_v43, %v3047_v10  ;;  %v11178_v43 = vld [vmem:[%s14538_s13 + $0xc0] sm:$0xff] }
 0x957   :  { %3460 = vmatpush.msra.mxu3 %v11178_v43 }
 0x958   :  { %14864 = vst [vmem:[#allocation33_spill] sm:$0xff] %v11062_v24  ;;  %v3278_v20 = vrot.slane %v11062_v24, 2 }
 0x959   :  { %3224 = vst [vmem:[#allocation4] sm:$0xc] %v11062_v24  ;;  %v11271_v24 = vld [vmem:[%s14538_s13 + $0x30] sm:$0xff] }
 0x95a   :  { %3296 = vmatmul.f32.vlgmr.msra.gmra.mxu1 %v3278_v20  ;;  %3316 = vmatmul.f32.vlgmr.msrb.gmra.mxu2 %v3278_v20 }
 0x95b   :  { %3336 = vmatmul.f32.vlgmr.msra.gmra.mxu0 %v3278_v20  ;;  %v3427_v20 = vld [vmem:[%s14538_s13 + $0xc8] sm:$0xff] }
 0x95c   :  { %3821 = vmatpush.msra.mxu0 %v3448_v23  ;;  %v11186_v23 = vld [vmem:[%s14538_s13 + $0xd0] sm:$0xff]  ;;  %3480 = vmatpush.msrb.mxu1 %v3427_v20 }
 0x95d   :  { %14867 = vst [vmem:[#allocation13_spill] sm:$0xff] %v11186_v23  ;;  %3500 = vmatpush.msra.mxu2 %v11186_v23  ;;  %v11310_v23 = vld [vmem:[%s14538_s13 + $0x10] sm:$0xff] }
 0x95e   :  { %3822 = vmatpush.msra.mxu0 %v3445_v61 }
 0x960   :  { %3823 = vmatpush.msra.mxu0 %v3442_v36  ;;  %v11193_v36 = vld [vmem:[%s14538_s13 + $0xa8] sm:$0xff] }
 0x961   :  { %3461 = vmatpush.msra.mxu3 %v11193_v36 }
 0x962   :  { %v3141_v48 = vpop.f32.mrf.mxu0  ;;  %3824 = vmatpush.msra.mxu0 %v3439_v4 }
 0x963   :  { %v3188_v34 = vrot.slane %v3141_v48, 2  ;;  %v3424_v48 = vld [vmem:[%s14538_s13 + $0xb0] sm:$0xff] }
 0x964   :  { %3825 = vmatpush.msra.mxu0 %v3436_v17  ;;  %3481 = vmatpush.msrb.mxu1 %v3424_v48  ;;  %v11216_v17 = vld [vmem:[%s14538_s13 + $0xa0] sm:$0xff] }
 0x965   :  { %v3190_v5 = vadd.f32 %v3188_v34, %v3054_v56  ;;  %v11201_v34 = vld [vmem:[%s14538_s13 + $0xb8] sm:$0xff]  ;;  %v11208_v56 = vld [vmem:[%s14538_s13 + $0x90] sm:$0xff]  ;;  %14869 = vst [vmem:[#allocation32_spill] sm:$0xff] %v11216_v17 }
 0x966   :  { %3826 = vmatpush.msra.mxu0 %v3433_v30  ;;  %14868 = vst [vmem:[#allocation30_spill] sm:$0xff] %v11201_v34  ;;  %3501 = vmatpush.msra.mxu2 %v11201_v34  ;;  %v11225_v30 = vld [vmem:[%s14538_s13 + $0x78] sm:$0xff]  ;;  %v3403_v34 = vld [vmem:[%s14538_s13 + $0x8] sm:$0xff] }
 0x967   :  { %v7240_v14 = vmul.f32 -1.442695, %v3190_v5  ;;  %v3421_v5 = vld [vmem:[%s14538_s13 + $0x98] sm:$0xff]  ;;  %3462 = vmatpush.msra.mxu3 %v11208_v56 }
 0x968   :  { %v3121_v9 = vpop.f32.mrf.mxu2  ;;  %3827 = vmatpush.msra.mxu0 %v3430_v55  ;;  %3482 = vmatpush.msrb.mxu1 %v3421_v5  ;;  %v11241_v55 = vld [vmem:[%s14538_s13 + $0x60] sm:$0xff] }
 0x969   :  { %7443 = vpow2.f32 %v7240_v14  ;;  %v3165_v46 = vrot.slane %v3121_v9, 2  ;;  %3502 = vmatpush.msra.mxu2 %v11216_v17  ;;  %v3418_v9 = vld [vmem:[%s14538_s13 + $0x80] sm:$0xff]  ;;  %3463 = vmatpush.msra.mxu3 %v11225_v30 }
 0x96a   :  { %3828 = vmatpush.msra.mxu0 %v3427_v20  ;;  %3483 = vmatpush.msrb.mxu1 %v3418_v9 }
 0x96b   :  { %v3167_v10 = vadd.f32 %v3165_v46, %v3053_v16  ;;  %v11233_v46 = vld [vmem:[%s14538_s13 + $0x88] sm:$0xff]  ;;  %3464 = vmatpush.msra.mxu3 %v11241_v55 }
 0x96c   :  { %14870 = vst [vmem:[#allocation17_spill] sm:$0xff] %v11233_v46  ;;  %3829 = vmatpush.msra.mxu0 %v3424_v48  ;;  %3503 = vmatpush.msra.mxu2 %v11233_v46  ;;  %v3415_v16 = vld [vmem:[%s14538_s13 + $0x68] sm:$0xff]  ;;  %v3412_v48 = vld [vmem:[%s14538_s13 + $0x50] sm:$0xff]  ;;  %v11279_v46 = vld [vmem:[%s14538_s13 + $0x40] sm:$0xff] }
 0x96d   :  { %v7239_v61 = vmul.f32 -1.442695, %v3167_v10  ;;  %v11249_v10 = vld [vmem:[%s14538_s13 + $0x70] sm:$0xff]  ;;  %3484 = vmatpush.msrb.mxu1 %v3415_v16  ;;  %14873 = vst [vmem:[#allocation23_spill] sm:$0xff] %v11279_v46 }
 0x96e   :  { %14871 = vst [vmem:[#allocation6_spill] sm:$0xff] %v11249_v10  ;;  %3830 = vmatpush.msra.mxu0 %v3421_v5  ;;  %3504 = vmatpush.msra.mxu2 %v11249_v10  ;;  %v3409_v10 = vld [vmem:[%s14538_s13 + $0x38] sm:$0xff] }
 0x96f   :  { %v7444_v4 = vpop.eup %7443  ;;  %7445 = vpow2.f32 %v7239_v61  ;;  %v11256_v61 = vld [vmem:[%s14538_s13 + $0x48] sm:$0xff]  ;;  %3485 = vmatpush.msrb.mxu1 %v3412_v48 }
 0x970   :  { %v11218_v14 = vadd.f32 1.0, %v7444_v4  ;;  %v11264_v4 = vld [vmem:[%s14538_s13 + $0x58] sm:$0xff]  ;;  %3831 = vmatpush.msra.mxu0 %v3418_v9  ;;  %3465 = vmatpush.msra.mxu3 %v11256_v61 }
 0x971   :  { %14872 = vst [vmem:[#allocation11_spill] sm:$0xff] %v11264_v4  ;;  %3505 = vmatpush.msra.mxu2 %v11264_v4  ;;  %3486 = vmatpush.msrb.mxu1 %v3409_v10  ;;  %v11285_v9 = vld [vmem:[%s14538_s13 + $0x18] sm:$0xff]  ;;  %v11293_v4 = vld [vmem:[%s14538_s13 + $0x28] sm:$0xff] }
 0x972   :  { %7447 = vrcp.f32 %v11218_v14  ;;  %3832 = vmatpush.msra.mxu0 %v3415_v16  ;;  %3466 = vmatpush.msra.mxu3 %v11271_v24  ;;  %14874 = vst [vmem:[#allocation19_spill] sm:$0xff] %v11293_v4  ;;  %v11301_v16 = vld [vmem:[%s14538_s13] sm:$0xff]  ;;  %vm3200_vm8 = vweird.f32 %v11218_v14 }
 0x973   :  { %3506 = vmatpush.msra.mxu2 %v11279_v46 }
 0x974   :  { %3833 = vmatpush.msra.mxu0 %v3412_v48  ;;  %3467 = vmatpush.msra.mxu3 %v11285_v9 }
 0x975   :  { %v7446_v20 = vpop.eup %7445  ;;  %3507 = vmatpush.msra.mxu2 %v11293_v4  ;;  %v3161_v4 = vpop.f32.mrf.mxu3 }
 0x976   :  { %v3171_v5 = vadd.f32 1.0, %v7446_v20  ;;  %v3406_v20 = vld [vmem:[%s14538_s13 + $0x20] sm:$0xff]  ;;  %3834 = vmatpush.msra.mxu0 %v3409_v10  ;;  %3468 = vmatpush.msra.mxu3 %v11301_v16 }
 0x977   :  { %3487 = vmatpush.msrb.mxu1 %v3406_v20  ;;  %3508 = vmatpush.msra.mxu2 %v11310_v23 }
 0x978   :  { %7449 = vrcp.f32 %v3171_v5  ;;  %v11295_v17 = vpop.eup %7447  ;;  %3648 = vmatpush.msrb.mxu3 %v10768_v8  ;;  %3835 = vmatpush.msra.mxu0 %v3406_v20  ;;  %v3183_v8 = vand.u32 2147483648, %v3171_v5  ;;  %vm3177_vm3 = vweird.f32 %v3171_v5  ;;  %v11397_v20 = vld [vmem:[%s14539_s14] ss:$0 sm:$0xff] }
 0x979   :  { %v3196_v46 = vmul.f32 %v11295_v17, %v11218_v14  ;;  %3488 = vmatpush.msrb.mxu1 %v3403_v34  ;;  %3801 = vmatpush.msrb.mxu2 %v11072_v44  ;;  %v3181_v44 = vand.u32 2147483647, %v3171_v5  ;;  %vm3201_vm7 = vweird.f32 %v11295_v17 }
 0x97a   :  { %3649 = vmatpush.msrb.mxu3 %v10786_v1  ;;  %3836 = vmatpush.msra.mxu0 %v3403_v34  ;;  %v3210_v1 = vadd.f32 %v10750_v51, %v3161_v4  ;;  %vm3202_vm9 = vmor %vm3200_vm8, %vm3201_vm7 }
 0x97b   :  { %3668 = vmatpush.msra.mxu1 %v10773_v40  ;;  %v3197_v10 = vsub.f32 1.0, %v3196_v46  ;;  %3802 = vmatpush.msrb.mxu2 %v11087_v39  ;;  %vm3182_vm6 = vcmp.eq.f32.partialorder %v3181_v44, 8.507059e+37 }
 0x97c   :  { %3650 = vmatpush.msrb.mxu3 %v10804_v28  ;;  %v3212_v51 = vrot.slane %v3210_v1, 2 }
 0x97d   :  { %3669 = vmatpush.msra.mxu1 %v10791_v13  ;;  %3803 = vmatpush.msrb.mxu2 %v11103_v11  ;;  %v3198_v13 = vmul.f32 %v11295_v17, %v3197_v10 }
 0x97e   :  { %v7450_v48 = vpop.eup %7449  ;;  %3651 = vmatpush.msrb.mxu3 %v10822_v37 }
 0x97f   :  { %v3173_v18 = vmul.f32 %v7450_v48, %v3171_v5  ;;  %3670 = vmatpush.msra.mxu1 %v10809_v19  ;;  %vm3178_vm0 = vweird.f32 %v7450_v48  ;;  %3804 = vmatpush.msrb.mxu2 %v11118_v26  ;;  %v3184_v19 = vor.u32 1.1754944e-38, %v3183_v8  ;;  %v3055_v26 = vld [vmem:[#allocation3 + $0x40] sm:$0xc0] }
 0x980   :  { %3652 = vmatpush.msrb.mxu3 %v10840_v22  ;;  %vm3179_vm4 = vmor %vm3177_vm3, %vm3178_vm0  ;;  %v3206_v22 = vand.u32 2147483648, %v11218_v14 }
 0x981   :  { %v3174_v12 = vsub.f32 1.0, %v3173_v18  ;;  %3671 = vmatpush.msra.mxu1 %v10827_v0  ;;  %3805 = vmatpush.msrb.mxu2 %v11133_v52  ;;  %v3199_v0 = vadd.f32 %v11295_v17, %v3198_v13 }
 0x982   :  { %3653 = vmatpush.msrb.mxu3 %v10858_v58 }
 0x983   :  { %v3175_v40 = vmul.f32 %v7450_v48, %v3174_v12  ;;  %3672 = vmatpush.msra.mxu1 %v10845_v53  ;;  %3806 = vmatpush.msrb.mxu2 %v11148_v31  ;;  %v3204_v53 = vand.u32 2147483647, %v11218_v14 }
 0x984   :  { %3654 = vmatpush.msrb.mxu3 %v10876_v49  ;;  %v3207_v49 = vor.u32 1.1754944e-38, %v3206_v22 }
 0x985   :  { %v3176_v28 = vadd.f32 %v7450_v48, %v3175_v40  ;;  %3673 = vmatpush.msra.mxu1 %v10863_v45  ;;  %3807 = vmatpush.msrb.mxu2 %v11163_v35  ;;  %v3203_v45 = vsel %vm3202_vm9, %v11295_v17, %v3199_v0  ;;  %vm3205_vm10 = vcmp.eq.f32.partialorder %v3204_v53, 8.507059e+37 }
 0x986   :  { %3655 = vmatpush.msrb.mxu3 %v10894_v41 }
 0x987   :  { %v3180_v39 = vsel %vm3179_vm4, %v7450_v48, %v3176_v28  ;;  %3674 = vmatpush.msra.mxu1 %v10881_v38  ;;  %3808 = vmatpush.msrb.mxu2 %v11178_v43  ;;  %v3208_v38 = vsel %vm3205_vm10, %v3207_v49, %v3203_v45  ;;  %v3227_v43 = vld [vmem:[#allocation2 + $0x50] sm:$0x30]  ;;  %v14888_v49 = vld [vmem:[#allocation33_spill] sm:$0xff] }
 0x988   :  { %v3185_v37 = vsel %vm3182_vm6, %v3184_v19, %v3180_v39  ;;  %3656 = vmatpush.msrb.mxu3 %v10912_v6  ;;  %v3217_v41 = vsub.f32 1.0, %v3208_v38 }
 0x989   :  { %v3214_v11 = vmul.f32 %v3212_v51, %v3185_v37  ;;  %3675 = vmatpush.msra.mxu1 %v10899_v25  ;;  %3809 = vmatpush.msrb.mxu2 %v11193_v36  ;;  %v3220_v25 = vrot.slane %v10754_v63, 2  ;;  %v3228_v37 = vld [vmem:[#allocation2 + $0x68] sm:$0x30] }
 0x98a   :  { %3657 = vmatpush.msrb.mxu3 %v10929_v60 }
 0x98b   :  { %v3215_v58 = vadd.f32 %v3214_v11, %v3055_v26  ;;  %3676 = vmatpush.msra.mxu1 %v10917_v62  ;;  %3810 = vmatpush.msrb.mxu2 %v11208_v56  ;;  %v3222_v52 = vmul.f32 %v3220_v25, %v3208_v38  ;;  %v3395_v38 = vrot.slane %v14888_v49, 6  ;;  %v11465_v49 = vld [vmem:[%s14537_s12 + $0x148] sm:$0xff] }
 0x98c   :  { %3658 = vmatpush.msrb.mxu3 %v10945_v42  ;;  %v14876_v42 = vld [vmem:[#allocation28_spill] sm:$0xff] }
 0x98d   :  { %7451 = vtanh.f32 %v3215_v58  ;;  %3677 = vmatpush.msra.mxu1 %v10934_v29  ;;  %3811 = vmatpush.msrb.mxu2 %v11225_v30  ;;  %v14875_v29 = vld [vmem:[#allocation15_spill] sm:$0xff] }
 0x98e   :  { %3659 = vmatpush.msrb.mxu3 %v10963_v33  ;;  %v14878_v33 = vld [vmem:[#allocation24_spill] sm:$0xff] }
 0x98f   :  { %3678 = vmatpush.msra.mxu1 %v10952_v50  ;;  %3812 = vmatpush.msrb.mxu2 %v11241_v55  ;;  %v14877_v50 = vld [vmem:[#allocation31_spill] sm:$0xff] }
 0x990   :  { %3660 = vmatpush.msrb.mxu3 %v10981_v47  ;;  %v14880_v47 = vld [vmem:[#allocation13_spill] sm:$0xff] }
 0x991   :  { %3679 = vmatpush.msra.mxu1 %v10970_v54  ;;  %3813 = vmatpush.msrb.mxu2 %v11256_v61  ;;  %v14879_v54 = vld [vmem:[#allocation27_spill] sm:$0xff] }
 0x992   :  { %3661 = vmatpush.msrb.mxu3 %v10999_v21  ;;  %v14882_v21 = vld [vmem:[#allocation32_spill] sm:$0xff] }
 0x993   :  { %v7452_v6 = vpop.eup %7451  ;;  %3680 = vmatpush.msra.mxu1 %v10988_v32  ;;  %3814 = vmatpush.msrb.mxu2 %v11271_v24  ;;  %v14881_v32 = vld [vmem:[#allocation30_spill] sm:$0xff]  ;;  %v14885_v24 = vld [vmem:[#allocation11_spill] sm:$0xff] }
 0x994   :  { %v3218_v62 = vmul.f32 %v7452_v6, %v3217_v41  ;;  %3662 = vmatpush.msrb.mxu3 %v11017_v3  ;;  %v14884_v3 = vld [vmem:[#allocation6_spill] sm:$0xff] }
 0x995   :  { %3681 = vmatpush.msra.mxu1 %v11006_v57  ;;  %3815 = vmatpush.msrb.mxu2 %v11285_v9  ;;  %v14883_v57 = vld [vmem:[#allocation17_spill] sm:$0xff] }
 0x996   :  { %v11363_v60 = vadd.f32 %v3222_v52, %v3218_v62  ;;  %3663 = vmatpush.msrb.mxu3 %v14876_v42  ;;  %v3400_v42 = vld [vmem:[#allocation3 + $0x8] sm:$0x30] }
 0x997   :  { %3682 = vmatpush.msra.mxu1 %v14875_v29  ;;  %3816 = vmatpush.msrb.mxu2 %v11301_v16 }
 0x998   :  { %3225 = vst [vmem:[#allocation5] sm:$0xc0] %v11363_v60  ;;  %v3451_v63 = vrot.slane %v11363_v60, 6 }
 0x999   :  { %3683 = vmatpush.msra.mxu1 %v14877_v50 }
 0x99a   :  { %3469 = vmatmul.f32.vlgmr.msra.gmra.mxu3 %v3451_v63  ;;  %3489 = vmatmul.f32.vlgmr.msrb.gmra.mxu1 %v3451_v63 }
 0x99b   :  { %3509 = vmatmul.f32.vlgmr.msra.gmra.mxu2 %v3451_v63  ;;  %3841 = vmatpush.msra.mxu3 %v11080_v27  ;;  %v14886_v27 = vld [vmem:[#allocation23_spill] sm:$0xff] }
 0x99d   :  { %3842 = vmatpush.msra.mxu3 %v11095_v7  ;;  %v14887_v7 = vld [vmem:[#allocation19_spill] sm:$0xff] }
 0x99f   :  { %3843 = vmatpush.msra.mxu3 %v11111_v2 }
 0x9a1   :  { %3844 = vmatpush.msra.mxu3 %v11126_v15 }
 0x9a3   :  { %3845 = vmatpush.msra.mxu3 %v11141_v59  ;;  %v3226_v59 = vld [vmem:[#allocation2 + $0x18] sm:$0x30] }
 0x9a5   :  { %3846 = vmatpush.msra.mxu3 %v14878_v33 }
 0x9a7   :  { %3847 = vmatpush.msra.mxu3 %v14879_v54 }
 0x9a9   :  { %3848 = vmatpush.msra.mxu3 %v14880_v47 }
 0x9ab   :  { %3849 = vmatpush.msra.mxu3 %v14881_v32  ;;  %v3399_v32 = vld [vmem:[#allocation3 + $0x38] sm:$0x30] }
 0x9ad   :  { %3850 = vmatpush.msra.mxu3 %v14882_v21 }
 0x9af   :  { %3851 = vmatpush.msra.mxu3 %v14883_v57 }
 0x9b1   :  { %3852 = vmatpush.msra.mxu3 %v14884_v3 }
 0x9b3   :  { %3853 = vmatpush.msra.mxu3 %v14885_v24 }
 0x9b5   :  { %3854 = vmatpush.msra.mxu3 %v14886_v27 }
 0x9b7   :  { %3855 = vmatpush.msra.mxu3 %v14887_v7 }
 0x9b9   :  { %3856 = vmatpush.msra.mxu3 %v11310_v23 }
 0x9d7   :  { %v3297_v2 = vpop.f32.mrf.mxu1 }
 0x9d8   :  { %v3341_v15 = vrot.slane %v3297_v2, 4  ;;  %v3337_v55 = vpop.f32.mrf.mxu0 }
 0x9d9   :  { %v3386_v16 = vadd.f32 %v11397_v20, %v3337_v55 }
 0x9da   :  { %v3343_v31 = vadd.f32 %v3341_v15, %v3226_v59 }
 0x9db   :  { %v3388_v1 = vrot.slane %v3386_v16, 4 }
 0x9dc   :  { %v7241_v12 = vmul.f32 -1.442695, %v3343_v31 }
 0x9dd   :  { %v3317_v35 = vpop.f32.mrf.mxu2 }
 0x9de   :  { %7453 = vpow2.f32 %v7241_v12  ;;  %v3364_v18 = vrot.slane %v3317_v35, 4 }
 0x9e0   :  { %v3366_v36 = vadd.f32 %v3364_v18, %v3227_v43 }
 0x9e2   :  { %v7242_v34 = vmul.f32 -1.442695, %v3366_v36 }
 0x9e4   :  { %v7454_v56 = vpop.eup %7453  ;;  %7455 = vpow2.f32 %v7242_v34 }
 0x9e5   :  { %v3347_v17 = vadd.f32 1.0, %v7454_v56  ;;  %v11408_v56 = vld [vmem:[%s14540_s15] ss:$0 sm:$0xff] }
 0x9e7   :  { %7457 = vrcp.f32 %v3347_v17  ;;  %v3359_v4 = vand.u32 2147483648, %v3347_v17  ;;  %v3357_v9 = vand.u32 2147483647, %v3347_v17  ;;  %vm3353_vm12 = vweird.f32 %v3347_v17 }
 0x9e9   :  { %v3360_v40 = vor.u32 1.1754944e-38, %v3359_v4  ;;  %vm3358_vm14 = vcmp.eq.f32.partialorder %v3357_v9, 8.507059e+37 }
 0x9ea   :  { %v7456_v14 = vpop.eup %7455 }
 0x9eb   :  { %v3370_v30 = vadd.f32 1.0, %v7456_v14 }
 0x9ed   :  { %v7458_v46 = vpop.eup %7457  ;;  %7459 = vrcp.f32 %v3370_v30  ;;  %v3382_v51 = vand.u32 2147483648, %v3370_v30  ;;  %v3380_v0 = vand.u32 2147483647, %v3370_v30  ;;  %vm3376_vm0 = vweird.f32 %v3370_v30 }
 0x9ee   :  { %v3349_v23 = vmul.f32 %v7458_v46, %v3347_v17  ;;  %vm3354_vm11 = vweird.f32 %v7458_v46 }
 0x9ef   :  { %vm3355_vm13 = vmor %vm3353_vm12, %vm3354_vm11  ;;  %v3383_v26 = vor.u32 1.1754944e-38, %v3382_v51  ;;  %vm3381_vm4 = vcmp.eq.f32.partialorder %v3380_v0, 8.507059e+37  ;;  %v11419_v0 = vld [vmem:[%s14537_s12 + $0x168] sm:$0xff] }
 0x9f0   :  { %v3350_v61 = vsub.f32 1.0, %v3349_v23  ;;  %3976 = vmatpush.msrb.mxu1 %v11419_v0 }
 0x9f2   :  { %v3351_v5 = vmul.f32 %v7458_v46, %v3350_v61 }
 0x9f3   :  { %v7460_v48 = vpop.eup %7459 }
 0x9f4   :  { %v3352_v10 = vadd.f32 %v7458_v46, %v3351_v5  ;;  %v3372_v8 = vmul.f32 %v7460_v48, %v3370_v30  ;;  %vm3377_vm15 = vweird.f32 %v7460_v48 }
 0x9f5   :  { %vm3378_vm3 = vmor %vm3376_vm0, %vm3377_vm15 }
 0x9f6   :  { %v3356_v44 = vsel %vm3355_vm13, %v7458_v46, %v3352_v10  ;;  %v3373_v13 = vsub.f32 1.0, %v3372_v8 }
 0x9f7   :  { %v3361_v28 = vsel %vm3358_vm14, %v3360_v40, %v3356_v44 }
 0x9f8   :  { %v3390_v19 = vmul.f32 %v3388_v1, %v3361_v28  ;;  %v3374_v39 = vmul.f32 %v7460_v48, %v3373_v13  ;;  %v3568_v13 = vrot.slane %v11363_v60, 2  ;;  %v11424_v60 = vld [vmem:[%s14537_s12 + $0x170] sm:$0xff] }
 0x9f9   :  { %3996 = vmatpush.msra.mxu2 %v11424_v60 }
 0x9fa   :  { %v3391_v22 = vadd.f32 %v3390_v19, %v3228_v37  ;;  %v3375_v11 = vadd.f32 %v7460_v48, %v3374_v39 }
 0x9fc   :  { %7461 = vtanh.f32 %v3391_v22  ;;  %v3379_v53 = vsel %vm3378_vm3, %v7460_v48, %v3375_v11  ;;  %v3401_v48 = vld [vmem:[#allocation3 + $0x40] sm:$0x30]  ;;  %v11437_v11 = vld [vmem:[%s14537_s12 + $0x150] sm:$0xff] }
 0x9fd   :  { %v3384_v58 = vsel %vm3381_vm4, %v3383_v26, %v3379_v53  ;;  %v11429_v22 = vld [vmem:[%s14537_s12 + $0x178] sm:$0xff]  ;;  %v11447_v26 = vld [vmem:[%s14537_s12 + $0x160] sm:$0xff]  ;;  %3977 = vmatpush.msrb.mxu1 %v11437_v11 }
 0x9fe   :  { %v3393_v45 = vsub.f32 1.0, %v3384_v58  ;;  %v3397_v6 = vmul.f32 %v3395_v38, %v3384_v58  ;;  %v11442_v53 = vld [vmem:[%s14537_s12 + $0x158] sm:$0xff]  ;;  %v11473_v38 = vld [vmem:[%s14537_s12 + $0x120] sm:$0xff] }
 0x9ff   :  { %3997 = vmatpush.msra.mxu2 %v11442_v53  ;;  %v11455_v58 = vld [vmem:[%s14537_s12 + $0x138] sm:$0xff] }
 0xa00   :  { %3978 = vmatpush.msrb.mxu1 %v11455_v58 }
 0xa02   :  { %v7462_v41 = vpop.eup %7461  ;;  %3979 = vmatpush.msrb.mxu1 %v11473_v38 }
 0xa03   :  { %v3394_v25 = vmul.f32 %v7462_v41, %v3393_v45  ;;  %v11460_v45 = vld [vmem:[%s14537_s12 + $0x140] sm:$0xff]  ;;  %v11478_v41 = vld [vmem:[%s14537_s12 + $0x128] sm:$0xff] }
 0xa04   :  { %3998 = vmatpush.msra.mxu2 %v11460_v45 }
 0xa05   :  { %v11401_v62 = vadd.f32 %v3397_v6, %v3394_v25  ;;  %v11483_v25 = vld [vmem:[%s14537_s12 + $0x130] sm:$0xff]  ;;  %v11491_v6 = vld [vmem:[%s14537_s12 + $0x108] sm:$0xff] }
 0xa06   :  { %3999 = vmatpush.msra.mxu2 %v11478_v41  ;;  %3980 = vmatpush.msrb.mxu1 %v11491_v6 }
 0xa07   :  { %3572 = vst [vmem:[#allocation4] sm:$0x30] %v11401_v62  ;;  %v3626_v52 = vrot.slane %v11401_v62, 4 }
 0xa09   :  { %3644 = vmatmul.f32.vlgmr.msrb.gmra.mxu0 %v3626_v52  ;;  %3664 = vmatmul.f32.vlgmr.msrb.gmra.mxu3 %v3626_v52 }
 0xa0a   :  { %3684 = vmatmul.f32.vlgmr.msra.gmra.mxu1 %v3626_v52  ;;  %4016 = vmatpush.msrb.mxu0 %v11429_v22  ;;  %v11496_v52 = vld [vmem:[%s14537_s12 + $0x110] sm:$0xff] }
 0xa0b   :  { %4000 = vmatpush.msra.mxu2 %v11496_v52 }
 0xa0c   :  { %4017 = vmatpush.msrb.mxu0 %v11447_v26 }
 0xa0e   :  { %4018 = vmatpush.msrb.mxu0 %v11465_v49 }
 0xa10   :  { %4019 = vmatpush.msrb.mxu0 %v11483_v25 }
 0xa17   :  { %v3490_v63 = vpop.f32.mrf.mxu1 }
 0xa18   :  { %v3537_v29 = vrot.slane %v3490_v63, 4  ;;  %v11501_v63 = vld [vmem:[%s14537_s12 + $0x118] sm:$0xff] }
 0xa19   :  { %4020 = vmatpush.msrb.mxu0 %v11501_v63 }
 0xa1a   :  { %v3539_v50 = vadd.f32 %v3537_v29, %v3400_v42  ;;  %v11509_v29 = vld [vmem:[%s14537_s12 + $0xf0] sm:$0xff]  ;;  %v11514_v42 = vld [vmem:[%s14537_s12 + $0xf8] sm:$0xff] }
 0xa1b   :  { %3981 = vmatpush.msrb.mxu1 %v11509_v29  ;;  %4001 = vmatpush.msra.mxu2 %v11514_v42 }
 0xa1c   :  { %v7244_v33 = vmul.f32 -1.442695, %v3539_v50  ;;  %v11519_v50 = vld [vmem:[%s14537_s12 + $0x100] sm:$0xff] }
 0xa1d   :  { %v3470_v54 = vpop.f32.mrf.mxu3  ;;  %4021 = vmatpush.msrb.mxu0 %v11519_v50 }
 0xa1e   :  { %7463 = vpow2.f32 %v7244_v33  ;;  %v3514_v47 = vrot.slane %v3470_v54, 4  ;;  %v3510_v35 = vpop.f32.mrf.mxu2 }
 0xa1f   :  { %v3559_v17 = vadd.f32 %v11408_v56, %v3510_v35  ;;  %v11580_v35 = vld [vmem:[%s14537_s12 + $0x90] sm:$0xff] }
 0xa20   :  { %v3516_v21 = vadd.f32 %v3514_v47, %v3399_v32  ;;  %v11527_v47 = vld [vmem:[%s14537_s12 + $0xd8] sm:$0xff]  ;;  %v11532_v32 = vld [vmem:[%s14537_s12 + $0xe0] sm:$0xff] }
 0xa21   :  { %v3561_v55 = vrot.slane %v3559_v17, 4  ;;  %3982 = vmatpush.msrb.mxu1 %v11527_v47  ;;  %4002 = vmatpush.msra.mxu2 %v11532_v32  ;;  %v11601_v17 = vld [vmem:[%s14537_s12 + $0x80] sm:$0xff] }
 0xa22   :  { %v7243_v57 = vmul.f32 -1.442695, %v3516_v21  ;;  %v11537_v21 = vld [vmem:[%s14537_s12 + $0xe8] sm:$0xff] }
 0xa23   :  { %4022 = vmatpush.msrb.mxu0 %v11537_v21 }
 0xa24   :  { %v7464_v3 = vpop.eup %7463  ;;  %7465 = vpow2.f32 %v7243_v57  ;;  %v3574_v57 = vld [vmem:[#allocation2 + $0x18] sm:$0xc0] }
 0xa25   :  { %v3543_v24 = vadd.f32 1.0, %v7464_v3 }
 0xa27   :  { %7467 = vrcp.f32 %v3543_v24  ;;  %v3555_v5 = vand.u32 2147483648, %v3543_v24  ;;  %vm3549_vm11 = vweird.f32 %v3543_v24  ;;  %v3553_v16 = vand.u32 2147483647, %v3543_v24 }
 0xa29   :  { %v3556_v40 = vor.u32 1.1754944e-38, %v3555_v5  ;;  %vm3554_vm13 = vcmp.eq.f32.partialorder %v3553_v16, 8.507059e+37  ;;  %v11632_v5 = vld [vmem:[%s14537_s12 + $0x48] sm:$0xff]  ;;  %v11644_v16 = vld [vmem:[%s14537_s12 + $0x58] sm:$0xff] }
 0xa2a   :  { %v7466_v27 = vpop.eup %7465 }
 0xa2b   :  { %v3520_v7 = vadd.f32 1.0, %v7466_v27  ;;  %v11550_v27 = vld [vmem:[%s14537_s12 + $0xc8] sm:$0xff] }
 0xa2c   :  { %4003 = vmatpush.msra.mxu2 %v11550_v27 }
 0xa2d   :  { %7469 = vrcp.f32 %v3520_v7  ;;  %v7468_v2 = vpop.eup %7467  ;;  %v3532_v43 = vand.u32 2147483648, %v3520_v7  ;;  %v3530_v34 = vand.u32 2147483647, %v3520_v7  ;;  %vm3526_vm7 = vweird.f32 %v3520_v7 }
 0xa2e   :  { %v3545_v15 = vmul.f32 %v7468_v2, %v3543_v24  ;;  %vm3550_vm10 = vweird.f32 %v7468_v2  ;;  %v11545_v24 = vld [vmem:[%s14537_s12 + $0xc0] sm:$0xff] }
 0xa2f   :  { %v3533_v46 = vor.u32 1.1754944e-38, %v3532_v43  ;;  %vm3531_vm9 = vcmp.eq.f32.partialorder %v3530_v34, 8.507059e+37  ;;  %vm3551_vm12 = vmor %vm3549_vm11, %vm3550_vm10  ;;  %3983 = vmatpush.msrb.mxu1 %v11545_v24  ;;  %v11590_v43 = vld [vmem:[%s14537_s12 + $0xa0] sm:$0xff]  ;;  %v11596_v34 = vld [vmem:[%s14537_s12 + $0x78] sm:$0xff] }
 0xa30   :  { %v3546_v12 = vsub.f32 1.0, %v3545_v15  ;;  %v11563_v15 = vld [vmem:[%s14537_s12 + $0xa8] sm:$0xff] }
 0xa31   :  { %3984 = vmatpush.msrb.mxu1 %v11563_v15 }
 0xa32   :  { %v3547_v14 = vmul.f32 %v7468_v2, %v3546_v12 }
 0xa33   :  { %v7470_v59 = vpop.eup %7469  ;;  %3985 = vmatpush.msrb.mxu1 %v11580_v35 }
 0xa34   :  { %v3522_v31 = vmul.f32 %v7470_v59, %v3520_v7  ;;  %vm3527_vm6 = vweird.f32 %v7470_v59  ;;  %v3548_v4 = vadd.f32 %v7468_v2, %v3547_v14  ;;  %v11555_v7 = vld [vmem:[%s14537_s12 + $0xd0] sm:$0xff] }
 0xa35   :  { %vm3528_vm8 = vmor %vm3526_vm7, %vm3527_vm6  ;;  %4023 = vmatpush.msrb.mxu0 %v11555_v7  ;;  %v3575_v14 = vld [vmem:[#allocation2 + $0x50] sm:$0xc0]  ;;  %3986 = vmatpush.msrb.mxu1 %v11596_v34 }
 0xa36   :  { %v3523_v18 = vsub.f32 1.0, %v3522_v31  ;;  %v3552_v8 = vsel %vm3551_vm12, %v7468_v2, %v3548_v4  ;;  %v11573_v31 = vld [vmem:[%s14537_s12 + $0xb8] sm:$0xff] }
 0xa37   :  { %v3557_v44 = vsel %vm3554_vm13, %v3556_v40, %v3552_v8  ;;  %4024 = vmatpush.msrb.mxu0 %v11573_v31  ;;  %v11655_v8 = vld [vmem:[%s14537_s12 + $0x38] sm:$0xff] }
 0xa38   :  { %v3524_v36 = vmul.f32 %v7470_v59, %v3523_v18  ;;  %v3566_v1 = vsub.f32 1.0, %v3557_v44  ;;  %v3570_v39 = vmul.f32 %v3568_v13, %v3557_v44  ;;  %v11585_v18 = vld [vmem:[%s14537_s12 + $0x98] sm:$0xff]  ;;  %v11662_v44 = vld [vmem:[%s14537_s12 + $0x40] sm:$0xff] }
 0xa39   :  { %4025 = vmatpush.msrb.mxu0 %v11590_v43  ;;  %v11673_v13 = vld [vmem:[%s14537_s12 + $0x20] sm:$0xff] }
 0xa3a   :  { %v3525_v30 = vadd.f32 %v7470_v59, %v3524_v36 }
 0xa3c   :  { %v3529_v23 = vsel %vm3528_vm8, %v7470_v59, %v3525_v30  ;;  %v11568_v59 = vld [vmem:[%s14537_s12 + $0xb0] sm:$0xff]  ;;  %v11608_v30 = vld [vmem:[%s14537_s12 + $0x88] sm:$0xff] }
 0xa3d   :  { %v3534_v61 = vsel %vm3531_vm9, %v3533_v46, %v3529_v23  ;;  %4004 = vmatpush.msra.mxu2 %v11568_v59  ;;  %v11614_v23 = vld [vmem:[%s14537_s12 + $0x60] sm:$0xff]  ;;  %4026 = vmatpush.msrb.mxu0 %v11608_v30 }
 0xa3e   :  { %v3563_v9 = vmul.f32 %v3561_v55, %v3534_v61  ;;  %v11619_v55 = vld [vmem:[%s14537_s12 + $0x68] sm:$0xff]  ;;  %v11626_v61 = vld [vmem:[%s14537_s12 + $0x70] sm:$0xff]  ;;  %3987 = vmatpush.msrb.mxu1 %v11614_v23 }
 0xa3f   :  { %4005 = vmatpush.msra.mxu2 %v11585_v18  ;;  %4027 = vmatpush.msrb.mxu0 %v11626_v61 }
 0xa40   :  { %v3564_v10 = vadd.f32 %v3563_v9, %v3401_v48  ;;  %v11637_v9 = vld [vmem:[%s14537_s12 + $0x50] sm:$0xff]  ;;  %3988 = vmatpush.msrb.mxu1 %v11632_v5 }
 0xa41   :  { %4006 = vmatpush.msra.mxu2 %v11601_v17  ;;  %4028 = vmatpush.msrb.mxu0 %v11644_v16 }
 0xa42   :  { %7471 = vtanh.f32 %v3564_v10  ;;  %v11650_v10 = vld [vmem:[%s14537_s12 + $0x30] sm:$0xff] }
 0xa43   :  { %4007 = vmatpush.msra.mxu2 %v11619_v55  ;;  %3989 = vmatpush.msrb.mxu1 %v11650_v10 }
 0xa44   :  { %4029 = vmatpush.msrb.mxu0 %v11662_v44 }
 0xa45   :  { %4008 = vmatpush.msra.mxu2 %v11637_v9 }
 0xa47   :  { %4009 = vmatpush.msra.mxu2 %v11655_v8 }
 0xa48   :  { %v7472_v28 = vpop.eup %7471 }
 0xa49   :  { %v3567_v19 = vmul.f32 %v7472_v28, %v3566_v1  ;;  %v11668_v1 = vld [vmem:[%s14537_s12 + $0x18] sm:$0xff]  ;;  %v11680_v28 = vld [vmem:[%s14537_s12 + $0x28] sm:$0xff]  ;;  %4010 = vmatpush.msra.mxu2 %v11673_v13 }
 0xa4a   :  { %14889 = vst [vmem:[#allocation12_spill] sm:$0xff] %v11680_v28  ;;  %3990 = vmatpush.msrb.mxu1 %v11668_v1  ;;  %4030 = vmatpush.msrb.mxu0 %v11680_v28 }
 0xa4b   :  { %v11412_v51 = vadd.f32 %v3570_v39, %v3567_v19  ;;  %v11686_v19 = vld [vmem:[%s14537_s12] sm:$0xff]  ;;  %v11691_v39 = vld [vmem:[%s14537_s12 + $0x8] sm:$0xff] }
 0xa4c   :  { %14890 = vst [vmem:[#allocation25_spill] sm:$0xff] %v11691_v39  ;;  %3991 = vmatpush.msrb.mxu1 %v11686_v19  ;;  %4011 = vmatpush.msra.mxu2 %v11691_v39 }
 0xa4d   :  { %3573 = vst [vmem:[#allocation5] sm:$0x30] %v11412_v51  ;;  %v3799_v37 = vrot.slane %v11412_v51, 4 }
 0xa4f   :  { %3817 = vmatmul.f32.vlgmr.msrb.gmra.mxu2 %v3799_v37  ;;  %3837 = vmatmul.f32.vlgmr.msra.gmra.mxu0 %v3799_v37 }
 0xa50   :  { %3857 = vmatmul.f32.vlgmr.msra.gmra.mxu3 %v3799_v37  ;;  %v11698_v37 = vld [vmem:[%s14537_s12 + $0x10] sm:$0xff] }
 0xa51   :  { %14891 = vst [vmem:[#allocation21_spill] sm:$0xff] %v11698_v37  ;;  %4031 = vmatpush.msrb.mxu0 %v11698_v37 }
 0xa53   :  { %4299 = vmatpush.msra.mxu0 %v11419_v0 }
 0xa55   :  { %4300 = vmatpush.msra.mxu0 %v11437_v11 }
 0xa57   :  { %4301 = vmatpush.msra.mxu0 %v11455_v58 }
 0xa59   :  { %4302 = vmatpush.msra.mxu0 %v11473_v38 }
 0xa5b   :  { %4303 = vmatpush.msra.mxu0 %v11491_v6 }
 0xa5d   :  { %4304 = vmatpush.msra.mxu0 %v11509_v29 }
 0xa5f   :  { %4305 = vmatpush.msra.mxu0 %v11527_v47 }
 0xa61   :  { %4306 = vmatpush.msra.mxu0 %v11545_v24 }
 0xa63   :  { %4307 = vmatpush.msra.mxu0 %v11563_v15  ;;  %v4133_v15 = vld [vmem:[%s14538_s13 + $0x170] sm:$0xff] }
 0xa64   :  { %4158 = vmatpush.msra.mxu1 %v4133_v15 }
 0xa65   :  { %4308 = vmatpush.msra.mxu0 %v11580_v35  ;;  %v11738_v35 = vld [vmem:[%s14538_s13 + $0x178] sm:$0xff] }
 0xa66   :  { %4178 = vmatpush.msrb.mxu2 %v11738_v35 }
 0xa67   :  { %4309 = vmatpush.msra.mxu0 %v11596_v34  ;;  %v11745_v34 = vld [vmem:[%s14538_s13 + $0x150] sm:$0xff] }
 0xa69   :  { %4310 = vmatpush.msra.mxu0 %v11614_v23  ;;  %v4130_v23 = vld [vmem:[%s14538_s13 + $0x158] sm:$0xff] }
 0xa6a   :  { %4159 = vmatpush.msra.mxu1 %v4130_v23 }
 0xa6b   :  { %4311 = vmatpush.msra.mxu0 %v11632_v5  ;;  %v11753_v5 = vld [vmem:[%s14538_s13 + $0x160] sm:$0xff] }
 0xa6c   :  { %4179 = vmatpush.msrb.mxu2 %v11753_v5 }
 0xa6d   :  { %4312 = vmatpush.msra.mxu0 %v11650_v10  ;;  %v11760_v10 = vld [vmem:[%s14538_s13 + $0x138] sm:$0xff] }
 0xa6f   :  { %4313 = vmatpush.msra.mxu0 %v11668_v1  ;;  %v4127_v1 = vld [vmem:[%s14538_s13 + $0x140] sm:$0xff] }
 0xa70   :  { %4160 = vmatpush.msra.mxu1 %v4127_v1 }
 0xa71   :  { %4314 = vmatpush.msra.mxu0 %v11686_v19  ;;  %v11768_v19 = vld [vmem:[%s14538_s13 + $0x148] sm:$0xff] }
 0xa72   :  { %4180 = vmatpush.msrb.mxu2 %v11768_v19 }
 0xa86   :  { %v3645_v33 = vpop.f32.mrf.mxu0 }
 0xa87   :  { %v3689_v54 = vrot.slane %v3645_v33, 2 }
 0xa89   :  { %v3691_v3 = vadd.f32 %v3689_v54, %v3574_v57 }
 0xa8b   :  { %v7245_v2 = vmul.f32 -1.442695, %v3691_v3 }
 0xa8c   :  { %v3665_v12 = vpop.f32.mrf.mxu3 }
 0xa8d   :  { %7473 = vpow2.f32 %v7245_v2  ;;  %v3712_v36 = vrot.slane %v3665_v12, 2  ;;  %v3685_v2 = vpop.f32.mrf.mxu1 }
 0xa8f   :  { %v3714_v46 = vadd.f32 %v3712_v36, %v3575_v14 }
 0xa91   :  { %v7246_v4 = vmul.f32 -1.442695, %v3714_v46 }
 0xa93   :  { %v7474_v48 = vpop.eup %7473  ;;  %7475 = vpow2.f32 %v7246_v4  ;;  %v3734_v4 = vadd.f32 %v11397_v20, %v3685_v2  ;;  %v3576_v2 = vld [vmem:[#allocation2 + $0x68] sm:$0xc0] }
 0xa94   :  { %v3695_v40 = vadd.f32 1.0, %v7474_v48 }
 0xa96   :  { %7477 = vrcp.f32 %v3695_v40  ;;  %v3707_v36 = vand.u32 2147483648, %v3695_v40  ;;  %v3705_v46 = vand.u32 2147483647, %v3695_v40  ;;  %vm3701_vm15 = vweird.f32 %v3695_v40 }
 0xa98   :  { %v3708_v0 = vor.u32 1.1754944e-38, %v3707_v36  ;;  %vm3706_vm3 = vcmp.eq.f32.partialorder %v3705_v46, 8.507059e+37 }
 0xa99   :  { %v7476_v33 = vpop.eup %7475 }
 0xa9a   :  { %v3718_v54 = vadd.f32 1.0, %v7476_v33 }
 0xa9c   :  { %v7478_v57 = vpop.eup %7477  ;;  %7479 = vrcp.f32 %v3718_v54  ;;  %v3730_v20 = vand.u32 2147483648, %v3718_v54  ;;  %v3728_v38 = vand.u32 2147483647, %v3718_v54  ;;  %vm3724_vm6 = vweird.f32 %v3718_v54 }
 0xa9d   :  { %v3697_v3 = vmul.f32 %v7478_v57, %v3695_v40  ;;  %vm3702_vm14 = vweird.f32 %v7478_v57 }
 0xa9e   :  { %vm3703_vm0 = vmor %vm3701_vm15, %vm3702_vm14  ;;  %v3731_v6 = vor.u32 1.1754944e-38, %v3730_v20  ;;  %vm3729_vm8 = vcmp.eq.f32.partialorder %v3728_v38, 8.507059e+37  ;;  %v11798_v20 = vld [vmem:[%s14538_s13 + $0x118] sm:$0xff]  ;;  %v11805_v38 = vld [vmem:[%s14538_s13 + $0xf0] sm:$0xff] }
 0xa9f   :  { %v3698_v12 = vsub.f32 1.0, %v3697_v3  ;;  %v3736_v3 = vrot.slane %v3734_v4, 2 }
 0xaa1   :  { %v3699_v14 = vmul.f32 %v7478_v57, %v3698_v12 }
 0xaa2   :  { %v7480_v48 = vpop.eup %7479 }
 0xaa3   :  { %v3700_v33 = vadd.f32 %v7478_v57, %v3699_v14  ;;  %v3720_v37 = vmul.f32 %v7480_v48, %v3718_v54  ;;  %vm3725_vm4 = vweird.f32 %v7480_v48 }
 0xaa4   :  { %vm3726_vm7 = vmor %vm3724_vm6, %vm3725_vm4 }
 0xaa5   :  { %v3704_v11 = vsel %vm3703_vm0, %v7478_v57, %v3700_v33  ;;  %v3721_v39 = vsub.f32 1.0, %v3720_v37  ;;  %v3743_v57 = vrot.slane %v11401_v62, 6  ;;  %v11730_v62 = vld [vmem:[%s14538_s13 + $0x168] sm:$0xff] }
 0xaa6   :  { %v3709_v58 = vsel %vm3706_vm3, %v3708_v0, %v3704_v11  ;;  %4138 = vmatpush.msrb.mxu3 %v11730_v62  ;;  %v4124_v33 = vld [vmem:[%s14538_s13 + $0x128] sm:$0xff]  ;;  %v11783_v0 = vld [vmem:[%s14538_s13 + $0x130] sm:$0xff]  ;;  %v3748_v11 = vld [vmem:[#allocation3 + $0x8] sm:$0xc] }
 0xaa7   :  { %v3738_v12 = vmul.f32 %v3736_v3, %v3709_v58  ;;  %v3722_v28 = vmul.f32 %v7480_v48, %v3721_v39  ;;  %4161 = vmatpush.msra.mxu1 %v4124_v33  ;;  %4181 = vmatpush.msrb.mxu2 %v11783_v0  ;;  %v11790_v58 = vld [vmem:[%s14538_s13 + $0x108] sm:$0xff] }
 0xaa8   :  { %4139 = vmatpush.msrb.mxu3 %v11745_v34 }
 0xaa9   :  { %v3739_v40 = vadd.f32 %v3738_v12, %v3576_v2  ;;  %v3723_v14 = vadd.f32 %v7480_v48, %v3722_v28  ;;  %v4121_v12 = vld [vmem:[%s14538_s13 + $0x110] sm:$0xff]  ;;  %4182 = vmatpush.msrb.mxu2 %v11798_v20 }
 0xaaa   :  { %4140 = vmatpush.msrb.mxu3 %v11760_v10  ;;  %4162 = vmatpush.msra.mxu1 %v4121_v12 }
 0xaab   :  { %7481 = vtanh.f32 %v3739_v40  ;;  %v3727_v37 = vsel %vm3726_vm7, %v7480_v48, %v3723_v14  ;;  %v11775_v48 = vld [vmem:[%s14538_s13 + $0x120] sm:$0xff]  ;;  %v4118_v40 = vld [vmem:[%s14538_s13 + $0xf8] sm:$0xff] }
 0xaac   :  { %v3732_v29 = vsel %vm3729_vm8, %v3731_v6, %v3727_v37  ;;  %4141 = vmatpush.msrb.mxu3 %v11775_v48  ;;  %v11813_v14 = vld [vmem:[%s14538_s13 + $0x100] sm:$0xff]  ;;  %4163 = vmatpush.msra.mxu1 %v4118_v40 }
 0xaad   :  { %v3741_v39 = vsub.f32 1.0, %v3732_v29  ;;  %v3745_v54 = vmul.f32 %v3743_v57, %v3732_v29  ;;  %4183 = vmatpush.msrb.mxu2 %v11813_v14  ;;  %v11820_v29 = vld [vmem:[%s14538_s13 + $0xd8] sm:$0xff]  ;;  %v11828_v57 = vld [vmem:[%s14538_s13 + $0xe8] sm:$0xff] }
 0xaae   :  { %4142 = vmatpush.msrb.mxu3 %v11790_v58  ;;  %14893 = vst [vmem:[#allocation8_spill] sm:$0xff] %v11828_v57 }
 0xaaf   :  { %4184 = vmatpush.msrb.mxu2 %v11828_v57 }
 0xab0   :  { %4143 = vmatpush.msrb.mxu3 %v11805_v38 }
 0xab1   :  { %v7482_v47 = vpop.eup %7481 }
 0xab2   :  { %v3742_v28 = vmul.f32 %v7482_v47, %v3741_v39  ;;  %v4115_v39 = vld [vmem:[%s14538_s13 + $0xe0] sm:$0xff]  ;;  %v3747_v47 = vld [vmem:[#allocation3 + $0x38] sm:$0xc]  ;;  %4144 = vmatpush.msrb.mxu3 %v11820_v29 }
 0xab3   :  { %4164 = vmatpush.msra.mxu1 %v4115_v39 }
 0xab4   :  { %v3746_v24 = vadd.f32 %v3745_v54, %v3742_v28  ;;  %v11835_v54 = vld [vmem:[%s14538_s13 + $0xc0] sm:$0xff] }
 0xab5   :  { %4145 = vmatpush.msrb.mxu3 %v11835_v54 }
 0xab6   :  { %3920 = vst [vmem:[#allocation4] sm:$0xc0] %v3746_v24  ;;  %v11719_v36 = vrot.slane %v3746_v24, 6  ;;  %v4112_v24 = vld [vmem:[%s14538_s13 + $0xc8] sm:$0xff] }
 0xab7   :  { %4165 = vmatpush.msra.mxu1 %v4112_v24 }
 0xab8   :  { %14892 = vst [vmem:[#allocation14_spill] sm:$0xff] %v11719_v36  ;;  %3992 = vmatmul.f32.vlgmr.msrb.gmra.mxu1 %v11719_v36  ;;  %4012 = vmatmul.f32.vlgmr.msra.gmra.mxu2 %v11719_v36 }
 0xab9   :  { %4032 = vmatmul.f32.vlgmr.msrb.gmra.mxu0 %v11719_v36 }
 0xaba   :  { %4490 = vmatpush.msrb.mxu0 %v4133_v15  ;;  %v11843_v15 = vld [vmem:[%s14538_s13 + $0xd0] sm:$0xff] }
 0xabb   :  { %14894 = vst [vmem:[#allocation29_spill] sm:$0xff] %v11843_v15  ;;  %4185 = vmatpush.msrb.mxu2 %v11843_v15 }
 0xabc   :  { %4491 = vmatpush.msrb.mxu0 %v4130_v23 }
 0xabe   :  { %4492 = vmatpush.msrb.mxu0 %v4127_v1  ;;  %v11850_v1 = vld [vmem:[%s14538_s13 + $0xa8] sm:$0xff] }
 0xabf   :  { %4146 = vmatpush.msrb.mxu3 %v11850_v1 }
 0xac0   :  { %4493 = vmatpush.msrb.mxu0 %v4124_v33 }
 0xac2   :  { %4494 = vmatpush.msrb.mxu0 %v4121_v12  ;;  %v11873_v12 = vld [vmem:[%s14538_s13 + $0xa0] sm:$0xff] }
 0xac3   :  { %14896 = vst [vmem:[#allocation9_spill] sm:$0xff] %v11873_v12 }
 0xac4   :  { %4495 = vmatpush.msrb.mxu0 %v4118_v40  ;;  %v11882_v40 = vld [vmem:[%s14538_s13 + $0x78] sm:$0xff] }
 0xac6   :  { %4496 = vmatpush.msrb.mxu0 %v4115_v39  ;;  %v11898_v39 = vld [vmem:[%s14538_s13 + $0x60] sm:$0xff] }
 0xac8   :  { %4497 = vmatpush.msrb.mxu0 %v4112_v24  ;;  %v11912_v24 = vld [vmem:[%s14538_s13 + $0x48] sm:$0xff] }
 0xacc   :  { %v3838_v46 = vpop.f32.mrf.mxu0 }
 0xacd   :  { %v3885_v4 = vrot.slane %v3838_v46, 6  ;;  %v4109_v46 = vld [vmem:[%s14538_s13 + $0xb0] sm:$0xff] }
 0xace   :  { %4166 = vmatpush.msra.mxu1 %v4109_v46  ;;  %4498 = vmatpush.msrb.mxu0 %v4109_v46  ;;  %v11920_v46 = vld [vmem:[%s14538_s13 + $0x58] sm:$0xff] }
 0xacf   :  { %v3887_v3 = vadd.f32 %v3885_v4, %v3748_v11  ;;  %v11858_v4 = vld [vmem:[%s14538_s13 + $0xb8] sm:$0xff]  ;;  %v11865_v11 = vld [vmem:[%s14538_s13 + $0x90] sm:$0xff]  ;;  %14899 = vst [vmem:[#allocation20_spill] sm:$0xff] %v11920_v46 }
 0xad0   :  { %14895 = vst [vmem:[#allocation16_spill] sm:$0xff] %v11858_v4  ;;  %4186 = vmatpush.msrb.mxu2 %v11858_v4  ;;  %4147 = vmatpush.msrb.mxu3 %v11865_v11  ;;  %v11967_v4 = vld [vmem:[%s14538_s13 + $0x10] sm:$0xff] }
 0xad1   :  { %v7248_v2 = vmul.f32 -1.442695, %v3887_v3  ;;  %v4106_v3 = vld [vmem:[%s14538_s13 + $0x98] sm:$0xff]  ;;  %14902 = vst [vmem:[#allocation7_spill] sm:$0xff] %v11967_v4 }
 0xad2   :  { %v3818_v6 = vpop.f32.mrf.mxu2  ;;  %4167 = vmatpush.msra.mxu1 %v4106_v3  ;;  %4187 = vmatpush.msrb.mxu2 %v11873_v12  ;;  %v11958_v12 = vld [vmem:[%s14538_s13] sm:$0xff] }
 0xad3   :  { %7483 = vpow2.f32 %v7248_v2  ;;  %v3862_v37 = vrot.slane %v3818_v6, 6  ;;  %v4103_v6 = vld [vmem:[%s14538_s13 + $0x80] sm:$0xff]  ;;  %4499 = vmatpush.msrb.mxu0 %v4106_v3  ;;  %4148 = vmatpush.msrb.mxu3 %v11882_v40  ;;  %v11926_v3 = vld [vmem:[%s14538_s13 + $0x30] sm:$0xff] }
 0xad4   :  { %4168 = vmatpush.msra.mxu1 %v4103_v6 }
 0xad5   :  { %v3864_v28 = vadd.f32 %v3862_v37, %v3747_v47  ;;  %v11890_v37 = vld [vmem:[%s14538_s13 + $0x88] sm:$0xff]  ;;  %4500 = vmatpush.msrb.mxu0 %v4103_v6  ;;  %4149 = vmatpush.msrb.mxu3 %v11898_v39  ;;  %v4094_v6 = vld [vmem:[%s14538_s13 + $0x38] sm:$0xff] }
 0xad6   :  { %14897 = vst [vmem:[#allocation18_spill] sm:$0xff] %v11890_v37  ;;  %4188 = vmatpush.msrb.mxu2 %v11890_v37  ;;  %v4100_v47 = vld [vmem:[%s14538_s13 + $0x68] sm:$0xff]  ;;  %v11935_v37 = vld [vmem:[%s14538_s13 + $0x40] sm:$0xff] }
 0xad7   :  { %v7247_v23 = vmul.f32 -1.442695, %v3864_v28  ;;  %v11906_v28 = vld [vmem:[%s14538_s13 + $0x70] sm:$0xff]  ;;  %4169 = vmatpush.msra.mxu1 %v4100_v47  ;;  %4501 = vmatpush.msrb.mxu0 %v4100_v47  ;;  %14900 = vst [vmem:[#allocation22_spill] sm:$0xff] %v11935_v37  ;;  %v4091_v47 = vld [vmem:[%s14538_s13 + $0x20] sm:$0xff] }
 0xad8   :  { %14898 = vst [vmem:[#allocation10_spill] sm:$0xff] %v11906_v28  ;;  %4189 = vmatpush.msrb.mxu2 %v11906_v28  ;;  %4150 = vmatpush.msrb.mxu3 %v11912_v24  ;;  %v11941_v28 = vld [vmem:[%s14538_s13 + $0x18] sm:$0xff] }
 0xad9   :  { %v7484_v33 = vpop.eup %7483  ;;  %7485 = vpow2.f32 %v7247_v23  ;;  %v4097_v23 = vld [vmem:[%s14538_s13 + $0x50] sm:$0xff] }
 0xada   :  { %v11875_v2 = vadd.f32 1.0, %v7484_v33  ;;  %4170 = vmatpush.msra.mxu1 %v4097_v23  ;;  %4190 = vmatpush.msrb.mxu2 %v11920_v46 }
 0xadb   :  { %4502 = vmatpush.msrb.mxu0 %v4097_v23  ;;  %4151 = vmatpush.msrb.mxu3 %v11926_v3  ;;  %v4088_v23 = vld [vmem:[%s14538_s13 + $0x8] sm:$0xff] }
 0xadc   :  { %7487 = vrcp.f32 %v11875_v2  ;;  %4171 = vmatpush.msra.mxu1 %v4094_v6  ;;  %4191 = vmatpush.msrb.mxu2 %v11935_v37  ;;  %vm3897_vm14 = vweird.f32 %v11875_v2 }
 0xadd   :  { %4503 = vmatpush.msrb.mxu0 %v4094_v6  ;;  %4152 = vmatpush.msrb.mxu3 %v11941_v28 }
 0xade   :  { %4172 = vmatpush.msra.mxu1 %v4091_v47 }
 0xadf   :  { %v7486_v33 = vpop.eup %7485  ;;  %4504 = vmatpush.msrb.mxu0 %v4091_v47  ;;  %4153 = vmatpush.msrb.mxu3 %v11958_v12 }
 0xae0   :  { %v3868_v36 = vadd.f32 1.0, %v7486_v33  ;;  %v11950_v33 = vld [vmem:[%s14538_s13 + $0x28] sm:$0xff]  ;;  %4173 = vmatpush.msra.mxu1 %v4088_v23 }
 0xae1   :  { %14901 = vst [vmem:[#allocation26_spill] sm:$0xff] %v11950_v33  ;;  %4192 = vmatpush.msrb.mxu2 %v11950_v33  ;;  %4319 = vmatpush.msra.mxu3 %v11424_v60  ;;  %v3858_v33 = vpop.f32.mrf.mxu3 }
 0xae2   :  { %7489 = vrcp.f32 %v3868_v36  ;;  %v11952_v46 = vpop.eup %7487  ;;  %4339 = vmatpush.msrb.mxu1 %v11429_v22  ;;  %4505 = vmatpush.msrb.mxu0 %v4088_v23  ;;  %v3878_v22 = vand.u32 2147483647, %v3868_v36  ;;  %vm3874_vm10 = vweird.f32 %v3868_v36 }
 0xae3   :  { %v3893_v37 = vmul.f32 %v11952_v46, %v11875_v2  ;;  %4193 = vmatpush.msrb.mxu2 %v11967_v4  ;;  %4320 = vmatpush.msra.mxu3 %v11442_v53  ;;  %v3880_v4 = vand.u32 2147483648, %v3868_v36  ;;  %v3907_v53 = vadd.f32 %v11408_v56, %v3858_v33  ;;  %vm3898_vm13 = vweird.f32 %v11952_v46 }
 0xae4   :  { %4340 = vmatpush.msrb.mxu1 %v11447_v26  ;;  %vm3879_vm12 = vcmp.eq.f32.partialorder %v3878_v22, 8.507059e+37  ;;  %vm3899_vm15 = vmor %vm3897_vm14, %vm3898_vm13 }
 0xae5   :  { %4470 = vmatpush.msra.mxu2 %v11730_v62  ;;  %v3894_v47 = vsub.f32 1.0, %v3893_v37  ;;  %4321 = vmatpush.msra.mxu3 %v11460_v45  ;;  %v3881_v45 = vor.u32 1.1754944e-38, %v3880_v4  ;;  %v3909_v56 = vrot.slane %v3907_v53, 6 }
 0xae6   :  { %4341 = vmatpush.msrb.mxu1 %v11465_v49 }
 0xae7   :  { %4471 = vmatpush.msra.mxu2 %v11745_v34  ;;  %4322 = vmatpush.msra.mxu3 %v11478_v41  ;;  %v3895_v62 = vmul.f32 %v11952_v46, %v3894_v47  ;;  %v3749_v34 = vld [vmem:[#allocation3 + $0x40] sm:$0xc] }
 0xae8   :  { %v7490_v6 = vpop.eup %7489  ;;  %4342 = vmatpush.msrb.mxu1 %v11483_v25 }
 0xae9   :  { %v3870_v15 = vmul.f32 %v7490_v6, %v3868_v36  ;;  %4472 = vmatpush.msra.mxu2 %v11760_v10  ;;  %vm3875_vm9 = vweird.f32 %v7490_v6  ;;  %4323 = vmatpush.msra.mxu3 %v11496_v52  ;;  %v3896_v25 = vadd.f32 %v11952_v46, %v3895_v62  ;;  %v3903_v52 = vand.u32 2147483648, %v11875_v2 }
 0xaea   :  { %vm3876_vm11 = vmor %vm3874_vm10, %vm3875_vm9  ;;  %4343 = vmatpush.msrb.mxu1 %v11501_v63  ;;  %v3901_v63 = vand.u32 2147483647, %v11875_v2 }
 0xaeb   :  { %v3871_v57 = vsub.f32 1.0, %v3870_v15  ;;  %4473 = vmatpush.msra.mxu2 %v11775_v48  ;;  %4324 = vmatpush.msra.mxu3 %v11514_v42  ;;  %v3922_v48 = vld [vmem:[#allocation2 + $0x8] sm:$0x3] }
 0xaec   :  { %4344 = vmatpush.msrb.mxu1 %v11519_v50  ;;  %v3900_v50 = vsel %vm3899_vm15, %v11952_v46, %v3896_v25  ;;  %vm3902_vm0 = vcmp.eq.f32.partialorder %v3901_v63, 8.507059e+37 }
 0xaed   :  { %v3872_v60 = vmul.f32 %v7490_v6, %v3871_v57  ;;  %4474 = vmatpush.msra.mxu2 %v11790_v58  ;;  %4325 = vmatpush.msra.mxu3 %v11532_v32  ;;  %v3904_v32 = vor.u32 1.1754944e-38, %v3903_v52 }
 0xaee   :  { %4345 = vmatpush.msrb.mxu1 %v11537_v21 }
 0xaef   :  { %v3873_v26 = vadd.f32 %v7490_v6, %v3872_v60  ;;  %4475 = vmatpush.msra.mxu2 %v11805_v38  ;;  %4326 = vmatpush.msra.mxu3 %v11550_v27  ;;  %v3905_v21 = vsel %vm3902_vm0, %v3904_v32, %v3900_v50  ;;  %v3923_v38 = vld [vmem:[#allocation2 + $0x48] sm:$0x3]  ;;  %v14916_v50 = vld [vmem:[#allocation14_spill] sm:$0xff] }
 0xaf0   :  { %4346 = vmatpush.msrb.mxu1 %v11555_v7  ;;  %v3914_v27 = vsub.f32 1.0, %v3905_v21  ;;  %v3916_v7 = vrot.slane %v11412_v51, 2 }
 0xaf1   :  { %v3877_v49 = vsel %vm3876_vm11, %v7490_v6, %v3873_v26  ;;  %4476 = vmatpush.msra.mxu2 %v11820_v29  ;;  %4327 = vmatpush.msra.mxu3 %v11568_v59  ;;  %v12055_v6 = vld [vmem:[%s14539_s14] ss:$0 sm:$0xff] }
 0xaf2   :  { %v3882_v41 = vsel %vm3879_vm12, %v3881_v45, %v3877_v49  ;;  %4347 = vmatpush.msrb.mxu1 %v11573_v31  ;;  %v3918_v10 = vmul.f32 %v3916_v7, %v3905_v21  ;;  %v3924_v45 = vld [vmem:[#allocation2 + $0x40] sm:$0x3] }
 0xaf3   :  { %v3911_v36 = vmul.f32 %v3909_v56, %v3882_v41  ;;  %4477 = vmatpush.msra.mxu2 %v11835_v54  ;;  %4328 = vmatpush.msra.mxu3 %v11585_v18 }
 0xaf4   :  { %4348 = vmatpush.msrb.mxu1 %v11590_v43  ;;  %v14903_v43 = vld [vmem:[#allocation12_spill] sm:$0xff] }
 0xaf5   :  { %v3912_v42 = vadd.f32 %v3911_v36, %v3749_v34  ;;  %4478 = vmatpush.msra.mxu2 %v11850_v1  ;;  %4329 = vmatpush.msra.mxu3 %v11601_v17  ;;  %v14904_v17 = vld [vmem:[#allocation25_spill] sm:$0xff] }
 0xaf6   :  { %4349 = vmatpush.msrb.mxu1 %v11608_v30  ;;  %v14905_v30 = vld [vmem:[#allocation21_spill] sm:$0xff] }
 0xaf7   :  { %7491 = vtanh.f32 %v3912_v42  ;;  %4479 = vmatpush.msra.mxu2 %v11865_v11  ;;  %4330 = vmatpush.msra.mxu3 %v11619_v55  ;;  %v14906_v55 = vld [vmem:[#allocation8_spill] sm:$0xff] }
 0xaf8   :  { %4350 = vmatpush.msrb.mxu1 %v11626_v61  ;;  %v14907_v61 = vld [vmem:[#allocation29_spill] sm:$0xff] }
 0xaf9   :  { %4480 = vmatpush.msra.mxu2 %v11882_v40  ;;  %4331 = vmatpush.msra.mxu3 %v11637_v9  ;;  %v14908_v9 = vld [vmem:[#allocation16_spill] sm:$0xff] }
 0xafa   :  { %4351 = vmatpush.msrb.mxu1 %v11644_v16  ;;  %v14909_v16 = vld [vmem:[#allocation9_spill] sm:$0xff] }
 0xafb   :  { %4481 = vmatpush.msra.mxu2 %v11898_v39  ;;  %4332 = vmatpush.msra.mxu3 %v11655_v8  ;;  %v14910_v8 = vld [vmem:[#allocation18_spill] sm:$0xff] }
 0xafc   :  { %4352 = vmatpush.msrb.mxu1 %v11662_v44  ;;  %v14911_v44 = vld [vmem:[#allocation10_spill] sm:$0xff] }
 0xafd   :  { %v7492_v59 = vpop.eup %7491  ;;  %4482 = vmatpush.msra.mxu2 %v11912_v24  ;;  %4333 = vmatpush.msra.mxu3 %v11673_v13  ;;  %v14912_v13 = vld [vmem:[#allocation20_spill] sm:$0xff] }
 0xafe   :  { %v3915_v31 = vmul.f32 %v7492_v59, %v3914_v27  ;;  %4353 = vmatpush.msrb.mxu1 %v14903_v43  ;;  %v4085_v27 = vld [vmem:[#allocation3 + $0x8] sm:$0x3] }
 0xaff   :  { %4483 = vmatpush.msra.mxu2 %v11926_v3  ;;  %4334 = vmatpush.msra.mxu3 %v14904_v17 }
 0xb00   :  { %v3919_v18 = vadd.f32 %v3918_v10, %v3915_v31  ;;  %4354 = vmatpush.msrb.mxu1 %v14905_v30  ;;  %v4084_v10 = vld [vmem:[#allocation3 + $0x38] sm:$0x3] }
 0xb01   :  { %4484 = vmatpush.msra.mxu2 %v11941_v28 }
 0xb02   :  { %3921 = vst [vmem:[#allocation5] sm:$0xc] %v3919_v18  ;;  %v12023_v51 = vrot.slane %v3919_v18, 2 }
 0xb03   :  { %4485 = vmatpush.msra.mxu2 %v11958_v12 }
 0xb04   :  { %4154 = vmatmul.f32.vlgmr.msrb.gmra.mxu3 %v12023_v51  ;;  %4174 = vmatmul.f32.vlgmr.msra.gmra.mxu1 %v12023_v51 }
 0xb05   :  { %4194 = vmatmul.f32.vlgmr.msrb.gmra.mxu2 %v12023_v51  ;;  %4510 = vmatpush.msrb.mxu3 %v11738_v35  ;;  %v14913_v35 = vld [vmem:[#allocation22_spill] sm:$0xff] }
 0xb07   :  { %4511 = vmatpush.msrb.mxu3 %v11753_v5  ;;  %v14914_v5 = vld [vmem:[#allocation26_spill] sm:$0xff] }
 0xb09   :  { %4512 = vmatpush.msrb.mxu3 %v11768_v19  ;;  %v14915_v19 = vld [vmem:[#allocation7_spill] sm:$0xff] }
 0xb0b   :  { %4513 = vmatpush.msrb.mxu3 %v11783_v0 }
 0xb0d   :  { %4514 = vmatpush.msrb.mxu3 %v11798_v20 }
 0xb0f   :  { %4515 = vmatpush.msrb.mxu3 %v11813_v14 }
 0xb11   :  { %4516 = vmatpush.msrb.mxu3 %v14906_v55 }
 0xb13   :  { %4517 = vmatpush.msrb.mxu3 %v14907_v61 }
 0xb15   :  { %4518 = vmatpush.msrb.mxu3 %v14908_v9 }
 0xb17   :  { %4519 = vmatpush.msrb.mxu3 %v14909_v16 }
 0xb19   :  { %4520 = vmatpush.msrb.mxu3 %v14910_v8 }
 0xb1b   :  { %4521 = vmatpush.msrb.mxu3 %v14911_v44 }
 0xb1d   :  { %4522 = vmatpush.msrb.mxu3 %v14912_v13 }
 0xb1f   :  { %4523 = vmatpush.msrb.mxu3 %v14913_v35 }
 0xb21   :  { %4524 = vmatpush.msrb.mxu3 %v14914_v5 }
 0xb23   :  { %4525 = vmatpush.msrb.mxu3 %v14915_v19 }
 0xb35   :  { %v3993_v0 = vpop.f32.mrf.mxu1 }
 0xb36   :  { %v4036_v58 = vadd.f32 %v3993_v0, %v3922_v48  ;;  %v4033_v24 = vpop.f32.mrf.mxu0 }
 0xb37   :  { %v4076_v47 = vadd.f32 %v12055_v6, %v4033_v24 }
 0xb38   :  { %v7249_v20 = vmul.f32 -1.442695, %v4036_v58 }
 0xb3a   :  { %7493 = vpow2.f32 %v7249_v20 }
 0xb3b   :  { %v4013_v14 = vpop.f32.mrf.mxu2 }
 0xb3c   :  { %v4056_v29 = vadd.f32 %v4013_v14, %v3923_v38 }
 0xb3e   :  { %v7250_v57 = vmul.f32 -1.442695, %v4056_v29 }
 0xb40   :  { %v7494_v54 = vpop.eup %7493  ;;  %7495 = vpow2.f32 %v7250_v57  ;;  %v12068_v57 = vld [vmem:[%s14540_s15] ss:$0 sm:$0xff] }
 0xb41   :  { %v4040_v15 = vadd.f32 1.0, %v7494_v54 }
 0xb43   :  { %7497 = vrcp.f32 %v4040_v15  ;;  %v4052_v40 = vand.u32 2147483648, %v4040_v15  ;;  %v4050_v39 = vand.u32 2147483647, %v4040_v15  ;;  %vm4046_vm4 = vweird.f32 %v4040_v15 }
 0xb45   :  { %v4053_v33 = vor.u32 1.1754944e-38, %v4052_v40  ;;  %vm4051_vm7 = vcmp.eq.f32.partialorder %v4050_v39, 8.507059e+37 }
 0xb46   :  { %v7496_v1 = vpop.eup %7495 }
 0xb47   :  { %v4060_v4 = vadd.f32 1.0, %v7496_v1 }
 0xb49   :  { %v7498_v11 = vpop.eup %7497  ;;  %7499 = vrcp.f32 %v4060_v4  ;;  %v4072_v26 = vand.u32 2147483648, %v4060_v4  ;;  %v4070_v49 = vand.u32 2147483647, %v4060_v4  ;;  %vm4066_vm9 = vweird.f32 %v4060_v4 }
 0xb4a   :  { %v4042_v12 = vmul.f32 %v7498_v11, %v4040_v15  ;;  %vm4047_vm3 = vweird.f32 %v7498_v11 }
 0xb4b   :  { %vm4048_vm6 = vmor %vm4046_vm4, %vm4047_vm3  ;;  %v4073_v25 = vor.u32 1.1754944e-38, %v4072_v26  ;;  %vm4071_vm11 = vcmp.eq.f32.partialorder %v4070_v49, 8.507059e+37  ;;  %v12117_v26 = vld [vmem:[%s14537_s12 + $0x138] sm:$0xff]  ;;  %v12127_v49 = vld [vmem:[%s14537_s12 + $0x148] sm:$0xff] }
 0xb4c   :  { %v4043_v2 = vsub.f32 1.0, %v4042_v12 }
 0xb4e   :  { %v4044_v37 = vmul.f32 %v7498_v11, %v4043_v2  ;;  %v4086_v2 = vld [vmem:[#allocation3 + $0x40] sm:$0x3] }
 0xb4f   :  { %v7500_v28 = vpop.eup %7499 }
 0xb50   :  { %v4045_v46 = vadd.f32 %v7498_v11, %v4044_v37  ;;  %v4062_v3 = vmul.f32 %v7500_v28, %v4060_v4  ;;  %vm4067_vm8 = vweird.f32 %v7500_v28 }
 0xb51   :  { %vm4068_vm10 = vmor %vm4066_vm9, %vm4067_vm8 }
 0xb52   :  { %v4049_v23 = vsel %vm4048_vm6, %v7498_v11, %v4045_v46  ;;  %v4063_v60 = vsub.f32 1.0, %v4062_v3 }
 0xb53   :  { %v4054_v22 = vsel %vm4051_vm7, %v4053_v33, %v4049_v23 }
 0xb54   :  { %v4077_v53 = vmul.f32 %v4076_v47, %v4054_v22  ;;  %v4064_v62 = vmul.f32 %v7500_v28, %v4063_v60  ;;  %v12081_v47 = vld [vmem:[%s14537_s12 + $0x168] sm:$0xff]  ;;  %v12086_v60 = vld [vmem:[%s14537_s12 + $0x170] sm:$0xff] }
 0xb55   :  { %4646 = vmatpush.msra.mxu1 %v12081_v47  ;;  %4666 = vmatpush.msrb.mxu2 %v12086_v60  ;;  %v12099_v22 = vld [vmem:[%s14537_s12 + $0x150] sm:$0xff] }
 0xb56   :  { %v4078_v56 = vadd.f32 %v4077_v53, %v3924_v45  ;;  %v4065_v41 = vadd.f32 %v7500_v28, %v4064_v62  ;;  %v12104_v53 = vld [vmem:[%s14537_s12 + $0x158] sm:$0xff]  ;;  %v12109_v62 = vld [vmem:[%s14537_s12 + $0x160] sm:$0xff] }
 0xb57   :  { %4647 = vmatpush.msra.mxu1 %v12099_v22  ;;  %4667 = vmatpush.msrb.mxu2 %v12104_v53  ;;  %v12122_v45 = vld [vmem:[%s14537_s12 + $0x140] sm:$0xff] }
 0xb58   :  { %7501 = vtanh.f32 %v4078_v56  ;;  %v4069_v52 = vsel %vm4068_vm10, %v7500_v28, %v4065_v41  ;;  %v12135_v56 = vld [vmem:[%s14537_s12 + $0x120] sm:$0xff]  ;;  %v12140_v41 = vld [vmem:[%s14537_s12 + $0x128] sm:$0xff] }
 0xb59   :  { %v4074_v36 = vsel %vm4071_vm11, %v4073_v25, %v4069_v52  ;;  %4648 = vmatpush.msra.mxu1 %v12117_v26  ;;  %4668 = vmatpush.msrb.mxu2 %v12122_v45  ;;  %v12145_v25 = vld [vmem:[%s14537_s12 + $0x130] sm:$0xff]  ;;  %v12153_v52 = vld [vmem:[%s14537_s12 + $0x108] sm:$0xff] }
 0xb5a   :  { %v4080_v63 = vsub.f32 1.0, %v4074_v36  ;;  %v4082_v32 = vmul.f32 %v4074_v36, %v14916_v50  ;;  %v12158_v36 = vld [vmem:[%s14537_s12 + $0x110] sm:$0xff]  ;;  %v12181_v50 = vld [vmem:[%s14537_s12 + $0x100] sm:$0xff] }
 0xb5b   :  { %4649 = vmatpush.msra.mxu1 %v12135_v56  ;;  %4669 = vmatpush.msrb.mxu2 %v12140_v41 }
 0xb5d   :  { %4650 = vmatpush.msra.mxu1 %v12153_v52  ;;  %4670 = vmatpush.msrb.mxu2 %v12158_v36 }
 0xb5e   :  { %v7502_v34 = vpop.eup %7501 }
 0xb5f   :  { %v4081_v42 = vmul.f32 %v7502_v34, %v4080_v63  ;;  %v12163_v63 = vld [vmem:[%s14537_s12 + $0x118] sm:$0xff]  ;;  %v12171_v34 = vld [vmem:[%s14537_s12 + $0xf0] sm:$0xff] }
 0xb60   :  { %4651 = vmatpush.msra.mxu1 %v12171_v34 }
 0xb61   :  { %v12059_v21 = vadd.f32 %v4082_v32, %v4081_v42  ;;  %v12176_v42 = vld [vmem:[%s14537_s12 + $0xf8] sm:$0xff] }
 0xb62   :  { %4671 = vmatpush.msrb.mxu2 %v12176_v42 }
 0xb63   :  { %4246 = vst [vmem:[#allocation4 + $0x18] sm:$0x3] %v12059_v21  ;;  %4315 = vmatmul.f32.vlgmr.msra.gmra.mxu0 %v12059_v21  ;;  %4335 = vmatmul.f32.vlgmr.msra.gmra.mxu3 %v12059_v21 }
 0xb64   :  { %4355 = vmatmul.f32.vlgmr.msrb.gmra.mxu1 %v12059_v21 }
 0xb81   :  { %v4175_v7 = vpop.f32.mrf.mxu1 }
 0xb82   :  { %v4218_v59 = vadd.f32 %v4175_v7, %v4085_v27  ;;  %v12189_v7 = vld [vmem:[%s14537_s12 + $0xd8] sm:$0xff] }
 0xb83   :  { %4652 = vmatpush.msra.mxu1 %v12189_v7 }
 0xb84   :  { %v7252_v31 = vmul.f32 -1.442695, %v4218_v59  ;;  %v12194_v59 = vld [vmem:[%s14537_s12 + $0xe0] sm:$0xff] }
 0xb85   :  { %4672 = vmatpush.msrb.mxu2 %v12194_v59 }
 0xb86   :  { %7503 = vpow2.f32 %v7252_v31  ;;  %v12199_v31 = vld [vmem:[%s14537_s12 + $0xe8] sm:$0xff] }
 0xb87   :  { %v4155_v18 = vpop.f32.mrf.mxu3 }
 0xb88   :  { %v4198_v43 = vadd.f32 %v4155_v18, %v4084_v10  ;;  %v4195_v20 = vpop.f32.mrf.mxu2  ;;  %v4248_v10 = vld [vmem:[#allocation2 + $0x8] sm:$0xc] }
 0xb89   :  { %v4238_v54 = vadd.f32 %v12068_v57, %v4195_v20 }
 0xb8a   :  { %v7251_v17 = vmul.f32 -1.442695, %v4198_v43  ;;  %v12207_v43 = vld [vmem:[%s14537_s12 + $0xc0] sm:$0xff] }
 0xb8b   :  { %4653 = vmatpush.msra.mxu1 %v12207_v43 }
 0xb8c   :  { %v7504_v30 = vpop.eup %7503  ;;  %7505 = vpow2.f32 %v7251_v17  ;;  %v12212_v17 = vld [vmem:[%s14537_s12 + $0xc8] sm:$0xff] }
 0xb8d   :  { %v4222_v55 = vadd.f32 1.0, %v7504_v30  ;;  %v12217_v30 = vld [vmem:[%s14537_s12 + $0xd0] sm:$0xff]  ;;  %4673 = vmatpush.msrb.mxu2 %v12212_v17 }
 0xb8f   :  { %7507 = vrcp.f32 %v4222_v55  ;;  %v4234_v4 = vand.u32 2147483648, %v4222_v55  ;;  %vm4228_vm3 = vweird.f32 %v4222_v55  ;;  %v4232_v12 = vand.u32 2147483647, %v4222_v55 }
 0xb91   :  { %v4235_v39 = vor.u32 1.1754944e-38, %v4234_v4  ;;  %vm4233_vm6 = vcmp.eq.f32.partialorder %v4232_v12, 8.507059e+37  ;;  %v12306_v4 = vld [vmem:[%s14537_s12 + $0x58] sm:$0xff]  ;;  %v12312_v12 = vld [vmem:[%s14537_s12 + $0x30] sm:$0xff] }
 0xb92   :  { %v7506_v61 = vpop.eup %7505 }
 0xb93   :  { %v4202_v9 = vadd.f32 1.0, %v7506_v61  ;;  %v12225_v61 = vld [vmem:[%s14537_s12 + $0xa8] sm:$0xff] }
 0xb94   :  { %4654 = vmatpush.msra.mxu1 %v12225_v61 }
 0xb95   :  { %7509 = vrcp.f32 %v4202_v9  ;;  %v7508_v16 = vpop.eup %7507  ;;  %v4214_v19 = vand.u32 2147483648, %v4202_v9  ;;  %v4212_v0 = vand.u32 2147483647, %v4202_v9  ;;  %vm4208_vm13 = vweird.f32 %v4202_v9 }
 0xb96   :  { %v4224_v8 = vmul.f32 %v7508_v16, %v4222_v55  ;;  %vm4229_vm0 = vweird.f32 %v7508_v16 }
 0xb97   :  { %v4215_v14 = vor.u32 1.1754944e-38, %v4214_v19  ;;  %vm4213_vm15 = vcmp.eq.f32.partialorder %v4212_v0, 8.507059e+37  ;;  %vm4230_vm4 = vmor %vm4228_vm3, %vm4229_vm0  ;;  %v12258_v19 = vld [vmem:[%s14537_s12 + $0x78] sm:$0xff]  ;;  %v4249_v0 = vld [vmem:[#allocation2 + $0x48] sm:$0xc] }
 0xb98   :  { %v4225_v35 = vsub.f32 1.0, %v4224_v8 }
 0xb9a   :  { %v4226_v58 = vmul.f32 %v7508_v16, %v4225_v35  ;;  %v12252_v35 = vld [vmem:[%s14537_s12 + $0xa0] sm:$0xff] }
 0xb9b   :  { %v7510_v44 = vpop.eup %7509 }
 0xb9c   :  { %v4204_v13 = vmul.f32 %v7510_v44, %v4202_v9  ;;  %vm4209_vm12 = vweird.f32 %v7510_v44  ;;  %v4227_v15 = vadd.f32 %v7508_v16, %v4226_v58  ;;  %v12230_v9 = vld [vmem:[%s14537_s12 + $0xb0] sm:$0xff]  ;;  %v12270_v58 = vld [vmem:[%s14537_s12 + $0x88] sm:$0xff] }
 0xb9d   :  { %vm4210_vm14 = vmor %vm4208_vm13, %vm4209_vm12  ;;  %4674 = vmatpush.msrb.mxu2 %v12230_v9 }
 0xb9e   :  { %v4205_v5 = vsub.f32 1.0, %v4204_v13  ;;  %v4231_v37 = vsel %vm4230_vm4, %v7508_v16, %v4227_v15  ;;  %v12235_v16 = vld [vmem:[%s14537_s12 + $0xb8] sm:$0xff]  ;;  %v12294_v15 = vld [vmem:[%s14537_s12 + $0x48] sm:$0xff] }
 0xb9f   :  { %v4236_v28 = vsel %vm4233_vm6, %v4235_v39, %v4231_v37  ;;  %v12247_v13 = vld [vmem:[%s14537_s12 + $0x98] sm:$0xff]  ;;  %v12324_v37 = vld [vmem:[%s14537_s12 + $0x40] sm:$0xff] }
 0xba0   :  { %v4206_v48 = vmul.f32 %v7510_v44, %v4205_v5  ;;  %v4242_v24 = vsub.f32 1.0, %v4236_v28  ;;  %v4244_v33 = vmul.f32 %v4236_v28, %v12023_v51  ;;  %v12091_v51 = vld [vmem:[%s14537_s12 + $0x178] sm:$0xff]  ;;  %4675 = vmatpush.msrb.mxu2 %v12247_v13  ;;  %v12335_v28 = vld [vmem:[%s14537_s12 + $0x20] sm:$0xff] }
 0xba1   :  { %4686 = vmatpush.msra.mxu0 %v12091_v51  ;;  %v12330_v39 = vld [vmem:[%s14537_s12 + $0x18] sm:$0xff] }
 0xba2   :  { %v4207_v38 = vadd.f32 %v7510_v44, %v4206_v48  ;;  %v12263_v48 = vld [vmem:[%s14537_s12 + $0x80] sm:$0xff] }
 0xba3   :  { %4687 = vmatpush.msra.mxu0 %v12109_v62  ;;  %4676 = vmatpush.msrb.mxu2 %v12263_v48 }
 0xba4   :  { %v4211_v29 = vsel %vm4210_vm14, %v7510_v44, %v4207_v38  ;;  %v12242_v44 = vld [vmem:[%s14537_s12 + $0x90] sm:$0xff]  ;;  %v12276_v38 = vld [vmem:[%s14537_s12 + $0x60] sm:$0xff] }
 0xba5   :  { %v4216_v1 = vsel %vm4213_vm15, %v4215_v14, %v4211_v29  ;;  %4688 = vmatpush.msra.mxu0 %v12127_v49  ;;  %4655 = vmatpush.msra.mxu1 %v12242_v44  ;;  %v12281_v14 = vld [vmem:[%s14537_s12 + $0x68] sm:$0xff]  ;;  %v12288_v29 = vld [vmem:[%s14537_s12 + $0x70] sm:$0xff] }
 0xba6   :  { %v4239_v11 = vmul.f32 %v4238_v54, %v4216_v1  ;;  %v12299_v1 = vld [vmem:[%s14537_s12 + $0x50] sm:$0xff]  ;;  %4677 = vmatpush.msrb.mxu2 %v12281_v14 }
 0xba7   :  { %4689 = vmatpush.msra.mxu0 %v12145_v25  ;;  %4656 = vmatpush.msra.mxu1 %v12258_v19 }
 0xba8   :  { %v4240_v40 = vadd.f32 %v4239_v11, %v4086_v2  ;;  %v12317_v2 = vld [vmem:[%s14537_s12 + $0x38] sm:$0xff]  ;;  %4678 = vmatpush.msrb.mxu2 %v12299_v1 }
 0xba9   :  { %4690 = vmatpush.msra.mxu0 %v12163_v63  ;;  %4657 = vmatpush.msra.mxu1 %v12276_v38 }
 0xbaa   :  { %7511 = vtanh.f32 %v4240_v40  ;;  %4679 = vmatpush.msrb.mxu2 %v12317_v2 }
 0xbab   :  { %4691 = vmatpush.msra.mxu0 %v12181_v50  ;;  %4658 = vmatpush.msra.mxu1 %v12294_v15 }
 0xbac   :  { %4680 = vmatpush.msrb.mxu2 %v12335_v28 }
 0xbad   :  { %4692 = vmatpush.msra.mxu0 %v12199_v31  ;;  %4659 = vmatpush.msra.mxu1 %v12312_v12 }
 0xbaf   :  { %4693 = vmatpush.msra.mxu0 %v12217_v30  ;;  %4660 = vmatpush.msra.mxu1 %v12330_v39 }
 0xbb0   :  { %v7512_v46 = vpop.eup %7511 }
 0xbb1   :  { %v4243_v3 = vmul.f32 %v7512_v46, %v4242_v24  ;;  %4694 = vmatpush.msra.mxu0 %v12235_v16  ;;  %v12342_v24 = vld [vmem:[%s14537_s12 + $0x28] sm:$0xff]  ;;  %v12348_v46 = vld [vmem:[%s14537_s12] sm:$0xff] }
 0xbb2   :  { %14917 = vst [vmem:[#allocation15_spill] sm:$0xff] %v12342_v24  ;;  %4661 = vmatpush.msra.mxu1 %v12348_v46 }
 0xbb3   :  { %v12072_v23 = vadd.f32 %v4244_v33, %v4243_v3  ;;  %4695 = vmatpush.msra.mxu0 %v12252_v35  ;;  %v12353_v3 = vld [vmem:[%s14537_s12 + $0x8] sm:$0xff]  ;;  %v12360_v33 = vld [vmem:[%s14537_s12 + $0x10] sm:$0xff] }
 0xbb4   :  { %14918 = vst [vmem:[#allocation28_spill] sm:$0xff] %v12353_v3  ;;  %4681 = vmatpush.msrb.mxu2 %v12353_v3 }
 0xbb5   :  { %4247 = vst [vmem:[#allocation5] sm:$0x3] %v12072_v23  ;;  %4486 = vmatmul.f32.vlgmr.msra.gmra.mxu2 %v12072_v23  ;;  %4506 = vmatmul.f32.vlgmr.msrb.gmra.mxu0 %v12072_v23 }
 0xbb6   :  { %4526 = vmatmul.f32.vlgmr.msrb.gmra.mxu3 %v12072_v23  ;;  %4696 = vmatpush.msra.mxu0 %v12270_v58  ;;  %14919 = vst [vmem:[#allocation31_spill] sm:$0xff] %v12360_v33 }
 0xbb8   :  { %4697 = vmatpush.msra.mxu0 %v12288_v29 }
 0xbba   :  { %4698 = vmatpush.msra.mxu0 %v12306_v4 }
 0xbbc   :  { %4699 = vmatpush.msra.mxu0 %v12324_v37 }
 0xbbe   :  { %4700 = vmatpush.msra.mxu0 %v12342_v24 }
 0xbc0   :  { %4701 = vmatpush.msra.mxu0 %v12360_v33 }
 0xbc2   :  { %4994 = vmatpush.msrb.mxu0 %v12081_v47 }
 0xbc4   :  { %4995 = vmatpush.msrb.mxu0 %v12099_v22 }
 0xbc6   :  { %4996 = vmatpush.msrb.mxu0 %v12117_v26 }
 0xbc8   :  { %4997 = vmatpush.msrb.mxu0 %v12135_v56 }
 0xbca   :  { %4998 = vmatpush.msrb.mxu0 %v12153_v52 }
 0xbcc   :  { %4999 = vmatpush.msrb.mxu0 %v12171_v34 }
 0xbce   :  { %5000 = vmatpush.msrb.mxu0 %v12189_v7 }
 0xbd0   :  { %5001 = vmatpush.msrb.mxu0 %v12207_v43 }
 0xbd2   :  { %5002 = vmatpush.msrb.mxu0 %v12225_v61 }
 0xbd4   :  { %5003 = vmatpush.msrb.mxu0 %v12242_v44  ;;  %v4814_v44 = vld [vmem:[%s14538_s13 + $0x170] sm:$0xff] }
 0xbd5   :  { %4839 = vmatpush.msrb.mxu1 %v4814_v44 }
 0xbd6   :  { %5004 = vmatpush.msrb.mxu0 %v12258_v19  ;;  %v12399_v19 = vld [vmem:[%s14538_s13 + $0x178] sm:$0xff] }
 0xbd7   :  { %4859 = vmatpush.msra.mxu2 %v12399_v19 }
 0xbd8   :  { %5005 = vmatpush.msrb.mxu0 %v12276_v38  ;;  %v12406_v38 = vld [vmem:[%s14538_s13 + $0x150] sm:$0xff] }
 0xbda   :  { %5006 = vmatpush.msrb.mxu0 %v12294_v15  ;;  %v4811_v15 = vld [vmem:[%s14538_s13 + $0x158] sm:$0xff] }
 0xbdb   :  { %4840 = vmatpush.msrb.mxu1 %v4811_v15 }
 0xbdc   :  { %5007 = vmatpush.msrb.mxu0 %v12312_v12  ;;  %v12414_v12 = vld [vmem:[%s14538_s13 + $0x160] sm:$0xff] }
 0xbdd   :  { %4860 = vmatpush.msra.mxu2 %v12414_v12 }
 0xbde   :  { %5008 = vmatpush.msrb.mxu0 %v12330_v39  ;;  %v12421_v39 = vld [vmem:[%s14538_s13 + $0x138] sm:$0xff] }
 0xbe0   :  { %v4316_v32 = vpop.f32.mrf.mxu0  ;;  %5009 = vmatpush.msrb.mxu0 %v12348_v46  ;;  %v4808_v46 = vld [vmem:[%s14538_s13 + $0x140] sm:$0xff] }
 0xbe1   :  { %v4360_v27 = vrot.slane %v4316_v32, 6  ;;  %4841 = vmatpush.msrb.mxu1 %v4808_v46 }
 0xbe3   :  { %v4362_v18 = vadd.f32 %v4360_v27, %v4248_v10 }
 0xbe5   :  { %v7253_v55 = vmul.f32 -1.442695, %v4362_v18 }
 0xbe6   :  { %v4336_v8 = vpop.f32.mrf.mxu3 }
 0xbe7   :  { %7513 = vpow2.f32 %v7253_v55  ;;  %v4383_v5 = vrot.slane %v4336_v8, 6  ;;  %v4356_v55 = vpop.f32.mrf.mxu1 }
 0xbe9   :  { %v4385_v20 = vadd.f32 %v4383_v5, %v4249_v0 }
 0xbeb   :  { %v7254_v54 = vmul.f32 -1.442695, %v4385_v20 }
 0xbed   :  { %v7514_v11 = vpop.eup %7513  ;;  %7515 = vpow2.f32 %v7254_v54  ;;  %v4405_v54 = vadd.f32 %v12055_v6, %v4356_v55  ;;  %v4250_v55 = vld [vmem:[#allocation2 + $0x40] sm:$0xc] }
 0xbee   :  { %v4366_v40 = vadd.f32 1.0, %v7514_v11 }
 0xbf0   :  { %7517 = vrcp.f32 %v4366_v40  ;;  %v4378_v5 = vand.u32 2147483648, %v4366_v40  ;;  %v4376_v20 = vand.u32 2147483647, %v4366_v40  ;;  %vm4372_vm8 = vweird.f32 %v4366_v40 }
 0xbf2   :  { %v4379_v47 = vor.u32 1.1754944e-38, %v4378_v5  ;;  %vm4377_vm10 = vcmp.eq.f32.partialorder %v4376_v20, 8.507059e+37  ;;  %v12429_v5 = vld [vmem:[%s14538_s13 + $0x148] sm:$0xff] }
 0xbf3   :  { %v7516_v32 = vpop.eup %7515  ;;  %4861 = vmatpush.msra.mxu2 %v12429_v5 }
 0xbf4   :  { %v4389_v27 = vadd.f32 1.0, %v7516_v32 }
 0xbf6   :  { %v7518_v10 = vpop.eup %7517  ;;  %7519 = vrcp.f32 %v4389_v27  ;;  %v4401_v6 = vand.u32 2147483648, %v4389_v27  ;;  %v4399_v56 = vand.u32 2147483647, %v4389_v27  ;;  %vm4395_vm12 = vweird.f32 %v4389_v27 }
 0xbf7   :  { %v4368_v18 = vmul.f32 %v7518_v10, %v4366_v40  ;;  %vm4373_vm7 = vweird.f32 %v7518_v10 }
 0xbf8   :  { %vm4374_vm9 = vmor %vm4372_vm8, %vm4373_vm7  ;;  %vm4400_vm14 = vcmp.eq.f32.partialorder %v4399_v56, 8.507059e+37  ;;  %v12466_v56 = vld [vmem:[%s14538_s13 + $0xf0] sm:$0xff] }
 0xbf9   :  { %v4369_v8 = vsub.f32 1.0, %v4368_v18  ;;  %v4407_v18 = vrot.slane %v4405_v54, 6 }
 0xbfb   :  { %v4370_v0 = vmul.f32 %v7518_v10, %v4369_v8 }
 0xbfc   :  { %v7520_v11 = vpop.eup %7519 }
 0xbfd   :  { %v4371_v32 = vadd.f32 %v7518_v10, %v4370_v0  ;;  %v4391_v33 = vmul.f32 %v7520_v11, %v4389_v27  ;;  %vm4396_vm11 = vweird.f32 %v7520_v11 }
 0xbfe   :  { %vm4397_vm13 = vmor %vm4395_vm12, %vm4396_vm11 }
 0xbff   :  { %v4375_v22 = vsel %vm4374_vm9, %v7518_v10, %v4371_v32  ;;  %v4392_v3 = vsub.f32 1.0, %v4391_v33  ;;  %v4402_v33 = vor.u32 1.1754944e-38, %v4401_v6  ;;  %v4415_v10 = vrot.slane %v12059_v21, 6  ;;  %v12391_v21 = vld [vmem:[%s14538_s13 + $0x168] sm:$0xff]  ;;  %v12459_v6 = vld [vmem:[%s14538_s13 + $0x118] sm:$0xff] }
 0xc00   :  { %v4380_v26 = vsel %vm4377_vm10, %v4379_v47, %v4375_v22  ;;  %4819 = vmatpush.msra.mxu3 %v12391_v21  ;;  %v4805_v32 = vld [vmem:[%s14538_s13 + $0x128] sm:$0xff]  ;;  %v12444_v47 = vld [vmem:[%s14538_s13 + $0x130] sm:$0xff]  ;;  %v4420_v22 = vld [vmem:[#allocation3 + $0x48] sm:$0xc0] }
 0xc01   :  { %v4409_v8 = vmul.f32 %v4407_v18, %v4380_v26  ;;  %v4393_v24 = vmul.f32 %v7520_v11, %v4392_v3  ;;  %4842 = vmatpush.msrb.mxu1 %v4805_v32  ;;  %4862 = vmatpush.msra.mxu2 %v12444_v47  ;;  %v12451_v26 = vld [vmem:[%s14538_s13 + $0x108] sm:$0xff] }
 0xc02   :  { %4820 = vmatpush.msra.mxu3 %v12406_v38 }
 0xc03   :  { %v4410_v40 = vadd.f32 %v4409_v8, %v4250_v55  ;;  %v4394_v0 = vadd.f32 %v7520_v11, %v4393_v24  ;;  %v4802_v8 = vld [vmem:[%s14538_s13 + $0x110] sm:$0xff]  ;;  %4863 = vmatpush.msra.mxu2 %v12459_v6 }
 0xc04   :  { %4821 = vmatpush.msra.mxu3 %v12421_v39  ;;  %4843 = vmatpush.msrb.mxu1 %v4802_v8 }
 0xc05   :  { %7521 = vtanh.f32 %v4410_v40  ;;  %v4398_v52 = vsel %vm4397_vm13, %v7520_v11, %v4394_v0  ;;  %v12436_v11 = vld [vmem:[%s14538_s13 + $0x120] sm:$0xff]  ;;  %v4799_v40 = vld [vmem:[%s14538_s13 + $0xf8] sm:$0xff] }
 0xc06   :  { %v4403_v34 = vsel %vm4400_vm14, %v4402_v33, %v4398_v52  ;;  %4822 = vmatpush.msra.mxu3 %v12436_v11  ;;  %v12474_v0 = vld [vmem:[%s14538_s13 + $0x100] sm:$0xff]  ;;  %4844 = vmatpush.msrb.mxu1 %v4799_v40 }
 0xc07   :  { %v4412_v3 = vsub.f32 1.0, %v4403_v34  ;;  %v4417_v27 = vmul.f32 %v4415_v10, %v4403_v34  ;;  %4864 = vmatpush.msra.mxu2 %v12474_v0  ;;  %v12481_v34 = vld [vmem:[%s14538_s13 + $0xd8] sm:$0xff]  ;;  %v12489_v10 = vld [vmem:[%s14538_s13 + $0xe8] sm:$0xff] }
 0xc08   :  { %4823 = vmatpush.msra.mxu3 %v12451_v26  ;;  %14921 = vst [vmem:[#allocation27_spill] sm:$0xff] %v12489_v10 }
 0xc09   :  { %4865 = vmatpush.msra.mxu2 %v12489_v10 }
 0xc0a   :  { %4824 = vmatpush.msra.mxu3 %v12466_v56 }
 0xc0b   :  { %v7522_v7 = vpop.eup %7521 }
 0xc0c   :  { %v4413_v24 = vmul.f32 %v7522_v7, %v4412_v3  ;;  %v4796_v3 = vld [vmem:[%s14538_s13 + $0xe0] sm:$0xff]  ;;  %v4419_v7 = vld [vmem:[#allocation3] sm:$0xc0]  ;;  %4825 = vmatpush.msra.mxu3 %v12481_v34 }
 0xc0d   :  { %4845 = vmatpush.msrb.mxu1 %v4796_v3 }
 0xc0e   :  { %v12380_v43 = vadd.f32 %v4417_v27, %v4413_v24  ;;  %v12496_v27 = vld [vmem:[%s14538_s13 + $0xc0] sm:$0xff] }
 0xc0f   :  { %4826 = vmatpush.msra.mxu3 %v12496_v27 }
 0xc10   :  { %14920 = vst [vmem:[#allocation24_spill] sm:$0xff] %v12380_v43  ;;  %v4644_v61 = vrot.slane %v12380_v43, 2 }
 0xc11   :  { %4590 = vst [vmem:[#allocation4 + $0x18] sm:$0xc] %v12380_v43  ;;  %v4775_v43 = vld [vmem:[%s14538_s13 + $0x38] sm:$0xff] }
 0xc12   :  { %4662 = vmatmul.f32.vlgmr.msra.gmra.mxu1 %v4644_v61  ;;  %4682 = vmatmul.f32.vlgmr.msrb.gmra.mxu2 %v4644_v61 }
 0xc13   :  { %4702 = vmatmul.f32.vlgmr.msra.gmra.mxu0 %v4644_v61  ;;  %v4793_v61 = vld [vmem:[%s14538_s13 + $0xc8] sm:$0xff] }
 0xc14   :  { %5187 = vmatpush.msra.mxu0 %v4814_v44  ;;  %v12504_v44 = vld [vmem:[%s14538_s13 + $0xd0] sm:$0xff]  ;;  %4846 = vmatpush.msrb.mxu1 %v4793_v61 }
 0xc15   :  { %14922 = vst [vmem:[#allocation13_spill] sm:$0xff] %v12504_v44  ;;  %4866 = vmatpush.msra.mxu2 %v12504_v44 }
 0xc16   :  { %5188 = vmatpush.msra.mxu0 %v4811_v15 }
 0xc18   :  { %5189 = vmatpush.msra.mxu0 %v4808_v46  ;;  %v12511_v46 = vld [vmem:[%s14538_s13 + $0xa8] sm:$0xff] }
 0xc19   :  { %4827 = vmatpush.msra.mxu3 %v12511_v46 }
 0xc1a   :  { %5190 = vmatpush.msra.mxu0 %v4805_v32 }
 0xc1c   :  { %5191 = vmatpush.msra.mxu0 %v4802_v8  ;;  %v12534_v8 = vld [vmem:[%s14538_s13 + $0xa0] sm:$0xff] }
 0xc1d   :  { %14924 = vst [vmem:[#allocation32_spill] sm:$0xff] %v12534_v8 }
 0xc1e   :  { %5192 = vmatpush.msra.mxu0 %v4799_v40  ;;  %v12543_v40 = vld [vmem:[%s14538_s13 + $0x78] sm:$0xff] }
 0xc20   :  { %5193 = vmatpush.msra.mxu0 %v4796_v3  ;;  %v12559_v3 = vld [vmem:[%s14538_s13 + $0x60] sm:$0xff] }
 0xc22   :  { %5194 = vmatpush.msra.mxu0 %v4793_v61 }
 0xc32   :  { %v4507_v20 = vpop.f32.mrf.mxu0 }
 0xc33   :  { %v4554_v54 = vrot.slane %v4507_v20, 2  ;;  %v4790_v20 = vld [vmem:[%s14538_s13 + $0xb0] sm:$0xff] }
 0xc34   :  { %4847 = vmatpush.msrb.mxu1 %v4790_v20  ;;  %5195 = vmatpush.msra.mxu0 %v4790_v20  ;;  %v4778_v20 = vld [vmem:[%s14538_s13 + $0x50] sm:$0xff] }
 0xc35   :  { %v4556_v18 = vadd.f32 %v4554_v54, %v4420_v22  ;;  %v12519_v54 = vld [vmem:[%s14538_s13 + $0xb8] sm:$0xff]  ;;  %v12526_v22 = vld [vmem:[%s14538_s13 + $0x90] sm:$0xff] }
 0xc36   :  { %14923 = vst [vmem:[#allocation30_spill] sm:$0xff] %v12519_v54  ;;  %4867 = vmatpush.msra.mxu2 %v12519_v54  ;;  %4828 = vmatpush.msra.mxu3 %v12526_v22  ;;  %v12628_v54 = vld [vmem:[%s14538_s13 + $0x10] sm:$0xff] }
 0xc37   :  { %v7256_v55 = vmul.f32 -1.442695, %v4556_v18  ;;  %v4787_v18 = vld [vmem:[%s14538_s13 + $0x98] sm:$0xff]  ;;  %14930 = vst [vmem:[#allocation33_spill] sm:$0xff] %v12628_v54 }
 0xc38   :  { %v4487_v52 = vpop.f32.mrf.mxu2  ;;  %4848 = vmatpush.msrb.mxu1 %v4787_v18  ;;  %4868 = vmatpush.msra.mxu2 %v12534_v8  ;;  %v4769_v8 = vld [vmem:[%s14538_s13 + $0x8] sm:$0xff] }
 0xc39   :  { %7523 = vpow2.f32 %v7256_v55  ;;  %v4531_v33 = vrot.slane %v4487_v52, 2  ;;  %v4784_v52 = vld [vmem:[%s14538_s13 + $0x80] sm:$0xff]  ;;  %5196 = vmatpush.msra.mxu0 %v4787_v18  ;;  %4829 = vmatpush.msra.mxu3 %v12543_v40 }
 0xc3a   :  { %4849 = vmatpush.msrb.mxu1 %v4784_v52 }
 0xc3b   :  { %v4533_v24 = vadd.f32 %v4531_v33, %v4419_v7  ;;  %v12551_v33 = vld [vmem:[%s14538_s13 + $0x88] sm:$0xff]  ;;  %5197 = vmatpush.msra.mxu0 %v4784_v52  ;;  %4830 = vmatpush.msra.mxu3 %v12559_v3  ;;  %v12589_v52 = vld [vmem:[%s14538_s13 + $0x30] sm:$0xff] }
 0xc3c   :  { %14925 = vst [vmem:[#allocation17_spill] sm:$0xff] %v12551_v33  ;;  %4869 = vmatpush.msra.mxu2 %v12551_v33  ;;  %v4781_v7 = vld [vmem:[%s14538_s13 + $0x68] sm:$0xff] }
 0xc3d   :  { %v7255_v15 = vmul.f32 -1.442695, %v4533_v24  ;;  %v12567_v24 = vld [vmem:[%s14538_s13 + $0x70] sm:$0xff]  ;;  %4850 = vmatpush.msrb.mxu1 %v4781_v7  ;;  %5198 = vmatpush.msra.mxu0 %v4781_v7  ;;  %v12603_v7 = vld [vmem:[%s14538_s13 + $0x18] sm:$0xff] }
 0xc3e   :  { %14926 = vst [vmem:[#allocation6_spill] sm:$0xff] %v12567_v24  ;;  %4870 = vmatpush.msra.mxu2 %v12567_v24  ;;  %v12597_v24 = vld [vmem:[%s14538_s13 + $0x40] sm:$0xff] }
 0xc3f   :  { %v7524_v32 = vpop.eup %7523  ;;  %7525 = vpow2.f32 %v7255_v15  ;;  %v12574_v15 = vld [vmem:[%s14538_s13 + $0x48] sm:$0xff]  ;;  %4851 = vmatpush.msrb.mxu1 %v4778_v20  ;;  %14928 = vst [vmem:[#allocation23_spill] sm:$0xff] %v12597_v24  ;;  %5199 = vmatpush.msra.mxu0 %v4778_v20  ;;  %v12619_v20 = vld [vmem:[%s14538_s13] sm:$0xff] }
 0xc40   :  { %v12536_v55 = vadd.f32 1.0, %v7524_v32  ;;  %v12582_v32 = vld [vmem:[%s14538_s13 + $0x58] sm:$0xff]  ;;  %4831 = vmatpush.msra.mxu3 %v12574_v15 }
 0xc41   :  { %14927 = vst [vmem:[#allocation11_spill] sm:$0xff] %v12582_v32  ;;  %4871 = vmatpush.msra.mxu2 %v12582_v32  ;;  %4852 = vmatpush.msrb.mxu1 %v4775_v43  ;;  %v12611_v32 = vld [vmem:[%s14538_s13 + $0x28] sm:$0xff] }
 0xc42   :  { %7527 = vrcp.f32 %v12536_v55  ;;  %4832 = vmatpush.msra.mxu3 %v12589_v52  ;;  %14929 = vst [vmem:[#allocation19_spill] sm:$0xff] %v12611_v32  ;;  %5200 = vmatpush.msra.mxu0 %v4775_v43  ;;  %vm4566_vm7 = vweird.f32 %v12536_v55 }
 0xc43   :  { %4872 = vmatpush.msra.mxu2 %v12597_v24 }
 0xc44   :  { %4833 = vmatpush.msra.mxu3 %v12603_v7 }
 0xc45   :  { %v7526_v61 = vpop.eup %7525  ;;  %4873 = vmatpush.msra.mxu2 %v12611_v32  ;;  %v4527_v32 = vpop.f32.mrf.mxu3 }
 0xc46   :  { %v4537_v18 = vadd.f32 1.0, %v7526_v61  ;;  %v4772_v61 = vld [vmem:[%s14538_s13 + $0x20] sm:$0xff]  ;;  %4834 = vmatpush.msra.mxu3 %v12619_v20 }
 0xc47   :  { %4853 = vmatpush.msrb.mxu1 %v4772_v61  ;;  %5201 = vmatpush.msra.mxu0 %v4772_v61 }
 0xc48   :  { %7529 = vrcp.f32 %v4537_v18  ;;  %v12613_v33 = vpop.eup %7527  ;;  %4874 = vmatpush.msra.mxu2 %v12628_v54  ;;  %5014 = vmatpush.msrb.mxu3 %v12086_v60  ;;  %v4549_v54 = vand.u32 2147483648, %v4537_v18  ;;  %vm4543_vm0 = vweird.f32 %v4537_v18 }
 0xc49   :  { %v4562_v24 = vmul.f32 %v12613_v33, %v12536_v55  ;;  %4854 = vmatpush.msrb.mxu1 %v4769_v8  ;;  %5202 = vmatpush.msra.mxu0 %v4769_v8  ;;  %vm4567_vm6 = vweird.f32 %v12613_v33 }
 0xc4a   :  { %5167 = vmatpush.msrb.mxu2 %v12391_v21  ;;  %5015 = vmatpush.msrb.mxu3 %v12104_v53  ;;  %v4576_v53 = vadd.f32 %v12068_v57, %v4527_v32  ;;  %vm4568_vm8 = vmor %vm4566_vm7, %vm4567_vm6 }
 0xc4b   :  { %5034 = vmatpush.msra.mxu1 %v12091_v51  ;;  %v4563_v61 = vsub.f32 1.0, %v4562_v24  ;;  %v4547_v51 = vand.u32 2147483647, %v4537_v18 }
 0xc4c   :  { %5168 = vmatpush.msrb.mxu2 %v12406_v38  ;;  %5016 = vmatpush.msrb.mxu3 %v12122_v45  ;;  %v4550_v45 = vor.u32 1.1754944e-38, %v4549_v54  ;;  %v4578_v57 = vrot.slane %v4576_v53, 2 }
 0xc4d   :  { %5035 = vmatpush.msra.mxu1 %v12109_v62  ;;  %v4564_v21 = vmul.f32 %v12613_v33, %v4563_v61  ;;  %vm4548_vm4 = vcmp.eq.f32.partialorder %v4547_v51, 8.507059e+37 }
 0xc4e   :  { %v7530_v43 = vpop.eup %7529  ;;  %5169 = vmatpush.msrb.mxu2 %v12421_v39  ;;  %5017 = vmatpush.msrb.mxu3 %v12140_v41  ;;  %v4421_v39 = vld [vmem:[#allocation3 + $0x50] sm:$0xc0] }
 0xc4f   :  { %v4539_v44 = vmul.f32 %v7530_v43, %v4537_v18  ;;  %5036 = vmatpush.msra.mxu1 %v12127_v49  ;;  %vm4544_vm15 = vweird.f32 %v7530_v43 }
 0xc50   :  { %5170 = vmatpush.msrb.mxu2 %v12436_v11  ;;  %5018 = vmatpush.msrb.mxu3 %v12158_v36  ;;  %vm4545_vm3 = vmor %vm4543_vm0, %vm4544_vm15  ;;  %v4572_v36 = vand.u32 2147483648, %v12536_v55 }
 0xc51   :  { %v4540_v10 = vsub.f32 1.0, %v4539_v44  ;;  %5037 = vmatpush.msra.mxu1 %v12145_v25  ;;  %v4565_v25 = vadd.f32 %v12613_v33, %v4564_v21 }
 0xc52   :  { %5171 = vmatpush.msrb.mxu2 %v12451_v26  ;;  %5019 = vmatpush.msrb.mxu3 %v12176_v42 }
 0xc53   :  { %v4541_v60 = vmul.f32 %v7530_v43, %v4540_v10  ;;  %5038 = vmatpush.msra.mxu1 %v12163_v63  ;;  %v4570_v63 = vand.u32 2147483647, %v12536_v55 }
 0xc54   :  { %5172 = vmatpush.msrb.mxu2 %v12466_v56  ;;  %5020 = vmatpush.msrb.mxu3 %v12194_v59  ;;  %v4573_v59 = vor.u32 1.1754944e-38, %v4572_v36 }
 0xc55   :  { %v4542_v62 = vadd.f32 %v7530_v43, %v4541_v60  ;;  %5039 = vmatpush.msra.mxu1 %v12181_v50  ;;  %v4569_v50 = vsel %vm4568_vm8, %v12613_v33, %v4565_v25  ;;  %vm4571_vm9 = vcmp.eq.f32.partialorder %v4570_v63, 8.507059e+37 }
 0xc56   :  { %5173 = vmatpush.msrb.mxu2 %v12481_v34  ;;  %5021 = vmatpush.msrb.mxu3 %v12212_v17 }
 0xc57   :  { %v4546_v49 = vsel %vm4545_vm3, %v7530_v43, %v4542_v62  ;;  %5040 = vmatpush.msra.mxu1 %v12199_v31  ;;  %v4574_v31 = vsel %vm4571_vm9, %v4573_v59, %v4569_v50  ;;  %v14944_v59 = vld [vmem:[#allocation24_spill] sm:$0xff] }
 0xc58   :  { %v4551_v41 = vsel %vm4548_vm4, %v4550_v45, %v4546_v49  ;;  %5174 = vmatpush.msrb.mxu2 %v12496_v27  ;;  %5022 = vmatpush.msrb.mxu3 %v12230_v9  ;;  %v4583_v17 = vsub.f32 1.0, %v4574_v31  ;;  %v4593_v27 = vld [vmem:[#allocation2 + $0x48] sm:$0x30] }
 0xc59   :  { %v4580_v38 = vmul.f32 %v4578_v57, %v4551_v41  ;;  %5041 = vmatpush.msra.mxu1 %v12217_v30  ;;  %v4586_v30 = vrot.slane %v12072_v23, 2  ;;  %v4594_v41 = vld [vmem:[#allocation2 + $0x40] sm:$0x30] }
 0xc5a   :  { %5175 = vmatpush.msrb.mxu2 %v12511_v46  ;;  %5023 = vmatpush.msrb.mxu3 %v12247_v13 }
 0xc5b   :  { %v4581_v42 = vadd.f32 %v4580_v38, %v4421_v39  ;;  %5042 = vmatpush.msra.mxu1 %v12235_v16  ;;  %v4588_v11 = vmul.f32 %v4586_v30, %v4574_v31  ;;  %v4761_v31 = vrot.slane %v14944_v59, 6  ;;  %v12783_v59 = vld [vmem:[%s14537_s12 + $0x148] sm:$0xff] }
 0xc5c   :  { %5176 = vmatpush.msrb.mxu2 %v12526_v22  ;;  %5024 = vmatpush.msrb.mxu3 %v12263_v48  ;;  %v14932_v48 = vld [vmem:[#allocation28_spill] sm:$0xff] }
 0xc5d   :  { %7531 = vtanh.f32 %v4581_v42  ;;  %5043 = vmatpush.msra.mxu1 %v12252_v35  ;;  %v14931_v35 = vld [vmem:[#allocation15_spill] sm:$0xff] }
 0xc5e   :  { %5177 = vmatpush.msrb.mxu2 %v12543_v40  ;;  %5025 = vmatpush.msrb.mxu3 %v12281_v14  ;;  %v14934_v14 = vld [vmem:[#allocation27_spill] sm:$0xff] }
 0xc5f   :  { %5044 = vmatpush.msra.mxu1 %v12270_v58  ;;  %v14933_v58 = vld [vmem:[#allocation31_spill] sm:$0xff] }
 0xc60   :  { %5178 = vmatpush.msrb.mxu2 %v12559_v3  ;;  %5026 = vmatpush.msrb.mxu3 %v12299_v1  ;;  %v14936_v1 = vld [vmem:[#allocation30_spill] sm:$0xff] }
 0xc61   :  { %5045 = vmatpush.msra.mxu1 %v12288_v29  ;;  %v14935_v29 = vld [vmem:[#allocation13_spill] sm:$0xff] }
 0xc62   :  { %5179 = vmatpush.msrb.mxu2 %v12574_v15  ;;  %5027 = vmatpush.msrb.mxu3 %v12317_v2  ;;  %v14938_v2 = vld [vmem:[#allocation17_spill] sm:$0xff] }
 0xc63   :  { %v7532_v9 = vpop.eup %7531  ;;  %5046 = vmatpush.msra.mxu1 %v12306_v4  ;;  %v14937_v4 = vld [vmem:[#allocation32_spill] sm:$0xff] }
 0xc64   :  { %v4584_v16 = vmul.f32 %v7532_v9, %v4583_v17  ;;  %5180 = vmatpush.msrb.mxu2 %v12589_v52  ;;  %5028 = vmatpush.msrb.mxu3 %v12335_v28  ;;  %v14940_v28 = vld [vmem:[#allocation11_spill] sm:$0xff]  ;;  %v12715_v52 = vld [vmem:[%s14539_s14] ss:$0 sm:$0xff] }
 0xc65   :  { %5047 = vmatpush.msra.mxu1 %v12324_v37  ;;  %v14939_v37 = vld [vmem:[#allocation6_spill] sm:$0xff] }
 0xc66   :  { %v12681_v13 = vadd.f32 %v4588_v11, %v4584_v16  ;;  %5029 = vmatpush.msrb.mxu3 %v14932_v48  ;;  %5181 = vmatpush.msrb.mxu2 %v12603_v7  ;;  %v4766_v48 = vld [vmem:[#allocation3 + $0x48] sm:$0x30] }
 0xc67   :  { %5048 = vmatpush.msra.mxu1 %v14931_v35 }
 0xc68   :  { %4591 = vst [vmem:[#allocation5 + $0x10] sm:$0xc0] %v12681_v13  ;;  %v4817_v23 = vrot.slane %v12681_v13, 6  ;;  %5182 = vmatpush.msrb.mxu2 %v12619_v20 }
 0xc69   :  { %5049 = vmatpush.msra.mxu1 %v14933_v58 }
 0xc6a   :  { %4835 = vmatmul.f32.vlgmr.msra.gmra.mxu3 %v4817_v23  ;;  %4855 = vmatmul.f32.vlgmr.msrb.gmra.mxu1 %v4817_v23 }
 0xc6b   :  { %4875 = vmatmul.f32.vlgmr.msra.gmra.mxu2 %v4817_v23  ;;  %5207 = vmatpush.msra.mxu3 %v12399_v19  ;;  %v14941_v19 = vld [vmem:[#allocation23_spill] sm:$0xff] }
 0xc6d   :  { %5208 = vmatpush.msra.mxu3 %v12414_v12  ;;  %v14942_v12 = vld [vmem:[#allocation19_spill] sm:$0xff] }
 0xc6f   :  { %5209 = vmatpush.msra.mxu3 %v12429_v5  ;;  %v14943_v5 = vld [vmem:[#allocation33_spill] sm:$0xff] }
 0xc71   :  { %5210 = vmatpush.msra.mxu3 %v12444_v47 }
 0xc73   :  { %5211 = vmatpush.msra.mxu3 %v12459_v6  ;;  %v4592_v6 = vld [vmem:[#allocation2 + $0x8] sm:$0x30] }
 0xc75   :  { %5212 = vmatpush.msra.mxu3 %v12474_v0 }
 0xc77   :  { %5213 = vmatpush.msra.mxu3 %v14934_v14 }
 0xc79   :  { %5214 = vmatpush.msra.mxu3 %v14935_v29 }
 0xc7b   :  { %5215 = vmatpush.msra.mxu3 %v14936_v1 }
 0xc7d   :  { %5216 = vmatpush.msra.mxu3 %v14937_v4  ;;  %v4765_v4 = vld [vmem:[#allocation3] sm:$0x30] }
 0xc7f   :  { %5217 = vmatpush.msra.mxu3 %v14938_v2 }
 0xc81   :  { %5218 = vmatpush.msra.mxu3 %v14939_v37 }
 0xc83   :  { %5219 = vmatpush.msra.mxu3 %v14940_v28 }
 0xc85   :  { %5220 = vmatpush.msra.mxu3 %v14941_v19 }
 0xc87   :  { %5221 = vmatpush.msra.mxu3 %v14942_v12 }
 0xc89   :  { %5222 = vmatpush.msra.mxu3 %v14943_v5 }
 0xc8f   :  { %v4663_v47 = vpop.f32.mrf.mxu1 }
 0xc90   :  { %v4707_v26 = vrot.slane %v4663_v47, 4  ;;  %v4703_v3 = vpop.f32.mrf.mxu0 }
 0xc91   :  { %v4752_v7 = vadd.f32 %v12715_v52, %v4703_v3 }
 0xc92   :  { %v4709_v56 = vadd.f32 %v4707_v26, %v4592_v6 }
 0xc93   :  { %v4754_v53 = vrot.slane %v4752_v7, 4 }
 0xc94   :  { %v7257_v0 = vmul.f32 -1.442695, %v4709_v56 }
 0xc95   :  { %v4683_v34 = vpop.f32.mrf.mxu2 }
 0xc96   :  { %7533 = vpow2.f32 %v7257_v0  ;;  %v4730_v10 = vrot.slane %v4683_v34, 4 }
 0xc98   :  { %v4732_v44 = vadd.f32 %v4730_v10, %v4593_v27 }
 0xc9a   :  { %v7258_v46 = vmul.f32 -1.442695, %v4732_v44 }
 0xc9c   :  { %v7534_v54 = vpop.eup %7533  ;;  %7535 = vpow2.f32 %v7258_v46 }
 0xc9d   :  { %v4713_v22 = vadd.f32 1.0, %v7534_v54  ;;  %v12726_v54 = vld [vmem:[%s14540_s15] ss:$0 sm:$0xff] }
 0xc9f   :  { %7537 = vrcp.f32 %v4713_v22  ;;  %v4725_v15 = vand.u32 2147483648, %v4713_v22  ;;  %v4723_v18 = vand.u32 2147483647, %v4713_v22  ;;  %vm4719_vm11 = vweird.f32 %v4713_v22 }
 0xca1   :  { %v4726_v60 = vor.u32 1.1754944e-38, %v4725_v15  ;;  %vm4724_vm13 = vcmp.eq.f32.partialorder %v4723_v18, 8.507059e+37 }
 0xca2   :  { %v7536_v8 = vpop.eup %7535 }
 0xca3   :  { %v4736_v55 = vadd.f32 1.0, %v7536_v8 }
 0xca5   :  { %v7538_v40 = vpop.eup %7537  ;;  %7539 = vrcp.f32 %v4736_v55  ;;  %v4748_v57 = vand.u32 2147483648, %v4736_v55  ;;  %v4746_v25 = vand.u32 2147483647, %v4736_v55  ;;  %vm4742_vm15 = vweird.f32 %v4736_v55 }
 0xca6   :  { %v4715_v33 = vmul.f32 %v7538_v40, %v4713_v22  ;;  %vm4720_vm10 = vweird.f32 %v7538_v40 }
 0xca7   :  { %vm4721_vm12 = vmor %vm4719_vm11, %vm4720_vm10  ;;  %v4749_v39 = vor.u32 1.1754944e-38, %v4748_v57  ;;  %vm4747_vm3 = vcmp.eq.f32.partialorder %v4746_v25, 8.507059e+37  ;;  %v12737_v25 = vld [vmem:[%s14537_s12 + $0x168] sm:$0xff] }
 0xca8   :  { %v4716_v24 = vsub.f32 1.0, %v4715_v33  ;;  %5342 = vmatpush.msrb.mxu1 %v12737_v25 }
 0xcaa   :  { %v4717_v32 = vmul.f32 %v7538_v40, %v4716_v24 }
 0xcab   :  { %v7540_v20 = vpop.eup %7539 }
 0xcac   :  { %v4718_v43 = vadd.f32 %v7538_v40, %v4717_v32  ;;  %v4738_v61 = vmul.f32 %v7540_v20, %v4736_v55  ;;  %vm4743_vm14 = vweird.f32 %v7540_v20 }
 0xcad   :  { %vm4744_vm0 = vmor %vm4742_vm15, %vm4743_vm14 }
 0xcae   :  { %v4722_v51 = vsel %vm4721_vm12, %v7538_v40, %v4718_v43  ;;  %v4739_v21 = vsub.f32 1.0, %v4738_v61 }
 0xcaf   :  { %v4727_v62 = vsel %vm4724_vm13, %v4726_v60, %v4722_v51 }
 0xcb0   :  { %v4756_v45 = vmul.f32 %v4754_v53, %v4727_v62  ;;  %v4740_v49 = vmul.f32 %v7540_v20, %v4739_v21  ;;  %v4934_v21 = vrot.slane %v12681_v13, 2  ;;  %v12742_v13 = vld [vmem:[%s14537_s12 + $0x170] sm:$0xff] }
 0xcb1   :  { %5362 = vmatpush.msra.mxu2 %v12742_v13 }
 0xcb2   :  { %v4757_v36 = vadd.f32 %v4756_v45, %v4594_v41  ;;  %v4741_v38 = vadd.f32 %v7540_v20, %v4740_v49 }
 0xcb4   :  { %7541 = vtanh.f32 %v4757_v36  ;;  %v4745_v63 = vsel %vm4744_vm0, %v7540_v20, %v4741_v38  ;;  %v4767_v20 = vld [vmem:[#allocation3 + $0x50] sm:$0x30]  ;;  %v12747_v36 = vld [vmem:[%s14537_s12 + $0x178] sm:$0xff]  ;;  %v12755_v38 = vld [vmem:[%s14537_s12 + $0x150] sm:$0xff] }
 0xcb5   :  { %v4750_v42 = vsel %vm4747_vm3, %v4749_v39, %v4745_v63  ;;  %v12760_v63 = vld [vmem:[%s14537_s12 + $0x158] sm:$0xff]  ;;  %v12765_v39 = vld [vmem:[%s14537_s12 + $0x160] sm:$0xff]  ;;  %5343 = vmatpush.msrb.mxu1 %v12755_v38 }
 0xcb6   :  { %v4759_v50 = vsub.f32 1.0, %v4750_v42  ;;  %v4763_v9 = vmul.f32 %v4761_v31, %v4750_v42  ;;  %5363 = vmatpush.msra.mxu2 %v12760_v63  ;;  %v12773_v42 = vld [vmem:[%s14537_s12 + $0x138] sm:$0xff]  ;;  %v12791_v31 = vld [vmem:[%s14537_s12 + $0x120] sm:$0xff] }
 0xcb7   :  { %5344 = vmatpush.msrb.mxu1 %v12773_v42 }
 0xcb9   :  { %5345 = vmatpush.msrb.mxu1 %v12791_v31 }
 0xcba   :  { %v7542_v17 = vpop.eup %7541 }
 0xcbb   :  { %v4760_v30 = vmul.f32 %v7542_v17, %v4759_v50  ;;  %v12778_v50 = vld [vmem:[%s14537_s12 + $0x140] sm:$0xff]  ;;  %v12796_v17 = vld [vmem:[%s14537_s12 + $0x128] sm:$0xff] }
 0xcbc   :  { %5364 = vmatpush.msra.mxu2 %v12778_v50 }
 0xcbd   :  { %v12719_v16 = vadd.f32 %v4763_v9, %v4760_v30  ;;  %v12801_v30 = vld [vmem:[%s14537_s12 + $0x130] sm:$0xff]  ;;  %v12809_v9 = vld [vmem:[%s14537_s12 + $0x108] sm:$0xff] }
 0xcbe   :  { %5365 = vmatpush.msra.mxu2 %v12796_v17  ;;  %5346 = vmatpush.msrb.mxu1 %v12809_v9 }
 0xcbf   :  { %4938 = vst [vmem:[#allocation4 + $0x18] sm:$0x30] %v12719_v16  ;;  %v4992_v11 = vrot.slane %v12719_v16, 4 }
 0xcc1   :  { %5010 = vmatmul.f32.vlgmr.msrb.gmra.mxu0 %v4992_v11  ;;  %5030 = vmatmul.f32.vlgmr.msrb.gmra.mxu3 %v4992_v11 }
 0xcc2   :  { %5050 = vmatmul.f32.vlgmr.msra.gmra.mxu1 %v4992_v11  ;;  %5382 = vmatpush.msrb.mxu0 %v12747_v36  ;;  %v12814_v11 = vld [vmem:[%s14537_s12 + $0x110] sm:$0xff] }
 0xcc3   :  { %5366 = vmatpush.msra.mxu2 %v12814_v11 }
 0xcc4   :  { %5383 = vmatpush.msrb.mxu0 %v12765_v39 }
 0xcc6   :  { %5384 = vmatpush.msrb.mxu0 %v12783_v59 }
 0xcc8   :  { %5385 = vmatpush.msrb.mxu0 %v12801_v30 }
 0xce7   :  { %v4856_v23 = vpop.f32.mrf.mxu1 }
 0xce8   :  { %v4903_v35 = vrot.slane %v4856_v23, 4  ;;  %v12819_v23 = vld [vmem:[%s14537_s12 + $0x118] sm:$0xff] }
 0xce9   :  { %5386 = vmatpush.msrb.mxu0 %v12819_v23 }
 0xcea   :  { %v4905_v58 = vadd.f32 %v4903_v35, %v4766_v48 }
 0xcec   :  { %v7260_v14 = vmul.f32 -1.442695, %v4905_v58  ;;  %v12827_v58 = vld [vmem:[%s14537_s12 + $0xf0] sm:$0xff] }
 0xced   :  { %v4836_v29 = vpop.f32.mrf.mxu3  ;;  %5347 = vmatpush.msrb.mxu1 %v12827_v58 }
 0xcee   :  { %7543 = vpow2.f32 %v7260_v14  ;;  %v4880_v1 = vrot.slane %v4836_v29, 4  ;;  %v4876_v34 = vpop.f32.mrf.mxu2  ;;  %v12832_v14 = vld [vmem:[%s14537_s12 + $0xf8] sm:$0xff]  ;;  %v12837_v29 = vld [vmem:[%s14537_s12 + $0x100] sm:$0xff] }
 0xcef   :  { %v4925_v22 = vadd.f32 %v12726_v54, %v4876_v34  ;;  %5367 = vmatpush.msra.mxu2 %v12832_v14  ;;  %5387 = vmatpush.msrb.mxu0 %v12837_v29 }
 0xcf0   :  { %v4882_v2 = vadd.f32 %v4880_v1, %v4765_v4  ;;  %v4940_v1 = vld [vmem:[#allocation2 + $0x8] sm:$0xc0] }
 0xcf1   :  { %v4927_v3 = vrot.slane %v4925_v22, 4 }
 0xcf2   :  { %v7259_v37 = vmul.f32 -1.442695, %v4882_v2  ;;  %v12845_v2 = vld [vmem:[%s14537_s12 + $0xd8] sm:$0xff] }
 0xcf3   :  { %5348 = vmatpush.msrb.mxu1 %v12845_v2 }
 0xcf4   :  { %v7544_v28 = vpop.eup %7543  ;;  %7545 = vpow2.f32 %v7259_v37  ;;  %v12850_v37 = vld [vmem:[%s14537_s12 + $0xe0] sm:$0xff] }
 0xcf5   :  { %v4909_v19 = vadd.f32 1.0, %v7544_v28  ;;  %v12855_v28 = vld [vmem:[%s14537_s12 + $0xe8] sm:$0xff]  ;;  %5368 = vmatpush.msra.mxu2 %v12850_v37 }
 0xcf6   :  { %5388 = vmatpush.msrb.mxu0 %v12855_v28 }
 0xcf7   :  { %7547 = vrcp.f32 %v4909_v19  ;;  %v4921_v32 = vand.u32 2147483648, %v4909_v19  ;;  %vm4915_vm10 = vweird.f32 %v4909_v19  ;;  %v4919_v7 = vand.u32 2147483647, %v4909_v19 }
 0xcf9   :  { %v4922_v60 = vor.u32 1.1754944e-38, %v4921_v32  ;;  %vm4920_vm12 = vcmp.eq.f32.partialorder %v4919_v7, 8.507059e+37  ;;  %v12955_v7 = vld [vmem:[%s14537_s12 + $0x50] sm:$0xff] }
 0xcfa   :  { %v7546_v12 = vpop.eup %7545 }
 0xcfb   :  { %v4886_v5 = vadd.f32 1.0, %v7546_v12  ;;  %v12863_v12 = vld [vmem:[%s14537_s12 + $0xc0] sm:$0xff] }
 0xcfc   :  { %5349 = vmatpush.msrb.mxu1 %v12863_v12 }
 0xcfd   :  { %7549 = vrcp.f32 %v4886_v5  ;;  %v7548_v47 = vpop.eup %7547  ;;  %v4898_v27 = vand.u32 2147483648, %v4886_v5  ;;  %v4896_v46 = vand.u32 2147483647, %v4886_v5  ;;  %vm4892_vm6 = vweird.f32 %v4886_v5 }
 0xcfe   :  { %v4911_v26 = vmul.f32 %v7548_v47, %v4909_v19  ;;  %vm4916_vm9 = vweird.f32 %v7548_v47 }
 0xcff   :  { %v4899_v40 = vor.u32 1.1754944e-38, %v4898_v27  ;;  %vm4897_vm8 = vcmp.eq.f32.partialorder %v4896_v46, 8.507059e+37  ;;  %vm4917_vm11 = vmor %vm4915_vm10, %vm4916_vm9  ;;  %v12901_v27 = vld [vmem:[%s14537_s12 + $0x98] sm:$0xff]  ;;  %v12908_v46 = vld [vmem:[%s14537_s12 + $0xa0] sm:$0xff] }
 0xd00   :  { %v4912_v0 = vsub.f32 1.0, %v4911_v26 }
 0xd02   :  { %v4913_v8 = vmul.f32 %v7548_v47, %v4912_v0  ;;  %v12890_v0 = vld [vmem:[%s14537_s12 + $0xb8] sm:$0xff] }
 0xd03   :  { %v7550_v6 = vpop.eup %7549 }
 0xd04   :  { %v4888_v56 = vmul.f32 %v7550_v6, %v4886_v5  ;;  %vm4893_vm4 = vweird.f32 %v7550_v6  ;;  %v4914_v15 = vadd.f32 %v7548_v47, %v4913_v8  ;;  %v12868_v5 = vld [vmem:[%s14537_s12 + $0xc8] sm:$0xff]  ;;  %v12914_v8 = vld [vmem:[%s14537_s12 + $0x78] sm:$0xff] }
 0xd05   :  { %vm4894_vm7 = vmor %vm4892_vm6, %vm4893_vm4  ;;  %5369 = vmatpush.msra.mxu2 %v12868_v5 }
 0xd06   :  { %v4889_v10 = vsub.f32 1.0, %v4888_v56  ;;  %v4918_v61 = vsel %vm4917_vm11, %v7548_v47, %v4914_v15  ;;  %v12873_v47 = vld [vmem:[%s14537_s12 + $0xd0] sm:$0xff] }
 0xd07   :  { %v4923_v51 = vsel %vm4920_vm12, %v4922_v60, %v4918_v61  ;;  %v12885_v56 = vld [vmem:[%s14537_s12 + $0xb0] sm:$0xff]  ;;  %5389 = vmatpush.msrb.mxu0 %v12873_v47  ;;  %v12973_v60 = vld [vmem:[%s14537_s12 + $0x38] sm:$0xff] }
 0xd08   :  { %v4890_v44 = vmul.f32 %v7550_v6, %v4889_v10  ;;  %v4932_v53 = vsub.f32 1.0, %v4923_v51  ;;  %v4936_v49 = vmul.f32 %v4934_v21, %v4923_v51  ;;  %v12896_v10 = vld [vmem:[%s14537_s12 + $0x90] sm:$0xff]  ;;  %5370 = vmatpush.msra.mxu2 %v12885_v56  ;;  %v12980_v51 = vld [vmem:[%s14537_s12 + $0x40] sm:$0xff] }
 0xd09   :  { %5390 = vmatpush.msrb.mxu0 %v12890_v0  ;;  %v12944_v15 = vld [vmem:[%s14537_s12 + $0x70] sm:$0xff]  ;;  %v12991_v21 = vld [vmem:[%s14537_s12 + $0x20] sm:$0xff] }
 0xd0a   :  { %v4891_v55 = vadd.f32 %v7550_v6, %v4890_v44  ;;  %v4941_v44 = vld [vmem:[#allocation2 + $0x48] sm:$0xc0]  ;;  %5371 = vmatpush.msra.mxu2 %v12901_v27  ;;  %v12968_v61 = vld [vmem:[%s14537_s12 + $0x30] sm:$0xff]  ;;  %14945 = vst [vmem:[#allocation12_spill] sm:$0xff] %v12991_v21 }
 0xd0b   :  { %5391 = vmatpush.msrb.mxu0 %v12908_v46 }
 0xd0c   :  { %v4895_v33 = vsel %vm4894_vm7, %v7550_v6, %v4891_v55  ;;  %v12880_v6 = vld [vmem:[%s14537_s12 + $0xa8] sm:$0xff]  ;;  %v12919_v55 = vld [vmem:[%s14537_s12 + $0x80] sm:$0xff] }
 0xd0d   :  { %v4900_v24 = vsel %vm4897_vm8, %v4899_v40, %v4895_v33  ;;  %5350 = vmatpush.msrb.mxu1 %v12880_v6  ;;  %v12926_v40 = vld [vmem:[%s14537_s12 + $0x88] sm:$0xff]  ;;  %5372 = vmatpush.msra.mxu2 %v12919_v55 }
 0xd0e   :  { %v4929_v18 = vmul.f32 %v4927_v3, %v4900_v24  ;;  %v12932_v3 = vld [vmem:[%s14537_s12 + $0x60] sm:$0xff]  ;;  %v12937_v24 = vld [vmem:[%s14537_s12 + $0x68] sm:$0xff]  ;;  %5392 = vmatpush.msrb.mxu0 %v12926_v40 }
 0xd0f   :  { %5351 = vmatpush.msrb.mxu1 %v12896_v10  ;;  %5373 = vmatpush.msra.mxu2 %v12937_v24 }
 0xd10   :  { %v4930_v43 = vadd.f32 %v4929_v18, %v4767_v20  ;;  %v12950_v18 = vld [vmem:[%s14537_s12 + $0x48] sm:$0xff]  ;;  %5393 = vmatpush.msrb.mxu0 %v12944_v15 }
 0xd11   :  { %5352 = vmatpush.msrb.mxu1 %v12914_v8  ;;  %5374 = vmatpush.msra.mxu2 %v12955_v7 }
 0xd12   :  { %7551 = vtanh.f32 %v4930_v43  ;;  %v12962_v43 = vld [vmem:[%s14537_s12 + $0x58] sm:$0xff] }
 0xd13   :  { %5353 = vmatpush.msrb.mxu1 %v12932_v3  ;;  %5394 = vmatpush.msrb.mxu0 %v12962_v43 }
 0xd14   :  { %5375 = vmatpush.msra.mxu2 %v12973_v60 }
 0xd15   :  { %5354 = vmatpush.msrb.mxu1 %v12950_v18  ;;  %5395 = vmatpush.msrb.mxu0 %v12980_v51 }
 0xd16   :  { %5376 = vmatpush.msra.mxu2 %v12991_v21 }
 0xd17   :  { %5355 = vmatpush.msrb.mxu1 %v12968_v61 }
 0xd18   :  { %v7552_v62 = vpop.eup %7551 }
 0xd19   :  { %v4933_v45 = vmul.f32 %v7552_v62, %v4932_v53  ;;  %v12986_v53 = vld [vmem:[%s14537_s12 + $0x18] sm:$0xff]  ;;  %v12998_v62 = vld [vmem:[%s14537_s12 + $0x28] sm:$0xff] }
 0xd1a   :  { %14946 = vst [vmem:[#allocation25_spill] sm:$0xff] %v12998_v62  ;;  %5356 = vmatpush.msrb.mxu1 %v12986_v53  ;;  %5396 = vmatpush.msrb.mxu0 %v12998_v62 }
 0xd1b   :  { %v12730_v57 = vadd.f32 %v4936_v49, %v4933_v45  ;;  %v13004_v49 = vld [vmem:[%s14537_s12] sm:$0xff] }
 0xd1c   :  { %5357 = vmatpush.msrb.mxu1 %v13004_v49 }
 0xd1d   :  { %4939 = vst [vmem:[#allocation5 + $0x10] sm:$0x30] %v12730_v57  ;;  %v5165_v41 = vrot.slane %v12730_v57, 4 }
 0xd1f   :  { %5183 = vmatmul.f32.vlgmr.msrb.gmra.mxu2 %v5165_v41  ;;  %5203 = vmatmul.f32.vlgmr.msra.gmra.mxu0 %v5165_v41 }
 0xd20   :  { %5223 = vmatmul.f32.vlgmr.msra.gmra.mxu3 %v5165_v41  ;;  %v13009_v41 = vld [vmem:[%s14537_s12 + $0x8] sm:$0xff] }
 0xd21   :  { %14947 = vst [vmem:[#allocation21_spill] sm:$0xff] %v13009_v41  ;;  %5377 = vmatpush.msra.mxu2 %v13009_v41 }
 0xd3e   :  { %v5011_v35 = vpop.f32.mrf.mxu0 }
 0xd3f   :  { %v5055_v48 = vrot.slane %v5011_v35, 2 }
 0xd41   :  { %v5057_v4 = vadd.f32 %v5055_v48, %v4940_v1  ;;  %v13016_v48 = vld [vmem:[%s14537_s12 + $0x10] sm:$0xff] }
 0xd42   :  { %14948 = vst [vmem:[#allocation8_spill] sm:$0xff] %v13016_v48  ;;  %5397 = vmatpush.msrb.mxu0 %v13016_v48 }
 0xd43   :  { %v7261_v19 = vmul.f32 -1.442695, %v5057_v4 }
 0xd44   :  { %v5031_v26 = vpop.f32.mrf.mxu3  ;;  %5665 = vmatpush.msra.mxu0 %v12737_v25 }
 0xd45   :  { %7553 = vpow2.f32 %v7261_v19  ;;  %v5078_v34 = vrot.slane %v5031_v26, 2  ;;  %v5051_v19 = vpop.f32.mrf.mxu1 }
 0xd46   :  { %5666 = vmatpush.msra.mxu0 %v12755_v38 }
 0xd47   :  { %v5080_v22 = vadd.f32 %v5078_v34, %v4941_v44 }
 0xd48   :  { %5667 = vmatpush.msra.mxu0 %v12773_v42 }
 0xd49   :  { %v7262_v33 = vmul.f32 -1.442695, %v5080_v22 }
 0xd4a   :  { %5668 = vmatpush.msra.mxu0 %v12791_v31 }
 0xd4b   :  { %v7554_v32 = vpop.eup %7553  ;;  %7555 = vpow2.f32 %v7262_v33  ;;  %v5100_v33 = vadd.f32 %v12715_v52, %v5051_v19  ;;  %v4942_v19 = vld [vmem:[#allocation2 + $0x40] sm:$0xc0] }
 0xd4c   :  { %v5061_v20 = vadd.f32 1.0, %v7554_v32  ;;  %5669 = vmatpush.msra.mxu0 %v12809_v9 }
 0xd4e   :  { %7557 = vrcp.f32 %v5061_v20  ;;  %v5073_v34 = vand.u32 2147483648, %v5061_v20  ;;  %v5071_v22 = vand.u32 2147483647, %v5061_v20  ;;  %vm5067_vm14 = vweird.f32 %v5061_v20  ;;  %5670 = vmatpush.msra.mxu0 %v12827_v58 }
 0xd50   :  { %v5074_v48 = vor.u32 1.1754944e-38, %v5073_v34  ;;  %vm5072_vm0 = vcmp.eq.f32.partialorder %v5071_v22, 8.507059e+37  ;;  %5671 = vmatpush.msra.mxu0 %v12845_v2  ;;  %v5493_v34 = vld [vmem:[%s14538_s13 + $0x140] sm:$0xff]  ;;  %v13086_v22 = vld [vmem:[%s14538_s13 + $0x148] sm:$0xff] }
 0xd51   :  { %v7556_v45 = vpop.eup %7555 }
 0xd52   :  { %v5084_v35 = vadd.f32 1.0, %v7556_v45  ;;  %5672 = vmatpush.msra.mxu0 %v12863_v12  ;;  %v5499_v12 = vld [vmem:[%s14538_s13 + $0x170] sm:$0xff] }
 0xd53   :  { %5524 = vmatpush.msra.mxu1 %v5499_v12 }
 0xd54   :  { %v7558_v1 = vpop.eup %7557  ;;  %7559 = vrcp.f32 %v5084_v35  ;;  %v5096_v52 = vand.u32 2147483648, %v5084_v35  ;;  %v5094_v42 = vand.u32 2147483647, %v5084_v35  ;;  %vm5090_vm4 = vweird.f32 %v5084_v35  ;;  %5673 = vmatpush.msra.mxu0 %v12880_v6  ;;  %v13056_v6 = vld [vmem:[%s14538_s13 + $0x178] sm:$0xff] }
 0xd55   :  { %v5063_v4 = vmul.f32 %v7558_v1, %v5061_v20  ;;  %vm5068_vm13 = vweird.f32 %v7558_v1  ;;  %5544 = vmatpush.msrb.mxu2 %v13056_v6 }
 0xd56   :  { %vm5069_vm15 = vmor %vm5067_vm14, %vm5068_vm13  ;;  %v5097_v31 = vor.u32 1.1754944e-38, %v5096_v52  ;;  %vm5095_vm7 = vcmp.eq.f32.partialorder %v5094_v42, 8.507059e+37  ;;  %5674 = vmatpush.msra.mxu0 %v12896_v10  ;;  %v5487_v52 = vld [vmem:[%s14538_s13 + $0x110] sm:$0xff]  ;;  %v5113_v42 = vld [vmem:[#allocation3] sm:$0xc] }
 0xd57   :  { %v5064_v26 = vsub.f32 1.0, %v5063_v4  ;;  %v5102_v4 = vrot.slane %v5100_v33, 2 }
 0xd58   :  { %5675 = vmatpush.msra.mxu0 %v12914_v8  ;;  %v13063_v8 = vld [vmem:[%s14538_s13 + $0x150] sm:$0xff] }
 0xd59   :  { %v5065_v44 = vmul.f32 %v7558_v1, %v5064_v26 }
 0xd5a   :  { %v7560_v32 = vpop.eup %7559  ;;  %5676 = vmatpush.msra.mxu0 %v12932_v3  ;;  %v5496_v3 = vld [vmem:[%s14538_s13 + $0x158] sm:$0xff] }
 0xd5b   :  { %v5066_v45 = vadd.f32 %v7558_v1, %v5065_v44  ;;  %v5086_v41 = vmul.f32 %v7560_v32, %v5084_v35  ;;  %vm5091_vm3 = vweird.f32 %v7560_v32  ;;  %5525 = vmatpush.msra.mxu1 %v5496_v3 }
 0xd5c   :  { %vm5092_vm6 = vmor %vm5090_vm4, %vm5091_vm3  ;;  %5677 = vmatpush.msra.mxu0 %v12950_v18  ;;  %v13071_v18 = vld [vmem:[%s14538_s13 + $0x160] sm:$0xff] }
 0xd5d   :  { %v5070_v25 = vsel %vm5069_vm15, %v7558_v1, %v5066_v45  ;;  %v5087_v62 = vsub.f32 1.0, %v5086_v41  ;;  %5545 = vmatpush.msrb.mxu2 %v13071_v18  ;;  %5526 = vmatpush.msra.mxu1 %v5493_v34  ;;  %v5490_v45 = vld [vmem:[%s14538_s13 + $0x128] sm:$0xff] }
 0xd5e   :  { %v5075_v38 = vsel %vm5072_vm0, %v5074_v48, %v5070_v25  ;;  %v5109_v48 = vrot.slane %v12719_v16, 6  ;;  %5678 = vmatpush.msra.mxu0 %v12968_v61  ;;  %v13048_v16 = vld [vmem:[%s14538_s13 + $0x168] sm:$0xff]  ;;  %v5114_v61 = vld [vmem:[#allocation3 + $0x48] sm:$0xc]  ;;  %v13101_v25 = vld [vmem:[%s14538_s13 + $0x130] sm:$0xff] }
 0xd5f   :  { %v5104_v26 = vmul.f32 %v5102_v4, %v5075_v38  ;;  %v5088_v21 = vmul.f32 %v7560_v32, %v5087_v62  ;;  %5504 = vmatpush.msrb.mxu3 %v13048_v16  ;;  %5546 = vmatpush.msrb.mxu2 %v13086_v22 }
 0xd60   :  { %5679 = vmatpush.msra.mxu0 %v12986_v53  ;;  %5527 = vmatpush.msra.mxu1 %v5490_v45 }
 0xd61   :  { %v5105_v20 = vadd.f32 %v5104_v26, %v4942_v19  ;;  %v5089_v44 = vadd.f32 %v7560_v32, %v5088_v21  ;;  %5505 = vmatpush.msrb.mxu3 %v13063_v8  ;;  %5547 = vmatpush.msrb.mxu2 %v13101_v25  ;;  %v13108_v26 = vld [vmem:[%s14538_s13 + $0x108] sm:$0xff]  ;;  %v13116_v19 = vld [vmem:[%s14538_s13 + $0x118] sm:$0xff] }
 0xd62   :  { %5680 = vmatpush.msra.mxu0 %v13004_v49  ;;  %v13078_v49 = vld [vmem:[%s14538_s13 + $0x138] sm:$0xff]  ;;  %14950 = vst [vmem:[#allocation16_spill] sm:$0xff] %v13116_v19  ;;  %5528 = vmatpush.msra.mxu1 %v5487_v52 }
 0xd63   :  { %7561 = vtanh.f32 %v5105_v20  ;;  %v5093_v41 = vsel %vm5092_vm6, %v7560_v32, %v5089_v44  ;;  %5506 = vmatpush.msrb.mxu3 %v13078_v49  ;;  %v13093_v32 = vld [vmem:[%s14538_s13 + $0x120] sm:$0xff]  ;;  %5548 = vmatpush.msrb.mxu2 %v13116_v19  ;;  %v13123_v44 = vld [vmem:[%s14538_s13 + $0xf0] sm:$0xff] }
 0xd64   :  { %v5098_v9 = vsel %vm5095_vm7, %v5097_v31, %v5093_v41  ;;  %v5484_v31 = vld [vmem:[%s14538_s13 + $0xf8] sm:$0xff]  ;;  %v13131_v41 = vld [vmem:[%s14538_s13 + $0x100] sm:$0xff] }
 0xd65   :  { %v5107_v62 = vsub.f32 1.0, %v5098_v9  ;;  %v5111_v35 = vmul.f32 %v5109_v48, %v5098_v9  ;;  %5507 = vmatpush.msrb.mxu3 %v13093_v32  ;;  %14951 = vst [vmem:[#allocation9_spill] sm:$0xff] %v13131_v41  ;;  %5529 = vmatpush.msra.mxu1 %v5484_v31  ;;  %v5481_v48 = vld [vmem:[%s14538_s13 + $0xe0] sm:$0xff] }
 0xd66   :  { %5549 = vmatpush.msrb.mxu2 %v13131_v41 }
 0xd67   :  { %5508 = vmatpush.msrb.mxu3 %v13108_v26  ;;  %5530 = vmatpush.msra.mxu1 %v5481_v48 }
 0xd69   :  { %v7562_v58 = vpop.eup %7561  ;;  %5509 = vmatpush.msrb.mxu3 %v13123_v44 }
 0xd6a   :  { %v5108_v21 = vmul.f32 %v7562_v58, %v5107_v62  ;;  %v13138_v62 = vld [vmem:[%s14538_s13 + $0xd8] sm:$0xff]  ;;  %v13146_v58 = vld [vmem:[%s14538_s13 + $0xe8] sm:$0xff] }
 0xd6b   :  { %14952 = vst [vmem:[#allocation18_spill] sm:$0xff] %v13146_v58  ;;  %5510 = vmatpush.msrb.mxu3 %v13138_v62  ;;  %5550 = vmatpush.msrb.mxu2 %v13146_v58 }
 0xd6c   :  { %v5112_v2 = vadd.f32 %v5111_v35, %v5108_v21  ;;  %v13153_v35 = vld [vmem:[%s14538_s13 + $0xc0] sm:$0xff] }
 0xd6d   :  { %5511 = vmatpush.msrb.mxu3 %v13153_v35 }
 0xd6e   :  { %5286 = vst [vmem:[#allocation4 + $0x18] sm:$0xc0] %v5112_v2  ;;  %v13036_v1 = vrot.slane %v5112_v2, 6  ;;  %v5478_v2 = vld [vmem:[%s14538_s13 + $0xc8] sm:$0xff] }
 0xd6f   :  { %5531 = vmatpush.msra.mxu1 %v5478_v2 }
 0xd70   :  { %14949 = vst [vmem:[#allocation29_spill] sm:$0xff] %v13036_v1  ;;  %5358 = vmatmul.f32.vlgmr.msrb.gmra.mxu1 %v13036_v1  ;;  %5378 = vmatmul.f32.vlgmr.msra.gmra.mxu2 %v13036_v1 }
 0xd71   :  { %5398 = vmatmul.f32.vlgmr.msrb.gmra.mxu0 %v13036_v1  ;;  %v13258_v1 = vld [vmem:[%s14538_s13 + $0x40] sm:$0xff] }
 0xd72   :  { %5856 = vmatpush.msrb.mxu0 %v5499_v12  ;;  %v13161_v12 = vld [vmem:[%s14538_s13 + $0xd0] sm:$0xff]  ;;  %14959 = vst [vmem:[#allocation15_spill] sm:$0xff] %v13258_v1 }
 0xd73   :  { %14953 = vst [vmem:[#allocation10_spill] sm:$0xff] %v13161_v12  ;;  %5551 = vmatpush.msrb.mxu2 %v13161_v12 }
 0xd74   :  { %5857 = vmatpush.msrb.mxu0 %v5496_v3 }
 0xd76   :  { %5858 = vmatpush.msrb.mxu0 %v5493_v34  ;;  %v13178_v34 = vld [vmem:[%s14538_s13 + $0xb8] sm:$0xff] }
 0xd77   :  { %14954 = vst [vmem:[#allocation20_spill] sm:$0xff] %v13178_v34  ;;  %5552 = vmatpush.msrb.mxu2 %v13178_v34  ;;  %v13290_v34 = vld [vmem:[%s14538_s13 + $0x10] sm:$0xff] }
 0xd78   :  { %5859 = vmatpush.msrb.mxu0 %v5490_v45  ;;  %v5472_v45 = vld [vmem:[%s14538_s13 + $0x98] sm:$0xff] }
 0xd7a   :  { %5860 = vmatpush.msrb.mxu0 %v5487_v52  ;;  %v5469_v52 = vld [vmem:[%s14538_s13 + $0x80] sm:$0xff] }
 0xd7c   :  { %5861 = vmatpush.msrb.mxu0 %v5484_v31  ;;  %v13215_v31 = vld [vmem:[%s14538_s13 + $0x60] sm:$0xff] }
 0xd7e   :  { %5862 = vmatpush.msrb.mxu0 %v5481_v48  ;;  %v13223_v48 = vld [vmem:[%s14538_s13 + $0x70] sm:$0xff] }
 0xd7f   :  { %14957 = vst [vmem:[#allocation7_spill] sm:$0xff] %v13223_v48 }
 0xd80   :  { %5863 = vmatpush.msrb.mxu0 %v5478_v2  ;;  %v13231_v2 = vld [vmem:[%s14538_s13 + $0x48] sm:$0xff] }
 0xd9c   :  { %v5204_v10 = vpop.f32.mrf.mxu0 }
 0xd9d   :  { %v5251_v53 = vrot.slane %v5204_v10, 6 }
 0xd9f   :  { %v5253_v33 = vadd.f32 %v5251_v53, %v5114_v61  ;;  %v13170_v61 = vld [vmem:[%s14538_s13 + $0xa8] sm:$0xff]  ;;  %v5475_v53 = vld [vmem:[%s14538_s13 + $0xb0] sm:$0xff] }
 0xda0   :  { %5512 = vmatpush.msrb.mxu3 %v13170_v61  ;;  %5532 = vmatpush.msra.mxu1 %v5475_v53 }
 0xda1   :  { %v7264_v4 = vmul.f32 -1.442695, %v5253_v33  ;;  %v13185_v33 = vld [vmem:[%s14538_s13 + $0x90] sm:$0xff]  ;;  %5864 = vmatpush.msrb.mxu0 %v5475_v53  ;;  %v13240_v53 = vld [vmem:[%s14538_s13 + $0x58] sm:$0xff] }
 0xda2   :  { %v5184_v38 = vpop.f32.mrf.mxu2  ;;  %5513 = vmatpush.msrb.mxu3 %v13185_v33  ;;  %5533 = vmatpush.msra.mxu1 %v5472_v45  ;;  %14958 = vst [vmem:[#allocation14_spill] sm:$0xff] %v13240_v53 }
 0xda3   :  { %7563 = vpow2.f32 %v7264_v4  ;;  %v5228_v20 = vrot.slane %v5184_v38, 6  ;;  %v13193_v4 = vld [vmem:[%s14538_s13 + $0xa0] sm:$0xff]  ;;  %v13201_v38 = vld [vmem:[%s14538_s13 + $0x78] sm:$0xff]  ;;  %5865 = vmatpush.msrb.mxu0 %v5472_v45  ;;  %v13247_v45 = vld [vmem:[%s14538_s13 + $0x30] sm:$0xff]  ;;  %v5224_v41 = vpop.f32.mrf.mxu3 }
 0xda4   :  { %14955 = vst [vmem:[#allocation22_spill] sm:$0xff] %v13193_v4  ;;  %5553 = vmatpush.msrb.mxu2 %v13193_v4  ;;  %5514 = vmatpush.msrb.mxu3 %v13201_v38  ;;  %v13281_v4 = vld [vmem:[%s14538_s13] sm:$0xff] }
 0xda5   :  { %v5230_v9 = vadd.f32 %v5228_v20, %v5113_v42  ;;  %v13209_v42 = vld [vmem:[%s14538_s13 + $0x88] sm:$0xff]  ;;  %5534 = vmatpush.msra.mxu1 %v5469_v52  ;;  %5866 = vmatpush.msrb.mxu0 %v5469_v52  ;;  %v5460_v52 = vld [vmem:[%s14538_s13 + $0x38] sm:$0xff] }
 0xda6   :  { %14956 = vst [vmem:[#allocation26_spill] sm:$0xff] %v13209_v42  ;;  %5554 = vmatpush.msrb.mxu2 %v13209_v42  ;;  %5515 = vmatpush.msrb.mxu3 %v13215_v31  ;;  %v13273_v42 = vld [vmem:[%s14538_s13 + $0x28] sm:$0xff] }
 0xda7   :  { %v7263_v21 = vmul.f32 -1.442695, %v5230_v9  ;;  %v5466_v9 = vld [vmem:[%s14538_s13 + $0x68] sm:$0xff]  ;;  %14960 = vst [vmem:[#allocation28_spill] sm:$0xff] %v13273_v42 }
 0xda8   :  { %5535 = vmatpush.msra.mxu1 %v5466_v9  ;;  %5555 = vmatpush.msrb.mxu2 %v13223_v48  ;;  %v13264_v48 = vld [vmem:[%s14538_s13 + $0x18] sm:$0xff] }
 0xda9   :  { %v7564_v10 = vpop.eup %7563  ;;  %7565 = vpow2.f32 %v7263_v21  ;;  %5867 = vmatpush.msrb.mxu0 %v5466_v9  ;;  %5516 = vmatpush.msrb.mxu3 %v13231_v2  ;;  %v5457_v9 = vld [vmem:[%s14538_s13 + $0x20] sm:$0xff] }
 0xdaa   :  { %v13164_v3 = vadd.f32 1.0, %v7564_v10  ;;  %v5463_v10 = vld [vmem:[%s14538_s13 + $0x50] sm:$0xff]  ;;  %5556 = vmatpush.msrb.mxu2 %v13240_v53 }
 0xdab   :  { %5536 = vmatpush.msra.mxu1 %v5463_v10  ;;  %5868 = vmatpush.msrb.mxu0 %v5463_v10  ;;  %v5454_v10 = vld [vmem:[%s14538_s13 + $0x8] sm:$0xff] }
 0xdac   :  { %7567 = vrcp.f32 %v13164_v3  ;;  %5517 = vmatpush.msrb.mxu3 %v13247_v45  ;;  %5557 = vmatpush.msrb.mxu2 %v13258_v1  ;;  %vm5263_vm13 = vweird.f32 %v13164_v3 }
 0xdad   :  { %5537 = vmatpush.msra.mxu1 %v5460_v52  ;;  %5869 = vmatpush.msrb.mxu0 %v5460_v52 }
 0xdae   :  { %5518 = vmatpush.msrb.mxu3 %v13264_v48  ;;  %5558 = vmatpush.msrb.mxu2 %v13273_v42 }
 0xdaf   :  { %v7566_v20 = vpop.eup %7565  ;;  %5538 = vmatpush.msra.mxu1 %v5457_v9  ;;  %5870 = vmatpush.msrb.mxu0 %v5457_v9 }
 0xdb0   :  { %v13225_v21 = vadd.f32 1.0, %v7566_v20  ;;  %5519 = vmatpush.msrb.mxu3 %v13281_v4  ;;  %5559 = vmatpush.msrb.mxu2 %v13290_v34 }
 0xdb1   :  { %5539 = vmatpush.msra.mxu1 %v5454_v10  ;;  %5871 = vmatpush.msrb.mxu0 %v5454_v10 }
 0xdb2   :  { %7569 = vrcp.f32 %v13225_v21  ;;  %v13252_v20 = vpop.eup %7567  ;;  %5685 = vmatpush.msra.mxu3 %v12742_v13  ;;  %5836 = vmatpush.msra.mxu2 %v13048_v16  ;;  %v5246_v19 = vand.u32 2147483648, %v13225_v21  ;;  %v5244_v42 = vand.u32 2147483647, %v13225_v21  ;;  %vm5240_vm9 = vweird.f32 %v13225_v21 }
 0xdb3   :  { %v5259_v53 = vmul.f32 %v13252_v20, %v13164_v3  ;;  %5705 = vmatpush.msrb.mxu1 %v12747_v36  ;;  %vm5264_vm12 = vweird.f32 %v13252_v20 }
 0xdb4   :  { %5686 = vmatpush.msra.mxu3 %v12760_v63  ;;  %5837 = vmatpush.msra.mxu2 %v13063_v8  ;;  %v5247_v63 = vor.u32 1.1754944e-38, %v5246_v19  ;;  %vm5245_vm11 = vcmp.eq.f32.partialorder %v5244_v42, 8.507059e+37  ;;  %vm5265_vm14 = vmor %vm5263_vm13, %vm5264_vm12 }
 0xdb5   :  { %v5260_v58 = vsub.f32 1.0, %v5259_v53  ;;  %v5273_v53 = vadd.f32 %v12726_v54, %v5224_v41  ;;  %5706 = vmatpush.msrb.mxu1 %v12765_v39  ;;  %v14974_v41 = vld [vmem:[#allocation15_spill] sm:$0xff] }
 0xdb6   :  { %5687 = vmatpush.msra.mxu3 %v12778_v50  ;;  %5838 = vmatpush.msra.mxu2 %v13078_v49 }
 0xdb7   :  { %v5261_v13 = vmul.f32 %v13252_v20, %v5260_v58  ;;  %5707 = vmatpush.msrb.mxu1 %v12783_v59  ;;  %v5275_v39 = vrot.slane %v5273_v53, 6  ;;  %v5269_v59 = vand.u32 2147483648, %v13164_v3  ;;  %v14975_v58 = vld [vmem:[#allocation28_spill] sm:$0xff] }
 0xdb8   :  { %v7570_v12 = vpop.eup %7569  ;;  %5688 = vmatpush.msra.mxu3 %v12796_v17  ;;  %5839 = vmatpush.msra.mxu2 %v13093_v32  ;;  %v5267_v17 = vand.u32 2147483647, %v13164_v3  ;;  %v14972_v32 = vld [vmem:[#allocation7_spill] sm:$0xff] }
 0xdb9   :  { %v5236_v1 = vmul.f32 %v7570_v12, %v13225_v21  ;;  %vm5241_vm8 = vweird.f32 %v7570_v12  ;;  %5708 = vmatpush.msrb.mxu1 %v12801_v30  ;;  %v5115_v30 = vld [vmem:[#allocation3 + $0x50] sm:$0xc] }
 0xdba   :  { %vm5242_vm10 = vmor %vm5240_vm9, %vm5241_vm8  ;;  %5689 = vmatpush.msra.mxu3 %v12814_v11  ;;  %5840 = vmatpush.msra.mxu2 %v13108_v26  ;;  %vm5268_vm15 = vcmp.eq.f32.partialorder %v5267_v17, 8.507059e+37  ;;  %v5289_v26 = vld [vmem:[#allocation2 + $0x10] sm:$0x3] }
 0xdbb   :  { %v5237_v52 = vsub.f32 1.0, %v5236_v1  ;;  %v5262_v1 = vadd.f32 %v13252_v20, %v5261_v13  ;;  %5709 = vmatpush.msrb.mxu1 %v12819_v23  ;;  %v5270_v23 = vor.u32 1.1754944e-38, %v5269_v59 }
 0xdbc   :  { %5690 = vmatpush.msra.mxu3 %v12832_v14  ;;  %5841 = vmatpush.msra.mxu2 %v13123_v44 }
 0xdbd   :  { %v5238_v9 = vmul.f32 %v7570_v12, %v5237_v52  ;;  %5710 = vmatpush.msrb.mxu1 %v12837_v29  ;;  %v5266_v11 = vsel %vm5265_vm14, %v13252_v20, %v5262_v1  ;;  %v13380_v52 = vld [vmem:[%s14539_s14] ss:$0 sm:$0xff] }
 0xdbe   :  { %5691 = vmatpush.msra.mxu3 %v12850_v37  ;;  %5842 = vmatpush.msra.mxu2 %v13138_v62  ;;  %v5271_v14 = vsel %vm5268_vm15, %v5270_v23, %v5266_v11  ;;  %v5282_v37 = vrot.slane %v12730_v57, 2 }
 0xdbf   :  { %v5239_v36 = vadd.f32 %v7570_v12, %v5238_v9  ;;  %5711 = vmatpush.msrb.mxu1 %v12855_v28  ;;  %v5280_v29 = vsub.f32 1.0, %v5271_v14 }
 0xdc0   :  { %5692 = vmatpush.msra.mxu3 %v12868_v5  ;;  %5843 = vmatpush.msra.mxu2 %v13153_v35 }
 0xdc1   :  { %v5243_v54 = vsel %vm5242_vm10, %v7570_v12, %v5239_v36  ;;  %5712 = vmatpush.msrb.mxu1 %v12873_v47  ;;  %v5284_v47 = vmul.f32 %v5282_v37, %v5271_v14  ;;  %v14976_v14 = vld [vmem:[#allocation29_spill] sm:$0xff] }
 0xdc2   :  { %v5248_v50 = vsel %vm5245_vm11, %v5247_v63, %v5243_v54  ;;  %5693 = vmatpush.msra.mxu3 %v12885_v56  ;;  %5844 = vmatpush.msra.mxu2 %v13170_v61 }
 0xdc3   :  { %v5277_v16 = vmul.f32 %v5275_v39, %v5248_v50  ;;  %5713 = vmatpush.msrb.mxu1 %v12890_v0  ;;  %v14961_v0 = vld [vmem:[#allocation12_spill] sm:$0xff]  ;;  %v5290_v39 = vld [vmem:[#allocation2 + $0x38] sm:$0x3] }
 0xdc4   :  { %5694 = vmatpush.msra.mxu3 %v12901_v27  ;;  %5845 = vmatpush.msra.mxu2 %v13185_v33  ;;  %v14962_v27 = vld [vmem:[#allocation25_spill] sm:$0xff] }
 0xdc5   :  { %v5278_v8 = vadd.f32 %v5277_v16, %v5115_v30  ;;  %5714 = vmatpush.msrb.mxu1 %v12908_v46  ;;  %v14963_v46 = vld [vmem:[#allocation21_spill] sm:$0xff] }
 0xdc6   :  { %5695 = vmatpush.msra.mxu3 %v12919_v55  ;;  %5846 = vmatpush.msra.mxu2 %v13201_v38  ;;  %v14964_v55 = vld [vmem:[#allocation8_spill] sm:$0xff] }
 0xdc7   :  { %7571 = vtanh.f32 %v5278_v8  ;;  %5715 = vmatpush.msrb.mxu1 %v12926_v40  ;;  %v14965_v40 = vld [vmem:[#allocation16_spill] sm:$0xff] }
 0xdc8   :  { %5696 = vmatpush.msra.mxu3 %v12937_v24  ;;  %5847 = vmatpush.msra.mxu2 %v13215_v31  ;;  %v14966_v24 = vld [vmem:[#allocation9_spill] sm:$0xff] }
 0xdc9   :  { %5716 = vmatpush.msrb.mxu1 %v12944_v15  ;;  %v14967_v15 = vld [vmem:[#allocation18_spill] sm:$0xff] }
 0xdca   :  { %5697 = vmatpush.msra.mxu3 %v12955_v7  ;;  %5848 = vmatpush.msra.mxu2 %v13231_v2  ;;  %v14968_v7 = vld [vmem:[#allocation10_spill] sm:$0xff] }
 0xdcb   :  { %5717 = vmatpush.msrb.mxu1 %v12962_v43  ;;  %v14969_v43 = vld [vmem:[#allocation20_spill] sm:$0xff] }
 0xdcc   :  { %5698 = vmatpush.msra.mxu3 %v12973_v60  ;;  %5849 = vmatpush.msra.mxu2 %v13247_v45  ;;  %v14970_v60 = vld [vmem:[#allocation22_spill] sm:$0xff] }
 0xdcd   :  { %v7572_v28 = vpop.eup %7571  ;;  %5718 = vmatpush.msrb.mxu1 %v12980_v51  ;;  %v5288_v51 = vld [vmem:[#allocation2 + $0x20] sm:$0x3] }
 0xdce   :  { %v5281_v5 = vmul.f32 %v7572_v28, %v5280_v29  ;;  %5699 = vmatpush.msra.mxu3 %v14961_v0  ;;  %5850 = vmatpush.msra.mxu2 %v13264_v48  ;;  %v5451_v28 = vld [vmem:[#allocation3 + $0x48] sm:$0x3]  ;;  %v5450_v0 = vld [vmem:[#allocation3] sm:$0x3] }
 0xdcf   :  { %5719 = vmatpush.msrb.mxu1 %v14962_v27 }
 0xdd0   :  { %v5285_v56 = vadd.f32 %v5284_v47, %v5281_v5  ;;  %5700 = vmatpush.msra.mxu3 %v14963_v46  ;;  %5851 = vmatpush.msra.mxu2 %v13281_v4 }
 0xdd1   :  { %5720 = vmatpush.msrb.mxu1 %v14964_v55 }
 0xdd2   :  { %5287 = vst [vmem:[#allocation5 + $0x10] sm:$0xc] %v5285_v56  ;;  %v13344_v57 = vrot.slane %v5285_v56, 2 }
 0xdd4   :  { %5520 = vmatmul.f32.vlgmr.msrb.gmra.mxu3 %v13344_v57  ;;  %5540 = vmatmul.f32.vlgmr.msra.gmra.mxu1 %v13344_v57 }
 0xdd5   :  { %5560 = vmatmul.f32.vlgmr.msrb.gmra.mxu2 %v13344_v57  ;;  %5876 = vmatpush.msrb.mxu3 %v13056_v6 }
 0xdd7   :  { %5877 = vmatpush.msrb.mxu3 %v13071_v18  ;;  %v14971_v18 = vld [vmem:[#allocation26_spill] sm:$0xff] }
 0xdd9   :  { %5878 = vmatpush.msrb.mxu3 %v13086_v22 }
 0xddb   :  { %5879 = vmatpush.msrb.mxu3 %v13101_v25  ;;  %v14973_v25 = vld [vmem:[#allocation14_spill] sm:$0xff] }
 0xddd   :  { %5880 = vmatpush.msrb.mxu3 %v14965_v40 }
 0xddf   :  { %5881 = vmatpush.msrb.mxu3 %v14966_v24 }
 0xde1   :  { %5882 = vmatpush.msrb.mxu3 %v14967_v15 }
 0xde3   :  { %5883 = vmatpush.msrb.mxu3 %v14968_v7 }
 0xde5   :  { %5884 = vmatpush.msrb.mxu3 %v14969_v43 }
 0xde7   :  { %5885 = vmatpush.msrb.mxu3 %v14970_v60 }
 0xde9   :  { %5886 = vmatpush.msrb.mxu3 %v14971_v18 }
 0xdeb   :  { %5887 = vmatpush.msrb.mxu3 %v14972_v32 }
 0xded   :  { %v5359_v6 = vpop.f32.mrf.mxu1  ;;  %5888 = vmatpush.msrb.mxu3 %v14973_v25 }
 0xdee   :  { %v5402_v49 = vadd.f32 %v5359_v6, %v5288_v51  ;;  %v5399_v2 = vpop.f32.mrf.mxu0 }
 0xdef   :  { %5889 = vmatpush.msrb.mxu3 %v14974_v41  ;;  %v5442_v9 = vadd.f32 %v13380_v52, %v5399_v2 }
 0xdf0   :  { %v7265_v22 = vmul.f32 -1.442695, %v5402_v49 }
 0xdf1   :  { %5890 = vmatpush.msrb.mxu3 %v14975_v58  ;;  %v13393_v58 = vld [vmem:[%s14540_s15] ss:$0 sm:$0xff] }
 0xdf2   :  { %7573 = vpow2.f32 %v7265_v22 }
 0xdf3   :  { %v5379_v19 = vpop.f32.mrf.mxu2  ;;  %5891 = vmatpush.msrb.mxu3 %v13290_v34 }
 0xdf4   :  { %v5422_v44 = vadd.f32 %v5379_v19, %v5289_v26 }
 0xdf6   :  { %v7266_v62 = vmul.f32 -1.442695, %v5422_v44 }
 0xdf8   :  { %v7574_v35 = vpop.eup %7573  ;;  %7575 = vpow2.f32 %v7266_v62 }
 0xdf9   :  { %v5406_v12 = vadd.f32 1.0, %v7574_v35 }
 0xdfb   :  { %7577 = vrcp.f32 %v5406_v12  ;;  %v5418_v42 = vand.u32 2147483648, %v5406_v12  ;;  %v5416_v48 = vand.u32 2147483647, %v5406_v12  ;;  %vm5412_vm3 = vweird.f32 %v5406_v12 }
 0xdfd   :  { %v5419_v10 = vor.u32 1.1754944e-38, %v5418_v42  ;;  %vm5417_vm6 = vcmp.eq.f32.partialorder %v5416_v48, 8.507059e+37 }
 0xdfe   :  { %v7576_v3 = vpop.eup %7575 }
 0xdff   :  { %v5426_v61 = vadd.f32 1.0, %v7576_v3 }
 0xe01   :  { %v7578_v33 = vpop.eup %7577  ;;  %7579 = vrcp.f32 %v5426_v61  ;;  %v5438_v54 = vand.u32 2147483648, %v5426_v61  ;;  %v5436_v50 = vand.u32 2147483647, %v5426_v61  ;;  %vm5432_vm8 = vweird.f32 %v5426_v61 }
 0xe02   :  { %v5408_v4 = vmul.f32 %v7578_v33, %v5406_v12  ;;  %vm5413_vm0 = vweird.f32 %v7578_v33 }
 0xe03   :  { %vm5414_vm4 = vmor %vm5412_vm3, %vm5413_vm0  ;;  %v5439_v16 = vor.u32 1.1754944e-38, %v5438_v54  ;;  %vm5437_vm10 = vcmp.eq.f32.partialorder %v5436_v50, 8.507059e+37  ;;  %v13442_v54 = vld [vmem:[%s14537_s12 + $0x138] sm:$0xff]  ;;  %v13452_v50 = vld [vmem:[%s14537_s12 + $0x148] sm:$0xff] }
 0xe04   :  { %v5409_v38 = vsub.f32 1.0, %v5408_v4 }
 0xe06   :  { %v5410_v31 = vmul.f32 %v7578_v33, %v5409_v38  ;;  %v5452_v38 = vld [vmem:[#allocation3 + $0x50] sm:$0x3] }
 0xe07   :  { %v7580_v21 = vpop.eup %7579 }
 0xe08   :  { %v5411_v45 = vadd.f32 %v7578_v33, %v5410_v31  ;;  %v5428_v20 = vmul.f32 %v7580_v21, %v5426_v61  ;;  %vm5433_vm7 = vweird.f32 %v7580_v21 }
 0xe09   :  { %vm5434_vm9 = vmor %vm5432_vm8, %vm5433_vm7 }
 0xe0a   :  { %v5415_v34 = vsel %vm5414_vm4, %v7578_v33, %v5411_v45  ;;  %v5429_v53 = vsub.f32 1.0, %v5428_v20 }
 0xe0b   :  { %v5420_v13 = vsel %vm5417_vm6, %v5419_v10, %v5415_v34 }
 0xe0c   :  { %v5443_v36 = vmul.f32 %v5442_v9, %v5420_v13  ;;  %v5430_v63 = vmul.f32 %v7580_v21, %v5429_v53  ;;  %v13406_v9 = vld [vmem:[%s14537_s12 + $0x168] sm:$0xff]  ;;  %v13411_v53 = vld [vmem:[%s14537_s12 + $0x170] sm:$0xff] }
 0xe0d   :  { %6012 = vmatpush.msra.mxu1 %v13406_v9  ;;  %6032 = vmatpush.msrb.mxu2 %v13411_v53  ;;  %v13424_v13 = vld [vmem:[%s14537_s12 + $0x150] sm:$0xff] }
 0xe0e   :  { %v5444_v1 = vadd.f32 %v5443_v36, %v5290_v39  ;;  %v5431_v59 = vadd.f32 %v7580_v21, %v5430_v63  ;;  %v13429_v36 = vld [vmem:[%s14537_s12 + $0x158] sm:$0xff]  ;;  %v13434_v63 = vld [vmem:[%s14537_s12 + $0x160] sm:$0xff] }
 0xe0f   :  { %6013 = vmatpush.msra.mxu1 %v13424_v13  ;;  %6033 = vmatpush.msrb.mxu2 %v13429_v36  ;;  %v13447_v39 = vld [vmem:[%s14537_s12 + $0x140] sm:$0xff] }
 0xe10   :  { %7581 = vtanh.f32 %v5444_v1  ;;  %v5435_v17 = vsel %vm5434_vm9, %v7580_v21, %v5431_v59  ;;  %v13460_v1 = vld [vmem:[%s14537_s12 + $0x120] sm:$0xff]  ;;  %v13465_v59 = vld [vmem:[%s14537_s12 + $0x128] sm:$0xff] }
 0xe11   :  { %v5440_v30 = vsel %vm5437_vm10, %v5439_v16, %v5435_v17  ;;  %6014 = vmatpush.msra.mxu1 %v13442_v54  ;;  %6034 = vmatpush.msrb.mxu2 %v13447_v39  ;;  %v13470_v16 = vld [vmem:[%s14537_s12 + $0x130] sm:$0xff] }
 0xe12   :  { %v5446_v8 = vsub.f32 1.0, %v5440_v30  ;;  %v5448_v29 = vmul.f32 %v5440_v30, %v14976_v14  ;;  %v13478_v30 = vld [vmem:[%s14537_s12 + $0x108] sm:$0xff] }
 0xe13   :  { %6015 = vmatpush.msra.mxu1 %v13460_v1  ;;  %6035 = vmatpush.msrb.mxu2 %v13465_v59 }
 0xe15   :  { %6016 = vmatpush.msra.mxu1 %v13478_v30 }
 0xe16   :  { %v7582_v11 = vpop.eup %7581 }
 0xe17   :  { %v5447_v23 = vmul.f32 %v7582_v11, %v5446_v8  ;;  %v13483_v8 = vld [vmem:[%s14537_s12 + $0x110] sm:$0xff]  ;;  %v13488_v11 = vld [vmem:[%s14537_s12 + $0x118] sm:$0xff] }
 0xe18   :  { %6036 = vmatpush.msrb.mxu2 %v13483_v8 }
 0xe19   :  { %v13384_v37 = vadd.f32 %v5448_v29, %v5447_v23  ;;  %v5614_v23 = vld [vmem:[#allocation2 + $0x20] sm:$0xc]  ;;  %v13496_v29 = vld [vmem:[%s14537_s12 + $0xf0] sm:$0xff] }
 0xe1a   :  { %6017 = vmatpush.msra.mxu1 %v13496_v29 }
 0xe1b   :  { %5612 = vst [vmem:[#allocation4 + $0x20] sm:$0x3] %v13384_v37  ;;  %5681 = vmatmul.f32.vlgmr.msra.gmra.mxu0 %v13384_v37  ;;  %5701 = vmatmul.f32.vlgmr.msra.gmra.mxu3 %v13384_v37 }
 0xe1c   :  { %5721 = vmatmul.f32.vlgmr.msrb.gmra.mxu1 %v13384_v37 }
 0xe51   :  { %v5541_v5 = vpop.f32.mrf.mxu1 }
 0xe52   :  { %v5584_v47 = vadd.f32 %v5541_v5, %v5451_v28  ;;  %v13501_v28 = vld [vmem:[%s14537_s12 + $0xf8] sm:$0xff]  ;;  %v13506_v5 = vld [vmem:[%s14537_s12 + $0x100] sm:$0xff] }
 0xe53   :  { %6037 = vmatpush.msrb.mxu2 %v13501_v28 }
 0xe54   :  { %v7268_v56 = vmul.f32 -1.442695, %v5584_v47 }
 0xe56   :  { %7583 = vpow2.f32 %v7268_v56  ;;  %v13514_v56 = vld [vmem:[%s14537_s12 + $0xd8] sm:$0xff] }
 0xe57   :  { %v5521_v27 = vpop.f32.mrf.mxu3  ;;  %6018 = vmatpush.msra.mxu1 %v13514_v56 }
 0xe58   :  { %v5564_v46 = vadd.f32 %v5521_v27, %v5450_v0  ;;  %v5561_v19 = vpop.f32.mrf.mxu2  ;;  %v13519_v0 = vld [vmem:[%s14537_s12 + $0xe0] sm:$0xff]  ;;  %v13524_v27 = vld [vmem:[%s14537_s12 + $0xe8] sm:$0xff] }
 0xe59   :  { %v5604_v35 = vadd.f32 %v13393_v58, %v5561_v19  ;;  %6038 = vmatpush.msrb.mxu2 %v13519_v0 }
 0xe5a   :  { %v7267_v55 = vmul.f32 -1.442695, %v5564_v46 }
 0xe5c   :  { %v7584_v40 = vpop.eup %7583  ;;  %7585 = vpow2.f32 %v7267_v55  ;;  %v13531_v55 = vld [vmem:[%s14537_s12 + $0xc0] sm:$0xff] }
 0xe5d   :  { %v5588_v24 = vadd.f32 1.0, %v7584_v40  ;;  %v13536_v40 = vld [vmem:[%s14537_s12 + $0xc8] sm:$0xff]  ;;  %6019 = vmatpush.msra.mxu1 %v13531_v55 }
 0xe5e   :  { %6039 = vmatpush.msrb.mxu2 %v13536_v40 }
 0xe5f   :  { %7587 = vrcp.f32 %v5588_v24  ;;  %v5600_v61 = vand.u32 2147483648, %v5588_v24  ;;  %vm5594_vm0 = vweird.f32 %v5588_v24  ;;  %v5598_v4 = vand.u32 2147483647, %v5588_v24 }
 0xe61   :  { %v5601_v48 = vor.u32 1.1754944e-38, %v5600_v61  ;;  %vm5599_vm4 = vcmp.eq.f32.partialorder %v5598_v4, 8.507059e+37  ;;  %v13619_v61 = vld [vmem:[%s14537_s12 + $0x48] sm:$0xff]  ;;  %v13631_v4 = vld [vmem:[%s14537_s12 + $0x58] sm:$0xff] }
 0xe62   :  { %v7586_v15 = vpop.eup %7585 }
 0xe63   :  { %v5568_v7 = vadd.f32 1.0, %v7586_v15 }
 0xe65   :  { %7589 = vrcp.f32 %v5568_v7  ;;  %v7588_v43 = vpop.eup %7587  ;;  %v5580_v22 = vand.u32 2147483648, %v5568_v7  ;;  %v5578_v25 = vand.u32 2147483647, %v5568_v7  ;;  %vm5574_vm12 = vweird.f32 %v5568_v7 }
 0xe66   :  { %v5590_v60 = vmul.f32 %v7588_v43, %v5588_v24  ;;  %vm5595_vm15 = vweird.f32 %v7588_v43  ;;  %v13541_v24 = vld [vmem:[%s14537_s12 + $0xd0] sm:$0xff] }
 0xe67   :  { %v5581_v41 = vor.u32 1.1754944e-38, %v5580_v22  ;;  %vm5579_vm14 = vcmp.eq.f32.partialorder %v5578_v25, 8.507059e+37  ;;  %vm5596_vm3 = vmor %vm5594_vm0, %vm5595_vm15  ;;  %v13583_v25 = vld [vmem:[%s14537_s12 + $0x78] sm:$0xff] }
 0xe68   :  { %v5591_v49 = vsub.f32 1.0, %v5590_v60 }
 0xe6a   :  { %v5592_v26 = vmul.f32 %v7588_v43, %v5591_v49  ;;  %v13565_v49 = vld [vmem:[%s14537_s12 + $0x90] sm:$0xff] }
 0xe6b   :  { %v7590_v51 = vpop.eup %7589 }
 0xe6c   :  { %v5570_v6 = vmul.f32 %v7590_v51, %v5568_v7  ;;  %vm5575_vm11 = vweird.f32 %v7590_v51  ;;  %v5593_v12 = vadd.f32 %v7588_v43, %v5592_v26  ;;  %v13547_v7 = vld [vmem:[%s14537_s12 + $0xa8] sm:$0xff]  ;;  %v13588_v26 = vld [vmem:[%s14537_s12 + $0x80] sm:$0xff] }
 0xe6d   :  { %vm5576_vm13 = vmor %vm5574_vm12, %vm5575_vm11  ;;  %6020 = vmatpush.msra.mxu1 %v13547_v7 }
 0xe6e   :  { %v5571_v18 = vsub.f32 1.0, %v5570_v6  ;;  %v5597_v31 = vsel %vm5596_vm3, %v7588_v43, %v5593_v12  ;;  %v13552_v43 = vld [vmem:[%s14537_s12 + $0xb0] sm:$0xff] }
 0xe6f   :  { %v5602_v21 = vsel %vm5599_vm4, %v5601_v48, %v5597_v31  ;;  %v5615_v6 = vld [vmem:[#allocation2 + $0x10] sm:$0xc]  ;;  %6040 = vmatpush.msrb.mxu2 %v13552_v43  ;;  %6021 = vmatpush.msra.mxu1 %v13565_v49  ;;  %v13649_v31 = vld [vmem:[%s14537_s12 + $0x40] sm:$0xff]  ;;  %v13655_v48 = vld [vmem:[%s14537_s12 + $0x18] sm:$0xff] }
 0xe70   :  { %v5572_v32 = vmul.f32 %v7590_v51, %v5571_v18  ;;  %v5608_v2 = vsub.f32 1.0, %v5602_v21  ;;  %v5610_v10 = vmul.f32 %v5602_v21, %v13344_v57  ;;  %v13416_v57 = vld [vmem:[%s14537_s12 + $0x178] sm:$0xff]  ;;  %v13613_v12 = vld [vmem:[%s14537_s12 + $0x70] sm:$0xff]  ;;  %14977 = vst [vmem:[#allocation31_spill] sm:$0xff] %v13649_v31  ;;  %v13660_v21 = vld [vmem:[%s14537_s12 + $0x20] sm:$0xff] }
 0xe71   :  { %6052 = vmatpush.msra.mxu0 %v13416_v57  ;;  %v13570_v18 = vld [vmem:[%s14537_s12 + $0x98] sm:$0xff]  ;;  %6022 = vmatpush.msra.mxu1 %v13583_v25  ;;  %14978 = vst [vmem:[#allocation27_spill] sm:$0xff] %v13660_v21 }
 0xe72   :  { %v5573_v44 = vadd.f32 %v7590_v51, %v5572_v32  ;;  %v13577_v32 = vld [vmem:[%s14537_s12 + $0xa0] sm:$0xff]  ;;  %6041 = vmatpush.msrb.mxu2 %v13570_v18 }
 0xe73   :  { %6053 = vmatpush.msra.mxu0 %v13434_v63 }
 0xe74   :  { %v5577_v62 = vsel %vm5576_vm13, %v7590_v51, %v5573_v44  ;;  %v13559_v51 = vld [vmem:[%s14537_s12 + $0xb8] sm:$0xff]  ;;  %v13595_v44 = vld [vmem:[%s14537_s12 + $0x88] sm:$0xff]  ;;  %6042 = vmatpush.msrb.mxu2 %v13588_v26 }
 0xe75   :  { %v5582_v3 = vsel %vm5579_vm14, %v5581_v41, %v5577_v62  ;;  %6054 = vmatpush.msra.mxu0 %v13452_v50  ;;  %v13601_v41 = vld [vmem:[%s14537_s12 + $0x60] sm:$0xff]  ;;  %v13606_v62 = vld [vmem:[%s14537_s12 + $0x68] sm:$0xff] }
 0xe76   :  { %v5605_v33 = vmul.f32 %v5604_v35, %v5582_v3  ;;  %6023 = vmatpush.msra.mxu1 %v13601_v41  ;;  %6043 = vmatpush.msrb.mxu2 %v13606_v62 }
 0xe77   :  { %6055 = vmatpush.msra.mxu0 %v13470_v16 }
 0xe78   :  { %v5606_v42 = vadd.f32 %v5605_v33, %v5452_v38  ;;  %v13624_v33 = vld [vmem:[%s14537_s12 + $0x50] sm:$0xff]  ;;  %6024 = vmatpush.msra.mxu1 %v13619_v61 }
 0xe79   :  { %6056 = vmatpush.msra.mxu0 %v13488_v11  ;;  %v13637_v38 = vld [vmem:[%s14537_s12 + $0x30] sm:$0xff]  ;;  %6044 = vmatpush.msrb.mxu2 %v13624_v33 }
 0xe7a   :  { %7591 = vtanh.f32 %v5606_v42  ;;  %v13642_v42 = vld [vmem:[%s14537_s12 + $0x38] sm:$0xff]  ;;  %6025 = vmatpush.msra.mxu1 %v13637_v38 }
 0xe7b   :  { %6057 = vmatpush.msra.mxu0 %v13506_v5  ;;  %6045 = vmatpush.msrb.mxu2 %v13642_v42 }
 0xe7c   :  { %6026 = vmatpush.msra.mxu1 %v13655_v48 }
 0xe7d   :  { %6058 = vmatpush.msra.mxu0 %v13524_v27  ;;  %6046 = vmatpush.msrb.mxu2 %v13660_v21 }
 0xe7f   :  { %6059 = vmatpush.msra.mxu0 %v13541_v24 }
 0xe80   :  { %v7592_v45 = vpop.eup %7591 }
 0xe81   :  { %v5609_v20 = vmul.f32 %v7592_v45, %v5608_v2  ;;  %6060 = vmatpush.msra.mxu0 %v13559_v51  ;;  %v13667_v45 = vld [vmem:[%s14537_s12 + $0x28] sm:$0xff] }
 0xe82   :  { %14979 = vst [vmem:[#allocation13_spill] sm:$0xff] %v13667_v45 }
 0xe83   :  { %v13397_v34 = vadd.f32 %v5610_v10, %v5609_v20  ;;  %6061 = vmatpush.msra.mxu0 %v13577_v32  ;;  %v13673_v10 = vld [vmem:[%s14537_s12] sm:$0xff] }
 0xe84   :  { %6027 = vmatpush.msra.mxu1 %v13673_v10 }
 0xe85   :  { %5613 = vst [vmem:[#allocation5 + $0x10] sm:$0x3] %v13397_v34  ;;  %5852 = vmatmul.f32.vlgmr.msra.gmra.mxu2 %v13397_v34  ;;  %5872 = vmatmul.f32.vlgmr.msrb.gmra.mxu0 %v13397_v34 }
 0xe86   :  { %5892 = vmatmul.f32.vlgmr.msrb.gmra.mxu3 %v13397_v34  ;;  %6062 = vmatpush.msra.mxu0 %v13595_v44 }
 0xe88   :  { %6063 = vmatpush.msra.mxu0 %v13613_v12 }
 0xe8a   :  { %6064 = vmatpush.msra.mxu0 %v13631_v4 }
 0xe8c   :  { %6065 = vmatpush.msra.mxu0 %v13649_v31 }
 0xe8e   :  { %6066 = vmatpush.msra.mxu0 %v13667_v45 }
 0xe98   :  { %v5682_v17 = vpop.f32.mrf.mxu0 }
 0xe99   :  { %v5726_v14 = vrot.slane %v5682_v17, 6  ;;  %v13678_v17 = vld [vmem:[%s14537_s12 + $0x8] sm:$0xff] }
 0xe9a   :  { %14980 = vst [vmem:[#allocation30_spill] sm:$0xff] %v13678_v17  ;;  %6047 = vmatpush.msrb.mxu2 %v13678_v17 }
 0xe9b   :  { %v5728_v47 = vadd.f32 %v5726_v14, %v5614_v23  ;;  %v13685_v23 = vld [vmem:[%s14537_s12 + $0x10] sm:$0xff] }
 0xe9c   :  { %14981 = vst [vmem:[#allocation32_spill] sm:$0xff] %v13685_v23  ;;  %6067 = vmatpush.msra.mxu0 %v13685_v23 }
 0xe9d   :  { %v7269_v46 = vmul.f32 -1.442695, %v5728_v47 }
 0xe9e   :  { %v5702_v15 = vpop.f32.mrf.mxu3  ;;  %6360 = vmatpush.msrb.mxu0 %v13406_v9 }
 0xe9f   :  { %7593 = vpow2.f32 %v7269_v46  ;;  %v5749_v60 = vrot.slane %v5702_v15, 6  ;;  %v5722_v46 = vpop.f32.mrf.mxu1 }
 0xea0   :  { %6361 = vmatpush.msrb.mxu0 %v13424_v13  ;;  %v5616_v13 = vld [vmem:[#allocation2 + $0x38] sm:$0xc] }
 0xea1   :  { %v5751_v22 = vadd.f32 %v5749_v60, %v5615_v6 }
 0xea2   :  { %6362 = vmatpush.msrb.mxu0 %v13442_v54 }
 0xea3   :  { %v7270_v19 = vmul.f32 -1.442695, %v5751_v22 }
 0xea4   :  { %6363 = vmatpush.msrb.mxu0 %v13460_v1 }
 0xea5   :  { %v7594_v35 = vpop.eup %7593  ;;  %7595 = vpow2.f32 %v7270_v19  ;;  %v5771_v19 = vadd.f32 %v13380_v52, %v5722_v46 }
 0xea6   :  { %v5732_v3 = vadd.f32 1.0, %v7594_v35  ;;  %6364 = vmatpush.msrb.mxu0 %v13478_v30 }
 0xea8   :  { %7597 = vrcp.f32 %v5732_v3  ;;  %v5744_v60 = vand.u32 2147483648, %v5732_v3  ;;  %v5742_v22 = vand.u32 2147483647, %v5732_v3  ;;  %vm5738_vm7 = vweird.f32 %v5732_v3  ;;  %6365 = vmatpush.msrb.mxu0 %v13496_v29 }
 0xeaa   :  { %v5745_v17 = vor.u32 1.1754944e-38, %v5744_v60  ;;  %vm5743_vm9 = vcmp.eq.f32.partialorder %v5742_v22, 8.507059e+37  ;;  %6366 = vmatpush.msrb.mxu0 %v13514_v56  ;;  %v13761_v22 = vld [vmem:[%s14538_s13 + $0x120] sm:$0xff] }
 0xeab   :  { %v7596_v2 = vpop.eup %7595 }
 0xeac   :  { %v5755_v20 = vadd.f32 1.0, %v7596_v2  ;;  %6367 = vmatpush.msrb.mxu0 %v13531_v55  ;;  %v6180_v55 = vld [vmem:[%s14538_s13 + $0x170] sm:$0xff] }
 0xead   :  { %6205 = vmatpush.msrb.mxu1 %v6180_v55 }
 0xeae   :  { %v7598_v14 = vpop.eup %7597  ;;  %7599 = vrcp.f32 %v5755_v20  ;;  %v5767_v52 = vand.u32 2147483648, %v5755_v20  ;;  %vm5761_vm11 = vweird.f32 %v5755_v20  ;;  %6368 = vmatpush.msrb.mxu0 %v13547_v7  ;;  %v13724_v7 = vld [vmem:[%s14538_s13 + $0x178] sm:$0xff] }
 0xeaf   :  { %v5734_v47 = vmul.f32 %v7598_v14, %v5732_v3  ;;  %vm5739_vm6 = vweird.f32 %v7598_v14  ;;  %v5765_v3 = vand.u32 2147483647, %v5755_v20  ;;  %6225 = vmatpush.msra.mxu2 %v13724_v7 }
 0xeb0   :  { %vm5740_vm8 = vmor %vm5738_vm7, %vm5739_vm6  ;;  %6369 = vmatpush.msrb.mxu0 %v13565_v49 }
 0xeb1   :  { %v5735_v15 = vsub.f32 1.0, %v5734_v47  ;;  %v5773_v47 = vrot.slane %v5771_v19, 6  ;;  %vm5766_vm13 = vcmp.eq.f32.partialorder %v5765_v3, 8.507059e+37  ;;  %v6171_v19 = vld [vmem:[%s14538_s13 + $0x128] sm:$0xff] }
 0xeb2   :  { %6370 = vmatpush.msrb.mxu0 %v13583_v25  ;;  %v13731_v25 = vld [vmem:[%s14538_s13 + $0x150] sm:$0xff] }
 0xeb3   :  { %v5736_v6 = vmul.f32 %v7598_v14, %v5735_v15 }
 0xeb4   :  { %v7600_v35 = vpop.eup %7599  ;;  %6371 = vmatpush.msrb.mxu0 %v13601_v41  ;;  %v6177_v41 = vld [vmem:[%s14538_s13 + $0x158] sm:$0xff] }
 0xeb5   :  { %v5737_v2 = vadd.f32 %v7598_v14, %v5736_v6  ;;  %v5757_v45 = vmul.f32 %v7600_v35, %v5755_v20  ;;  %vm5762_vm10 = vweird.f32 %v7600_v35  ;;  %6206 = vmatpush.msrb.mxu1 %v6177_v41 }
 0xeb6   :  { %vm5763_vm12 = vmor %vm5761_vm11, %vm5762_vm10  ;;  %6372 = vmatpush.msrb.mxu0 %v13619_v61  ;;  %v13739_v61 = vld [vmem:[%s14538_s13 + $0x160] sm:$0xff] }
 0xeb7   :  { %v5741_v23 = vsel %vm5740_vm8, %v7598_v14, %v5737_v2  ;;  %v5758_v9 = vsub.f32 1.0, %v5757_v45  ;;  %v5768_v45 = vor.u32 1.1754944e-38, %v5767_v52  ;;  %6226 = vmatpush.msra.mxu2 %v13739_v61  ;;  %v13754_v14 = vld [vmem:[%s14538_s13 + $0x148] sm:$0xff]  ;;  %v13784_v52 = vld [vmem:[%s14538_s13 + $0x118] sm:$0xff] }
 0xeb8   :  { %v5746_v15 = vsel %vm5743_vm9, %v5745_v17, %v5741_v23  ;;  %v5781_v17 = vrot.slane %v13384_v37, 6  ;;  %6373 = vmatpush.msrb.mxu0 %v13637_v38  ;;  %v13716_v37 = vld [vmem:[%s14538_s13 + $0x168] sm:$0xff]  ;;  %v6174_v23 = vld [vmem:[%s14538_s13 + $0x140] sm:$0xff] }
 0xeb9   :  { %v5775_v21 = vmul.f32 %v5773_v47, %v5746_v15  ;;  %v5759_v31 = vmul.f32 %v7600_v35, %v5758_v9  ;;  %6185 = vmatpush.msra.mxu3 %v13716_v37  ;;  %v5786_v38 = vld [vmem:[#allocation3 + $0x30] sm:$0xc0]  ;;  %6207 = vmatpush.msrb.mxu1 %v6174_v23  ;;  %v6168_v15 = vld [vmem:[%s14538_s13 + $0x110] sm:$0xff] }
 0xeba   :  { %6374 = vmatpush.msrb.mxu0 %v13655_v48  ;;  %6227 = vmatpush.msra.mxu2 %v13754_v14  ;;  %v13776_v9 = vld [vmem:[%s14538_s13 + $0x108] sm:$0xff] }
 0xebb   :  { %v5776_v46 = vadd.f32 %v5775_v21, %v5616_v13  ;;  %v5760_v6 = vadd.f32 %v7600_v35, %v5759_v31  ;;  %6186 = vmatpush.msra.mxu3 %v13731_v25  ;;  %6208 = vmatpush.msrb.mxu1 %v6171_v19  ;;  %v5785_v13 = vld [vmem:[#allocation3 + $0x18] sm:$0xc0] }
 0xebc   :  { %6375 = vmatpush.msrb.mxu0 %v13673_v10  ;;  %v13746_v10 = vld [vmem:[%s14538_s13 + $0x138] sm:$0xff] }
 0xebd   :  { %7601 = vtanh.f32 %v5776_v46  ;;  %v5764_v54 = vsel %vm5763_vm12, %v7600_v35, %v5760_v6  ;;  %6187 = vmatpush.msra.mxu3 %v13746_v10  ;;  %v13769_v35 = vld [vmem:[%s14538_s13 + $0x130] sm:$0xff]  ;;  %6209 = vmatpush.msrb.mxu1 %v6168_v15  ;;  %v6165_v6 = vld [vmem:[%s14538_s13 + $0xf8] sm:$0xff] }
 0xebe   :  { %v5769_v1 = vsel %vm5766_vm13, %v5768_v45, %v5764_v54  ;;  %6228 = vmatpush.msra.mxu2 %v13769_v35  ;;  %v13791_v46 = vld [vmem:[%s14538_s13 + $0xf0] sm:$0xff]  ;;  %v13799_v54 = vld [vmem:[%s14538_s13 + $0x100] sm:$0xff] }
 0xebf   :  { %v5778_v30 = vsub.f32 1.0, %v5769_v1  ;;  %v5783_v29 = vmul.f32 %v5781_v17, %v5769_v1  ;;  %6188 = vmatpush.msra.mxu3 %v13761_v22  ;;  %14983 = vst [vmem:[#allocation6_spill] sm:$0xff] %v13799_v54  ;;  %6210 = vmatpush.msrb.mxu1 %v6165_v6  ;;  %v13806_v1 = vld [vmem:[%s14538_s13 + $0xd8] sm:$0xff]  ;;  %v13814_v17 = vld [vmem:[%s14538_s13 + $0xe8] sm:$0xff] }
 0xec0   :  { %6229 = vmatpush.msra.mxu2 %v13784_v52  ;;  %14984 = vst [vmem:[#allocation11_spill] sm:$0xff] %v13814_v17 }
 0xec1   :  { %6189 = vmatpush.msra.mxu3 %v13776_v9 }
 0xec2   :  { %6230 = vmatpush.msra.mxu2 %v13799_v54 }
 0xec3   :  { %v7602_v21 = vpop.eup %7601  ;;  %6190 = vmatpush.msra.mxu3 %v13791_v46 }
 0xec4   :  { %v5779_v31 = vmul.f32 %v7602_v21, %v5778_v30  ;;  %v6162_v30 = vld [vmem:[%s14538_s13 + $0xe0] sm:$0xff]  ;;  %6231 = vmatpush.msra.mxu2 %v13814_v17 }
 0xec5   :  { %6191 = vmatpush.msra.mxu3 %v13806_v1  ;;  %6211 = vmatpush.msrb.mxu1 %v6162_v30 }
 0xec6   :  { %v13704_v20 = vadd.f32 %v5783_v29, %v5779_v31  ;;  %v13821_v31 = vld [vmem:[%s14538_s13 + $0xc0] sm:$0xff]  ;;  %v6159_v29 = vld [vmem:[%s14538_s13 + $0xc8] sm:$0xff] }
 0xec7   :  { %6192 = vmatpush.msra.mxu3 %v13821_v31  ;;  %6212 = vmatpush.msrb.mxu1 %v6159_v29 }
 0xec8   :  { %14982 = vst [vmem:[#allocation17_spill] sm:$0xff] %v13704_v20  ;;  %v6010_v56 = vrot.slane %v13704_v20, 2 }
 0xec9   :  { %5956 = vst [vmem:[#allocation4 + $0x20] sm:$0xc] %v13704_v20  ;;  %v6138_v20 = vld [vmem:[%s14538_s13 + $0x20] sm:$0xff] }
 0xeca   :  { %6028 = vmatmul.f32.vlgmr.msra.gmra.mxu1 %v6010_v56  ;;  %6048 = vmatmul.f32.vlgmr.msrb.gmra.mxu2 %v6010_v56 }
 0xecb   :  { %6068 = vmatmul.f32.vlgmr.msra.gmra.mxu0 %v6010_v56  ;;  %v13829_v56 = vld [vmem:[%s14538_s13 + $0xd0] sm:$0xff] }
 0xecc   :  { %6553 = vmatpush.msra.mxu0 %v6180_v55  ;;  %14985 = vst [vmem:[#allocation23_spill] sm:$0xff] %v13829_v56  ;;  %6232 = vmatpush.msra.mxu2 %v13829_v56 }
 0xece   :  { %6554 = vmatpush.msra.mxu0 %v6177_v41  ;;  %v13838_v41 = vld [vmem:[%s14538_s13 + $0xa8] sm:$0xff] }
 0xecf   :  { %6193 = vmatpush.msra.mxu3 %v13838_v41 }
 0xed0   :  { %6555 = vmatpush.msra.mxu0 %v6174_v23  ;;  %v13853_v23 = vld [vmem:[%s14538_s13 + $0x90] sm:$0xff] }
 0xed1   :  { %6194 = vmatpush.msra.mxu3 %v13853_v23 }
 0xed2   :  { %6556 = vmatpush.msra.mxu0 %v6171_v19  ;;  %v13861_v19 = vld [vmem:[%s14538_s13 + $0xa0] sm:$0xff] }
 0xed3   :  { %14987 = vst [vmem:[#allocation33_spill] sm:$0xff] %v13861_v19 }
 0xed4   :  { %6557 = vmatpush.msra.mxu0 %v6168_v15  ;;  %v13877_v15 = vld [vmem:[%s14538_s13 + $0x88] sm:$0xff] }
 0xed5   :  { %14988 = vst [vmem:[#allocation24_spill] sm:$0xff] %v13877_v15 }
 0xed6   :  { %6558 = vmatpush.msra.mxu0 %v6165_v6  ;;  %v13886_v6 = vld [vmem:[%s14538_s13 + $0x60] sm:$0xff] }
 0xed8   :  { %6559 = vmatpush.msra.mxu0 %v6162_v30  ;;  %v13894_v30 = vld [vmem:[%s14538_s13 + $0x70] sm:$0xff] }
 0xed9   :  { %14989 = vst [vmem:[#allocation12_spill] sm:$0xff] %v13894_v30 }
 0xeda   :  { %6560 = vmatpush.msra.mxu0 %v6159_v29  ;;  %v6144_v29 = vld [vmem:[%s14538_s13 + $0x50] sm:$0xff] }
 0xf02   :  { %v5873_v49 = vpop.f32.mrf.mxu0 }
 0xf03   :  { %v5920_v48 = vrot.slane %v5873_v49, 2 }
 0xf05   :  { %v5922_v60 = vadd.f32 %v5920_v48, %v5786_v38  ;;  %v6156_v38 = vld [vmem:[%s14538_s13 + $0xb0] sm:$0xff]  ;;  %v13846_v48 = vld [vmem:[%s14538_s13 + $0xb8] sm:$0xff] }
 0xf06   :  { %14986 = vst [vmem:[#allocation19_spill] sm:$0xff] %v13846_v48  ;;  %6213 = vmatpush.msrb.mxu1 %v6156_v38  ;;  %6233 = vmatpush.msra.mxu2 %v13846_v48 }
 0xf07   :  { %v7272_v2 = vmul.f32 -1.442695, %v5922_v60  ;;  %v6153_v60 = vld [vmem:[%s14538_s13 + $0x98] sm:$0xff]  ;;  %6561 = vmatpush.msra.mxu0 %v6156_v38 }
 0xf08   :  { %v5853_v47 = vpop.f32.mrf.mxu2  ;;  %6214 = vmatpush.msrb.mxu1 %v6153_v60  ;;  %6234 = vmatpush.msra.mxu2 %v13861_v19  ;;  %v13958_v19 = vld [vmem:[%s14538_s13 + $0x10] sm:$0xff] }
 0xf09   :  { %7603 = vpow2.f32 %v7272_v2  ;;  %v5897_v3 = vrot.slane %v5853_v47, 2  ;;  %v13869_v2 = vld [vmem:[%s14538_s13 + $0x78] sm:$0xff]  ;;  %v6150_v47 = vld [vmem:[%s14538_s13 + $0x80] sm:$0xff]  ;;  %6562 = vmatpush.msra.mxu0 %v6153_v60  ;;  %v13918_v60 = vld [vmem:[%s14538_s13 + $0x30] sm:$0xff]  ;;  %v5893_v17 = vpop.f32.mrf.mxu3 }
 0xf0a   :  { %6195 = vmatpush.msra.mxu3 %v13869_v2  ;;  %6215 = vmatpush.msrb.mxu1 %v6150_v47 }
 0xf0b   :  { %v5899_v45 = vadd.f32 %v5897_v3, %v5785_v13  ;;  %6235 = vmatpush.msra.mxu2 %v13877_v15  ;;  %6563 = vmatpush.msra.mxu0 %v6150_v47  ;;  %v6141_v47 = vld [vmem:[%s14538_s13 + $0x38] sm:$0xff]  ;;  %v13949_v15 = vld [vmem:[%s14538_s13] sm:$0xff] }
 0xf0c   :  { %6196 = vmatpush.msra.mxu3 %v13886_v6 }
 0xf0d   :  { %v7271_v21 = vmul.f32 -1.442695, %v5899_v45  ;;  %v6147_v45 = vld [vmem:[%s14538_s13 + $0x68] sm:$0xff]  ;;  %6236 = vmatpush.msra.mxu2 %v13894_v30 }
 0xf0e   :  { %6216 = vmatpush.msrb.mxu1 %v6147_v45  ;;  %6564 = vmatpush.msra.mxu0 %v6147_v45  ;;  %v13932_v45 = vld [vmem:[%s14538_s13 + $0x18] sm:$0xff]  ;;  %v13941_v30 = vld [vmem:[%s14538_s13 + $0x28] sm:$0xff] }
 0xf0f   :  { %v7604_v55 = vpop.eup %7603  ;;  %7605 = vpow2.f32 %v7271_v21  ;;  %v13902_v21 = vld [vmem:[%s14538_s13 + $0x48] sm:$0xff]  ;;  %14992 = vst [vmem:[#allocation8_spill] sm:$0xff] %v13941_v30 }
 0xf10   :  { %v13832_v49 = vadd.f32 1.0, %v7604_v55  ;;  %v13910_v55 = vld [vmem:[%s14538_s13 + $0x58] sm:$0xff]  ;;  %6197 = vmatpush.msra.mxu3 %v13902_v21  ;;  %6217 = vmatpush.msrb.mxu1 %v6144_v29 }
 0xf11   :  { %14990 = vst [vmem:[#allocation25_spill] sm:$0xff] %v13910_v55  ;;  %6237 = vmatpush.msra.mxu2 %v13910_v55  ;;  %6565 = vmatpush.msra.mxu0 %v6144_v29  ;;  %v6135_v29 = vld [vmem:[%s14538_s13 + $0x8] sm:$0xff] }
 0xf12   :  { %7607 = vrcp.f32 %v13832_v49  ;;  %6198 = vmatpush.msra.mxu3 %v13918_v60  ;;  %6218 = vmatpush.msrb.mxu1 %v6141_v47  ;;  %vm5932_vm6 = vweird.f32 %v13832_v49 }
 0xf13   :  { %6566 = vmatpush.msra.mxu0 %v6141_v47 }
 0xf14   :  { %6199 = vmatpush.msra.mxu3 %v13932_v45  ;;  %6219 = vmatpush.msrb.mxu1 %v6138_v20 }
 0xf15   :  { %v7606_v13 = vpop.eup %7605  ;;  %6567 = vmatpush.msra.mxu0 %v6138_v20 }
 0xf16   :  { %v13880_v3 = vadd.f32 1.0, %v7606_v13  ;;  %v13926_v13 = vld [vmem:[%s14538_s13 + $0x40] sm:$0xff]  ;;  %6200 = vmatpush.msra.mxu3 %v13949_v15  ;;  %6220 = vmatpush.msrb.mxu1 %v6135_v29 }
 0xf17   :  { %14991 = vst [vmem:[#allocation21_spill] sm:$0xff] %v13926_v13  ;;  %6238 = vmatpush.msra.mxu2 %v13926_v13  ;;  %6568 = vmatpush.msra.mxu0 %v6135_v29 }
 0xf18   :  { %7609 = vrcp.f32 %v13880_v3  ;;  %v13912_v38 = vpop.eup %7607  ;;  %6380 = vmatpush.msrb.mxu3 %v13411_v53  ;;  %6400 = vmatpush.msra.mxu1 %v13416_v57  ;;  %v5915_v54 = vand.u32 2147483648, %v13880_v3  ;;  %vm5909_vm15 = vweird.f32 %v13880_v3 }
 0xf19   :  { %v5928_v55 = vmul.f32 %v13912_v38, %v13832_v49  ;;  %6239 = vmatpush.msra.mxu2 %v13941_v30  ;;  %v5913_v30 = vand.u32 2147483647, %v13880_v3  ;;  %vm5933_vm4 = vweird.f32 %v13912_v38 }
 0xf1a   :  { %6381 = vmatpush.msrb.mxu3 %v13429_v36  ;;  %6401 = vmatpush.msra.mxu1 %v13434_v63  ;;  %v5916_v36 = vor.u32 1.1754944e-38, %v5915_v54  ;;  %vm5934_vm7 = vmor %vm5932_vm6, %vm5933_vm4  ;;  %v15000_v54 = vld [vmem:[#allocation23_spill] sm:$0xff] }
 0xf1b   :  { %v5929_v56 = vsub.f32 1.0, %v5928_v55  ;;  %6240 = vmatpush.msra.mxu2 %v13958_v19  ;;  %v5942_v55 = vadd.f32 %v13393_v58, %v5893_v17  ;;  %vm5914_vm3 = vcmp.eq.f32.partialorder %v5913_v30, 8.507059e+37  ;;  %v15002_v17 = vld [vmem:[#allocation33_spill] sm:$0xff] }
 0xf1c   :  { %6382 = vmatpush.msrb.mxu3 %v13447_v39  ;;  %6402 = vmatpush.msra.mxu1 %v13452_v50  ;;  %v5938_v50 = vand.u32 2147483648, %v13832_v49 }
 0xf1d   :  { %6533 = vmatpush.msrb.mxu2 %v13716_v37  ;;  %v5930_v53 = vmul.f32 %v13912_v38, %v5929_v56  ;;  %v5944_v63 = vrot.slane %v5942_v55, 2 }
 0xf1e   :  { %v7610_v48 = vpop.eup %7609  ;;  %6383 = vmatpush.msrb.mxu3 %v13465_v59  ;;  %6403 = vmatpush.msra.mxu1 %v13470_v16  ;;  %v5936_v59 = vand.u32 2147483647, %v13832_v49  ;;  %v5787_v16 = vld [vmem:[#allocation3 + $0x70] sm:$0xc0]  ;;  %v15004_v49 = vld [vmem:[#allocation12_spill] sm:$0xff] }
 0xf1f   :  { %v5905_v13 = vmul.f32 %v7610_v48, %v13880_v3  ;;  %vm5910_vm14 = vweird.f32 %v7610_v48  ;;  %6534 = vmatpush.msrb.mxu2 %v13731_v25  ;;  %v5931_v37 = vadd.f32 %v13912_v38, %v5930_v53 }
 0xf20   :  { %vm5911_vm0 = vmor %vm5909_vm15, %vm5910_vm14  ;;  %6384 = vmatpush.msrb.mxu3 %v13483_v8  ;;  %6404 = vmatpush.msra.mxu1 %v13488_v11  ;;  %v5939_v11 = vor.u32 1.1754944e-38, %v5938_v50  ;;  %vm5937_vm8 = vcmp.eq.f32.partialorder %v5936_v59, 8.507059e+37  ;;  %v5960_v50 = vld [vmem:[#allocation2 + $0x38] sm:$0x30] }
 0xf21   :  { %v5906_v47 = vsub.f32 1.0, %v5905_v13  ;;  %6535 = vmatpush.msrb.mxu2 %v13746_v10  ;;  %v5935_v8 = vsel %vm5934_vm7, %v13912_v38, %v5931_v37 }
 0xf22   :  { %6385 = vmatpush.msrb.mxu3 %v13501_v28  ;;  %6405 = vmatpush.msra.mxu1 %v13506_v5  ;;  %v5940_v28 = vsel %vm5937_vm8, %v5939_v11, %v5935_v8 }
 0xf23   :  { %v5907_v20 = vmul.f32 %v7610_v48, %v5906_v47  ;;  %6536 = vmatpush.msrb.mxu2 %v13761_v22  ;;  %v5949_v5 = vsub.f32 1.0, %v5940_v28 }
 0xf24   :  { %6386 = vmatpush.msrb.mxu3 %v13519_v0  ;;  %6406 = vmatpush.msra.mxu1 %v13524_v27  ;;  %v5952_v0 = vrot.slane %v13397_v34, 2 }
 0xf25   :  { %v5908_v57 = vadd.f32 %v7610_v48, %v5907_v20  ;;  %6537 = vmatpush.msrb.mxu2 %v13776_v9  ;;  %v14999_v9 = vld [vmem:[#allocation11_spill] sm:$0xff] }
 0xf26   :  { %6387 = vmatpush.msrb.mxu3 %v13536_v40  ;;  %6407 = vmatpush.msra.mxu1 %v13541_v24  ;;  %v5954_v24 = vmul.f32 %v5952_v0, %v5940_v28 }
 0xf27   :  { %v5912_v58 = vsel %vm5911_vm0, %v7610_v48, %v5908_v57  ;;  %6538 = vmatpush.msrb.mxu2 %v13791_v46 }
 0xf28   :  { %v5917_v39 = vsel %vm5914_vm3, %v5916_v36, %v5912_v58  ;;  %6388 = vmatpush.msrb.mxu3 %v13552_v43  ;;  %6408 = vmatpush.msra.mxu1 %v13559_v51  ;;  %v14993_v51 = vld [vmem:[#allocation31_spill] sm:$0xff] }
 0xf29   :  { %v5946_v25 = vmul.f32 %v5944_v63, %v5917_v39  ;;  %6539 = vmatpush.msrb.mxu2 %v13806_v1  ;;  %v15001_v1 = vld [vmem:[#allocation19_spill] sm:$0xff] }
 0xf2a   :  { %6389 = vmatpush.msrb.mxu3 %v13570_v18  ;;  %6409 = vmatpush.msra.mxu1 %v13577_v32  ;;  %v14994_v18 = vld [vmem:[#allocation27_spill] sm:$0xff]  ;;  %v14995_v32 = vld [vmem:[#allocation13_spill] sm:$0xff] }
 0xf2b   :  { %v5947_v10 = vadd.f32 %v5946_v25, %v5787_v16  ;;  %6540 = vmatpush.msrb.mxu2 %v13821_v31  ;;  %v15003_v31 = vld [vmem:[#allocation24_spill] sm:$0xff] }
 0xf2c   :  { %6390 = vmatpush.msrb.mxu3 %v13588_v26  ;;  %6410 = vmatpush.msra.mxu1 %v13595_v44  ;;  %v14996_v26 = vld [vmem:[#allocation30_spill] sm:$0xff]  ;;  %v14997_v44 = vld [vmem:[#allocation32_spill] sm:$0xff] }
 0xf2d   :  { %7611 = vtanh.f32 %v5947_v10  ;;  %6541 = vmatpush.msrb.mxu2 %v13838_v41  ;;  %v15005_v41 = vld [vmem:[#allocation25_spill] sm:$0xff] }
 0xf2e   :  { %6391 = vmatpush.msrb.mxu3 %v13606_v62  ;;  %6411 = vmatpush.msra.mxu1 %v13613_v12 }
 0xf2f   :  { %6542 = vmatpush.msrb.mxu2 %v13853_v23  ;;  %v15006_v23 = vld [vmem:[#allocation21_spill] sm:$0xff] }
 0xf30   :  { %6392 = vmatpush.msrb.mxu3 %v13624_v33  ;;  %6412 = vmatpush.msra.mxu1 %v13631_v4  ;;  %v5958_v33 = vld [vmem:[#allocation2 + $0x20] sm:$0x30] }
 0xf31   :  { %6543 = vmatpush.msrb.mxu2 %v13869_v2 }
 0xf32   :  { %6393 = vmatpush.msrb.mxu3 %v13642_v42  ;;  %6413 = vmatpush.msra.mxu1 %v14993_v51  ;;  %v14998_v42 = vld [vmem:[#allocation6_spill] sm:$0xff] }
 0xf33   :  { %v7612_v27 = vpop.eup %7611  ;;  %6544 = vmatpush.msrb.mxu2 %v13886_v6 }
 0xf34   :  { %v5950_v40 = vmul.f32 %v7612_v27, %v5949_v5  ;;  %6394 = vmatpush.msrb.mxu3 %v14994_v18  ;;  %6414 = vmatpush.msra.mxu1 %v14995_v32  ;;  %v15008_v5 = vld [vmem:[#allocation17_spill] sm:$0xff] }
 0xf35   :  { %6545 = vmatpush.msrb.mxu2 %v13902_v21  ;;  %v6127_v0 = vrot.slane %v15008_v5, 6  ;;  %v6698_v5 = vld [vmem:[%s14537_s12 + $0x148] sm:$0xff] }
 0xf36   :  { %v14009_v43 = vadd.f32 %v5954_v24, %v5950_v40  ;;  %6395 = vmatpush.msrb.mxu3 %v14996_v26  ;;  %6415 = vmatpush.msra.mxu1 %v14997_v44  ;;  %v6132_v26 = vld [vmem:[#allocation3 + $0x30] sm:$0x30] }
 0xf37   :  { %6546 = vmatpush.msrb.mxu2 %v13918_v60 }
 0xf38   :  { %5957 = vst [vmem:[#allocation5 + $0x20] sm:$0xc0] %v14009_v43  ;;  %v6183_v34 = vrot.slane %v14009_v43, 6 }
 0xf39   :  { %6547 = vmatpush.msrb.mxu2 %v13932_v45  ;;  %v14047_v45 = vld [vmem:[%s14539_s14] ss:$0 sm:$0xff] }
 0xf3a   :  { %6201 = vmatmul.f32.vlgmr.msra.gmra.mxu3 %v6183_v34  ;;  %6221 = vmatmul.f32.vlgmr.msrb.gmra.mxu1 %v6183_v34 }
 0xf3b   :  { %6241 = vmatmul.f32.vlgmr.msra.gmra.mxu2 %v6183_v34  ;;  %6573 = vmatpush.msra.mxu3 %v13724_v7 }
 0xf3c   :  { %6548 = vmatpush.msrb.mxu2 %v13949_v15  ;;  %v15007_v15 = vld [vmem:[#allocation8_spill] sm:$0xff] }
 0xf3d   :  { %6574 = vmatpush.msra.mxu3 %v13739_v61  ;;  %v5959_v61 = vld [vmem:[#allocation2 + $0x10] sm:$0x30] }
 0xf3f   :  { %6575 = vmatpush.msra.mxu3 %v13754_v14 }
 0xf41   :  { %6576 = vmatpush.msra.mxu3 %v13769_v35 }
 0xf43   :  { %6577 = vmatpush.msra.mxu3 %v13784_v52 }
 0xf45   :  { %6578 = vmatpush.msra.mxu3 %v14998_v42 }
 0xf47   :  { %v6029_v62 = vpop.f32.mrf.mxu1  ;;  %6579 = vmatpush.msra.mxu3 %v14999_v9 }
 0xf48   :  { %v6073_v12 = vrot.slane %v6029_v62, 4  ;;  %v6069_v30 = vpop.f32.mrf.mxu0 }
 0xf49   :  { %6580 = vmatpush.msra.mxu3 %v15000_v54  ;;  %v6118_v29 = vadd.f32 %v14047_v45, %v6069_v30 }
 0xf4a   :  { %v6075_v4 = vadd.f32 %v6073_v12, %v5958_v33 }
 0xf4b   :  { %6581 = vmatpush.msra.mxu3 %v15001_v1  ;;  %v6120_v57 = vrot.slane %v6118_v29, 4 }
 0xf4c   :  { %v7273_v22 = vmul.f32 -1.442695, %v6075_v4  ;;  %v6131_v4 = vld [vmem:[#allocation3 + $0x18] sm:$0x30] }
 0xf4d   :  { %v6049_v7 = vpop.f32.mrf.mxu2  ;;  %6582 = vmatpush.msra.mxu3 %v15002_v17 }
 0xf4e   :  { %7613 = vpow2.f32 %v7273_v22  ;;  %v6096_v46 = vrot.slane %v6049_v7, 4 }
 0xf4f   :  { %6583 = vmatpush.msra.mxu3 %v15003_v31 }
 0xf50   :  { %v6098_v14 = vadd.f32 %v6096_v46, %v5959_v61 }
 0xf51   :  { %6584 = vmatpush.msra.mxu3 %v15004_v49 }
 0xf52   :  { %v7274_v35 = vmul.f32 -1.442695, %v6098_v14 }
 0xf53   :  { %6585 = vmatpush.msra.mxu3 %v15005_v41 }
 0xf54   :  { %v7614_v52 = vpop.eup %7613  ;;  %7615 = vpow2.f32 %v7274_v35 }
 0xf55   :  { %v6079_v56 = vadd.f32 1.0, %v7614_v52  ;;  %6586 = vmatpush.msra.mxu3 %v15006_v23 }
 0xf57   :  { %7617 = vrcp.f32 %v6079_v56  ;;  %6587 = vmatpush.msra.mxu3 %v15007_v15  ;;  %v6091_v38 = vand.u32 2147483648, %v6079_v56  ;;  %v6089_v13 = vand.u32 2147483647, %v6079_v56  ;;  %vm6085_vm10 = vweird.f32 %v6079_v56 }
 0xf59   :  { %6588 = vmatpush.msra.mxu3 %v13958_v19  ;;  %v6092_v53 = vor.u32 1.1754944e-38, %v6091_v38  ;;  %vm6090_vm12 = vcmp.eq.f32.partialorder %v6089_v13, 8.507059e+37 }
 0xf5a   :  { %v7616_v48 = vpop.eup %7615 }
 0xf5b   :  { %v6102_v2 = vadd.f32 1.0, %v7616_v48  ;;  %v14058_v48 = vld [vmem:[%s14540_s15] ss:$0 sm:$0xff] }
 0xf5d   :  { %v7618_v3 = vpop.eup %7617  ;;  %7619 = vrcp.f32 %v6102_v2  ;;  %v6114_v37 = vand.u32 2147483648, %v6102_v2  ;;  %v6112_v25 = vand.u32 2147483647, %v6102_v2  ;;  %vm6108_vm14 = vweird.f32 %v6102_v2 }
 0xf5e   :  { %v6081_v6 = vmul.f32 %v7618_v3, %v6079_v56  ;;  %vm6086_vm9 = vweird.f32 %v7618_v3 }
 0xf5f   :  { %vm6087_vm11 = vmor %vm6085_vm10, %vm6086_vm9  ;;  %v6115_v8 = vor.u32 1.1754944e-38, %v6114_v37  ;;  %vm6113_vm0 = vcmp.eq.f32.partialorder %v6112_v25, 8.507059e+37  ;;  %v6702_v25 = vld [vmem:[%s14537_s12 + $0x168] sm:$0xff] }
 0xf60   :  { %v6082_v21 = vsub.f32 1.0, %v6081_v6  ;;  %6708 = vmatpush.msrb.mxu1 %v6702_v25 }
 0xf62   :  { %v6083_v60 = vmul.f32 %v7618_v3, %v6082_v21 }
 0xf63   :  { %v7620_v47 = vpop.eup %7619 }
 0xf64   :  { %v6084_v20 = vadd.f32 %v7618_v3, %v6083_v60  ;;  %v6104_v55 = vmul.f32 %v7620_v47, %v6102_v2  ;;  %vm6109_vm13 = vweird.f32 %v7620_v47 }
 0xf65   :  { %vm6110_vm15 = vmor %vm6108_vm14, %vm6109_vm13 }
 0xf66   :  { %v6088_v19 = vsel %vm6087_vm11, %v7618_v3, %v6084_v20  ;;  %v6105_v36 = vsub.f32 1.0, %v6104_v55 }
 0xf67   :  { %v6093_v58 = vsel %vm6090_vm12, %v6092_v53, %v6088_v19 }
 0xf68   :  { %v6122_v63 = vmul.f32 %v6120_v57, %v6093_v58  ;;  %v6106_v39 = vmul.f32 %v7620_v47, %v6105_v36  ;;  %v6300_v36 = vrot.slane %v14009_v43, 2  ;;  %v6704_v43 = vld [vmem:[%s14537_s12 + $0x178] sm:$0xff] }
 0xf6a   :  { %v6123_v59 = vadd.f32 %v6122_v63, %v5960_v50  ;;  %v6107_v16 = vadd.f32 %v7620_v47, %v6106_v39 }
 0xf6c   :  { %7621 = vtanh.f32 %v6123_v59  ;;  %v6111_v10 = vsel %vm6110_vm15, %v7620_v47, %v6107_v16  ;;  %v6133_v47 = vld [vmem:[#allocation3 + $0x70] sm:$0x30]  ;;  %v6703_v59 = vld [vmem:[%s14537_s12 + $0x170] sm:$0xff] }
 0xf6d   :  { %v6116_v11 = vsel %vm6113_vm0, %v6115_v8, %v6111_v10  ;;  %v6699_v16 = vld [vmem:[%s14537_s12 + $0x150] sm:$0xff]  ;;  %v6700_v10 = vld [vmem:[%s14537_s12 + $0x158] sm:$0xff]  ;;  %v6701_v8 = vld [vmem:[%s14537_s12 + $0x160] sm:$0xff]  ;;  %6728 = vmatpush.msra.mxu2 %v6703_v59 }
 0xf6e   :  { %v6125_v28 = vsub.f32 1.0, %v6116_v11  ;;  %v6129_v24 = vmul.f32 %v6127_v0, %v6116_v11  ;;  %6709 = vmatpush.msrb.mxu1 %v6699_v16  ;;  %v6696_v11 = vld [vmem:[%s14537_s12 + $0x138] sm:$0xff]  ;;  %v6693_v0 = vld [vmem:[%s14537_s12 + $0x120] sm:$0xff]  ;;  %v6658_v59 = vld [vmem:[%s14537_s12 + $0x8] sm:$0xff] }
 0xf6f   :  { %6729 = vmatpush.msra.mxu2 %v6700_v10 }
 0xf70   :  { %6710 = vmatpush.msrb.mxu1 %v6696_v11 }
 0xf72   :  { %v7622_v27 = vpop.eup %7621  ;;  %6711 = vmatpush.msrb.mxu1 %v6693_v0 }
 0xf73   :  { %v6126_v40 = vmul.f32 %v7622_v27, %v6125_v28  ;;  %v6697_v28 = vld [vmem:[%s14537_s12 + $0x140] sm:$0xff]  ;;  %v6694_v27 = vld [vmem:[%s14537_s12 + $0x128] sm:$0xff] }
 0xf74   :  { %6730 = vmatpush.msra.mxu2 %v6697_v28 }
 0xf75   :  { %v14051_v34 = vadd.f32 %v6129_v24, %v6126_v40  ;;  %v6695_v40 = vld [vmem:[%s14537_s12 + $0x130] sm:$0xff] }
 0xf76   :  { %6731 = vmatpush.msra.mxu2 %v6694_v27 }
 0xf77   :  { %6304 = vst [vmem:[#allocation4 + $0x20] sm:$0x30] %v14051_v34  ;;  %v6358_v51 = vrot.slane %v14051_v34, 4 }
 0xf79   :  { %6376 = vmatmul.f32.vlgmr.msrb.gmra.mxu0 %v6358_v51  ;;  %6396 = vmatmul.f32.vlgmr.msrb.gmra.mxu3 %v6358_v51 }
 0xf7a   :  { %6416 = vmatmul.f32.vlgmr.msra.gmra.mxu1 %v6358_v51  ;;  %6748 = vmatpush.msrb.mxu0 %v6704_v43  ;;  %v6690_v51 = vld [vmem:[%s14537_s12 + $0x108] sm:$0xff]  ;;  %v6659_v43 = vld [vmem:[%s14537_s12 + $0x10] sm:$0xff] }
 0xf7b   :  { %6712 = vmatpush.msrb.mxu1 %v6690_v51 }
 0xf7c   :  { %6749 = vmatpush.msrb.mxu0 %v6701_v8 }
 0xf7e   :  { %6750 = vmatpush.msrb.mxu0 %v6698_v5 }
 0xf80   :  { %6751 = vmatpush.msrb.mxu0 %v6695_v40 }
 0xfb7   :  { %v6222_v18 = vpop.f32.mrf.mxu1 }
 0xfb8   :  { %v6269_v32 = vrot.slane %v6222_v18, 4  ;;  %v6691_v18 = vld [vmem:[%s14537_s12 + $0x110] sm:$0xff] }
 0xfb9   :  { %6732 = vmatpush.msra.mxu2 %v6691_v18 }
 0xfba   :  { %v6271_v44 = vadd.f32 %v6269_v32, %v6132_v26  ;;  %v6692_v32 = vld [vmem:[%s14537_s12 + $0x118] sm:$0xff]  ;;  %v6306_v26 = vld [vmem:[#allocation2 + $0x20] sm:$0xc0] }
 0xfbb   :  { %6752 = vmatpush.msrb.mxu0 %v6692_v32 }
 0xfbc   :  { %v7276_v62 = vmul.f32 -1.442695, %v6271_v44 }
 0xfbd   :  { %v6202_v12 = vpop.f32.mrf.mxu3 }
 0xfbe   :  { %7623 = vpow2.f32 %v7276_v62  ;;  %v6246_v33 = vrot.slane %v6202_v12, 4  ;;  %v6242_v52 = vpop.f32.mrf.mxu2  ;;  %v6687_v62 = vld [vmem:[%s14537_s12 + $0xf0] sm:$0xff]  ;;  %v6688_v12 = vld [vmem:[%s14537_s12 + $0xf8] sm:$0xff] }
 0xfbf   :  { %v6291_v23 = vadd.f32 %v14058_v48, %v6242_v52  ;;  %6713 = vmatpush.msrb.mxu1 %v6687_v62  ;;  %6733 = vmatpush.msra.mxu2 %v6688_v12  ;;  %v6679_v52 = vld [vmem:[%s14537_s12 + $0xb0] sm:$0xff] }
 0xfc0   :  { %v6248_v42 = vadd.f32 %v6246_v33, %v6131_v4  ;;  %v6689_v33 = vld [vmem:[%s14537_s12 + $0x100] sm:$0xff] }
 0xfc1   :  { %v6293_v30 = vrot.slane %v6291_v23, 4  ;;  %6753 = vmatpush.msrb.mxu0 %v6689_v33  ;;  %v6677_v23 = vld [vmem:[%s14537_s12 + $0xa0] sm:$0xff] }
 0xfc2   :  { %v7275_v22 = vmul.f32 -1.442695, %v6248_v42  ;;  %v6684_v42 = vld [vmem:[%s14537_s12 + $0xd8] sm:$0xff] }
 0xfc3   :  { %6714 = vmatpush.msrb.mxu1 %v6684_v42 }
 0xfc4   :  { %v7624_v9 = vpop.eup %7623  ;;  %7625 = vpow2.f32 %v7275_v22  ;;  %v6685_v22 = vld [vmem:[%s14537_s12 + $0xe0] sm:$0xff] }
 0xfc5   :  { %v6275_v7 = vadd.f32 1.0, %v7624_v9  ;;  %v6686_v9 = vld [vmem:[%s14537_s12 + $0xe8] sm:$0xff]  ;;  %6734 = vmatpush.msra.mxu2 %v6685_v22 }
 0xfc6   :  { %6754 = vmatpush.msrb.mxu0 %v6686_v9 }
 0xfc7   :  { %7627 = vrcp.f32 %v6275_v7  ;;  %v6287_v60 = vand.u32 2147483648, %v6275_v7  ;;  %vm6281_vm9 = vweird.f32 %v6275_v7  ;;  %v6285_v29 = vand.u32 2147483647, %v6275_v7 }
 0xfc9   :  { %v6288_v53 = vor.u32 1.1754944e-38, %v6287_v60  ;;  %vm6286_vm11 = vcmp.eq.f32.partialorder %v6285_v29, 8.507059e+37  ;;  %v6670_v60 = vld [vmem:[%s14537_s12 + $0x68] sm:$0xff] }
 0xfca   :  { %v7626_v46 = vpop.eup %7625  ;;  %v6666_v29 = vld [vmem:[%s14537_s12 + $0x48] sm:$0xff] }
 0xfcb   :  { %v6252_v54 = vadd.f32 1.0, %v7626_v46  ;;  %v6681_v46 = vld [vmem:[%s14537_s12 + $0xc0] sm:$0xff] }
 0xfcc   :  { %6715 = vmatpush.msrb.mxu1 %v6681_v46 }
 0xfcd   :  { %7629 = vrcp.f32 %v6252_v54  ;;  %v7628_v61 = vpop.eup %7627  ;;  %v6264_v56 = vand.u32 2147483648, %v6252_v54  ;;  %v6262_v41 = vand.u32 2147483647, %v6252_v54  ;;  %vm6258_vm4 = vweird.f32 %v6252_v54 }
 0xfce   :  { %v6277_v14 = vmul.f32 %v7628_v61, %v6275_v7  ;;  %vm6282_vm8 = vweird.f32 %v7628_v61 }
 0xfcf   :  { %v6265_v3 = vor.u32 1.1754944e-38, %v6264_v56  ;;  %vm6263_vm7 = vcmp.eq.f32.partialorder %v6262_v41, 8.507059e+37  ;;  %vm6283_vm10 = vmor %vm6281_vm9, %vm6282_vm8  ;;  %v6676_v41 = vld [vmem:[%s14537_s12 + $0x98] sm:$0xff] }
 0xfd0   :  { %v6278_v17 = vsub.f32 1.0, %v6277_v14  ;;  %v6683_v14 = vld [vmem:[%s14537_s12 + $0xd0] sm:$0xff] }
 0xfd1   :  { %6755 = vmatpush.msrb.mxu0 %v6683_v14  ;;  %v6475_v14 = vrot.slane %v14051_v34, 6  ;;  %v6861_v34 = vld [vmem:[%s14538_s13 + $0x150] sm:$0xff] }
 0xfd2   :  { %v6279_v2 = vmul.f32 %v7628_v61, %v6278_v17  ;;  %v6307_v17 = vld [vmem:[#allocation2 + $0x10] sm:$0xc0] }
 0xfd3   :  { %v7630_v1 = vpop.eup %7629 }
 0xfd4   :  { %v6254_v35 = vmul.f32 %v7630_v1, %v6252_v54  ;;  %vm6259_vm3 = vweird.f32 %v7630_v1  ;;  %v6280_v38 = vadd.f32 %v7628_v61, %v6279_v2 }
 0xfd5   :  { %vm6260_vm6 = vmor %vm6258_vm4, %vm6259_vm3 }
 0xfd6   :  { %v6255_v31 = vsub.f32 1.0, %v6254_v35  ;;  %v6284_v55 = vsel %vm6283_vm10, %v7628_v61, %v6280_v38  ;;  %v6682_v61 = vld [vmem:[%s14537_s12 + $0xc8] sm:$0xff] }
 0xfd7   :  { %v6289_v19 = vsel %vm6286_vm11, %v6288_v53, %v6284_v55  ;;  %v6678_v35 = vld [vmem:[%s14537_s12 + $0xa8] sm:$0xff]  ;;  %6735 = vmatpush.msra.mxu2 %v6682_v61  ;;  %v6663_v55 = vld [vmem:[%s14537_s12 + $0x30] sm:$0xff]  ;;  %v6664_v53 = vld [vmem:[%s14537_s12 + $0x38] sm:$0xff] }
 0xfd8   :  { %v6256_v49 = vmul.f32 %v7630_v1, %v6255_v31  ;;  %v6298_v57 = vsub.f32 1.0, %v6289_v19  ;;  %v6302_v39 = vmul.f32 %v6300_v36, %v6289_v19  ;;  %v6680_v31 = vld [vmem:[%s14537_s12 + $0xb8] sm:$0xff]  ;;  %6716 = vmatpush.msrb.mxu1 %v6678_v35  ;;  %v6665_v19 = vld [vmem:[%s14537_s12 + $0x40] sm:$0xff] }
 0xfd9   :  { %6736 = vmatpush.msra.mxu2 %v6679_v52  ;;  %6756 = vmatpush.msrb.mxu0 %v6680_v31  ;;  %v6660_v36 = vld [vmem:[%s14537_s12 + $0x18] sm:$0xff] }
 0xfda   :  { %v6257_v15 = vadd.f32 %v7630_v1, %v6256_v49  ;;  %v6675_v49 = vld [vmem:[%s14537_s12 + $0x90] sm:$0xff] }
 0xfdb   :  { %6717 = vmatpush.msrb.mxu1 %v6675_v49  ;;  %6737 = vmatpush.msra.mxu2 %v6676_v41  ;;  %v6858_v49 = vld [vmem:[%s14538_s13 + $0x138] sm:$0xff]  ;;  %v6855_v41 = vld [vmem:[%s14538_s13 + $0x120] sm:$0xff] }
 0xfdc   :  { %v6261_v6 = vsel %vm6260_vm6, %v7630_v1, %v6257_v15  ;;  %v6672_v15 = vld [vmem:[%s14537_s12 + $0x78] sm:$0xff]  ;;  %6757 = vmatpush.msrb.mxu0 %v6677_v23  ;;  %v6852_v23 = vld [vmem:[%s14538_s13 + $0x108] sm:$0xff] }
 0xfdd   :  { %v6266_v21 = vsel %vm6263_vm7, %v6265_v3, %v6261_v6  ;;  %v6673_v3 = vld [vmem:[%s14537_s12 + $0x80] sm:$0xff]  ;;  %v6674_v6 = vld [vmem:[%s14537_s12 + $0x88] sm:$0xff]  ;;  %6718 = vmatpush.msrb.mxu1 %v6672_v15  ;;  %v6846_v15 = vld [vmem:[%s14538_s13 + $0xd8] sm:$0xff] }
 0xfde   :  { %v6295_v13 = vmul.f32 %v6293_v30, %v6266_v21  ;;  %v6669_v21 = vld [vmem:[%s14537_s12 + $0x60] sm:$0xff]  ;;  %6738 = vmatpush.msra.mxu2 %v6673_v3  ;;  %6758 = vmatpush.msrb.mxu0 %v6674_v6  ;;  %v6840_v6 = vld [vmem:[%s14538_s13 + $0xa8] sm:$0xff] }
 0xfdf   :  { %6719 = vmatpush.msrb.mxu1 %v6669_v21  ;;  %v6843_v3 = vld [vmem:[%s14538_s13 + $0xc0] sm:$0xff]  ;;  %v6834_v21 = vld [vmem:[%s14538_s13 + $0x78] sm:$0xff] }
 0xfe0   :  { %v6296_v20 = vadd.f32 %v6295_v13, %v6133_v47  ;;  %v6671_v13 = vld [vmem:[%s14537_s12 + $0x70] sm:$0xff]  ;;  %6739 = vmatpush.msra.mxu2 %v6670_v60 }
 0xfe1   :  { %v6667_v47 = vld [vmem:[%s14537_s12 + $0x50] sm:$0xff]  ;;  %6759 = vmatpush.msrb.mxu0 %v6671_v13  ;;  %6720 = vmatpush.msrb.mxu1 %v6666_v29  ;;  %v6866_v13 = vld [vmem:[%s14538_s13 + $0x178] sm:$0xff]  ;;  %v6828_v29 = vld [vmem:[%s14538_s13 + $0x48] sm:$0xff] }
 0xfe2   :  { %7631 = vtanh.f32 %v6296_v20  ;;  %v6668_v20 = vld [vmem:[%s14537_s12 + $0x58] sm:$0xff]  ;;  %6740 = vmatpush.msra.mxu2 %v6667_v47  ;;  %v6865_v60 = vld [vmem:[%s14538_s13 + $0x170] sm:$0xff] }
 0xfe3   :  { %6760 = vmatpush.msrb.mxu0 %v6668_v20  ;;  %6721 = vmatpush.msrb.mxu1 %v6663_v55  ;;  %v6862_v20 = vld [vmem:[%s14538_s13 + $0x158] sm:$0xff]  ;;  %v6863_v55 = vld [vmem:[%s14538_s13 + $0x160] sm:$0xff] }
 0xfe4   :  { %6741 = vmatpush.msra.mxu2 %v6664_v53 }
 0xfe5   :  { %6761 = vmatpush.msrb.mxu0 %v6665_v19  ;;  %6722 = vmatpush.msrb.mxu1 %v6660_v36  ;;  %v6825_v19 = vld [vmem:[%s14538_s13 + $0x30] sm:$0xff]  ;;  %v6859_v36 = vld [vmem:[%s14538_s13 + $0x140] sm:$0xff] }
 0xfe8   :  { %v7632_v58 = vpop.eup %7631 }
 0xfe9   :  { %v6299_v63 = vmul.f32 %v7632_v58, %v6298_v57 }
 0xfeb   :  { %v14062_v37 = vadd.f32 %v6302_v39, %v6299_v63  ;;  %v6661_v63 = vld [vmem:[%s14537_s12 + $0x20] sm:$0xff]  ;;  %v6662_v39 = vld [vmem:[%s14537_s12 + $0x28] sm:$0xff] }
 0xfec   :  { %6742 = vmatpush.msra.mxu2 %v6661_v63  ;;  %6762 = vmatpush.msrb.mxu0 %v6662_v39  ;;  %v6822_v39 = vld [vmem:[%s14538_s13 + $0x18] sm:$0xff] }
 0xfed   :  { %6305 = vst [vmem:[#allocation5 + $0x20] sm:$0x30] %v14062_v37  ;;  %v6531_v50 = vrot.slane %v14062_v37, 4 }
 0xfee   :  { %6743 = vmatpush.msra.mxu2 %v6658_v59  ;;  %6763 = vmatpush.msrb.mxu0 %v6659_v43  ;;  %v6819_v43 = vld [vmem:[%s14538_s13] sm:$0xff] }
 0xfef   :  { %6549 = vmatmul.f32.vlgmr.msrb.gmra.mxu2 %v6531_v50  ;;  %6569 = vmatmul.f32.vlgmr.msra.gmra.mxu0 %v6531_v50 }
 0xff0   :  { %6589 = vmatmul.f32.vlgmr.msra.gmra.mxu3 %v6531_v50  ;;  %v6657_v50 = vld [vmem:[%s14537_s12] sm:$0xff]  ;;  %6910 = vmatpush.msrb.mxu2 %v6866_v13  ;;  %v6820_v13 = vld [vmem:[%s14538_s13 + $0x8] sm:$0xff] }
 0xff1   :  { %6723 = vmatpush.msrb.mxu1 %v6657_v50  ;;  %v6856_v50 = vld [vmem:[%s14538_s13 + $0x128] sm:$0xff] }
 0xff2   :  { %6911 = vmatpush.msrb.mxu2 %v6863_v55 }
 0xff3   :  { %6890 = vmatpush.msra.mxu1 %v6865_v60 }
 0xff5   :  { %6891 = vmatpush.msra.mxu1 %v6862_v20 }
 0xff6   :  { %v6377_v24 = vpop.f32.mrf.mxu0 }
 0xff7   :  { %v6421_v44 = vrot.slane %v6377_v24, 2  ;;  %v6417_v10 = vpop.f32.mrf.mxu1  ;;  %6892 = vmatpush.msra.mxu1 %v6859_v36 }
 0xff8   :  { %v6466_v0 = vadd.f32 %v14047_v45, %v6417_v10  ;;  %v6853_v10 = vld [vmem:[%s14538_s13 + $0x110] sm:$0xff] }
 0xff9   :  { %v6423_v4 = vadd.f32 %v6421_v44, %v6306_v26  ;;  %6893 = vmatpush.msra.mxu1 %v6856_v50 }
 0xffa   :  { %v6468_v32 = vrot.slane %v6466_v0, 2  ;;  %v6850_v0 = vld [vmem:[%s14538_s13 + $0xf8] sm:$0xff] }
 0xffb   :  { %v7277_v7 = vmul.f32 -1.442695, %v6423_v4  ;;  %v6308_v4 = vld [vmem:[#allocation2 + $0x38] sm:$0xc0]  ;;  %6894 = vmatpush.msra.mxu1 %v6853_v10 }
 0xffc   :  { %v6397_v54 = vpop.f32.mrf.mxu3 }
 0xffd   :  { %7633 = vpow2.f32 %v7277_v7  ;;  %v6444_v1 = vrot.slane %v6397_v54, 2  ;;  %6895 = vmatpush.msra.mxu1 %v6850_v0 }
 0xfff   :  { %v6446_v56 = vadd.f32 %v6444_v1, %v6307_v17 }
0x1001   :  { %v7278_v2 = vmul.f32 -1.442695, %v6446_v56  ;;  %v6864_v56 = vld [vmem:[%s14538_s13 + $0x168] sm:$0xff] }
0x1002   :  { %6870 = vmatpush.msrb.mxu3 %v6864_v56  ;;  %v6988_v56 = vld [vmem:[%s14542_s16 + $0x40] sm:$0xff] }
0x1003   :  { %v7634_v30 = vpop.eup %7633  ;;  %7635 = vpow2.f32 %v7278_v2  ;;  %v6849_v2 = vld [vmem:[%s14538_s13 + $0xf0] sm:$0xff] }
0x1004   :  { %v6427_v38 = vadd.f32 1.0, %v7634_v30  ;;  %6871 = vmatpush.msrb.mxu3 %v6861_v34  ;;  %v6837_v30 = vld [vmem:[%s14538_s13 + $0x90] sm:$0xff] }
0x1006   :  { %7637 = vrcp.f32 %v6427_v38  ;;  %v6439_v11 = vand.u32 2147483648, %v6427_v38  ;;  %v6437_v5 = vand.u32 2147483647, %v6427_v38  ;;  %vm6433_vm13 = vweird.f32 %v6427_v38  ;;  %6872 = vmatpush.msrb.mxu3 %v6858_v49  ;;  %v6829_v49 = vld [vmem:[%s14538_s13 + $0x50] sm:$0xff] }
0x1008   :  { %v6440_v51 = vor.u32 1.1754944e-38, %v6439_v11  ;;  %vm6438_vm15 = vcmp.eq.f32.partialorder %v6437_v5, 8.507059e+37  ;;  %6873 = vmatpush.msrb.mxu3 %v6855_v41  ;;  %v6995_v11 = vld [vmem:[%s14542_s16 + $0x78] sm:$0xff] }
0x1009   :  { %v7636_v57 = vpop.eup %7635  ;;  %v6830_v41 = vld [vmem:[%s14538_s13 + $0x58] sm:$0xff] }
0x100a   :  { %v6450_v58 = vadd.f32 1.0, %v7636_v57  ;;  %6874 = vmatpush.msrb.mxu3 %v6852_v23  ;;  %v6480_v57 = vld [vmem:[#allocation3 + $0x30] sm:$0xc]  ;;  %v6987_v23 = vld [vmem:[%s14542_s16 + $0x38] sm:$0xff] }
0x100c   :  { %v7638_v25 = vpop.eup %7637  ;;  %7639 = vrcp.f32 %v6450_v58  ;;  %v6462_v33 = vand.u32 2147483648, %v6450_v58  ;;  %v6460_v42 = vand.u32 2147483647, %v6450_v58  ;;  %vm6456_vm3 = vweird.f32 %v6450_v58  ;;  %6875 = vmatpush.msrb.mxu3 %v6849_v2  ;;  %v6826_v2 = vld [vmem:[%s14538_s13 + $0x38] sm:$0xff] }
0x100d   :  { %v6429_v16 = vmul.f32 %v7638_v25, %v6427_v38  ;;  %vm6434_vm12 = vweird.f32 %v7638_v25  ;;  %v6831_v38 = vld [vmem:[%s14538_s13 + $0x60] sm:$0xff] }
0x100e   :  { %vm6435_vm14 = vmor %vm6433_vm13, %vm6434_vm12  ;;  %v6463_v7 = vor.u32 1.1754944e-38, %v6462_v33  ;;  %vm6461_vm6 = vcmp.eq.f32.partialorder %v6460_v42, 8.507059e+37  ;;  %6876 = vmatpush.msrb.mxu3 %v6846_v15  ;;  %v6841_v42 = vld [vmem:[%s14538_s13 + $0xb0] sm:$0xff]  ;;  %v6827_v15 = vld [vmem:[%s14538_s13 + $0x40] sm:$0xff] }
0x100f   :  { %v6430_v8 = vsub.f32 1.0, %v6429_v16 }
0x1010   :  { %6877 = vmatpush.msrb.mxu3 %v6843_v3 }
0x1011   :  { %v6431_v28 = vmul.f32 %v7638_v25, %v6430_v8  ;;  %v6854_v8 = vld [vmem:[%s14538_s13 + $0x118] sm:$0xff] }
0x1012   :  { %v7640_v27 = vpop.eup %7639  ;;  %6878 = vmatpush.msrb.mxu3 %v6840_v6  ;;  %v6986_v6 = vld [vmem:[%s14542_s16 + $0x30] sm:$0xff] }
0x1013   :  { %v6432_v40 = vadd.f32 %v7638_v25, %v6431_v28  ;;  %v6452_v24 = vmul.f32 %v7640_v27, %v6450_v58  ;;  %vm6457_vm0 = vweird.f32 %v7640_v27  ;;  %v6860_v58 = vld [vmem:[%s14538_s13 + $0x148] sm:$0xff]  ;;  %v6479_v28 = vld [vmem:[#allocation3 + $0x18] sm:$0xc] }
0x1014   :  { %vm6458_vm4 = vmor %vm6456_vm3, %vm6457_vm0  ;;  %6879 = vmatpush.msrb.mxu3 %v6837_v30  ;;  %6912 = vmatpush.msrb.mxu2 %v6860_v58  ;;  %v6823_v30 = vld [vmem:[%s14538_s13 + $0x20] sm:$0xff] }
0x1015   :  { %v6436_v18 = vsel %vm6435_vm14, %v7638_v25, %v6432_v40  ;;  %v6453_v26 = vsub.f32 1.0, %v6452_v24  ;;  %v6857_v25 = vld [vmem:[%s14538_s13 + $0x130] sm:$0xff] }
0x1016   :  { %v6441_v44 = vsel %vm6438_vm15, %v6440_v51, %v6436_v18  ;;  %6880 = vmatpush.msrb.mxu3 %v6834_v21  ;;  %6913 = vmatpush.msrb.mxu2 %v6857_v25  ;;  %v6994_v40 = vld [vmem:[%s14542_s16 + $0x70] sm:$0xff]  ;;  %v6847_v51 = vld [vmem:[%s14538_s13 + $0xe0] sm:$0xff]  ;;  %v6848_v18 = vld [vmem:[%s14538_s13 + $0xe8] sm:$0xff] }
0x1017   :  { %v6470_v62 = vmul.f32 %v6468_v32, %v6441_v44  ;;  %v6454_v12 = vmul.f32 %v7640_v27, %v6453_v26  ;;  %v6993_v32 = vld [vmem:[%s14542_s16 + $0x68] sm:$0xff]  ;;  %6896 = vmatpush.msra.mxu1 %v6847_v51 }
0x1018   :  { %6881 = vmatpush.msrb.mxu3 %v6831_v38  ;;  %6914 = vmatpush.msrb.mxu2 %v6854_v8  ;;  %v6844_v44 = vld [vmem:[%s14538_s13 + $0xc8] sm:$0xff]  ;;  %v6980_v8 = vld [vmem:[%s14542_s16] sm:$0xff] }
0x1019   :  { %v6471_v22 = vadd.f32 %v6470_v62, %v6308_v4  ;;  %v6455_v9 = vadd.f32 %v7640_v27, %v6454_v12  ;;  %v6845_v62 = vld [vmem:[%s14538_s13 + $0xd0] sm:$0xff]  ;;  %v6992_v12 = vld [vmem:[%s14542_s16 + $0x60] sm:$0xff]  ;;  %6897 = vmatpush.msra.mxu1 %v6844_v44  ;;  %v6824_v21 = vld [vmem:[%s14538_s13 + $0x28] sm:$0xff] }
0x101a   :  { %6882 = vmatpush.msrb.mxu3 %v6828_v29  ;;  %v6985_v38 = vld [vmem:[%s14542_s16 + $0x28] sm:$0xff]  ;;  %v6821_v29 = vld [vmem:[%s14538_s13 + $0x10] sm:$0xff] }
0x101b   :  { %7641 = vtanh.f32 %v6471_v22  ;;  %v6459_v46 = vsel %vm6458_vm4, %v7640_v27, %v6455_v9  ;;  %v6851_v27 = vld [vmem:[%s14538_s13 + $0x100] sm:$0xff]  ;;  %v6842_v22 = vld [vmem:[%s14538_s13 + $0xb8] sm:$0xff]  ;;  %6898 = vmatpush.msra.mxu1 %v6841_v42 }
0x101c   :  { %v6464_v54 = vsel %vm6461_vm6, %v6463_v7, %v6459_v46  ;;  %6883 = vmatpush.msrb.mxu3 %v6825_v19  ;;  %6915 = vmatpush.msrb.mxu2 %v6851_v27  ;;  %v6991_v9 = vld [vmem:[%s14542_s16 + $0x58] sm:$0xff]  ;;  %v6839_v46 = vld [vmem:[%s14538_s13 + $0xa0] sm:$0xff] }
0x101d   :  { %v6473_v61 = vsub.f32 1.0, %v6464_v54  ;;  %v6477_v17 = vmul.f32 %v6475_v14, %v6464_v54  ;;  %v6838_v7 = vld [vmem:[%s14538_s13 + $0x98] sm:$0xff]  ;;  %v6990_v54 = vld [vmem:[%s14542_s16 + $0x50] sm:$0xff]  ;;  %v6836_v14 = vld [vmem:[%s14538_s13 + $0x88] sm:$0xff] }
0x101e   :  { %6884 = vmatpush.msrb.mxu3 %v6822_v39  ;;  %6916 = vmatpush.msrb.mxu2 %v6848_v18 }
0x101f   :  { %6899 = vmatpush.msra.mxu1 %v6838_v7 }
0x1020   :  { %6885 = vmatpush.msrb.mxu3 %v6819_v43  ;;  %6917 = vmatpush.msrb.mxu2 %v6845_v62  ;;  %v6981_v43 = vld [vmem:[%s14542_s16 + $0x8] sm:$0xff]  ;;  %v6648_v62 = vrot.slane %v14062_v37, 2 }
0x1021   :  { %v7642_v1 = vpop.eup %7641 }
0x1022   :  { %v6474_v35 = vmul.f32 %v7642_v1, %v6473_v61  ;;  %7054 = vmatpush.msra.mxu3 %v6995_v11  ;;  %6918 = vmatpush.msrb.mxu2 %v6842_v22  ;;  %v6835_v61 = vld [vmem:[%s14538_s13 + $0x80] sm:$0xff]  ;;  %v6989_v1 = vld [vmem:[%s14542_s16 + $0x48] sm:$0xff] }
0x1023   :  { %6900 = vmatpush.msra.mxu1 %v6835_v61  ;;  %v6655_v61 = vld [vmem:[#allocation2 + $0x70] sm:$0x3] }
0x1024   :  { %v6478_v52 = vadd.f32 %v6477_v17, %v6474_v35  ;;  %7055 = vmatpush.msra.mxu3 %v6994_v40  ;;  %6919 = vmatpush.msrb.mxu2 %v6839_v46  ;;  %v6832_v17 = vld [vmem:[%s14538_s13 + $0x68] sm:$0xff] }
0x1025   :  { %6901 = vmatpush.msra.mxu1 %v6832_v17 }
0x1026   :  { %6652 = vst [vmem:[#allocation4 + $0x20] sm:$0xc0] %v6478_v52  ;;  %v14212_v31 = vrot.slane %v6478_v52, 6  ;;  %7056 = vmatpush.msra.mxu3 %v6993_v32  ;;  %6920 = vmatpush.msrb.mxu2 %v6836_v14  ;;  %v6833_v52 = vld [vmem:[%s14538_s13 + $0x70] sm:$0xff]  ;;  %v7012_v14 = vld [vmem:[#allocation4 + $0x8] sm:$0xff] }
0x1027   :  { %6902 = vmatpush.msra.mxu1 %v6829_v49 }
0x1028   :  { %6724 = vmatmul.f32.vlgmr.msrb.gmra.mxu1 %v14212_v31  ;;  %6744 = vmatmul.f32.vlgmr.msra.gmra.mxu2 %v14212_v31 }
0x1029   :  { %6764 = vmatmul.f32.vlgmr.msrb.gmra.mxu0 %v14212_v31  ;;  %7057 = vmatpush.msra.mxu3 %v6992_v12 }
0x102a   :  { %6921 = vmatpush.msrb.mxu2 %v6833_v52  ;;  %6903 = vmatpush.msra.mxu1 %v6826_v2  ;;  %v7014_v2 = vld [vmem:[#allocation4 + $0x18] sm:$0xff] }
0x102b   :  { %7058 = vmatpush.msra.mxu3 %v6991_v9 }
0x102c   :  { %6922 = vmatpush.msrb.mxu2 %v6830_v41  ;;  %6904 = vmatpush.msra.mxu1 %v6823_v30 }
0x102d   :  { %7059 = vmatpush.msra.mxu3 %v6990_v54 }
0x102e   :  { %6923 = vmatpush.msrb.mxu2 %v6827_v15  ;;  %6905 = vmatpush.msra.mxu1 %v6820_v13 }
0x102f   :  { %7060 = vmatpush.msra.mxu3 %v6989_v1 }
0x1030   :  { %6924 = vmatpush.msrb.mxu2 %v6824_v21 }
0x1031   :  { %7061 = vmatpush.msra.mxu3 %v6988_v56  ;;  %v7013_v56 = vld [vmem:[#allocation4] sm:$0xff] }
0x1032   :  { %6925 = vmatpush.msrb.mxu2 %v6821_v29 }
0x1033   :  { %7062 = vmatpush.msra.mxu3 %v6987_v23 }
0x1035   :  { %7063 = vmatpush.msra.mxu3 %v6986_v6 }
0x1037   :  { %7064 = vmatpush.msra.mxu3 %v6985_v38 }
0x106c   :  { %v6570_v47 = vpop.f32.mrf.mxu0 }
0x106d   :  { %v6617_v53 = vrot.slane %v6570_v47, 6  ;;  %v6984_v47 = vld [vmem:[%s14542_s16 + $0x20] sm:$0xff] }
0x106e   :  { %7065 = vmatpush.msra.mxu3 %v6984_v47 }
0x106f   :  { %v6619_v63 = vadd.f32 %v6617_v53, %v6480_v57  ;;  %v6983_v57 = vld [vmem:[%s14542_s16 + $0x18] sm:$0xff] }
0x1070   :  { %7066 = vmatpush.msra.mxu3 %v6983_v57 }
0x1071   :  { %v7280_v59 = vmul.f32 -1.442695, %v6619_v63  ;;  %v6982_v63 = vld [vmem:[%s14542_s16 + $0x10] sm:$0xff] }
0x1072   :  { %v6550_v16 = vpop.f32.mrf.mxu2  ;;  %7067 = vmatpush.msra.mxu3 %v6982_v63  ;;  %v6656_v63 = vld [vmem:[#allocation2 + $0x28] sm:$0x3] }
0x1073   :  { %7643 = vpow2.f32 %v7280_v59  ;;  %v6594_v5 = vrot.slane %v6550_v16, 6  ;;  %v6590_v19 = vpop.f32.mrf.mxu3 }
0x1074   :  { %v6639_v25 = vadd.f32 %v14058_v48, %v6590_v19  ;;  %7068 = vmatpush.msra.mxu3 %v6981_v43  ;;  %v7015_v19 = vld [vmem:[#allocation4 + $0x20] sm:$0xff] }
0x1075   :  { %v6596_v24 = vadd.f32 %v6594_v5, %v6479_v28 }
0x1076   :  { %v6641_v28 = vrot.slane %v6639_v25, 6  ;;  %7069 = vmatpush.msra.mxu3 %v6980_v8 }
0x1077   :  { %v7279_v26 = vmul.f32 -1.442695, %v6596_v24  ;;  %v6481_v24 = vld [vmem:[#allocation3 + $0x70] sm:$0xc] }
0x1079   :  { %v7644_v33 = vpop.eup %7643  ;;  %7645 = vpow2.f32 %v7279_v26 }
0x107a   :  { %v14325_v4 = vadd.f32 1.0, %v7644_v33 }
0x107c   :  { %7647 = vrcp.f32 %v14325_v4  ;;  %v6635_v0 = vand.u32 2147483648, %v14325_v4  ;;  %vm6629_vm12 = vweird.f32 %v14325_v4  ;;  %v6633_v40 = vand.u32 2147483647, %v14325_v4 }
0x107e   :  { %v6636_v32 = vor.u32 1.1754944e-38, %v6635_v0  ;;  %vm6634_vm14 = vcmp.eq.f32.partialorder %v6633_v40, 8.507059e+37  ;;  %v7011_v40 = vld [vmem:[%s14542_s16 + $0xf8] sm:$0xff] }
0x107f   :  { %v7646_v35 = vpop.eup %7645  ;;  %7022 = vmatpush.msra.mxu0 %v7011_v40 }
0x1080   :  { %v6600_v34 = vadd.f32 1.0, %v7646_v35 }
0x1082   :  { %7649 = vrcp.f32 %v6600_v34  ;;  %v14379_v3 = vpop.eup %7647  ;;  %v6612_v58 = vand.u32 2147483648, %v6600_v34  ;;  %v6610_v50 = vand.u32 2147483647, %v6600_v34  ;;  %vm6606_vm8 = vweird.f32 %v6600_v34 }
0x1083   :  { %v6625_v60 = vmul.f32 %v14379_v3, %v14325_v4  ;;  %vm6630_vm11 = vweird.f32 %v14379_v3  ;;  %v6654_v4 = vld [vmem:[#allocation2 + $0x60] sm:$0x3] }
0x1084   :  { %v6613_v10 = vor.u32 1.1754944e-38, %v6612_v58  ;;  %vm6611_vm10 = vcmp.eq.f32.partialorder %v6610_v50, 8.507059e+37  ;;  %vm6631_vm13 = vmor %vm6629_vm12, %vm6630_vm11 }
0x1085   :  { %v6626_v53 = vsub.f32 1.0, %v6625_v60 }
0x1087   :  { %v6627_v59 = vmul.f32 %v14379_v3, %v6626_v53 }
0x1088   :  { %v7650_v20 = vpop.eup %7649 }
0x1089   :  { %v6602_v55 = vmul.f32 %v7650_v20, %v6600_v34  ;;  %vm6607_vm7 = vweird.f32 %v7650_v20  ;;  %v6628_v5 = vadd.f32 %v14379_v3, %v6627_v59 }
0x108a   :  { %vm6608_vm9 = vmor %vm6606_vm8, %vm6607_vm7 }
0x108b   :  { %v6603_v36 = vsub.f32 1.0, %v6602_v55  ;;  %v6632_v18 = vsel %vm6631_vm13, %v14379_v3, %v6628_v5  ;;  %v6817_v5 = vld [vmem:[#allocation3 + $0x30] sm:$0x3] }
0x108c   :  { %v6637_v26 = vsel %vm6634_vm14, %v6636_v32, %v6632_v18  ;;  %v7009_v32 = vld [vmem:[%s14542_s16 + $0xe8] sm:$0xff] }
0x108d   :  { %v6604_v39 = vmul.f32 %v7650_v20, %v6603_v36  ;;  %v6646_v44 = vsub.f32 1.0, %v6637_v26  ;;  %v6650_v42 = vmul.f32 %v6648_v62, %v6637_v26 }
0x108f   :  { %v6605_v16 = vadd.f32 %v7650_v20, %v6604_v39 }
0x1091   :  { %v6609_v11 = vsel %vm6608_vm9, %v7650_v20, %v6605_v16 }
0x1092   :  { %v6614_v48 = vsel %vm6611_vm10, %v6613_v10, %v6609_v11 }
0x1093   :  { %v6643_v27 = vmul.f32 %v6641_v28, %v6614_v48 }
0x1095   :  { %v6644_v51 = vadd.f32 %v6643_v27, %v6481_v24 }
0x1097   :  { %7651 = vtanh.f32 %v6644_v51  ;;  %v7010_v51 = vld [vmem:[%s14542_s16 + $0xf0] sm:$0xff] }
0x1098   :  { %7023 = vmatpush.msra.mxu0 %v7010_v51 }
0x109a   :  { %7024 = vmatpush.msra.mxu0 %v7009_v32 }
0x109d   :  { %v7652_v12 = vpop.eup %7651 }
0x109e   :  { %v6647_v33 = vmul.f32 %v7652_v12, %v6646_v44  ;;  %v7008_v44 = vld [vmem:[%s14542_s16 + $0xe0] sm:$0xff]  ;;  %v7007_v12 = vld [vmem:[%s14542_s16 + $0xd8] sm:$0xff] }
0x109f   :  { %7025 = vmatpush.msra.mxu0 %v7008_v44  ;;  %v7312_v44 = vld [vmem:[%s14543_s17] ss:$0 sm:$0xff] }
0x10a0   :  { %v6651_v22 = vadd.f32 %v6650_v42, %v6647_v33 }
0x10a1   :  { %7026 = vmatpush.msra.mxu0 %v7007_v12 }
0x10a2   :  { %6653 = vst [vmem:[#allocation5 + $0x20] sm:$0xc] %v6651_v22  ;;  %v14425_v9 = vrot.slane %v6651_v22, 2  ;;  %v7006_v22 = vld [vmem:[%s14542_s16 + $0xd0] sm:$0xff] }
0x10a3   :  { %7027 = vmatpush.msra.mxu0 %v7006_v22 }
0x10a4   :  { %6886 = vmatmul.f32.vlgmr.msrb.gmra.mxu3 %v14425_v9  ;;  %6906 = vmatmul.f32.vlgmr.msra.gmra.mxu1 %v14425_v9 }
0x10a5   :  { %6926 = vmatmul.f32.vlgmr.msrb.gmra.mxu2 %v14425_v9  ;;  %v6725_v7 = vpop.f32.mrf.mxu1 }
0x10a6   :  { %v6768_v46 = vadd.f32 %v6725_v7, %v6654_v4  ;;  %v6765_v38 = vpop.f32.mrf.mxu0  ;;  %v7005_v4 = vld [vmem:[%s14542_s16 + $0xc8] sm:$0xff]  ;;  %v7004_v7 = vld [vmem:[%s14542_s16 + $0xc0] sm:$0xff] }
0x10a7   :  { %v6808_v20 = vadd.f32 %v14047_v45, %v6765_v38  ;;  %7028 = vmatpush.msra.mxu0 %v7005_v4 }
0x10a8   :  { %v7281_v54 = vmul.f32 -1.442695, %v6768_v46 }
0x10a9   :  { %7029 = vmatpush.msra.mxu0 %v7004_v7 }
0x10aa   :  { %7653 = vpow2.f32 %v7281_v54 }
0x10ab   :  { %v6745_v37 = vpop.f32.mrf.mxu2 }
0x10ac   :  { %v6788_v1 = vadd.f32 %v6745_v37, %v6655_v61  ;;  %7070 = vmatmul.f32.vlgmr.msra.gmra.mxu3 %v7012_v14  ;;  %v7003_v61 = vld [vmem:[%s14542_s16 + $0xb8] sm:$0xff]  ;;  %v7002_v37 = vld [vmem:[%s14542_s16 + $0xb0] sm:$0xff]  ;;  %v7001_v14 = vld [vmem:[%s14542_s16 + $0xa8] sm:$0xff] }
0x10ad   :  { %7030 = vmatpush.msra.mxu0 %v7003_v61 }
0x10ae   :  { %v7282_v35 = vmul.f32 -1.442695, %v6788_v1 }
0x10af   :  { %7031 = vmatpush.msra.mxu0 %v7002_v37  ;;  %v7095_v37 = vld [vmem:[%s14544_s9] sm:$0xff] }
0x10b0   :  { %v7654_v17 = vpop.eup %7653  ;;  %7655 = vpow2.f32 %v7282_v35  ;;  %v7000_v35 = vld [vmem:[%s14542_s16 + $0xa0] sm:$0xff] }
0x10b1   :  { %v6772_v52 = vadd.f32 1.0, %v7654_v17  ;;  %7032 = vmatpush.msra.mxu0 %v7001_v14  ;;  %v7096_v14 = vld [vmem:[%s14544_s9 + $0x8] sm:$0xff] }
0x10b3   :  { %7657 = vrcp.f32 %v6772_v52  ;;  %v6784_v3 = vand.u32 2147483648, %v6772_v52  ;;  %v6782_v30 = vand.u32 2147483647, %v6772_v52  ;;  %vm6778_vm0 = vweird.f32 %v6772_v52  ;;  %7033 = vmatpush.msra.mxu0 %v7000_v35  ;;  %v7098_v35 = vld [vmem:[%s14544_s9 + $0x18] sm:$0xff] }
0x10b4   :  { %7073 = vmatmul.f32.gmra.mxu3 %v7013_v56 }
0x10b5   :  { %v6785_v29 = vor.u32 1.1754944e-38, %v6784_v3  ;;  %vm6783_vm4 = vcmp.eq.f32.partialorder %v6782_v30, 8.507059e+37  ;;  %v6996_v3 = vld [vmem:[%s14542_s16 + $0x80] sm:$0xff] }
0x10b6   :  { %v7656_v34 = vpop.eup %7655 }
0x10b7   :  { %v6792_v49 = vadd.f32 1.0, %v7656_v34  ;;  %v6998_v34 = vld [vmem:[%s14542_s16 + $0x90] sm:$0xff] }
0x10b9   :  { %v7658_v41 = vpop.eup %7657  ;;  %7659 = vrcp.f32 %v6792_v49  ;;  %v6804_v58 = vand.u32 2147483648, %v6792_v49  ;;  %v6802_v39 = vand.u32 2147483647, %v6792_v49  ;;  %vm6798_vm7 = vweird.f32 %v6792_v49 }
0x10ba   :  { %v6774_v23 = vmul.f32 %v7658_v41, %v6772_v52  ;;  %vm6779_vm15 = vweird.f32 %v7658_v41  ;;  %v6999_v52 = vld [vmem:[%s14542_s16 + $0x98] sm:$0xff] }
0x10bb   :  { %vm6780_vm3 = vmor %vm6778_vm0, %vm6779_vm15  ;;  %v6805_v43 = vor.u32 1.1754944e-38, %v6804_v58  ;;  %vm6803_vm9 = vcmp.eq.f32.partialorder %v6802_v39, 8.507059e+37  ;;  %7034 = vmatpush.msra.mxu0 %v6999_v52  ;;  %v6818_v58 = vld [vmem:[#allocation3 + $0x70] sm:$0x3] }
0x10bc   :  { %v6775_v15 = vsub.f32 1.0, %v6774_v23  ;;  %7076 = vmatmul.f32.gmra.mxu3 %v7014_v2  ;;  %v6997_v23 = vld [vmem:[%s14542_s16 + $0x88] sm:$0xff] }
0x10bd   :  { %7035 = vmatpush.msra.mxu0 %v6998_v34 }
0x10be   :  { %v6776_v6 = vmul.f32 %v7658_v41, %v6775_v15 }
0x10bf   :  { %v7660_v21 = vpop.eup %7659  ;;  %7036 = vmatpush.msra.mxu0 %v6997_v23 }
0x10c0   :  { %v6777_v60 = vadd.f32 %v7658_v41, %v6776_v6  ;;  %v6794_v13 = vmul.f32 %v7660_v21, %v6792_v49  ;;  %vm6799_vm6 = vweird.f32 %v7660_v21 }
0x10c1   :  { %vm6800_vm8 = vmor %vm6798_vm7, %vm6799_vm6  ;;  %7037 = vmatpush.msra.mxu0 %v6996_v3 }
0x10c2   :  { %v6781_v47 = vsel %vm6780_vm3, %v7658_v41, %v6777_v60  ;;  %v6795_v55 = vsub.f32 1.0, %v6794_v13 }
0x10c3   :  { %v6786_v53 = vsel %vm6783_vm4, %v6785_v29, %v6781_v47  ;;  %v7687_v47 = vld [vmem:[%s14540_s15] ss:$0 sm:$0xff] }
0x10c4   :  { %v6809_v57 = vmul.f32 %v6808_v20, %v6786_v53  ;;  %v6796_v36 = vmul.f32 %v7660_v21, %v6795_v55  ;;  %7079 = vmatmul.f32.gmra.mxu3 %v7015_v19 }
0x10c6   :  { %v6810_v50 = vadd.f32 %v6809_v57, %v6656_v63  ;;  %v6797_v25 = vadd.f32 %v7660_v21, %v6796_v36 }
0x10c8   :  { %7661 = vtanh.f32 %v6810_v50  ;;  %v6801_v59 = vsel %vm6800_vm8, %v7660_v21, %v6797_v25 }
0x10c9   :  { %v6806_v16 = vsel %vm6803_vm9, %v6805_v43, %v6801_v59 }
0x10ca   :  { %v6812_v45 = vsub.f32 1.0, %v6806_v16  ;;  %v6814_v11 = vmul.f32 %v6806_v16, %v14212_v31  ;;  %v6816_v31 = vld [vmem:[#allocation3 + $0x18] sm:$0x3] }
0x10ce   :  { %v7662_v10 = vpop.eup %7661 }
0x10cf   :  { %v6813_v8 = vmul.f32 %v7662_v10, %v6812_v45 }
0x10d1   :  { %v6815_v28 = vadd.f32 %v6814_v11, %v6813_v8  ;;  %v7018_v11 = vld [vmem:[#allocation5 + $0x10] sm:$0xff] }
0x10d3   :  { %6978 = vst [vmem:[#allocation4 + $0x10] sm:$0x3] %v6815_v28  ;;  %v7019_v28 = vld [vmem:[#allocation5] sm:$0xff] }
0x10da   :  { %v7016_v48 = vld [vmem:[#allocation4 + $0x10] sm:$0x3] }
0x10db   :  { %7082 = vmatmul.f32.gmra.mxu3 %v7016_v48  ;;  %v7020_v48 = vld [vmem:[#allocation5 + $0x18] sm:$0xff] }
0x1121   :  { %v6907_v0 = vpop.f32.mrf.mxu1 }
0x1122   :  { %v6950_v27 = vadd.f32 %v6907_v0, %v6817_v5  ;;  %v7021_v5 = vld [vmem:[#allocation5 + $0x8] sm:$0x3] }
0x1124   :  { %v7284_v24 = vmul.f32 -1.442695, %v6950_v27 }
0x1126   :  { %7663 = vpow2.f32 %v7284_v24 }
0x1127   :  { %v6887_v18 = vpop.f32.mrf.mxu3 }
0x1128   :  { %v6930_v26 = vadd.f32 %v6887_v18, %v6816_v31  ;;  %v6927_v38 = vpop.f32.mrf.mxu2 }
0x1129   :  { %v6970_v20 = vadd.f32 %v7687_v47, %v6927_v38 }
0x112a   :  { %v7283_v62 = vmul.f32 -1.442695, %v6930_v26 }
0x112c   :  { %v7664_v33 = vpop.eup %7663  ;;  %7665 = vpow2.f32 %v7283_v62 }
0x112d   :  { %v6954_v42 = vadd.f32 1.0, %v7664_v33 }
0x112f   :  { %7667 = vrcp.f32 %v6954_v42  ;;  %v6966_v19 = vand.u32 2147483648, %v6954_v42  ;;  %vm6960_vm15 = vweird.f32 %v6954_v42  ;;  %v6964_v36 = vand.u32 2147483647, %v6954_v42  ;;  %v7071_v0 = vpop.f32.mrf.mxu3 }
0x1131   :  { %v6967_v50 = vor.u32 1.1754944e-38, %v6966_v19  ;;  %vm6965_vm3 = vcmp.eq.f32.partialorder %v6964_v36, 8.507059e+37 }
0x1132   :  { %v7666_v46 = vpop.eup %7665 }
0x1133   :  { %v6934_v54 = vadd.f32 1.0, %v7666_v46 }
0x1135   :  { %7669 = vrcp.f32 %v6934_v54  ;;  %v7668_v1 = vpop.eup %7667  ;;  %v6946_v15 = vand.u32 2147483648, %v6934_v54  ;;  %v6944_v30 = vand.u32 2147483647, %v6934_v54  ;;  %vm6940_vm11 = vweird.f32 %v6934_v54 }
0x1136   :  { %v6956_v17 = vmul.f32 %v7668_v1, %v6954_v42  ;;  %vm6961_vm14 = vweird.f32 %v7668_v1 }
0x1137   :  { %v6947_v13 = vor.u32 1.1754944e-38, %v6946_v15  ;;  %vm6945_vm13 = vcmp.eq.f32.partialorder %v6944_v30, 8.507059e+37  ;;  %vm6962_vm0 = vmor %vm6960_vm15, %vm6961_vm14  ;;  %v7074_v40 = vpop.f32.mrf.mxu3 }
0x1138   :  { %v6957_v41 = vsub.f32 1.0, %v6956_v17  ;;  %v7099_v17 = vld [vmem:[%s14544_s9 + $0x20] sm:$0x3] }
0x113a   :  { %v6958_v21 = vmul.f32 %v7668_v1, %v6957_v41 }
0x113b   :  { %v7670_v56 = vpop.eup %7669 }
0x113c   :  { %v6936_v49 = vmul.f32 %v7670_v56, %v6934_v54  ;;  %vm6941_vm10 = vweird.f32 %v7670_v56  ;;  %v6959_v55 = vadd.f32 %v7668_v1, %v6958_v21 }
0x113d   :  { %vm6942_vm12 = vmor %vm6940_vm11, %vm6941_vm10 }
0x113e   :  { %v6937_v2 = vsub.f32 1.0, %v6936_v49  ;;  %v6963_v39 = vsel %vm6962_vm0, %v7668_v1, %v6959_v55  ;;  %v7097_v1 = vld [vmem:[%s14544_s9 + $0x10] sm:$0xff] }
0x113f   :  { %v6968_v25 = vsel %vm6965_vm3, %v6967_v50, %v6963_v39  ;;  %v7077_v51 = vpop.f32.mrf.mxu3 }
0x1140   :  { %v6938_v6 = vmul.f32 %v7670_v56, %v6937_v2  ;;  %v6974_v59 = vsub.f32 1.0, %v6968_v25  ;;  %v6976_v45 = vmul.f32 %v6968_v25, %v14425_v9 }
0x1142   :  { %v6939_v60 = vadd.f32 %v7670_v56, %v6938_v6 }
0x1144   :  { %v6943_v29 = vsel %vm6942_vm12, %v7670_v56, %v6939_v60 }
0x1145   :  { %v6948_v53 = vsel %vm6945_vm13, %v6947_v13, %v6943_v29 }
0x1146   :  { %v6971_v57 = vmul.f32 %v6970_v20, %v6948_v53 }
0x1147   :  { %v7080_v18 = vpop.f32.mrf.mxu3 }
0x1148   :  { %v6972_v63 = vadd.f32 %v6971_v57, %v6818_v58 }
0x114a   :  { %7671 = vtanh.f32 %v6972_v63 }
0x1150   :  { %v7672_v43 = vpop.eup %7671 }
0x1151   :  { %v6975_v16 = vmul.f32 %v7672_v43, %v6974_v59 }
0x1153   :  { %v6977_v10 = vadd.f32 %v6976_v45, %v6975_v16 }
0x1155   :  { %6979 = vst [vmem:[#allocation5 + $0x20] sm:$0x3] %v6977_v10 }
0x115c   :  { %v7017_v8 = vld [vmem:[#allocation5 + $0x20] sm:$0xff] }
0x115d   :  { %7038 = vmatmul.f32.vlgmr.msra.gmra.mxu0 %v7017_v8 }
0x115e   :  { %v7083_v32 = vpop.f32.mrf.mxu3 }
0x1165   :  { %7041 = vmatmul.f32.gmra.mxu0 %v7018_v11 }
0x116d   :  { %7044 = vmatmul.f32.gmra.mxu0 %v7019_v28 }
0x1175   :  { %7047 = vmatmul.f32.gmra.mxu0 %v7020_v48 }
0x117d   :  { %7050 = vmatmul.f32.gmra.mxu0 %v7021_v5 }
0x11da   :  { %v7039_v27 = vpop.f32.mrf.mxu0 }
0x11db   :  { %v7072_v7 = vadd.f32 %v7071_v0, %v7039_v27 }
0x11dd   :  { %v7090_v61 = vadd.f32 %v7312_v44, %v7072_v7 }
0x11e2   :  { %v7042_v24 = vpop.f32.mrf.mxu0 }
0x11e3   :  { %v7075_v22 = vadd.f32 %v7074_v40, %v7042_v24 }
0x11e5   :  { %v7091_v54 = vadd.f32 %v7312_v44, %v7075_v22 }
0x11ea   :  { %v7045_v31 = vpop.f32.mrf.mxu0 }
0x11eb   :  { %v7078_v33 = vadd.f32 %v7077_v51, %v7045_v31 }
0x11ed   :  { %v7092_v46 = vadd.f32 %v7312_v44, %v7078_v33 }
0x11f2   :  { %v7048_v9 = vpop.f32.mrf.mxu0 }
0x11f3   :  { %v7081_v62 = vadd.f32 %v7080_v18, %v7048_v9 }
0x11f5   :  { %v7093_v4 = vadd.f32 %v7312_v44, %v7081_v62 }
0x11fa   :  { %v7051_v26 = vpop.f32.mrf.mxu0 }
0x11fb   :  { %v7084_v12 = vadd.f32 %v7083_v32, %v7051_v26 }
0x11fd   :  { %v7094_v42 = vadd.f32 %v7312_v44, %v7084_v12 }
0x11ff   :  { %7285 = vmatpush.msk.msrb.mxu1 %vm651_vm1, %v7094_v42  ;;  %vm7154_vm1 = vcmask 123904  }
0x1201   :  { %7130 = vmatpush.msrb.mxu1 %v7093_v4 }
0x1203   :  { %7131 = vmatpush.msrb.mxu1 %v7092_v46 }
0x1205   :  { %7132 = vmatpush.msrb.mxu1 %v7091_v54 }
0x1207   :  { %7133 = vmatpush.msrb.mxu1 %v7090_v61 }
0x1208   :  { %7286 = vmatmul.msk.f32.vlgmr.msrb.gmra.mxu1 %vm647_vm2, %v7095_v37 }
0x1210   :  { %7287 = vmatmul.msk.f32.gmra.mxu1 %vm647_vm2, %v7096_v14 }
0x1218   :  { %7288 = vmatmul.msk.f32.gmra.mxu1 %vm647_vm2, %v7097_v1 }
0x1220   :  { %7289 = vmatmul.msk.f32.gmra.mxu1 %vm647_vm2, %v7098_v35 }
0x1228   :  { %7290 = vmatmul.msk.f32.gmra.mxu1 %vm647_vm2, %v7099_v17 }
0x1285   :  { %v7135_v52 = vpop.f32.mrf.mxu1 }
0x1286   :  { %7150 = vst.msk [vmem:[%s14545_s18] sm:$0xff] %vm950_vm5, %v7135_v52 }
0x128d   :  { %v7138_v56 = vpop.f32.mrf.mxu1 }
0x128e   :  { %7151 = vst.msk [vmem:[%s14545_s18 + $0x8] sm:$0xff] %vm950_vm5, %v7138_v56 }
0x1295   :  { %v7141_v34 = vpop.f32.mrf.mxu1 }
0x1296   :  { %7152 = vst.msk [vmem:[%s14545_s18 + $0x10] sm:$0xff] %vm950_vm5, %v7141_v34 }
0x129d   :  { %v7144_v49 = vpop.f32.mrf.mxu1 }
0x129e   :  { %7153 = vst.msk [vmem:[%s14545_s18 + $0x18] sm:$0xff] %vm950_vm5, %v7144_v49 }
0x12a5   :  { %v7147_v41 = vpop.f32.mrf.mxu1 }
0x12a6   :  { %7155 = vst.msk [vmem:[%s14545_s18 + $0x20] sm:$0x3] %vm7154_vm1, %v7147_v41 }

</bundles_post_ra>
